<compile_context>
chip_gen: v5e
topology: v5e:2x2
jax: 0.10.0
libtpu: 0.0.40
codegen_flags: <defaults>
</compile_context>

<pallas_src>
import jax
import jax.numpy as jnp
from jax.experimental import pallas as pl
from jax.experimental.pallas import tpu as pltpu


# ------------------------------------------------------------------ kernel ---
def lstm_recurrence_kernel(gx_ref, w_hh_ref, h_ref, c_sc):
    """One grid step == one (batch_tile, time_chunk).

    gx_ref : (B_TILE, T_CHUNK, 4H) f32  precomputed x_t @ W_ih^T + b (batch-first)
    w_hh_ref: (H, 4H) bf16              recurrent weight (pre-transposed)
    h_ref  : (B_TILE, H) f32            resident output block == h state
    c_sc   : (B_TILE, H) f32            VMEM scratch == c state
    Gate order matches PyTorch nn.LSTM: i, f, g, o.
    """
    t_idx = pl.program_id(1)

    @pl.when(t_idx == 0)                      # new batch tile -> reset state
    def _init():
        h_ref[...] = jnp.zeros_like(h_ref)
        c_sc[...] = jnp.zeros_like(c_sc)

    H = w_hh_ref.shape[0]
    t_chunk = gx_ref.shape[1]

    w_hh = w_hh_ref[...]                      # load once per grid step (bf16)
    h = h_ref[...]                            # f32 carries live in vregs
    c = c_sc[...]

    # Fully-unrolled inner time loop (static indices -> clean static slices,
    # full visibility for the LLO scheduler).
    for i in range(t_chunk):
        gates = gx_ref[:, i, :] + jnp.dot(
            h.astype(w_hh.dtype), w_hh, preferred_element_type=jnp.float32)
        ig = jax.nn.sigmoid(gates[:, 0 * H:1 * H])
        fg = jax.nn.sigmoid(gates[:, 1 * H:2 * H])
        gg = jnp.tanh(gates[:, 2 * H:3 * H])
        og = jax.nn.sigmoid(gates[:, 3 * H:4 * H])
        c = fg * c + ig * gg
        h = og * jnp.tanh(c)

    h_ref[...] = h                            # resident across the time axis
    c_sc[...] = c


# ----------------------------------------------------------------- wrapper ---
def ph_lstm_forward(x, params, *, t_chunk=None, b_tile=None):
    """x: (B, T, D) batch-first (PyTorch convention). Returns (B, output_dim)."""
    w_ih, w_hh, b_ih, b_hh, w_fc, b_fc = params
    B, T, D = x.shape
    H = w_hh.shape[1]
    G = 4 * H

    t_chunk = T if t_chunk is None else t_chunk
    b_tile = B if b_tile is None else b_tile
    assert T % t_chunk == 0 and B % b_tile == 0
    assert (t_chunk == T) or (t_chunk % 8 == 0)     # (8,128) block rule
    assert (b_tile == B) or (b_tile % 8 == 0)

    # --- hoisted input projection: one big matmul over all timesteps (XLA) ---
    x_bf16 = x.astype(jnp.bfloat16)
    w_ih_t = w_ih.T.astype(jnp.bfloat16)                       # (D, 4H)
    bias = (b_ih + b_hh).astype(jnp.float32)                   # (4H,)
    gx = (jnp.dot(x_bf16.reshape(B * T, D), w_ih_t,
                  preferred_element_type=jnp.float32)
          .reshape(B, T, G) + bias)                            # (B, T, 4H) f32

    w_hh_t = w_hh.T.astype(jnp.bfloat16)                       # (H, 4H)

    h_last = pl.pallas_call(
        lstm_recurrence_kernel,
        out_shape=jax.ShapeDtypeStruct((B, H), jnp.float32),
        grid_spec=pltpu.PrefetchScalarGridSpec(
            num_scalar_prefetch=0,
            grid=(B // b_tile, T // t_chunk),          # (parallel, sequential)
            in_specs=[
                # gx stays batch-first; strided block DMA handles the layout.
                pl.BlockSpec((b_tile, t_chunk, G), lambda b, t: (b, t, 0)),
                # Constant-index resident recurrent weight (tiny: H x 4H bf16).
                pl.BlockSpec((H, G), lambda b, t: (0, 0)),
            ],
            out_specs=pl.BlockSpec((b_tile, H), lambda b, t: (b, 0)),
            scratch_shapes=[pltpu.VMEM((b_tile, H), jnp.float32)],  # c state
        ),
        compiler_params=pltpu.CompilerParams(
            dimension_semantics=("parallel", "arbitrary"),
            vmem_limit_bytes=32 * 1024 * 1024),
    )(gx, w_hh_t)

    # --- final FC on the last hidden state: one-shot matmul, leave to XLA ---
    return jnp.dot(h_last, w_fc.T.astype(jnp.float32)) + b_fc.astype(jnp.float32)


# ----------------------------------------------------------- pure-JAX ref ---
def ph_lstm_ref(x, params):
    """Same math (incl. bf16 weight/x casts, f32 accumulation), plain JAX."""
    w_ih, w_hh, b_ih, b_hh, w_fc, b_fc = params
    B, T, D = x.shape
    H = w_hh.shape[1]
    gx = (jnp.dot(x.astype(jnp.bfloat16).reshape(B * T, D),
                  w_ih.T.astype(jnp.bfloat16),
                  preferred_element_type=jnp.float32)
          .reshape(B, T, 4 * H) + (b_ih + b_hh).astype(jnp.float32))
    w_hh_t = w_hh.T.astype(jnp.bfloat16)
    h = jnp.zeros((B, H), jnp.float32)
    c = jnp.zeros((B, H), jnp.float32)
    for t in range(T):
        gates = gx[:, t, :] + jnp.dot(h.astype(jnp.bfloat16), w_hh_t,
                                      preferred_element_type=jnp.float32)
        i = jax.nn.sigmoid(gates[:, :H])
        f = jax.nn.sigmoid(gates[:, H:2 * H])
        g = jnp.tanh(gates[:, 2 * H:3 * H])
        o = jax.nn.sigmoid(gates[:, 3 * H:])
        c = f * c + i * g
        h = o * jnp.tanh(c)
    return jnp.dot(h, w_fc.T.astype(jnp.float32)) + b_fc.astype(jnp.float32)


# -------------------------------------------------------------- parameters ---
def init_params(key, input_dim, hidden_dim, output_dim):
    """Shapes match the PyTorch module.
    nn.LSTM: W_ih (4H, D), W_hh (4H, H), b_ih (4H,), b_hh (4H,) ~ U(-k, k), k=1/sqrt(H)
    nn.Linear: W_fc (O, H), b_fc (O,)                           ~ U(-k, k)
    """
    ks = jax.random.split(key, 6)
    k = 1.0 / jnp.sqrt(jnp.float32(hidden_dim))
    u = lambda kk, shape: jax.random.uniform(kk, shape, jnp.float32, -k, k)
    w_ih = u(ks[0], (4 * hidden_dim, input_dim))
    w_hh = u(ks[1], (4 * hidden_dim, hidden_dim))
    b_ih = u(ks[2], (4 * hidden_dim,))
    b_hh = u(ks[3], (4 * hidden_dim,))
    w_fc = u(ks[4], (output_dim, hidden_dim))
    b_fc = u(ks[5], (output_dim,))
    return (w_ih, w_hh, b_ih, b_hh, w_fc, b_fc)


# -------------------------------------------------------------------- main ---
if __name__ == "__main__":
    # TODO(synk): single-layer LSTM only (num_layers=1, the module default);
    # stacking layers is repeated application of this kernel.
    # hidden_dim=128 is the module default and keeps gate slices lane-aligned.
    B, T, D, H, O = 16, 16, 16, 128, 8

    key = jax.random.PRNGKey(0)
    kx, kp = jax.random.split(key)
    x = jax.random.normal(kx, (B, T, D), jnp.float32)   # (batch, seq, input_dim)
    params = init_params(kp, input_dim=D, hidden_dim=H, output_dim=O)

    # grid = (B//8, T//8) = (2, 2): exercises both the parallel batch axis and
    # the h/c state carry across time chunks.
    out = ph_lstm_forward(x, params, t_chunk=8, b_tile=8)
    out = jax.block_until_ready(out)

    ref = ph_lstm_ref(x, params)
    assert out.shape == (B, O)
    err = jnp.max(jnp.abs(out - ref))
    assert jnp.allclose(out, ref, atol=1e-3, rtol=1e-3), (
        f"mismatch: max abs err = {err}")

    print("KERNEL_OK")
</pallas_src>

<mosaic_0001>
module attributes {stable_mosaic.version = 11 : i64} {
  func.func @lstm_recurrence_kernel(%arg0: i32, %arg1: i32, %arg2: memref<8x8x512xf32, #tpu.memory_space<vmem>>, %arg3: memref<128x512xbf16, #tpu.memory_space<vmem>>, %arg4: memref<8x128xf32, #tpu.memory_space<vmem>>, %arg5: memref<8x128xf32, #tpu.memory_space<vmem>>) attributes {dimension_semantics = [#tpu.dimension_semantics<parallel>, #tpu.dimension_semantics<arbitrary>], iteration_bounds = array<i64: 2, 2>, scalar_prefetch = 0 : i64, scratch_operands = 1 : i64, tpu.core_type = #tpu.core_type<tc>, window_params = [{transform_indices = @transform_0, window_bounds = array<i64: 8, 8, 512>}, {pipeline_mode = #tpu.pipeline_mode<synchronous>, transform_indices = @transform_1, window_bounds = array<i64: 128, 512>}, {transform_indices = @transform_2, window_bounds = array<i64: 8, 128>}]} {
    %c0_i32 = arith.constant 0 : i32
    %0 = arith.cmpi eq, %arg1, %c0_i32 : i32
    %1 = arith.extui %0 : i1 to i32
    %c0_i32_0 = arith.constant 0 : i32
    %2 = arith.cmpi ne, %1, %c0_i32_0 : i32
    scf.if %2 {
      %cst_58 = arith.constant 0.000000e+00 : f32
      %248 = vector.broadcast %cst_58 : f32 to vector<8x128xf32>
      %c0_59 = arith.constant 0 : index
      %c0_60 = arith.constant 0 : index
      %249 = vector.load %arg4[%c0_59, %c0_60] : memref<8x128xf32, #tpu.memory_space<vmem>>, vector<8x128xf32>
      tpu.vector_store %arg4[%c0_59, %c0_60], %248 {strides = array<i32>} : memref<8x128xf32, #tpu.memory_space<vmem>>, vector<8x128xf32>,
      %cst_61 = arith.constant 0.000000e+00 : f32
      %250 = vector.broadcast %cst_61 : f32 to vector<8x128xf32>
      %c0_62 = arith.constant 0 : index
      %c0_63 = arith.constant 0 : index
      %251 = vector.load %arg5[%c0_62, %c0_63] : memref<8x128xf32, #tpu.memory_space<vmem>>, vector<8x128xf32>
      tpu.vector_store %arg5[%c0_62, %c0_63], %250 {strides = array<i32>} : memref<8x128xf32, #tpu.memory_space<vmem>>, vector<8x128xf32>,
    } else {
    }
    %c0 = arith.constant 0 : index
    %c0_1 = arith.constant 0 : index
    %3 = vector.load %arg3[%c0, %c0_1] : memref<128x512xbf16, #tpu.memory_space<vmem>>, vector<128x512xbf16>
    %c0_2 = arith.constant 0 : index
    %c0_3 = arith.constant 0 : index
    %4 = vector.load %arg4[%c0_2, %c0_3] : memref<8x128xf32, #tpu.memory_space<vmem>>, vector<8x128xf32>
    %c0_4 = arith.constant 0 : index
    %c0_5 = arith.constant 0 : index
    %5 = vector.load %arg5[%c0_4, %c0_5] : memref<8x128xf32, #tpu.memory_space<vmem>>, vector<8x128xf32>
    %c0_6 = arith.constant 0 : index
    %c0_7 = arith.constant 0 : index
    %c0_8 = arith.constant 0 : index
    %6 = vector.load %arg2[%c0_6, %c0_7, %c0_8] : memref<8x8x512xf32, #tpu.memory_space<vmem>>, vector<8x1x512xf32>
    %7 = vector.shape_cast %6 : vector<8x1x512xf32> to vector<8x512xf32>
    %8 = arith.truncf %4 : vector<8x128xf32> to vector<8x128xbf16>
    %cst = arith.constant dense<0.000000e+00> : vector<8x512xf32>
    %9 = tpu.matmul %8, %3, %cst {dimension_numbers = #tpu.dot_dimension_numbers<[1], [0], [0], [1], [0, 0, 1, 1], [], []>} : vector<8x128xbf16>, vector<128x512xbf16>, vector<8x512xf32> -> vector<8x512xf32>
    %10 = arith.addf %7, %9 : vector<8x512xf32>
    %11 = vector.extract_strided_slice %10 {offsets = [0, 0], sizes = [8, 128], strides = [1, 1]} : vector<8x512xf32> to vector<8x128xf32>
    %12 = arith.negf %11 : vector<8x128xf32>
    %13 = math.exp %12 : vector<8x128xf32>
    %cst_9 = arith.constant 1.000000e+00 : f32
    %14 = vector.broadcast %cst_9 : f32 to vector<8x128xf32>
    %15 = arith.addf %14, %13 : vector<8x128xf32>
    %16 = arith.divf %14, %15 : vector<8x128xf32>
    %17 = vector.extract_strided_slice %10 {offsets = [0, 128], sizes = [8, 128], strides = [1, 1]} : vector<8x512xf32> to vector<8x128xf32>
    %18 = arith.negf %17 : vector<8x128xf32>
    %19 = math.exp %18 : vector<8x128xf32>
    %cst_10 = arith.constant 1.000000e+00 : f32
    %20 = vector.broadcast %cst_10 : f32 to vector<8x128xf32>
    %21 = arith.addf %20, %19 : vector<8x128xf32>
    %22 = arith.divf %20, %21 : vector<8x128xf32>
    %23 = vector.extract_strided_slice %10 {offsets = [0, 256], sizes = [8, 128], strides = [1, 1]} : vector<8x512xf32> to vector<8x128xf32>
    %24 = math.tanh %23 : vector<8x128xf32>
    %25 = vector.extract_strided_slice %10 {offsets = [0, 384], sizes = [8, 128], strides = [1, 1]} : vector<8x512xf32> to vector<8x128xf32>
    %26 = arith.negf %25 : vector<8x128xf32>
    %27 = math.exp %26 : vector<8x128xf32>
    %cst_11 = arith.constant 1.000000e+00 : f32
    %28 = vector.broadcast %cst_11 : f32 to vector<8x128xf32>
    %29 = arith.addf %28, %27 : vector<8x128xf32>
    %30 = arith.divf %28, %29 : vector<8x128xf32>
    %31 = arith.mulf %22, %5 : vector<8x128xf32>
    %32 = arith.mulf %16, %24 : vector<8x128xf32>
    %33 = arith.addf %31, %32 : vector<8x128xf32>
    %34 = math.tanh %33 : vector<8x128xf32>
    %35 = arith.mulf %30, %34 : vector<8x128xf32>
    %c0_12 = arith.constant 0 : index
    %c1 = arith.constant 1 : index
    %c0_13 = arith.constant 0 : index
    %36 = vector.load %arg2[%c0_12, %c1, %c0_13] : memref<8x8x512xf32, #tpu.memory_space<vmem>>, vector<8x1x512xf32>
    %37 = vector.shape_cast %36 : vector<8x1x512xf32> to vector<8x512xf32>
    %38 = arith.truncf %35 : vector<8x128xf32> to vector<8x128xbf16>
    %cst_14 = arith.constant dense<0.000000e+00> : vector<8x512xf32>
    %39 = tpu.matmul %38, %3, %cst_14 {dimension_numbers = #tpu.dot_dimension_numbers<[1], [0], [0], [1], [0, 0, 1, 1], [], []>} : vector<8x128xbf16>, vector<128x512xbf16>, vector<8x512xf32> -> vector<8x512xf32>
    %40 = arith.addf %37, %39 : vector<8x512xf32>
    %41 = vector.extract_strided_slice %40 {offsets = [0, 0], sizes = [8, 128], strides = [1, 1]} : vector<8x512xf32> to vector<8x128xf32>
    %42 = arith.negf %41 : vector<8x128xf32>
    %43 = math.exp %42 : vector<8x128xf32>
    %cst_15 = arith.constant 1.000000e+00 : f32
    %44 = vector.broadcast %cst_15 : f32 to vector<8x128xf32>
    %45 = arith.addf %44, %43 : vector<8x128xf32>
    %46 = arith.divf %44, %45 : vector<8x128xf32>
    %47 = vector.extract_strided_slice %40 {offsets = [0, 128], sizes = [8, 128], strides = [1, 1]} : vector<8x512xf32> to vector<8x128xf32>
    %48 = arith.negf %47 : vector<8x128xf32>
    %49 = math.exp %48 : vector<8x128xf32>
    %cst_16 = arith.constant 1.000000e+00 : f32
    %50 = vector.broadcast %cst_16 : f32 to vector<8x128xf32>
    %51 = arith.addf %50, %49 : vector<8x128xf32>
    %52 = arith.divf %50, %51 : vector<8x128xf32>
    %53 = vector.extract_strided_slice %40 {offsets = [0, 256], sizes = [8, 128], strides = [1, 1]} : vector<8x512xf32> to vector<8x128xf32>
    %54 = math.tanh %53 : vector<8x128xf32>
    %55 = vector.extract_strided_slice %40 {offsets = [0, 384], sizes = [8, 128], strides = [1, 1]} : vector<8x512xf32> to vector<8x128xf32>
    %56 = arith.negf %55 : vector<8x128xf32>
    %57 = math.exp %56 : vector<8x128xf32>
    %cst_17 = arith.constant 1.000000e+00 : f32
    %58 = vector.broadcast %cst_17 : f32 to vector<8x128xf32>
    %59 = arith.addf %58, %57 : vector<8x128xf32>
    %60 = arith.divf %58, %59 : vector<8x128xf32>
    %61 = arith.mulf %52, %33 : vector<8x128xf32>
    %62 = arith.mulf %46, %54 : vector<8x128xf32>
    %63 = arith.addf %61, %62 : vector<8x128xf32>
    %64 = math.tanh %63 : vector<8x128xf32>
    %65 = arith.mulf %60, %64 : vector<8x128xf32>
    %c0_18 = arith.constant 0 : index
    %c2 = arith.constant 2 : index
    %c0_19 = arith.constant 0 : index
    %66 = vector.load %arg2[%c0_18, %c2, %c0_19] : memref<8x8x512xf32, #tpu.memory_space<vmem>>, vector<8x1x512xf32>
    %67 = vector.shape_cast %66 : vector<8x1x512xf32> to vector<8x512xf32>
    %68 = arith.truncf %65 : vector<8x128xf32> to vector<8x128xbf16>
    %cst_20 = arith.constant dense<0.000000e+00> : vector<8x512xf32>
    %69 = tpu.matmul %68, %3, %cst_20 {dimension_numbers = #tpu.dot_dimension_numbers<[1], [0], [0], [1], [0, 0, 1, 1], [], []>} : vector<8x128xbf16>, vector<128x512xbf16>, vector<8x512xf32> -> vector<8x512xf32>
    %70 = arith.addf %67, %69 : vector<8x512xf32>
    %71 = vector.extract_strided_slice %70 {offsets = [0, 0], sizes = [8, 128], strides = [1, 1]} : vector<8x512xf32> to vector<8x128xf32>
    %72 = arith.negf %71 : vector<8x128xf32>
    %73 = math.exp %72 : vector<8x128xf32>
    %cst_21 = arith.constant 1.000000e+00 : f32
    %74 = vector.broadcast %cst_21 : f32 to vector<8x128xf32>
    %75 = arith.addf %74, %73 : vector<8x128xf32>
    %76 = arith.divf %74, %75 : vector<8x128xf32>
    %77 = vector.extract_strided_slice %70 {offsets = [0, 128], sizes = [8, 128], strides = [1, 1]} : vector<8x512xf32> to vector<8x128xf32>
    %78 = arith.negf %77 : vector<8x128xf32>
    %79 = math.exp %78 : vector<8x128xf32>
    %cst_22 = arith.constant 1.000000e+00 : f32
    %80 = vector.broadcast %cst_22 : f32 to vector<8x128xf32>
    %81 = arith.addf %80, %79 : vector<8x128xf32>
    %82 = arith.divf %80, %81 : vector<8x128xf32>
    %83 = vector.extract_strided_slice %70 {offsets = [0, 256], sizes = [8, 128], strides = [1, 1]} : vector<8x512xf32> to vector<8x128xf32>
    %84 = math.tanh %83 : vector<8x128xf32>
    %85 = vector.extract_strided_slice %70 {offsets = [0, 384], sizes = [8, 128], strides = [1, 1]} : vector<8x512xf32> to vector<8x128xf32>
    %86 = arith.negf %85 : vector<8x128xf32>
    %87 = math.exp %86 : vector<8x128xf32>
    %cst_23 = arith.constant 1.000000e+00 : f32
    %88 = vector.broadcast %cst_23 : f32 to vector<8x128xf32>
    %89 = arith.addf %88, %87 : vector<8x128xf32>
    %90 = arith.divf %88, %89 : vector<8x128xf32>
    %91 = arith.mulf %82, %63 : vector<8x128xf32>
    %92 = arith.mulf %76, %84 : vector<8x128xf32>
    %93 = arith.addf %91, %92 : vector<8x128xf32>
    %94 = math.tanh %93 : vector<8x128xf32>
    %95 = arith.mulf %90, %94 : vector<8x128xf32>
    %c0_24 = arith.constant 0 : index
    %c3 = arith.constant 3 : index
    %c0_25 = arith.constant 0 : index
    %96 = vector.load %arg2[%c0_24, %c3, %c0_25] : memref<8x8x512xf32, #tpu.memory_space<vmem>>, vector<8x1x512xf32>
    %97 = vector.shape_cast %96 : vector<8x1x512xf32> to vector<8x512xf32>
    %98 = arith.truncf %95 : vector<8x128xf32> to vector<8x128xbf16>
    %cst_26 = arith.constant dense<0.000000e+00> : vector<8x512xf32>
    %99 = tpu.matmul %98, %3, %cst_26 {dimension_numbers = #tpu.dot_dimension_numbers<[1], [0], [0], [1], [0, 0, 1, 1], [], []>} : vector<8x128xbf16>, vector<128x512xbf16>, vector<8x512xf32> -> vector<8x512xf32>
    %100 = arith.addf %97, %99 : vector<8x512xf32>
    %101 = vector.extract_strided_slice %100 {offsets = [0, 0], sizes = [8, 128], strides = [1, 1]} : vector<8x512xf32> to vector<8x128xf32>
    %102 = arith.negf %101 : vector<8x128xf32>
    %103 = math.exp %102 : vector<8x128xf32>
    %cst_27 = arith.constant 1.000000e+00 : f32
    %104 = vector.broadcast %cst_27 : f32 to vector<8x128xf32>
    %105 = arith.addf %104, %103 : vector<8x128xf32>
    %106 = arith.divf %104, %105 : vector<8x128xf32>
    %107 = vector.extract_strided_slice %100 {offsets = [0, 128], sizes = [8, 128], strides = [1, 1]} : vector<8x512xf32> to vector<8x128xf32>
    %108 = arith.negf %107 : vector<8x128xf32>
    %109 = math.exp %108 : vector<8x128xf32>
    %cst_28 = arith.constant 1.000000e+00 : f32
    %110 = vector.broadcast %cst_28 : f32 to vector<8x128xf32>
    %111 = arith.addf %110, %109 : vector<8x128xf32>
    %112 = arith.divf %110, %111 : vector<8x128xf32>
    %113 = vector.extract_strided_slice %100 {offsets = [0, 256], sizes = [8, 128], strides = [1, 1]} : vector<8x512xf32> to vector<8x128xf32>
    %114 = math.tanh %113 : vector<8x128xf32>
    %115 = vector.extract_strided_slice %100 {offsets = [0, 384], sizes = [8, 128], strides = [1, 1]} : vector<8x512xf32> to vector<8x128xf32>
    %116 = arith.negf %115 : vector<8x128xf32>
    %117 = math.exp %116 : vector<8x128xf32>
    %cst_29 = arith.constant 1.000000e+00 : f32
    %118 = vector.broadcast %cst_29 : f32 to vector<8x128xf32>
    %119 = arith.addf %118, %117 : vector<8x128xf32>
    %120 = arith.divf %118, %119 : vector<8x128xf32>
    %121 = arith.mulf %112, %93 : vector<8x128xf32>
    %122 = arith.mulf %106, %114 : vector<8x128xf32>
    %123 = arith.addf %121, %122 : vector<8x128xf32>
    %124 = math.tanh %123 : vector<8x128xf32>
    %125 = arith.mulf %120, %124 : vector<8x128xf32>
    %c0_30 = arith.constant 0 : index
    %c4 = arith.constant 4 : index
    %c0_31 = arith.constant 0 : index
    %126 = vector.load %arg2[%c0_30, %c4, %c0_31] : memref<8x8x512xf32, #tpu.memory_space<vmem>>, vector<8x1x512xf32>
    %127 = vector.shape_cast %126 : vector<8x1x512xf32> to vector<8x512xf32>
    %128 = arith.truncf %125 : vector<8x128xf32> to vector<8x128xbf16>
    %cst_32 = arith.constant dense<0.000000e+00> : vector<8x512xf32>
    %129 = tpu.matmul %128, %3, %cst_32 {dimension_numbers = #tpu.dot_dimension_numbers<[1], [0], [0], [1], [0, 0, 1, 1], [], []>} : vector<8x128xbf16>, vector<128x512xbf16>, vector<8x512xf32> -> vector<8x512xf32>
    %130 = arith.addf %127, %129 : vector<8x512xf32>
    %131 = vector.extract_strided_slice %130 {offsets = [0, 0], sizes = [8, 128], strides = [1, 1]} : vector<8x512xf32> to vector<8x128xf32>
    %132 = arith.negf %131 : vector<8x128xf32>
    %133 = math.exp %132 : vector<8x128xf32>
    %cst_33 = arith.constant 1.000000e+00 : f32
    %134 = vector.broadcast %cst_33 : f32 to vector<8x128xf32>
    %135 = arith.addf %134, %133 : vector<8x128xf32>
    %136 = arith.divf %134, %135 : vector<8x128xf32>
    %137 = vector.extract_strided_slice %130 {offsets = [0, 128], sizes = [8, 128], strides = [1, 1]} : vector<8x512xf32> to vector<8x128xf32>
    %138 = arith.negf %137 : vector<8x128xf32>
    %139 = math.exp %138 : vector<8x128xf32>
    %cst_34 = arith.constant 1.000000e+00 : f32
    %140 = vector.broadcast %cst_34 : f32 to vector<8x128xf32>
    %141 = arith.addf %140, %139 : vector<8x128xf32>
    %142 = arith.divf %140, %141 : vector<8x128xf32>
    %143 = vector.extract_strided_slice %130 {offsets = [0, 256], sizes = [8, 128], strides = [1, 1]} : vector<8x512xf32> to vector<8x128xf32>
    %144 = math.tanh %143 : vector<8x128xf32>
    %145 = vector.extract_strided_slice %130 {offsets = [0, 384], sizes = [8, 128], strides = [1, 1]} : vector<8x512xf32> to vector<8x128xf32>
    %146 = arith.negf %145 : vector<8x128xf32>
    %147 = math.exp %146 : vector<8x128xf32>
    %cst_35 = arith.constant 1.000000e+00 : f32
    %148 = vector.broadcast %cst_35 : f32 to vector<8x128xf32>
    %149 = arith.addf %148, %147 : vector<8x128xf32>
    %150 = arith.divf %148, %149 : vector<8x128xf32>
    %151 = arith.mulf %142, %123 : vector<8x128xf32>
    %152 = arith.mulf %136, %144 : vector<8x128xf32>
    %153 = arith.addf %151, %152 : vector<8x128xf32>
    %154 = math.tanh %153 : vector<8x128xf32>
    %155 = arith.mulf %150, %154 : vector<8x128xf32>
    %c0_36 = arith.constant 0 : index
    %c5 = arith.constant 5 : index
    %c0_37 = arith.constant 0 : index
    %156 = vector.load %arg2[%c0_36, %c5, %c0_37] : memref<8x8x512xf32, #tpu.memory_space<vmem>>, vector<8x1x512xf32>
    %157 = vector.shape_cast %156 : vector<8x1x512xf32> to vector<8x512xf32>
    %158 = arith.truncf %155 : vector<8x128xf32> to vector<8x128xbf16>
    %cst_38 = arith.constant dense<0.000000e+00> : vector<8x512xf32>
    %159 = tpu.matmul %158, %3, %cst_38 {dimension_numbers = #tpu.dot_dimension_numbers<[1], [0], [0], [1], [0, 0, 1, 1], [], []>} : vector<8x128xbf16>, vector<128x512xbf16>, vector<8x512xf32> -> vector<8x512xf32>
    %160 = arith.addf %157, %159 : vector<8x512xf32>
    %161 = vector.extract_strided_slice %160 {offsets = [0, 0], sizes = [8, 128], strides = [1, 1]} : vector<8x512xf32> to vector<8x128xf32>
    %162 = arith.negf %161 : vector<8x128xf32>
    %163 = math.exp %162 : vector<8x128xf32>
    %cst_39 = arith.constant 1.000000e+00 : f32
    %164 = vector.broadcast %cst_39 : f32 to vector<8x128xf32>
    %165 = arith.addf %164, %163 : vector<8x128xf32>
    %166 = arith.divf %164, %165 : vector<8x128xf32>
    %167 = vector.extract_strided_slice %160 {offsets = [0, 128], sizes = [8, 128], strides = [1, 1]} : vector<8x512xf32> to vector<8x128xf32>
    %168 = arith.negf %167 : vector<8x128xf32>
    %169 = math.exp %168 : vector<8x128xf32>
    %cst_40 = arith.constant 1.000000e+00 : f32
    %170 = vector.broadcast %cst_40 : f32 to vector<8x128xf32>
    %171 = arith.addf %170, %169 : vector<8x128xf32>
    %172 = arith.divf %170, %171 : vector<8x128xf32>
    %173 = vector.extract_strided_slice %160 {offsets = [0, 256], sizes = [8, 128], strides = [1, 1]} : vector<8x512xf32> to vector<8x128xf32>
    %174 = math.tanh %173 : vector<8x128xf32>
    %175 = vector.extract_strided_slice %160 {offsets = [0, 384], sizes = [8, 128], strides = [1, 1]} : vector<8x512xf32> to vector<8x128xf32>
    %176 = arith.negf %175 : vector<8x128xf32>
    %177 = math.exp %176 : vector<8x128xf32>
    %cst_41 = arith.constant 1.000000e+00 : f32
    %178 = vector.broadcast %cst_41 : f32 to vector<8x128xf32>
    %179 = arith.addf %178, %177 : vector<8x128xf32>
    %180 = arith.divf %178, %179 : vector<8x128xf32>
    %181 = arith.mulf %172, %153 : vector<8x128xf32>
    %182 = arith.mulf %166, %174 : vector<8x128xf32>
    %183 = arith.addf %181, %182 : vector<8x128xf32>
    %184 = math.tanh %183 : vector<8x128xf32>
    %185 = arith.mulf %180, %184 : vector<8x128xf32>
    %c0_42 = arith.constant 0 : index
    %c6 = arith.constant 6 : index
    %c0_43 = arith.constant 0 : index
    %186 = vector.load %arg2[%c0_42, %c6, %c0_43] : memref<8x8x512xf32, #tpu.memory_space<vmem>>, vector<8x1x512xf32>
    %187 = vector.shape_cast %186 : vector<8x1x512xf32> to vector<8x512xf32>
    %188 = arith.truncf %185 : vector<8x128xf32> to vector<8x128xbf16>
    %cst_44 = arith.constant dense<0.000000e+00> : vector<8x512xf32>
    %189 = tpu.matmul %188, %3, %cst_44 {dimension_numbers = #tpu.dot_dimension_numbers<[1], [0], [0], [1], [0, 0, 1, 1], [], []>} : vector<8x128xbf16>, vector<128x512xbf16>, vector<8x512xf32> -> vector<8x512xf32>
    %190 = arith.addf %187, %189 : vector<8x512xf32>
    %191 = vector.extract_strided_slice %190 {offsets = [0, 0], sizes = [8, 128], strides = [1, 1]} : vector<8x512xf32> to vector<8x128xf32>
    %192 = arith.negf %191 : vector<8x128xf32>
    %193 = math.exp %192 : vector<8x128xf32>
    %cst_45 = arith.constant 1.000000e+00 : f32
    %194 = vector.broadcast %cst_45 : f32 to vector<8x128xf32>
    %195 = arith.addf %194, %193 : vector<8x128xf32>
    %196 = arith.divf %194, %195 : vector<8x128xf32>
    %197 = vector.extract_strided_slice %190 {offsets = [0, 128], sizes = [8, 128], strides = [1, 1]} : vector<8x512xf32> to vector<8x128xf32>
    %198 = arith.negf %197 : vector<8x128xf32>
    %199 = math.exp %198 : vector<8x128xf32>
    %cst_46 = arith.constant 1.000000e+00 : f32
    %200 = vector.broadcast %cst_46 : f32 to vector<8x128xf32>
    %201 = arith.addf %200, %199 : vector<8x128xf32>
    %202 = arith.divf %200, %201 : vector<8x128xf32>
    %203 = vector.extract_strided_slice %190 {offsets = [0, 256], sizes = [8, 128], strides = [1, 1]} : vector<8x512xf32> to vector<8x128xf32>
    %204 = math.tanh %203 : vector<8x128xf32>
    %205 = vector.extract_strided_slice %190 {offsets = [0, 384], sizes = [8, 128], strides = [1, 1]} : vector<8x512xf32> to vector<8x128xf32>
    %206 = arith.negf %205 : vector<8x128xf32>
    %207 = math.exp %206 : vector<8x128xf32>
    %cst_47 = arith.constant 1.000000e+00 : f32
    %208 = vector.broadcast %cst_47 : f32 to vector<8x128xf32>
    %209 = arith.addf %208, %207 : vector<8x128xf32>
    %210 = arith.divf %208, %209 : vector<8x128xf32>
    %211 = arith.mulf %202, %183 : vector<8x128xf32>
    %212 = arith.mulf %196, %204 : vector<8x128xf32>
    %213 = arith.addf %211, %212 : vector<8x128xf32>
    %214 = math.tanh %213 : vector<8x128xf32>
    %215 = arith.mulf %210, %214 : vector<8x128xf32>
    %c0_48 = arith.constant 0 : index
    %c7 = arith.constant 7 : index
    %c0_49 = arith.constant 0 : index
    %216 = vector.load %arg2[%c0_48, %c7, %c0_49] : memref<8x8x512xf32, #tpu.memory_space<vmem>>, vector<8x1x512xf32>
    %217 = vector.shape_cast %216 : vector<8x1x512xf32> to vector<8x512xf32>
    %218 = arith.truncf %215 : vector<8x128xf32> to vector<8x128xbf16>
    %cst_50 = arith.constant dense<0.000000e+00> : vector<8x512xf32>
    %219 = tpu.matmul %218, %3, %cst_50 {dimension_numbers = #tpu.dot_dimension_numbers<[1], [0], [0], [1], [0, 0, 1, 1], [], []>} : vector<8x128xbf16>, vector<128x512xbf16>, vector<8x512xf32> -> vector<8x512xf32>
    %220 = arith.addf %217, %219 : vector<8x512xf32>
    %221 = vector.extract_strided_slice %220 {offsets = [0, 0], sizes = [8, 128], strides = [1, 1]} : vector<8x512xf32> to vector<8x128xf32>
    %222 = arith.negf %221 : vector<8x128xf32>
    %223 = math.exp %222 : vector<8x128xf32>
    %cst_51 = arith.constant 1.000000e+00 : f32
    %224 = vector.broadcast %cst_51 : f32 to vector<8x128xf32>
    %225 = arith.addf %224, %223 : vector<8x128xf32>
    %226 = arith.divf %224, %225 : vector<8x128xf32>
    %227 = vector.extract_strided_slice %220 {offsets = [0, 128], sizes = [8, 128], strides = [1, 1]} : vector<8x512xf32> to vector<8x128xf32>
    %228 = arith.negf %227 : vector<8x128xf32>
    %229 = math.exp %228 : vector<8x128xf32>
    %cst_52 = arith.constant 1.000000e+00 : f32
    %230 = vector.broadcast %cst_52 : f32 to vector<8x128xf32>
    %231 = arith.addf %230, %229 : vector<8x128xf32>
    %232 = arith.divf %230, %231 : vector<8x128xf32>
    %233 = vector.extract_strided_slice %220 {offsets = [0, 256], sizes = [8, 128], strides = [1, 1]} : vector<8x512xf32> to vector<8x128xf32>
    %234 = math.tanh %233 : vector<8x128xf32>
    %235 = vector.extract_strided_slice %220 {offsets = [0, 384], sizes = [8, 128], strides = [1, 1]} : vector<8x512xf32> to vector<8x128xf32>
    %236 = arith.negf %235 : vector<8x128xf32>
    %237 = math.exp %236 : vector<8x128xf32>
    %cst_53 = arith.constant 1.000000e+00 : f32
    %238 = vector.broadcast %cst_53 : f32 to vector<8x128xf32>
    %239 = arith.addf %238, %237 : vector<8x128xf32>
    %240 = arith.divf %238, %239 : vector<8x128xf32>
    %241 = arith.mulf %232, %213 : vector<8x128xf32>
    %242 = arith.mulf %226, %234 : vector<8x128xf32>
    %243 = arith.addf %241, %242 : vector<8x128xf32>
    %244 = math.tanh %243 : vector<8x128xf32>
    %245 = arith.mulf %240, %244 : vector<8x128xf32>
    %c0_54 = arith.constant 0 : index
    %c0_55 = arith.constant 0 : index
    %246 = vector.load %arg4[%c0_54, %c0_55] : memref<8x128xf32, #tpu.memory_space<vmem>>, vector<8x128xf32>
    tpu.vector_store %arg4[%c0_54, %c0_55], %245 {strides = array<i32>} : memref<8x128xf32, #tpu.memory_space<vmem>>, vector<8x128xf32>,
    %c0_56 = arith.constant 0 : index
    %c0_57 = arith.constant 0 : index
    %247 = vector.load %arg5[%c0_56, %c0_57] : memref<8x128xf32, #tpu.memory_space<vmem>>, vector<8x128xf32>
    tpu.vector_store %arg5[%c0_56, %c0_57], %243 {strides = array<i32>} : memref<8x128xf32, #tpu.memory_space<vmem>>, vector<8x128xf32>,
    return
  }
  func.func @transform_0(%arg0: i32, %arg1: i32) -> (i32, i32, i32) {
    %c0_i32 = arith.constant 0 : i32
    %c0_i32_0 = arith.constant 0 : i32
    return %arg0, %arg1, %c0_i32 : i32, i32, i32
  }
  func.func @transform_1(%arg0: i32, %arg1: i32) -> (i32, i32) {
    %c0_i32 = arith.constant 0 : i32
    %c0_i32_0 = arith.constant 0 : i32
    %c0_i32_1 = arith.constant 0 : i32
    return %c0_i32, %c0_i32_0 : i32, i32
  }
  func.func @transform_2(%arg0: i32, %arg1: i32) -> (i32, i32) {
    %c0_i32 = arith.constant 0 : i32
    %c0_i32_0 = arith.constant 0 : i32
    return %arg0, %c0_i32 : i32, i32
  }
}

</mosaic_0001>

<bundles_post_ra>
// kernel: tpu_custom_call.1
= control target key start
LH: loop header
LB: loop body
LE: loop exit
PB: predicated region body
PF: predicated region fallthrough
CT: control target
= control target key end

     0   :  { %s16060_s0 = inlined_call_operand.hbm [shape: f32[16,16,512], index: 0, kind: input, shape index: {}]   ;;  %s16061_s1 = inlined_call_operand.hbm [shape: bf16[128,512], index: 1, kind: input, shape index: {}]   ;;  %s16062_s2 = inlined_call_operand.hbm [shape: f32[16,128], index: 2, kind: output, shape index: {}]  }
   0x1   :  { %16153 = sst [smem:[#allocation55_spill]] %s16061_s1 }
   0x2   :  { %16154 = sst [smem:[#allocation56_spill]] %s16062_s2 }
   0x3   :  { %7 = vsyncpa [#allocation4], 0 }
   0x4   :  { %9 = vsyncpa [#allocation4 + $0x1], 0 }
   0x5   :  { %10 = vsyncpa [#allocation7], 0 }
   0x6   :  { %11 = vsyncpa [#allocation5], 0 }
   0x7   :  { %13 = vsyncpa [#allocation5 + $0x1], 0  ;;  %s8117_s9 = smov 0   ;;  %s8119_s10 = smov 0  }
   0x8   :  { %s8121_s11 = smov 0   ;;  %s8123_s12 = smov 0  }
   0x9   :  { %s8125_s13 = smov 0   ;;  %s8127_s14 = smov 0  }
   0xa   :  { %s8129_s15 = smov 0   ;;  %s8131_s16 = smov 0  }
   0xb   :  { %s8133_s17 = smov 0   ;;  %s8135_s18 = smov 0  }
   0xc   :  { %s8137_s19 = smov 0  }
   0xd LB: > { %16155 = sst [smem:[#allocation12_spill]] %s8053_s9  ;;  %s6329_s20 = sadd.s32 4294967295, %s8093_s19   ;;  %s8093_s19 = sphi %s8137_s19, %s19_s19   ;;  %s8089_s18 = sphi %s8135_s18, %s17346_s18   ;;  %s8085_s17 = sphi %s8133_s17, %s17337_s17   ;;  %s8081_s16 = sphi %s8131_s16, %s17345_s16   ;;  %s8077_s15 = sphi %s8129_s15, %s17336_s15   ;;  %s8073_s14 = sphi %s8127_s14, %s17344_s14   ;;  %s8069_s13 = sphi %s8125_s13, %s17343_s13   ;;  %s8065_s12 = sphi %s8123_s12, %s17342_s12   ;;  %s8061_s11 = sphi %s8121_s11, %s17341_s11   ;;  %s8057_s10 = sphi %s8119_s10, %s17340_s10   ;;  %s8053_s9 = sphi %s8117_s9, %s17339_s9  }
   0xe   : > { %16156 = sst [smem:[#allocation13_spill]] %s8085_s17  ;;  %s6330_s21 = sadd.s32 4294967294, %s8093_s19  }
   0xf   : > { %p53_p0 = scmp.ne.s32.totalorder %s8069_s13, %s8065_s12  ;;  %p8173_p1 = scmp.eq.s32.totalorder %s6329_s20, 0 }
  0x10   : > { %s87_s23 = sadd.s32 1, %s8061_s11  ;;  %p97_p2 = scmp.ne.s32.totalorder %s8061_s11, %s8057_s10 }
  0x11   : > { %p8182_p3 = por %p8173_p1, %p53_p0  ;;  %p98_p4 = scmp.eq.s32.totalorder %s6329_s20, 3 }
  0x12   : > { %p103_p5 = scmp.ne.s32.totalorder %s8057_s10, %s8053_s9  ;;  %p104_p6 = scmp.eq.s32.totalorder %s6330_s21, 3 }
  0x13   : > { %p8188_p7 = por %p98_p4, %p97_p2  ;;  %p6331_p8 = scmp.ge.s32.totalorder %s8093_s19, 1 }
  0x14   : > { %p8193_p9 = por %p104_p6, %p103_p5  ;;  %p111_p10 = scmp.lt.s32.totalorder %s8093_s19, 5 }
  0x15   : > { %s16159_s25 = scalar_select %p8188_p7, 1, 0 }
  0x16   : > { %s16161_s26 = scalar_select %p8193_p9, 1, 0 }
  0x17   : > { %16160 = sst [smem:[#allocation14_spill]] %s16159_s25  ;;  %p8201_p11 = pnand %p6331_p8, %p111_p10 }
  0x18   : > { %16162 = sst [smem:[#allocation15_spill]] %s16161_s26  ;;  %s8095_s3 = smov [#allocation6]  }
  0x19   : > { %s16163_s1 = sld [smem:[#allocation55_spill]]  ;;  %p6772_p12 = pneg %p8201_p11 }
  0x1a   : > { %s124_s4 = sshll.u32 %s8095_s3, 4  ;;  %s8096_s5 = smov 256   ;;  %s125_s4 = int_to_ptr.vmem [resolvable:$true] %s124_s4 }
  0x1b   : > { %p6773_p13 = pnand %p6772_p12, %p8173_p1  ;;  %s8097_s6 = smov 16  }
  0x1c   : > { %s28_s7 = sadd.s32 1, %s8085_s17  ;;  %s31_s8 = sadd.s32 1, %s8089_s18 }
  0x1d   : > { %p29_p0 = scmp.ge.s32.totalorder %s28_s7, 2  ;;  %s40_s12 = sadd.s32 1, %s8073_s14 }
  0x1e   : > { %p47_p2 = scmp.ne.s32.totalorder %s8073_s14, %s8069_s13  ;;  %p48_p4 = scmp.eq.s32.totalorder %s8093_s19, 0 }
  0x1f   : > { %s122_s29 = sshll.u32 %s16163_s1, 4  ;;  %s17348_s7 = smov (%p29_p0, %s28_s7), 0  ;;  %s123_s29 = int_to_ptr.hbm [resolvable:$true] %s122_s29 }
  0x20   : > { %6775 = dma.hbm_to_vmem [thread:$0]  (!%p6773_p13), %s123_s29, 4096, %s125_s4, [#allocation7], %s8096_s5, %s8096_s5, %s8097_s6  }
  0x21   : > { %16165 = sst [smem:[#allocation16_spill]] %s17348_s7  ;;  %s17350_s8 = smov (!%p29_p0, %s31_s8), %s8089_s18 }
  0x22   : > { %s36_s20 = ssub.s32 %s8085_s17, %s17348_s7  ;;  %p33_p5 = scmp.ge.s32.totalorder %s17350_s8, 2 }
  0x23   : > { %p6785_p6 = scmp.lt.s32.totalorder %s8093_s19, 4  ;;  %p8221_p8 = por %p48_p4, %p47_p2 }
  0x24   : > { %s138_s27 = sand.u32 1, %s8073_s14   ;;  %s17352_s8 = smov (%p33_p5, %s17350_s8), 0 }
  0x25   : > { %16167 = sst [smem:[#allocation17_spill]] %s17352_s8  ;;  %s6334_s28 = sshll.u32 %s138_s27, 8 }
  0x26   : > { %s35_s29 = ssub.s32 %s8089_s18, %s17352_s8  ;;  %s6336_s4 = sshll.u32 %s8085_s17, 2 }
  0x27   : > { %s37_s3 = sor.u32 %s36_s20, %s35_s29  ;;  %p85_p10 = scmp.eq.s32.totalorder %s35_s29, 0 }
  0x28   : > { %p38_p12 = scmp.eq.s32.totalorder %s37_s3, 0  ;;  %s6731_s1 = sshll.u32 %s8089_s18, 6 }
  0x29   : > { %s8234_s5 = scalar_select %p85_p10, %s8061_s11, %s87_s23  }
  0x2a   : > { %s8237_s6 = scalar_select %p38_p12, %s8073_s14, %s40_s12  }
  0x2b   : > { %s142_s7 = scalar_lea.vmem [#allocation3], %s6334_s28  ;;  %s148_s9 = sadd.s32 %s6731_s1, %s6336_s4 }
  0x2c   : > { %s153_s26 = sshll.u32 %s142_s7, 4  ;;  %s6338_s2 = sshll.u32 %s148_s9, 3  ;;  %s154_s26 = int_to_ptr.vmem [resolvable:$true] %s153_s26 }
  0x2d   : > { %p6777_p13 = pnand %p6785_p6, %p8221_p8  ;;  %s150_s20 = scalar_lea.hbm %s16060_s0, %s6338_s2 }
  0x2e   : > { %s151_s29 = sshll.u32 %s150_s20, 4  ;;  %s139_s3 = scalar_lea.sflag [#allocation4], %s138_s27  ;;  %s152_s29 = int_to_ptr.hbm [resolvable:$true] %s151_s29 }
  0x2f   : > { %s8098_s23 = smov 1024   ;;  %s8099_s17 = smov 512  }
  0x30   : > { %s8100_s12 = smov 32   ;;  %165 = sbr.rel (%p8201_p11) target bundleno = 2308 (0x904), region = 28 }
  0x31   : > { %6779 = dma.hbm_to_vmem [thread:$0]  (!%p6777_p13), %s152_s29, 4096, %s154_s26, %s139_s3, %s8098_s23, %s8099_s17, %s8100_s12  }
  0x35   : > { %s167_s1 = sand.u32 1, %s8069_s13  }
  0x36   : > { %s6340_s9 = sshll.u32 %s167_s1, 8  ;;  %s168_s7 = scalar_lea.sflag [#allocation4], %s167_s1 }
  0x37   : > { %s8250_s21 = scalar_lea.vmem [#allocation3], %s6340_s9 }
  0x38   : > { %8040 = dma.done.wait (%p8182_p3), %s168_s7, 4096  }
  0x39   : > { %8042 = vsyncadd (%p8182_p3), %s168_s7, 4294963200 }
  0x3a   : > { %8044 = dma.done.wait (%p8173_p1), [#allocation7], 4096  }
  0x3b   : > { %8046 = vsyncadd (%p8173_p1), [#allocation7], 4294963200  ;;  %s195_s2 = sand.u32 1, %s8057_s10   ;;  %p6343_p11 = scmp.ne.s32.totalorder %s8077_s15, 0 }
  0x3c   : > { %s6342_s17 = sshll.u32 %s195_s2, 3 }
  0x3d   : > { %s8263_s25 = scalar_lea.vmem [#allocation8], %s6342_s17  ;;  %202 = sbr.rel (%p6343_p11) target bundleno = 69 (0x45), region = 40 }
  0x42   : > { %v8101_v0 = vmov 0.0  }
  0x43   : > { %203 = vst [vmem:[%s8263_s25] sm:$0xff] %v8101_v0 }
  0x44   : > { %204 = vst [vmem:[#allocation2] sm:$0xff] %v8101_v0 }
  0x45 PF: > { %v6465_v1 = vld [vmem:[#allocation6 + $0xe0] sm:$0xf]  ;;  %v6762_v2 = vld [vmem:[#allocation6 + $0xec] sm:$0xf0]  ;;  %v6760_v3 = vld [vmem:[#allocation6 + $0xe4] sm:$0xf] }
  0x46   : > { %v8267_v4 = vor.u32 %v6762_v2, %v6465_v1  ;;  %v6467_v5 = vld [vmem:[#allocation6 + $0xf0] sm:$0xf0]  ;;  %v6473_v6 = vld [vmem:[#allocation6 + $0xe8] sm:$0xf]  ;;  %v6763_v7 = vld [vmem:[#allocation6 + $0xf4] sm:$0xf0] }
  0x47   : > { %v8269_v8 = vor.u32 %v6760_v3, %v6467_v5  ;;  %v8271_v9 = vor.u32 %v6763_v7, %v6473_v6  ;;  %v6761_v10 = vld [vmem:[#allocation6 + $0xec] sm:$0xf]  ;;  %v6475_v11 = vld [vmem:[#allocation6 + $0xf8] sm:$0xf0]  ;;  %v6449_v12 = vld [vmem:[#allocation6 + $0xc0] sm:$0xf] }
  0x48   : > { %16168 = vst [vmem:[#allocation18_spill] sm:$0xff] %v8267_v4  ;;  %415 = vmatpush.bf16.msra.mxu0 %v8267_v4  ;;  %v8274_v13 = vor.u32 %v6761_v10, %v6475_v11  ;;  %v6758_v14 = vld [vmem:[#allocation6 + $0xcc] sm:$0xf0]  ;;  %v6756_v15 = vld [vmem:[#allocation6 + $0xc4] sm:$0xf]  ;;  %vm16110_vm0 = vcmask 1040384  }
  0x49   : > { %16169 = vst [vmem:[#allocation19_spill] sm:$0xff] %v8269_v8  ;;  %v6451_v16 = vld [vmem:[#allocation6 + $0xd0] sm:$0xf0]  ;;  %428 = vmatpush.bf16.msra.mxu1 %v8269_v8  ;;  %441 = vmatpush.bf16.msra.mxu2 %v8271_v9  ;;  %v8278_v17 = vor.u32 %v6758_v14, %v6449_v12  ;;  %v6457_v19 = vld [vmem:[#allocation6 + $0xc8] sm:$0xf]  ;;  %vm476_vm1 = vcmask 1042434  }
  0x4a   : > { %16170 = vst [vmem:[#allocation20_spill] sm:$0xff] %v8271_v9  ;;  %v8280_v18 = vor.u32 %v6756_v15, %v6451_v16  ;;  %v6759_v20 = vld [vmem:[#allocation6 + $0xd4] sm:$0xf0]  ;;  %v6757_v21 = vld [vmem:[#allocation6 + $0xcc] sm:$0xf]  ;;  %454 = vmatpush.bf16.msra.mxu3 %v8274_v13  ;;  %vm480_vm2 = vcmask 1041409  }
  0x4b   : > { %16171 = vst [vmem:[#allocation21_spill] sm:$0xff] %v8274_v13  ;;  %v8283_v22 = vor.u32 %v6759_v20, %v6457_v19  ;;  %v6459_v23 = vld [vmem:[#allocation6 + $0xd8] sm:$0xf0]  ;;  %v6433_v24 = vld [vmem:[#allocation6 + $0xa0] sm:$0xf]  ;;  %vm482_vm3 = vcmask 1043459  }
  0x4c   : > { %16172 = vst [vmem:[#allocation22_spill] sm:$0xff] %v8278_v17  ;;  %v6754_v25 = vld [vmem:[#allocation6 + $0xac] sm:$0xf0]  ;;  %v8285_v26 = vor.u32 %v6757_v21, %v6459_v23  ;;  %v6752_v27 = vld [vmem:[#allocation6 + $0xa4] sm:$0xf]  ;;  %416 = vmatpush.bf16.msra.mxu0 %v8278_v17  ;;  %vm16129_vm4 = vcmask 1044484  }
  0x4d   : > { %16173 = vst [vmem:[#allocation23_spill] sm:$0xff] %v8280_v18  ;;  %v6435_v28 = vld [vmem:[#allocation6 + $0xb0] sm:$0xf0]  ;;  %v6441_v29 = vld [vmem:[#allocation6 + $0xa8] sm:$0xf]  ;;  %v8288_v30 = vor.u32 %v6754_v25, %v6433_v24  ;;  %429 = vmatpush.bf16.msra.mxu1 %v8280_v18  ;;  %442 = vmatpush.bf16.msra.mxu2 %v8283_v22  ;;  %vm16116_vm5 = vcmask 1045509  }
  0x4e   : > { %16174 = vst [vmem:[#allocation24_spill] sm:$0xff] %v8283_v22  ;;  %v6755_v31 = vld [vmem:[#allocation6 + $0xb4] sm:$0xf0]  ;;  %v6753_v32 = vld [vmem:[#allocation6 + $0xac] sm:$0xf]  ;;  %v8292_v34 = vor.u32 %v6752_v27, %v6435_v28  ;;  %455 = vmatpush.bf16.msra.mxu3 %v8285_v26  ;;  %vm16111_vm6 = vcmask 1046534  }
  0x4f   : > { %16175 = vst [vmem:[#allocation25_spill] sm:$0xff] %v8285_v26  ;;  %v6443_v33 = vld [vmem:[#allocation6 + $0xb8] sm:$0xf0]  ;;  %v8294_v35 = vor.u32 %v6755_v31, %v6441_v29  ;;  %v6417_v36 = vld [vmem:[#allocation6 + $0x80] sm:$0xf]  ;;  %vm16109_vm7 = vcmask 1046528  }
  0x50   : > { %16176 = vst [vmem:[#allocation26_spill] sm:$0xff] %v8288_v30  ;;  %v6750_v37 = vld [vmem:[#allocation6 + $0x8c] sm:$0xf0]  ;;  %v6748_v38 = vld [vmem:[#allocation6 + $0x84] sm:$0xf]  ;;  %v8297_v39 = vor.u32 %v6753_v32, %v6443_v33  ;;  %417 = vmatpush.bf16.msra.mxu0 %v8288_v30  ;;  %vm16108_vm8 = vcmask 1041408  }
  0x51   : > { %16177 = vst [vmem:[#allocation27_spill] sm:$0xff] %v8292_v34  ;;  %v6419_v40 = vld [vmem:[#allocation6 + $0x90] sm:$0xf0]  ;;  %v6425_v41 = vld [vmem:[#allocation6 + $0x88] sm:$0xf]  ;;  %v8300_v45 = vor.u32 %v6750_v37, %v6417_v36  ;;  %430 = vmatpush.bf16.msra.mxu1 %v8292_v34  ;;  %443 = vmatpush.bf16.msra.mxu2 %v8294_v35  ;;  %vm16103_vm9 = vcmask 1042433  }
  0x52   : > { %16178 = vst [vmem:[#allocation28_spill] sm:$0xff] %v8294_v35  ;;  %v6751_v42 = vld [vmem:[#allocation6 + $0x94] sm:$0xf0]  ;;  %v6749_v43 = vld [vmem:[#allocation6 + $0x8c] sm:$0xf]  ;;  %v8304_v46 = vor.u32 %v6748_v38, %v6419_v40  ;;  %456 = vmatpush.bf16.msra.mxu3 %v8297_v39  ;;  %vm16100_vm10 = vcmask 1043458  }
  0x53   : > { %16179 = vst [vmem:[#allocation29_spill] sm:$0xff] %v8297_v39  ;;  %v6427_v44 = vld [vmem:[#allocation6 + $0x98] sm:$0xf0]  ;;  %v8306_v47 = vor.u32 %v6751_v42, %v6425_v41  ;;  %v6401_v48 = vld [vmem:[#allocation6 + $0x60] sm:$0xf]  ;;  %vm16099_vm11 = vcmask 1044483  }
  0x54   : > { %16180 = vst [vmem:[#allocation30_spill] sm:$0xff] %v8300_v45  ;;  %v6746_v49 = vld [vmem:[#allocation6 + $0x6c] sm:$0xf0]  ;;  %v6744_v50 = vld [vmem:[#allocation6 + $0x64] sm:$0xf]  ;;  %v8309_v51 = vor.u32 %v6749_v43, %v6427_v44  ;;  %418 = vmatpush.bf16.msra.mxu0 %v8300_v45  ;;  %vm16098_vm12 = vcmask 1045508  }
  0x55   : > { %16181 = vst [vmem:[#allocation31_spill] sm:$0xff] %v8304_v46  ;;  %v6403_v52 = vld [vmem:[#allocation6 + $0x70] sm:$0xf0]  ;;  %v6409_v53 = vld [vmem:[#allocation6 + $0x68] sm:$0xf]  ;;  %v8312_v57 = vor.u32 %v6746_v49, %v6401_v48  ;;  %431 = vmatpush.bf16.msra.mxu1 %v8304_v46  ;;  %444 = vmatpush.bf16.msra.mxu2 %v8306_v47  ;;  %vm16097_vm13 = vcmask 1046533  }
  0x56   : > { %16182 = vst [vmem:[#allocation32_spill] sm:$0xff] %v8306_v47  ;;  %v6747_v54 = vld [vmem:[#allocation6 + $0x74] sm:$0xf0]  ;;  %v6745_v55 = vld [vmem:[#allocation6 + $0x6c] sm:$0xf]  ;;  %v8316_v58 = vor.u32 %v6744_v50, %v6403_v52  ;;  %457 = vmatpush.bf16.msra.mxu3 %v8309_v51  ;;  %vm16094_vm14 = vcmask 1045504  }
  0x57   : > { %16183 = vst [vmem:[#allocation33_spill] sm:$0xff] %v8309_v51  ;;  %v6411_v56 = vld [vmem:[#allocation6 + $0x78] sm:$0xf0]  ;;  %v8318_v59 = vor.u32 %v6747_v54, %v6409_v53  ;;  %v6385_v60 = vld [vmem:[#allocation6 + $0x40] sm:$0xf]  ;;  %vm16087_vm15 = vcmask 1046529  }
  0x58   : > { %16184 = vst [vmem:[#allocation34_spill] sm:$0xff] %v8312_v57  ;;  %v6742_v61 = vld [vmem:[#allocation6 + $0x4c] sm:$0xf0]  ;;  %v6740_v62 = vld [vmem:[#allocation6 + $0x44] sm:$0xf]  ;;  %v8321_v63 = vor.u32 %v6745_v55, %v6411_v56  ;;  %419 = vmatpush.bf16.msra.mxu0 %v8312_v57  ;;  %s6728_s15 = sshll.u32 %s8081_s16, 3 }
  0x59   : > { %16185 = vst [vmem:[#allocation35_spill] sm:$0xff] %v8316_v58  ;;  %v6387_v0 = vld [vmem:[#allocation6 + $0x50] sm:$0xf0]  ;;  %v6393_v1 = vld [vmem:[#allocation6 + $0x48] sm:$0xf]  ;;  %v8324_v6 = vor.u32 %v6742_v61, %v6385_v60  ;;  %432 = vmatpush.bf16.msra.mxu1 %v8316_v58  ;;  %445 = vmatpush.bf16.msra.mxu2 %v8318_v59  ;;  %s17333_s30 = sld [smem:[#allocation56_spill]] }
  0x5a   : > { %16186 = vst [vmem:[#allocation36_spill] sm:$0xff] %v8318_v59  ;;  %v6743_v2 = vld [vmem:[#allocation6 + $0x54] sm:$0xf0]  ;;  %v6741_v3 = vld [vmem:[#allocation6 + $0x4c] sm:$0xf]  ;;  %v8328_v7 = vor.u32 %v6740_v62, %v6387_v0  ;;  %458 = vmatpush.bf16.msra.mxu3 %v8321_v63  ;;  %s6232_s27 = sshll.u32 %s8263_s25, 4  ;;  %s6233_s27 = int_to_ptr.vmem [resolvable:$true] %s6232_s27 }
  0x5b   : > { %16187 = vst [vmem:[#allocation37_spill] sm:$0xff] %v8321_v63  ;;  %v6395_v5 = vld [vmem:[#allocation6 + $0x58] sm:$0xf0]  ;;  %v8330_v10 = vor.u32 %v6743_v2, %v6393_v1  ;;  %v6369_v11 = vld [vmem:[#allocation6 + $0x20] sm:$0xf]  ;;  %s6220_s4 = scalar_lea.sflag [#allocation5], %s195_s2 }
  0x5c   : > { %16188 = vst [vmem:[#allocation38_spill] sm:$0xff] %v8324_v6  ;;  %v6738_v12 = vld [vmem:[#allocation6 + $0x2c] sm:$0xf0]  ;;  %v6736_v14 = vld [vmem:[#allocation6 + $0x24] sm:$0xf]  ;;  %v8333_v15 = vor.u32 %v6741_v3, %v6395_v5  ;;  %420 = vmatpush.bf16.msra.mxu0 %v8324_v6 }
  0x5d   : > { %16189 = vst [vmem:[#allocation39_spill] sm:$0xff] %v8328_v7  ;;  %v6371_v16 = vld [vmem:[#allocation6 + $0x30] sm:$0xf0]  ;;  %v6377_v19 = vld [vmem:[#allocation6 + $0x28] sm:$0xf]  ;;  %v8336_v24 = vor.u32 %v6738_v12, %v6369_v11  ;;  %433 = vmatpush.bf16.msra.mxu1 %v8328_v7  ;;  %446 = vmatpush.bf16.msra.mxu2 %v8330_v10 }
  0x5e   : > { %16190 = vst [vmem:[#allocation40_spill] sm:$0xff] %v8330_v10  ;;  %v6739_v20 = vld [vmem:[#allocation6 + $0x34] sm:$0xf0]  ;;  %v6737_v21 = vld [vmem:[#allocation6 + $0x2c] sm:$0xf]  ;;  %v8340_v25 = vor.u32 %v6736_v14, %v6371_v16  ;;  %459 = vmatpush.bf16.msra.mxu3 %v8333_v15 }
  0x5f   : > { %16191 = vst [vmem:[#allocation41_spill] sm:$0xff] %v8333_v15  ;;  %v6379_v23 = vld [vmem:[#allocation6 + $0x38] sm:$0xf0]  ;;  %v8342_v27 = vor.u32 %v6739_v20, %v6377_v19  ;;  %v6353_v28 = vld [vmem:[#allocation6] sm:$0xf]  ;;  %s6230_s8 = scalar_lea.hbm %s17333_s30, %s6728_s15  ;;  %s7987_s23 = scalar_lea.hbm %s17333_s30, 16 }
  0x60   : > { %16192 = vst [vmem:[#allocation42_spill] sm:$0xff] %v8336_v24  ;;  %v6734_v29 = vld [vmem:[#allocation6 + $0xc] sm:$0xf0]  ;;  %v6732_v31 = vld [vmem:[#allocation6 + $0x4] sm:$0xf]  ;;  %v8345_v32 = vor.u32 %v6737_v21, %v6379_v23  ;;  %421 = vmatpush.bf16.msra.mxu0 %v8336_v24  ;;  %s6234_s28 = sshll.u32 %s6230_s8, 4  ;;  %s6235_s28 = int_to_ptr.hbm [resolvable:$true] %s6234_s28 }
  0x61   : > { %16193 = vst [vmem:[#allocation43_spill] sm:$0xff] %v8340_v25  ;;  %v6355_v33 = vld [vmem:[#allocation6 + $0x10] sm:$0xf0]  ;;  %v6361_v36 = vld [vmem:[#allocation6 + $0x8] sm:$0xf]  ;;  %v8348_v41 = vor.u32 %v6734_v29, %v6353_v28  ;;  %434 = vmatpush.bf16.msra.mxu1 %v8340_v25  ;;  %447 = vmatpush.bf16.msra.mxu2 %v8342_v27  ;;  %s7981_s16 = sshra.s32 %s6235_s28, 4  ;;  %s7982_s16 = int_to_ptr.hbm [resolvable:$true] %s7981_s16 }
  0x62   : > { %16194 = vst [vmem:[#allocation44_spill] sm:$0xff] %v8342_v27  ;;  %v6735_v37 = vld [vmem:[#allocation6 + $0x14] sm:$0xf0]  ;;  %v6733_v38 = vld [vmem:[#allocation6 + $0xc] sm:$0xf]  ;;  %v8353_v43 = vor.u32 %v6732_v31, %v6355_v33  ;;  %460 = vmatpush.bf16.msra.mxu3 %v8345_v32  ;;  %s7983_s20 = scalar_lea.hbm %s7982_s16, 8  ;;  %p7988_p2 = scmp.lt.s32.totalorder %s7982_s16, %s17333_s30 }
  0x63   : > { %16195 = vst [vmem:[#allocation45_spill] sm:$0xff] %v8345_v32  ;;  %v6363_v40 = vld [vmem:[#allocation6 + $0x18] sm:$0xf0]  ;;  %v237_v42 = vld [vmem:[%s8263_s25] sm:$0xff]  ;;  %v8355_v44 = vor.u32 %v6735_v37, %v6361_v36  ;;  %p7984_p1 = scmp.ne.s32.totalorder %s7982_s16, %s7983_s20  ;;  %p7989_p4 = scmp.lt.s32.totalorder %s7987_s23, %s7983_s20 }
  0x64   : > { %16196 = vst [vmem:[#allocation46_spill] sm:$0xff] %v8348_v41  ;;  %v8358_v48 = vor.u32 %v6733_v38, %v6363_v40  ;;  %v254_v49 = vpack.c.bf16 %v237_v42, %v237_v42  ;;  %422 = vmatpush.bf16.msra.mxu0 %v8348_v41  ;;  %v239_v33 = vld [vmem:[%s8250_s21] ss:$8 sm:$0xf] }
  0x65   : > { %16197 = vst [vmem:[#allocation47_spill] sm:$0xff] %v8353_v43  ;;  %435 = vmatpush.bf16.msra.mxu1 %v8353_v43  ;;  %448 = vmatpush.bf16.msra.mxu2 %v8355_v44  ;;  %p7985_p3 = pnand %p7984_p1, %p8188_p7  ;;  %p7990_p5 = por %p7989_p4, %p7988_p2 }
  0x66   : > { %16198 = vst [vmem:[#allocation48_spill] sm:$0xff] %v8355_v44  ;;  %461 = vmatpush.bf16.msra.mxu3 %v8358_v48 }
  0x67   : > { %16199 = vst [vmem:[#allocation49_spill] sm:$0xff] %v8358_v48  ;;  %423 = vmatmul.bf16.vlgmr.msra.gmra.mxu0 %v254_v49  ;;  %p7986_p0 = pneg %p7985_p3 }
  0x68   : > { %1169 = vmatpush.bf16.msrb.mxu0 %v8267_v4  ;;  %436 = vmatmul.bf16.vlgmr.msra.gmra.mxu1 %v254_v49 }
  0x69   : > { %1182 = vmatpush.bf16.msrb.mxu1 %v8269_v8  ;;  %449 = vmatmul.bf16.vlgmr.msra.gmra.mxu2 %v254_v49  ;;  %p7991_p6 = pnand %p7990_p5, %p7986_p0 }
  0x6a   : > { %462 = vmatmul.bf16.vlgmr.msra.gmra.mxu3 %v254_v49  ;;  %1195 = vmatpush.bf16.msrb.mxu2 %v8271_v9 }
  0x6b   : > { %1208 = vmatpush.bf16.msrb.mxu3 %v8274_v13 }
  0x6c   : > { %1170 = vmatpush.bf16.msrb.mxu0 %v8278_v17 }
  0x6d   : > { %1183 = vmatpush.bf16.msrb.mxu1 %v8280_v18 }
  0x6e   : > { %1196 = vmatpush.bf16.msrb.mxu2 %v8283_v22 }
  0x6f   : > { %1209 = vmatpush.bf16.msrb.mxu3 %v8285_v26 }
  0x70   : > { %1171 = vmatpush.bf16.msrb.mxu0 %v8288_v30 }
  0x71   : > { %1184 = vmatpush.bf16.msrb.mxu1 %v8292_v34 }
  0x72   : > { %1197 = vmatpush.bf16.msrb.mxu2 %v8294_v35 }
  0x73   : > { %1210 = vmatpush.bf16.msrb.mxu3 %v8297_v39 }
  0x74   : > { %1172 = vmatpush.bf16.msrb.mxu0 %v8300_v45 }
  0x75   : > { %1185 = vmatpush.bf16.msrb.mxu1 %v8304_v46 }
  0x76   : > { %1198 = vmatpush.bf16.msrb.mxu2 %v8306_v47 }
  0x77   : > { %1211 = vmatpush.bf16.msrb.mxu3 %v8309_v51 }
  0x78   : > { %1173 = vmatpush.bf16.msrb.mxu0 %v8312_v57 }
  0x79   : > { %1186 = vmatpush.bf16.msrb.mxu1 %v8316_v58 }
  0x7a   : > { %1199 = vmatpush.bf16.msrb.mxu2 %v8318_v59 }
  0x7b   : > { %1212 = vmatpush.bf16.msrb.mxu3 %v8321_v63 }
  0x7c   : > { %1174 = vmatpush.bf16.msrb.mxu0 %v8324_v6 }
  0x7d   : > { %1187 = vmatpush.bf16.msrb.mxu1 %v8328_v7 }
  0x7e   : > { %1200 = vmatpush.bf16.msrb.mxu2 %v8330_v10 }
  0x7f   : > { %1213 = vmatpush.bf16.msrb.mxu3 %v8333_v15 }
  0x80   : > { %1175 = vmatpush.bf16.msrb.mxu0 %v8336_v24 }
  0x81   : > { %1188 = vmatpush.bf16.msrb.mxu1 %v8340_v25 }
  0x82   : > { %1201 = vmatpush.bf16.msrb.mxu2 %v8342_v27 }
  0x83   : > { %1214 = vmatpush.bf16.msrb.mxu3 %v8345_v32 }
  0x84   : > { %1176 = vmatpush.bf16.msrb.mxu0 %v8348_v41 }
  0x85   : > { %1189 = vmatpush.bf16.msrb.mxu1 %v8353_v43 }
  0x86   : > { %1202 = vmatpush.bf16.msrb.mxu2 %v8355_v44 }
  0x87   : > { %1215 = vmatpush.bf16.msrb.mxu3 %v8358_v48 }
  0x88   : > { %1891 = vmatpush.bf16.msra.mxu0 %v8267_v4 }
  0x89   : > { %1904 = vmatpush.bf16.msra.mxu1 %v8269_v8 }
  0x8a   : > { %1917 = vmatpush.bf16.msra.mxu2 %v8271_v9 }
  0x8b   : > { %1930 = vmatpush.bf16.msra.mxu3 %v8274_v13 }
  0x8c   : > { %1892 = vmatpush.bf16.msra.mxu0 %v8278_v17 }
  0x8d   : > { %1905 = vmatpush.bf16.msra.mxu1 %v8280_v18 }
  0x8e   : > { %1918 = vmatpush.bf16.msra.mxu2 %v8283_v22 }
  0x8f   : > { %1931 = vmatpush.bf16.msra.mxu3 %v8285_v26 }
  0x90   : > { %1893 = vmatpush.bf16.msra.mxu0 %v8288_v30 }
  0x91   : > { %1906 = vmatpush.bf16.msra.mxu1 %v8292_v34 }
  0x92   : > { %1919 = vmatpush.bf16.msra.mxu2 %v8294_v35 }
  0x93   : > { %1932 = vmatpush.bf16.msra.mxu3 %v8297_v39 }
  0x94   : > { %1894 = vmatpush.bf16.msra.mxu0 %v8300_v45 }
  0x95   : > { %1907 = vmatpush.bf16.msra.mxu1 %v8304_v46 }
  0x96   : > { %1920 = vmatpush.bf16.msra.mxu2 %v8306_v47 }
  0x97   : > { %1933 = vmatpush.bf16.msra.mxu3 %v8309_v51 }
  0x98   : > { %1895 = vmatpush.bf16.msra.mxu0 %v8312_v57 }
  0x99   : > { %1908 = vmatpush.bf16.msra.mxu1 %v8316_v58 }
  0x9a   : > { %1921 = vmatpush.bf16.msra.mxu2 %v8318_v59 }
  0x9b   : > { %1934 = vmatpush.bf16.msra.mxu3 %v8321_v63 }
  0x9c   : > { %1896 = vmatpush.bf16.msra.mxu0 %v8324_v6 }
  0x9d   : > { %1909 = vmatpush.bf16.msra.mxu1 %v8328_v7 }
  0x9e   : > { %1922 = vmatpush.bf16.msra.mxu2 %v8330_v10 }
  0x9f   : > { %1935 = vmatpush.bf16.msra.mxu3 %v8333_v15 }
  0xa0   : > { %1897 = vmatpush.bf16.msra.mxu0 %v8336_v24 }
  0xa1   : > { %1910 = vmatpush.bf16.msra.mxu1 %v8340_v25 }
  0xa2   : > { %1923 = vmatpush.bf16.msra.mxu2 %v8342_v27 }
  0xa3   : > { %1936 = vmatpush.bf16.msra.mxu3 %v8345_v32 }
  0xa4   : > { %1898 = vmatpush.bf16.msra.mxu0 %v8348_v41 }
  0xa5   : > { %1911 = vmatpush.bf16.msra.mxu1 %v8353_v43 }
  0xa6   : > { %1924 = vmatpush.bf16.msra.mxu2 %v8355_v44 }
  0xa7   : > { %1937 = vmatpush.bf16.msra.mxu3 %v8358_v48 }
  0xe4   : > { %v424_v50 = vpop.f32.mrf.mxu0 }
  0xe5   : > { %v437_v52 = vpop.f32.mrf.mxu1 }
  0xe6   : > { %v471_v53 = vrot.slane %v437_v52, 7 }
  0xe8   : > { %v475_v54 = vsel %vm16110_vm0, %v424_v50, %v471_v53  ;;  %v481_v55 = vsel %vm480_vm2, %v424_v50, %v471_v53  ;;  %v487_v56 = vsel %vm476_vm1, %v424_v50, %v471_v53  ;;  %v493_v60 = vsel %vm482_vm3, %v424_v50, %v471_v53 }
  0xe9   : > { %v499_v61 = vsel %vm16129_vm4, %v424_v50, %v471_v53  ;;  %v505_v62 = vsel %vm16116_vm5, %v424_v50, %v471_v53  ;;  %v511_v0 = vsel %vm16111_vm6, %v424_v50, %v471_v53  ;;  %v516_v1 = vsel %vm16109_vm7, %v471_v53, %v424_v50 }
  0xec   : > { %v450_v2 = vpop.f32.mrf.mxu2  ;;  %v426_v11 = vpop.f32.mrf.mxu0 }
  0xed   : > { %v472_v3 = vrot.slane %v450_v2, 6  ;;  %v463_v5 = vpop.f32.mrf.mxu3  ;;  %v439_v14 = vpop.f32.mrf.mxu1  ;;  %v6345_v2 = vld [vmem:[%s8250_s21 + $0x40] ss:$8 sm:$0xf] }
  0xee   : > { %v473_v12 = vrot.slane %v463_v5, 5  ;;  %v6346_v11 = vld [vmem:[%s8250_s21 + $0x60] ss:$8 sm:$0xf] }
  0xf0   : > { %v477_v16 = vsel %vm476_vm1, %v472_v3, %v473_v12  ;;  %v483_v19 = vsel %vm482_vm3, %v472_v3, %v473_v12  ;;  %v489_v20 = vsel %vm16129_vm4, %v472_v3, %v473_v12  ;;  %v495_v21 = vsel %vm16116_vm5, %v472_v3, %v473_v12 }
  0xf1   : > { %v479_v23 = vsel %vm16108_vm8, %v475_v54, %v477_v16  ;;  %v485_v28 = vsel %vm16103_vm9, %v481_v55, %v483_v19  ;;  %v491_v29 = vsel %vm16100_vm10, %v487_v56, %v489_v20  ;;  %v497_v31 = vsel %vm16099_vm11, %v493_v60, %v495_v21  ;;  %v6344_v55 = vld [vmem:[%s8250_s21 + $0x20] ss:$8 sm:$0xf] }
  0xf2   : > { %v501_v36 = vsel %vm16111_vm6, %v472_v3, %v473_v12  ;;  %v507_v38 = vsel %vm16109_vm7, %v473_v12, %v472_v3  ;;  %v512_v40 = vsel %vm16110_vm0, %v472_v3, %v473_v12  ;;  %v517_v42 = vsel %vm480_vm2, %v472_v3, %v473_v12  ;;  %v6347_v3 = vld [vmem:[%s8250_s21 + $0x80] ss:$8 sm:$0xf] }
  0xf3   : > { %v503_v37 = vsel %vm16098_vm12, %v499_v61, %v501_v36  ;;  %v486_v49 = vrot.slane %v485_v28, 1  ;;  %v509_v50 = vsel %vm16097_vm13, %v505_v62, %v507_v38  ;;  %v514_v52 = vsel %vm16094_vm14, %v512_v40, %v511_v0 }
  0xf4   : > { %v519_v53 = vsel %vm16087_vm15, %v517_v42, %v516_v1  ;;  %v452_v54 = vpop.f32.mrf.mxu2  ;;  %v492_v56 = vrot.slane %v491_v29, 2  ;;  %v8454_v60 = vadd.f32 %v479_v23, %v239_v33  ;;  %v498_v5 = vrot.slane %v497_v31, 3  ;;  %v6348_v29 = vld [vmem:[%s8250_s21 + $0xa0] ss:$8 sm:$0xf] }
  0xf5   : > { %v465_v61 = vpop.f32.mrf.mxu3  ;;  %v504_v14 = vrot.slane %v503_v37, 4  ;;  %v8458_v16 = vadd.f32 %v6344_v55, %v486_v49  ;;  %v510_v23 = vrot.slane %v509_v50, 5  ;;  %v515_v37 = vrot.slane %v514_v52, 6  ;;  %v6349_v42 = vld [vmem:[%s8250_s21 + $0xc0] ss:$8 sm:$0xf] }
  0xf6   : > { %v8461_v12 = vadd.f32 %v6345_v2, %v492_v56  ;;  %v6479_v62 = vmul.f32 -1.442695, %v8454_v60  ;;  %v8464_v0 = vadd.f32 %v6346_v11, %v498_v5  ;;  %v520_v49 = vrot.slane %v519_v53, 7  ;;  %v6350_v50 = vld [vmem:[%s8250_s21 + $0xe0] ss:$8 sm:$0xf] }
  0xf7   : > { %v8466_v1 = vadd.f32 %v6347_v3, %v504_v14  ;;  %v6480_v19 = vmul.f32 -1.442695, %v8458_v16  ;;  %v8473_v33 = vadd.f32 %v6348_v29, %v510_v23  ;;  %v697_v56 = vrot.slane %v8454_v60, 1 }
  0xf8   : > { %6883 = vpow2.f32 %v6479_v62  ;;  %v6481_v20 = vmul.f32 -1.442695, %v8461_v12  ;;  %v6482_v21 = vmul.f32 -1.442695, %v8464_v0  ;;  %v8483_v5 = vadd.f32 %v6349_v42, %v515_v37 }
  0xf9   : > { %6885 = vpow2.f32 %v6480_v19  ;;  %v6483_v28 = vmul.f32 -1.442695, %v8466_v1  ;;  %v6484_v55 = vmul.f32 -1.442695, %v8473_v33  ;;  %v8488_v52 = vadd.f32 %v6350_v50, %v520_v49 }
  0xfa   : > { %6887 = vpow2.f32 %v6481_v20  ;;  %v698_v53 = vrot.slane %v8458_v16, 1  ;;  %v6487_v3 = vmul.f32 -1.442695, %v697_v56  ;;  %v699_v19 = vrot.slane %v8461_v12, 1 }
  0xfb   : > { %6889 = vpow2.f32 %v6482_v21  ;;  %v6485_v20 = vmul.f32 -1.442695, %v8483_v5  ;;  %v6486_v21 = vmul.f32 -1.442695, %v8488_v52  ;;  %v700_v29 = vrot.slane %v8464_v0, 1 }
  0xfc   : > { %6891 = vpow2.f32 %v6483_v28  ;;  %v6488_v28 = vmul.f32 -1.442695, %v698_v53  ;;  %v701_v37 = vrot.slane %v8466_v1, 1  ;;  %v703_v50 = vrot.slane %v8483_v5, 1 }
  0xfd   : > { %v6490_v56 = vmul.f32 -1.442695, %v700_v29  ;;  %v890_v53 = vrot.slane %v8458_v16, 3  ;;  %v16208_v46 = vrot.slane %v8454_v60, 2 }
  0xfe   : > { %v6884_v31 = vpop.eup %6883  ;;  %v8532_v27 = vmul.f32 -1.442695, %v703_v50 }
  0xff   : > { %v6886_v36 = vpop.eup %6885  ;;  %v8475_v38 = vadd.f32 1.0, %v6884_v31  ;;  %v6489_v31 = vmul.f32 -1.442695, %v699_v19  ;;  %v6491_v19 = vmul.f32 -1.442695, %v701_v37 }
 0x100   : > { %v6888_v40 = vpop.eup %6887  ;;  %v8481_v61 = vadd.f32 1.0, %v6886_v36 }
 0x101   : > { %v6890_v54 = vpop.eup %6889  ;;  %v8485_v11 = vadd.f32 1.0, %v6888_v40  ;;  %6893 = vrcp.f32 %v8475_v38  ;;  %v702_v40 = vrot.slane %v8473_v33, 1  ;;  %vm574_vm15 = vweird.f32 %v8475_v38 }
 0x102   : > { %v6892_v2 = vpop.eup %6891  ;;  %v8490_v14 = vadd.f32 1.0, %v6890_v54  ;;  %6895 = vpow2.f32 %v6484_v55  ;;  %vm589_vm14 = vweird.f32 %v8481_v61 }
 0x103   : > { %v8493_v62 = vadd.f32 1.0, %v6892_v2  ;;  %6897 = vrcp.f32 %v8481_v61  ;;  %v889_v2 = vrot.slane %v8454_v60, 3  ;;  %vm604_vm13 = vweird.f32 %v8485_v11 }
 0x104   : > { %6899 = vrcp.f32 %v8485_v11  ;;  %vm619_vm9 = vweird.f32 %v8490_v14  ;;  %v623_v59 = vand.u32 2147483647, %v8490_v14 }
 0x105   : > { %6901 = vrcp.f32 %v8490_v14 }
 0x106   : > { %6903 = vpow2.f32 %v6487_v3 }
 0x107   : > { %v8501_v23 = vpop.eup %6893  ;;  %6905 = vrcp.f32 %v8493_v62 }
 0x108   : > { %v6896_v36 = vpop.eup %6895  ;;  %6907 = vpow2.f32 %v6485_v20  ;;  %v570_v49 = vmul.f32 %v8501_v23, %v8475_v38  ;;  %v6492_v20 = vmul.f32 -1.442695, %v702_v40  ;;  %v593_v40 = vand.u32 2147483647, %v8481_v61 }
 0x109   : > { %v8507_v42 = vpop.eup %6897  ;;  %6909 = vpow2.f32 %v6486_v21  ;;  %v580_v21 = vand.u32 2147483648, %v8475_v38  ;;  %v8527_v32 = vadd.f32 1.0, %v6896_v36  ;;  %v578_v36 = vand.u32 2147483647, %v8475_v38 }
 0x10a   : > { %v8511_v54 = vpop.eup %6899  ;;  %6911 = vpow2.f32 %v6488_v28  ;;  %v585_v48 = vmul.f32 %v8507_v42, %v8481_v61  ;;  %v8536_v28 = vmul.f32 -1.442695, %v889_v2  ;;  %vm575_vm11 = vweird.f32 %v8501_v23 }
 0x10b   : > { %v8514_v55 = vpop.eup %6901  ;;  %6913 = vpow2.f32 %v6489_v31  ;;  %v571_v31 = vsub.f32 1.0, %v570_v49  ;;  %v600_v29 = vmul.f32 %v8511_v54, %v8485_v11  ;;  %v8538_v49 = vmul.f32 -1.442695, %v890_v53  ;;  %vm8600_vm0 = vmor %vm574_vm15, %vm575_vm11 }
 0x10c   : > { %v6904_v3 = vpop.eup %6903  ;;  %v615_v37 = vmul.f32 %v8514_v55, %v8490_v14  ;;  %6915 = vpow2.f32 %v6490_v56  ;;  %v8542_v15 = vor.u32 1.1754944e-38, %v580_v21  ;;  %v586_v10 = vsub.f32 1.0, %v585_v48 }
 0x10d   : > { %v8521_v44 = vpop.eup %6905  ;;  %v8534_v24 = vadd.f32 1.0, %v6904_v3  ;;  %6917 = vpow2.f32 %v6491_v19  ;;  %v572_v56 = vmul.f32 %v8501_v23, %v571_v31  ;;  %v601_v2 = vsub.f32 1.0, %v600_v29 }
 0x10e   : > { %v6908_v41 = vpop.eup %6907  ;;  %v616_v53 = vsub.f32 1.0, %v615_v37  ;;  %v630_v6 = vmul.f32 %v8521_v44, %v8493_v62  ;;  %6919 = vrcp.f32 %v8527_v32  ;;  %vm8561_vm12 = vcmp.eq.f32.partialorder %v578_v36, 8.507059e+37 }
 0x10f   : > { %v6910_v25 = vpop.eup %6909  ;;  %v8545_v7 = vadd.f32 1.0, %v6908_v41  ;;  %6921 = vrcp.f32 %v8534_v24  ;;  %v595_v41 = vand.u32 2147483648, %v8481_v61  ;;  %v587_v21 = vmul.f32 %v8507_v42, %v586_v10 }
 0x110   : > { %v6912_v43 = vpop.eup %6911  ;;  %v8548_v3 = vadd.f32 1.0, %v6910_v25  ;;  %6923 = vpow2.f32 %v6492_v20  ;;  %v608_v31 = vand.u32 2147483647, %v8485_v11  ;;  %v610_v37 = vand.u32 2147483648, %v8485_v11 }
 0x111   : > { %v6914_v50 = vpop.eup %6913  ;;  %v8554_v48 = vadd.f32 1.0, %v6912_v43  ;;  %v602_v43 = vmul.f32 %v8511_v54, %v601_v2  ;;  %6925 = vrcp.f32 %v8545_v7  ;;  %v573_v20 = vadd.f32 %v8501_v23, %v572_v56 }
 0x112   : > { %v8559_v19 = vadd.f32 1.0, %v6914_v50  ;;  %v6916_v29 = vpop.eup %6915  ;;  %vm8572_vm10 = vcmp.eq.f32.partialorder %v593_v40, 8.507059e+37  ;;  %v617_v50 = vmul.f32 %v8514_v55, %v616_v53  ;;  %v631_v10 = vsub.f32 1.0, %v630_v6 }
 0x113   : > { %6927 = vrcp.f32 %v8548_v3  ;;  %v8578_v63 = vpop.eup %6917  ;;  %v596_v2 = vor.u32 1.1754944e-38, %v595_v41  ;;  %v8585_v40 = vadd.f32 1.0, %v6916_v29  ;;  %v588_v56 = vadd.f32 %v8507_v42, %v587_v21 }
 0x114   : > { %6929 = vrcp.f32 %v8554_v48  ;;  %v8583_v58 = vpop.eup %6919  ;;  %vm590_vm8 = vweird.f32 %v8507_v42  ;;  %vm8589_vm7 = vcmp.eq.f32.partialorder %v608_v31, 8.507059e+37  ;;  %v603_v21 = vadd.f32 %v8511_v54, %v602_v43 }
 0x115   : > { %v8593_v53 = vpop.eup %6921  ;;  %6931 = vrcp.f32 %v8559_v19  ;;  %vm605_vm6 = vweird.f32 %v8511_v54  ;;  %v611_v31 = vor.u32 1.1754944e-38, %v610_v37  ;;  %v577_v57 = vsel %vm8600_vm0, %v8501_v23, %v573_v20  ;;  %vm8622_vm11 = vmor %vm589_vm14, %vm590_vm8 }
 0x116   : > { %v8606_v29 = vpop.eup %6923  ;;  %v618_v51 = vadd.f32 %v8514_v55, %v617_v50  ;;  %vm620_vm5 = vweird.f32 %v8514_v55  ;;  %v632_v38 = vmul.f32 %v8521_v44, %v631_v10  ;;  %6933 = vtanh.f32 %v16208_v46  ;;  %vm8643_vm8 = vmor %vm604_vm13, %vm605_vm6 }
 0x117   : > { %v8614_v47 = vpop.eup %6925  ;;  %vm8626_vm0 = vcmp.eq.f32.partialorder %v623_v59, 8.507059e+37  ;;  %v625_v37 = vand.u32 2147483648, %v8490_v14  ;;  %v645_v20 = vmul.f32 %v8583_v58, %v8527_v32  ;;  %6935 = vrcp.f32 %v8585_v40  ;;  %vm8664_vm6 = vmor %vm619_vm9, %vm620_vm5 }
 0x118   : > { %v592_v46 = vsel %vm8622_vm11, %v8507_v42, %v588_v56  ;;  %vm634_vm14 = vweird.f32 %v8493_v62  ;;  %v746_v60 = vmul.f32 %v8593_v53, %v8534_v24  ;;  %v8655_v10 = vsel %vm8561_vm12, %v8542_v15, %v577_v57 }
 0x119   : > { %v8633_v50 = vpop.eup %6927  ;;  %v607_v11 = vsel %vm8643_vm8, %v8511_v54, %v603_v21  ;;  %vm635_vm13 = vweird.f32 %v8521_v44  ;;  %v638_v56 = vand.u32 2147483647, %v8493_v62  ;;  %v622_v57 = vsel %vm8664_vm6, %v8514_v55, %v618_v51 }
 0x11a   : > { %v8650_v61 = vpop.eup %6929  ;;  %v633_v15 = vadd.f32 %v8521_v44, %v632_v38  ;;  %v640_v54 = vand.u32 2147483648, %v8493_v62  ;;  %v660_v25 = vmul.f32 %v8614_v47, %v8545_v7  ;;  %v8681_v41 = vsel %vm8572_vm10, %v596_v2, %v592_v46  ;;  %vm8702_vm5 = vmor %vm634_vm14, %vm635_vm13 }
 0x11b   : > { %v8677_v14 = vpop.eup %6931  ;;  %v626_v21 = vor.u32 1.1754944e-38, %v625_v37  ;;  %v646_v43 = vsub.f32 1.0, %v645_v20  ;;  %v675_v59 = vmul.f32 %v8633_v50, %v8548_v3  ;;  %v8687_v51 = vsel %vm8589_vm7, %v611_v31, %v607_v11 }
 0x11c   : > { %v655_v55 = vand.u32 2147483648, %v8527_v32  ;;  %v747_v38 = vsub.f32 1.0, %v746_v60  ;;  %v761_v42 = vmul.f32 %v8650_v61, %v8554_v48  ;;  %v8692_v45 = vpop.eup %6933  ;;  %vm8706_vm7 = vcmp.eq.f32.partialorder %v638_v56, 8.507059e+37 }
 0x11d   : > { %v8696_v36 = vsel %vm8626_vm0, %v626_v21, %v622_v57  ;;  %v653_v31 = vand.u32 2147483647, %v8527_v32  ;;  %v16221_v37 = vrot.slane %v8488_v52, 1  ;;  %v8713_v23 = vpop.eup %6935  ;;  %v637_v46 = vsel %vm8702_vm5, %v8521_v44, %v633_v15 }
 0x11e   : > { %v641_v62 = vor.u32 1.1754944e-38, %v640_v54  ;;  %v661_v60 = vsub.f32 1.0, %v660_v25  ;;  %v670_v11 = vand.u32 2147483648, %v8545_v7  ;;  %v647_v56 = vmul.f32 %v8583_v58, %v646_v43 }
 0x11f   : > { %v6494_v20 = vmul.f32 -1.442695, %v16221_v37  ;;  %vm649_vm9 = vweird.f32 %v8527_v32  ;;  %v668_v57 = vand.u32 2147483647, %v8545_v7  ;;  %v676_v21 = vsub.f32 1.0, %v675_v59 }
 0x120   : > { %v656_v39 = vor.u32 1.1754944e-38, %v655_v55  ;;  %vm664_vm10 = vweird.f32 %v8545_v7  ;;  %6937 = vpow2.f32 %v8532_v27  ;;  %v748_v37 = vmul.f32 %v8593_v53, %v747_v38 }
 0x121   : > { %v762_v2 = vsub.f32 1.0, %v761_v42  ;;  %v8727_v44 = vsel %vm8706_vm7, %v641_v62, %v637_v46  ;;  %vm8729_vm12 = vcmp.eq.f32.partialorder %v653_v31, 8.507059e+37  ;;  %vm679_vm15 = vweird.f32 %v8548_v3 }
 0x122   : > { %v685_v54 = vand.u32 2147483648, %v8548_v3  ;;  %6939 = vpow2.f32 %v6494_v20  ;;  %v662_v25 = vmul.f32 %v8614_v47, %v661_v60  ;;  %v671_v43 = vor.u32 1.1754944e-38, %v670_v11 }
 0x123   : > { %v683_v27 = vand.u32 2147483647, %v8548_v3  ;;  %v8738_v59 = vadd.f32 1.0, %v8578_v63  ;;  %v648_v55 = vadd.f32 %v8583_v58, %v647_v56  ;;  %vm650_vm11 = vweird.f32 %v8583_v58 }
 0x124   : > { %v677_v38 = vmul.f32 %v8633_v50, %v676_v21  ;;  %v754_v42 = vand.u32 2147483647, %v8534_v24  ;;  %v8745_v6 = vadd.f32 1.0, %v8606_v29  ;;  %v749_v31 = vadd.f32 %v8593_v53, %v748_v37  ;;  %vm8756_vm14 = vmor %vm649_vm9, %vm650_vm11 }
 0x125   : > { %vm751_vm0 = vweird.f32 %v8593_v53  ;;  %v763_v20 = vmul.f32 %v8650_v61, %v762_v2  ;;  %v686_v46 = vor.u32 1.1754944e-38, %v685_v54  ;;  %vm750_vm8 = vweird.f32 %v8534_v24 }
 0x126   : > { %v756_v63 = vand.u32 2147483648, %v8534_v24  ;;  %v776_v62 = vmul.f32 %v8677_v14, %v8559_v19  ;;  %v6938_v60 = vpop.eup %6937  ;;  %v663_v11 = vadd.f32 %v8614_v47, %v662_v25  ;;  %vm665_vm6 = vweird.f32 %v8614_v47  ;;  %vm8779_vm9 = vmor %vm750_vm8, %vm751_vm0 }
 0x127   : > { %vm8762_vm13 = vcmp.eq.f32.partialorder %v668_v57, 8.507059e+37  ;;  %vm680_vm5 = vweird.f32 %v8633_v50  ;;  %vm8767_vm7 = vcmp.eq.f32.partialorder %v683_v27, 8.507059e+37  ;;  %v791_v32 = vmul.f32 %v8713_v23, %v8585_v40  ;;  %vm8798_vm0 = vmor %vm664_vm10, %vm665_vm6 }
 0x128   : > { %v6940_v21 = vpop.eup %6939  ;;  %v652_v37 = vsel %vm8756_vm14, %v8583_v58, %v648_v55  ;;  %v678_v2 = vadd.f32 %v8633_v50, %v677_v38  ;;  %vm8783_vm11 = vcmp.eq.f32.partialorder %v754_v42, 8.507059e+37  ;;  %v769_v25 = vand.u32 2147483647, %v8554_v48  ;;  %vm8816_vm10 = vmor %vm679_vm15, %vm680_vm5 }
 0x129   : > { %v753_v27 = vsel %vm8779_vm9, %v8593_v53, %v749_v31  ;;  %v764_v58 = vadd.f32 %v8650_v61, %v763_v20  ;;  %vm766_vm14 = vweird.f32 %v8650_v61  ;;  %v771_v55 = vand.u32 2147483648, %v8554_v48 }
 0x12a   : > { %v8802_v42 = vadd.f32 1.0, %v6938_v60  ;;  %v757_v29 = vor.u32 1.1754944e-38, %v756_v63  ;;  %vm765_vm8 = vweird.f32 %v8554_v48  ;;  %v777_v53 = vsub.f32 1.0, %v776_v62 }
 0x12b   : > { %v8807_v31 = vsel %vm8729_vm12, %v656_v39, %v652_v37  ;;  %v667_v20 = vsel %vm8798_vm0, %v8614_v47, %v663_v11  ;;  %v8820_v63 = vadd.f32 1.0, %v6940_v21  ;;  %v792_v48 = vsub.f32 1.0, %v791_v32  ;;  %vm8829_vm12 = vmor %vm765_vm8, %vm766_vm14 }
 0x12c   : > { %v682_v39 = vsel %vm8816_vm10, %v8633_v50, %v678_v2  ;;  %v8827_v15 = vsel %vm8783_vm11, %v757_v29, %v753_v27  ;;  %vm8833_vm6 = vcmp.eq.f32.partialorder %v769_v25, 8.507059e+37  ;;  %6941 = vrcp.f32 %v8738_v59 }
 0x12d   : > { %v768_v62 = vsel %vm8829_vm12, %v8650_v61, %v764_v58  ;;  %v772_v60 = vor.u32 1.1754944e-38, %v771_v55  ;;  %v784_v50 = vand.u32 2147483647, %v8559_v19  ;;  %6943 = vrcp.f32 %v8745_v6 }
 0x12e   : > { %v778_v11 = vmul.f32 %v8677_v14, %v777_v53  ;;  %v786_v32 = vand.u32 2147483648, %v8559_v19  ;;  %6945 = vrcp.f32 %v8802_v42  ;;  %v891_v21 = vrot.slane %v8461_v12, 3 }
 0x12f   : > { %v793_v37 = vmul.f32 %v8713_v23, %v792_v48  ;;  %v799_v2 = vand.u32 2147483647, %v8585_v40  ;;  %6947 = vrcp.f32 %v8820_v63  ;;  %v892_v61 = vrot.slane %v8464_v0, 3 }
 0x130   : > { %v8853_v57 = vsel %vm8762_vm13, %v671_v43, %v667_v20  ;;  %v8857_v54 = vsel %vm8767_vm7, %v686_v46, %v682_v39  ;;  %vm780_vm15 = vweird.f32 %v8559_v19  ;;  %vm781_vm5 = vweird.f32 %v8677_v14 }
 0x131   : > { %v8863_v25 = vsel %vm8833_vm6, %v772_v60, %v768_v62  ;;  %vm795_vm9 = vweird.f32 %v8585_v40  ;;  %v801_v27 = vand.u32 2147483648, %v8585_v40  ;;  %v893_v56 = vrot.slane %v8466_v1, 3  ;;  %vm8895_vm14 = vmor %vm780_vm15, %vm781_vm5 }
 0x132   : > { %v8868_v43 = vpop.eup %6941  ;;  %v779_v24 = vadd.f32 %v8677_v14, %v778_v11  ;;  %vm8871_vm13 = vcmp.eq.f32.partialorder %v784_v50, 8.507059e+37  ;;  %vm796_vm7 = vweird.f32 %v8713_v23  ;;  %v6497_v58 = vmul.f32 -1.442695, %v891_v21 }
 0x133   : > { %v8876_v55 = vpop.eup %6943  ;;  %v787_v38 = vor.u32 1.1754944e-38, %v786_v32  ;;  %v794_v29 = vadd.f32 %v8713_v23, %v793_v37  ;;  %vm8879_vm11 = vcmp.eq.f32.partialorder %v799_v2, 8.507059e+37  ;;  %v6498_v20 = vmul.f32 -1.442695, %v892_v61  ;;  %vm8909_vm0 = vmor %vm795_vm9, %vm796_vm7 }
 0x134   : > { %v8883_v7 = vpop.eup %6945  ;;  %v814_v48 = vand.u32 2147483647, %v8738_v59  ;;  %v816_v39 = vand.u32 2147483648, %v8738_v59  ;;  %v894_v47 = vrot.slane %v8473_v33, 3  ;;  %6949 = vpow2.f32 %v8536_v28 }
 0x135   : > { %v8889_v3 = vpop.eup %6947  ;;  %v802_v60 = vor.u32 1.1754944e-38, %v801_v27  ;;  %v806_v50 = vmul.f32 %v8868_v43, %v8738_v59  ;;  %6951 = vpow2.f32 %v8538_v49  ;;  %v6499_v11 = vmul.f32 -1.442695, %v893_v56 }
 0x136   : > { %v783_v28 = vsel %vm8895_vm14, %v8677_v14, %v779_v24  ;;  %v821_v32 = vmul.f32 %v8876_v55, %v8745_v6  ;;  %v831_v21 = vand.u32 2147483648, %v8745_v6  ;;  %6953 = vpow2.f32 %v6497_v58 }
 0x137   : > { %v798_v49 = vsel %vm8909_vm0, %v8713_v23, %v794_v29  ;;  %v836_v14 = vmul.f32 %v8883_v7, %v8802_v42  ;;  %v846_v37 = vand.u32 2147483648, %v8802_v42  ;;  %6955 = vpow2.f32 %v6498_v20 }
 0x138   : > { %v8922_v40 = vor.u32 1.1754944e-38, %v816_v39  ;;  %v829_v2 = vand.u32 2147483647, %v8745_v6  ;;  %v851_v61 = vmul.f32 %v8889_v3, %v8820_v63  ;;  %v6500_v27 = vmul.f32 -1.442695, %v894_v47 }
 0x139   : > { %v8929_v56 = vsel %vm8871_vm13, %v787_v38, %v783_v28  ;;  %v807_v24 = vsub.f32 1.0, %v806_v50  ;;  %v895_v23 = vrot.slane %v8483_v5, 3  ;;  %6957 = vpow2.f32 %v6499_v11 }
 0x13a   : > { %v6950_v58 = vpop.eup %6949  ;;  %v8934_v29 = vsel %vm8879_vm11, %v802_v60, %v798_v49  ;;  %v822_v20 = vsub.f32 1.0, %v821_v32  ;;  %v8936_v39 = vor.u32 1.1754944e-38, %v831_v21  ;;  %v844_v62 = vand.u32 2147483647, %v8802_v42 }
 0x13b   : > { %v6952_v19 = vpop.eup %6951  ;;  %vm810_vm8 = vweird.f32 %v8738_v59  ;;  %vm811_vm10 = vweird.f32 %v8868_v43  ;;  %v837_v46 = vsub.f32 1.0, %v836_v14  ;;  %v8941_v38 = vor.u32 1.1754944e-38, %v846_v37 }
 0x13c   : > { %v8943_v47 = vadd.f32 1.0, %v6950_v58  ;;  %v6954_v50 = vpop.eup %6953  ;;  %vm825_vm12 = vweird.f32 %v8745_v6  ;;  %v852_v53 = vsub.f32 1.0, %v851_v61  ;;  %v896_v60 = vrot.slane %v8488_v52, 3  ;;  %vm9003_vm0 = vmor %vm810_vm8, %vm811_vm10 }
 0x13d   : > { %6959 = vpow2.f32 %v6500_v27  ;;  %v8947_v11 = vadd.f32 1.0, %v6952_v19  ;;  %v6956_v28 = vpop.eup %6955  ;;  %v808_v32 = vmul.f32 %v8868_v43, %v807_v24  ;;  %vm840_vm6 = vweird.f32 %v8802_v42 }
 0x13e   : > { %v6501_v21 = vmul.f32 -1.442695, %v895_v23  ;;  %v8951_v49 = vadd.f32 1.0, %v6954_v50  ;;  %6961 = vrcp.f32 %v8943_v47  ;;  %v823_v14 = vmul.f32 %v8876_v55, %v822_v20 }
 0x13f   : > { %vm855_vm15 = vweird.f32 %v8820_v63  ;;  %v859_v37 = vand.u32 2147483647, %v8820_v63  ;;  %v867_v61 = vrot.slane %v8461_v12, 2  ;;  %6963 = vrcp.f32 %v8947_v11  ;;  %v6958_v27 = vpop.eup %6957 }
 0x140   : > { %vm8959_vm5 = vcmp.eq.f32.partialorder %v814_v48, 8.507059e+37  ;;  %v838_v23 = vmul.f32 %v8883_v7, %v837_v46  ;;  %v861_v58 = vand.u32 2147483648, %v8820_v63  ;;  %v16252_v19 = vrot.slane %v8458_v16, 2 }
 0x141   : > { %v8967_v20 = vadd.f32 1.0, %v6956_v28  ;;  %vm826_vm9 = vweird.f32 %v8876_v55  ;;  %vm8970_vm13 = vcmp.eq.f32.partialorder %v829_v2, 8.507059e+37  ;;  %v853_v48 = vmul.f32 %v8889_v3, %v852_v53 }
 0x142   : > { %6965 = vtanh.f32 %v16252_v19  ;;  %v6502_v50 = vmul.f32 -1.442695, %v896_v60  ;;  %v809_v46 = vadd.f32 %v8868_v43, %v808_v32  ;;  %vm8977_vm7 = vcmp.eq.f32.partialorder %v844_v62, 8.507059e+37  ;;  %vm9020_vm8 = vmor %vm825_vm12, %vm826_vm9 }
 0x143   : > { %6967 = vrcp.f32 %v8951_v49  ;;  %v868_v16 = vrot.slane %v8464_v0, 2  ;;  %v869_v28 = vrot.slane %v8466_v1, 2  ;;  %v6960_v2 = vpop.eup %6959  ;;  %v824_v19 = vadd.f32 %v8876_v55, %v823_v14 }
 0x144   : > { %6969 = vpow2.f32 %v6501_v21  ;;  %vm8984_vm11 = vcmp.eq.f32.partialorder %v859_v37, 8.507059e+37  ;;  %v870_v53 = vrot.slane %v8473_v33, 2  ;;  %v8989_v60 = vadd.f32 1.0, %v6958_v27  ;;  %v8991_v62 = vpop.eup %6961 }
 0x145   : > { %6971 = vtanh.f32 %v867_v61  ;;  %v839_v32 = vadd.f32 %v8883_v7, %v838_v23  ;;  %vm841_vm14 = vweird.f32 %v8883_v7  ;;  %v871_v0 = vrot.slane %v8483_v5, 2  ;;  %v8997_v1 = vpop.eup %6963 }
 0x146   : > { %6973 = vrcp.f32 %v8967_v20  ;;  %v854_v21 = vadd.f32 %v8889_v3, %v853_v48  ;;  %vm856_vm4 = vweird.f32 %v8889_v3  ;;  %v938_v5 = vmul.f32 %v8991_v62, %v8943_v47  ;;  %vm9037_vm10 = vmor %vm840_vm6, %vm841_vm14 }
 0x147   : > { %6975 = vpow2.f32 %v6502_v50  ;;  %v813_v37 = vsel %vm9003_vm0, %v8868_v43, %v809_v46  ;;  %v9024_v61 = vadd.f32 1.0, %v6960_v2  ;;  %v953_v27 = vmul.f32 %v8997_v1, %v8947_v11  ;;  %vm9050_vm12 = vmor %vm855_vm15, %vm856_vm4 }
 0x148   : > { %v9011_v14 = vpop.eup %6965  ;;  %6977 = vtanh.f32 %v868_v16  ;;  %v828_v43 = vsel %vm9020_vm8, %v8876_v55, %v824_v19  ;;  %v872_v48 = vrot.slane %v8488_v52, 2  ;;  %v939_v50 = vsub.f32 1.0, %v938_v5 }
 0x149   : > { %v9028_v23 = vpop.eup %6967  ;;  %6979 = vrcp.f32 %v8989_v60  ;;  %v843_v16 = vsel %vm9037_vm10, %v8883_v7, %v839_v32  ;;  %v954_v55 = vsub.f32 1.0, %v953_v27  ;;  %v9061_v19 = vsel %vm8959_vm5, %v8922_v40, %v813_v37 }
 0x14a   : > { %v6970_v46 = vpop.eup %6969  ;;  %6981 = vtanh.f32 %v869_v28  ;;  %v968_v52 = vmul.f32 %v9028_v23, %v8951_v49  ;;  %v858_v63 = vsel %vm9050_vm12, %v8889_v3, %v854_v21  ;;  %v862_v7 = vor.u32 1.1754944e-38, %v861_v58 }
 0x14b   : > { %v9056_v2 = vpop.eup %6971  ;;  %6983 = vtanh.f32 %v870_v53  ;;  %v9071_v28 = vsel %vm8970_vm13, %v8936_v39, %v828_v43  ;;  %v946_v33 = vand.u32 2147483647, %v8943_v47  ;;  %v948_v5 = vand.u32 2147483648, %v8943_v47 }
 0x14c   : > { %v9066_v32 = vpop.eup %6973  ;;  %6985 = vrcp.f32 %v9024_v61  ;;  %v9079_v3 = vsel %vm8977_vm7, %v8941_v38, %v843_v16  ;;  %v9081_v24 = vadd.f32 1.0, %v6970_v46  ;;  %v940_v58 = vmul.f32 %v8991_v62, %v939_v50 }
 0x14d   : > { %v6976_v40 = vpop.eup %6975  ;;  %6987 = vtanh.f32 %v871_v0  ;;  %v9088_v39 = vsel %vm8984_vm11, %v862_v7, %v858_v63  ;;  %v955_v53 = vmul.f32 %v8997_v1, %v954_v55  ;;  %v969_v21 = vsub.f32 1.0, %v968_v52 }
 0x14e   : > { %v9084_v12 = vpop.eup %6977  ;;  %6989 = vtanh.f32 %v872_v48  ;;  %vm942_vm4 = vweird.f32 %v8943_v47  ;;  %vm957_vm6 = vweird.f32 %v8947_v11  ;;  %v961_v35 = vand.u32 2147483647, %v8947_v11 }
 0x14f   : > { %v9091_v37 = vpop.eup %6979  ;;  %v983_v38 = vmul.f32 %v9066_v32, %v8967_v20  ;;  %v9100_v34 = vadd.f32 1.0, %v6976_v40  ;;  %vm9102_vm15 = vcmp.eq.f32.partialorder %v946_v33, 8.507059e+37  ;;  %v949_v27 = vor.u32 1.1754944e-38, %v948_v5 }
 0x150   : > { %v9098_v0 = vpop.eup %6981  ;;  %v963_v43 = vand.u32 2147483648, %v8947_v11  ;;  %v941_v48 = vadd.f32 %v8991_v62, %v940_v58  ;;  %vm943_vm5 = vweird.f32 %v8991_v62  ;;  %v978_v50 = vand.u32 2147483648, %v8951_v49 }
 0x151   : > { %v9107_v6 = vpop.eup %6983  ;;  %6991 = vrcp.f32 %v9081_v24  ;;  %v956_v16 = vadd.f32 %v8997_v1, %v955_v53  ;;  %vm958_vm9 = vweird.f32 %v8997_v1  ;;  %v970_v42 = vmul.f32 %v9028_v23, %v969_v21  ;;  %vm9132_vm11 = vmor %vm942_vm4, %vm943_vm5 }
 0x152   : > { %v9113_v46 = vpop.eup %6985  ;;  %v998_v55 = vmul.f32 %v9091_v37, %v8989_v60  ;;  %vm9122_vm13 = vcmp.eq.f32.partialorder %v961_v35, 8.507059e+37  ;;  %vm972_vm7 = vweird.f32 %v8951_v49  ;;  %v984_v7 = vsub.f32 1.0, %v983_v38  ;;  %v9139_v35 = vld [vmem:[#allocation2] sm:$0xff]  ;;  %vm9148_vm14 = vmor %vm957_vm6, %vm958_vm9 }
 0x153   : > { %v9120_v52 = vpop.eup %6987  ;;  %v993_v33 = vand.u32 2147483648, %v8967_v20  ;;  %v964_v58 = vor.u32 1.1754944e-38, %v963_v43  ;;  %v976_v53 = vand.u32 2147483647, %v8951_v49  ;;  %v1008_v21 = vand.u32 2147483648, %v8989_v60 }
 0x154   : > { %v9128_v5 = vpop.eup %6989  ;;  %6993 = vrcp.f32 %v9100_v34  ;;  %v945_v38 = vsel %vm9132_vm11, %v8991_v62, %v941_v48  ;;  %v9152_v43 = vor.u32 1.1754944e-38, %v978_v50  ;;  %v991_v30 = vand.u32 2147483647, %v8967_v20 }
 0x155   : > { %v1013_v26 = vmul.f32 %v9113_v46, %v9024_v61  ;;  %v960_v40 = vsel %vm9148_vm14, %v8997_v1, %v956_v16  ;;  %v9161_v62 = vadd.f32 %v9028_v23, %v970_v42  ;;  %vm973_vm0 = vweird.f32 %v9028_v23 }
 0x156   : > { %v999_v11 = vsub.f32 1.0, %v998_v55  ;;  %v985_v50 = vmul.f32 %v9066_v32, %v984_v7  ;;  %v9167_v22 = vor.u32 1.1754944e-38, %v993_v33  ;;  %v1006_v18 = vand.u32 2147483647, %v8989_v60  ;;  %vm9185_vm8 = vmor %vm972_vm7, %vm973_vm0 }
 0x157   : > { %v9164_v48 = vpop.eup %6991  ;;  %v1023_v17 = vand.u32 2147483648, %v9024_v61  ;;  %v9173_v47 = vsel %vm9102_vm15, %v949_v27, %v945_v38  ;;  %v9175_v1 = vor.u32 1.1754944e-38, %v1008_v21  ;;  %v1021_v16 = vand.u32 2147483647, %v9024_v61 }
 0x158   : > { %v1058_v42 = vrot.slane %v9139_v35, 1  ;;  %v9181_v55 = vsel %vm9122_vm13, %v964_v58, %v960_v40  ;;  %vm988_vm10 = vweird.f32 %v9066_v32  ;;  %v1014_v59 = vsub.f32 1.0, %v1013_v26 }
 0x159   : > { %16275 = vst [vmem:[#allocation50_spill] sm:$0xff] %v9175_v1  ;;  %v1059_v27 = vrot.slane %v9139_v35, 2  ;;  %v1060_v33 = vrot.slane %v9139_v35, 3  ;;  %v975_v63 = vsel %vm9185_vm8, %v9028_v23, %v9161_v62  ;;  %v1000_v49 = vmul.f32 %v9091_v37, %v999_v11 }
 0x15a   : > { %v9192_v21 = vpop.eup %6993  ;;  %v1028_v58 = vmul.f32 %v9164_v48, %v9081_v24  ;;  %v1061_v38 = vrot.slane %v9139_v35, 4  ;;  %vm9202_vm12 = vcmp.eq.f32.partialorder %v976_v53, 8.507059e+37  ;;  %v9207_v40 = vadd.f32 %v9066_v32, %v985_v50 }
 0x15b   : > { %vm987_vm4 = vweird.f32 %v8967_v20  ;;  %v9210_v13 = vor.u32 1.1754944e-38, %v1023_v17  ;;  %v1043_v23 = vmul.f32 %v9192_v21, %v9100_v34  ;;  %v1062_v62 = vrot.slane %v9139_v35, 5 }
 0x15c   : > { %vm1003_vm6 = vweird.f32 %v9091_v37  ;;  %v1036_v11 = vand.u32 2147483647, %v9081_v24  ;;  %v1063_v53 = vrot.slane %v9139_v35, 6  ;;  %v1072_v7 = vmul.f32 %v8827_v15, %v9139_v35  ;;  %vm9280_vm14 = vmor %vm987_vm4, %vm988_vm10 }
 0x15d   : > { %16280 = vst [vmem:[#allocation51_spill] sm:$0xff] %v9210_v13  ;;  %v1073_v50 = vmul.f32 %v1058_v42, %v8863_v25  ;;  %v1015_v9 = vmul.f32 %v9113_v46, %v1014_v59  ;;  %vm1018_vm15 = vweird.f32 %v9113_v46  ;;  %v1064_v17 = vrot.slane %v9139_v35, 7 }
 0x15e   : > { %v1074_v8 = vmul.f32 %v1059_v27, %v8929_v56  ;;  %v1075_v4 = vmul.f32 %v1060_v33, %v8934_v29  ;;  %vm1002_vm5 = vweird.f32 %v8989_v60  ;;  %v1029_v13 = vsub.f32 1.0, %v1028_v58 }
 0x15f   : > { %v1076_v1 = vmul.f32 %v1061_v38, %v9061_v19  ;;  %v1080_v15 = vmul.f32 %v8692_v45, %v8655_v10  ;;  %v1081_v25 = vmul.f32 %v9011_v14, %v8681_v41  ;;  %vm1017_vm9 = vweird.f32 %v9024_v61  ;;  %vm9308_vm10 = vmor %vm1002_vm5, %vm1003_vm6  ;;  %v16308_v38 = vld [vmem:[#allocation22_spill] sm:$0xff] }
 0x160   : > { %v1044_v42 = vsub.f32 1.0, %v1043_v23  ;;  %v1077_v35 = vmul.f32 %v1062_v62, %v9071_v28  ;;  %v1082_v56 = vmul.f32 %v9056_v2, %v8687_v51  ;;  %v1083_v29 = vmul.f32 %v9084_v12, %v8696_v36  ;;  %vm9326_vm6 = vmor %vm1017_vm9, %vm1018_vm15 }
 0x161   : > { %vm9238_vm13 = vcmp.eq.f32.partialorder %v991_v30, 8.507059e+37  ;;  %vm1032_vm7 = vweird.f32 %v9081_v24  ;;  %v1078_v45 = vmul.f32 %v1063_v53, %v9079_v3  ;;  %v1084_v10 = vmul.f32 %v9098_v0, %v8727_v44 }
 0x162   : > { %v9246_v41 = vadd.f32 %v1080_v15, %v1072_v7  ;;  %v9248_v14 = vadd.f32 %v1081_v25, %v1073_v50  ;;  %v1079_v51 = vmul.f32 %v1064_v17, %v9088_v39  ;;  %v1085_v36 = vmul.f32 %v9107_v6, %v8807_v31 }
 0x163   : > { %v9253_v30 = vadd.f32 %v1082_v56, %v1074_v8  ;;  %v9255_v2 = vadd.f32 %v1083_v29, %v1075_v4  ;;  %vm9257_vm11 = vcmp.eq.f32.partialorder %v1006_v18, 8.507059e+37  ;;  %v1030_v28 = vmul.f32 %v9164_v48, %v1029_v13 }
 0x164   : > { %v1086_v44 = vmul.f32 %v9120_v52, %v8853_v57  ;;  %v9264_v3 = vadd.f32 %v1084_v10, %v1076_v1  ;;  %6995 = vtanh.f32 %v9246_v41  ;;  %v1045_v12 = vmul.f32 %v9192_v21, %v1044_v42  ;;  %v16300_v17 = vld [vmem:[#allocation51_spill] sm:$0xff] }
 0x165   : > { %v1087_v8 = vmul.f32 %v9128_v5, %v8857_v54  ;;  %v9270_v4 = vadd.f32 %v1085_v36, %v1077_v35  ;;  %6997 = vtanh.f32 %v9248_v14  ;;  %v980_v13 = vsel %vm9202_vm12, %v9152_v43, %v975_v63 }
 0x166   : > { %v1001_v31 = vadd.f32 %v9091_v37, %v1000_v49  ;;  %vm9285_vm0 = vcmp.eq.f32.partialorder %v1021_v16, 8.507059e+37  ;;  %v9289_v54 = vadd.f32 %v1086_v44, %v1078_v45  ;;  %6999 = vtanh.f32 %v9253_v30 }
 0x167   : > { %v990_v39 = vsel %vm9280_vm14, %v9066_v32, %v9207_v40  ;;  %v1038_v20 = vand.u32 2147483648, %v9081_v24  ;;  %v9297_v0 = vadd.f32 %v1087_v8, %v1079_v51  ;;  %7001 = vtanh.f32 %v9255_v2 }
 0x168   : > { %v1016_v6 = vadd.f32 %v9113_v46, %v1015_v9  ;;  %v1031_v52 = vadd.f32 %v9164_v48, %v1030_v28  ;;  %vm1033_vm8 = vweird.f32 %v9164_v48  ;;  %7003 = vtanh.f32 %v9264_v3 }
 0x169   : > { %vm9312_vm12 = vcmp.eq.f32.partialorder %v1036_v11, 8.507059e+37  ;;  %v1046_v9 = vadd.f32 %v9192_v21, %v1045_v12  ;;  %vm1048_vm4 = vweird.f32 %v9192_v21  ;;  %7005 = vtanh.f32 %v9270_v4  ;;  %vm9340_vm5 = vmor %vm1032_vm7, %vm1033_vm8 }
 0x16a   : > { %v6996_v43 = vpop.eup %6995  ;;  %v1005_v1 = vsel %vm9308_vm10, %v9091_v37, %v1001_v31  ;;  %v1051_v16 = vand.u32 2147483647, %v9100_v34  ;;  %v1053_v27 = vand.u32 2147483648, %v9100_v34  ;;  %7007 = vtanh.f32 %v9289_v54 }
 0x16b   : > { %v6998_v33 = vpop.eup %6997  ;;  %v995_v63 = vsel %vm9238_vm13, %v9167_v22, %v990_v39  ;;  %vm1047_vm15 = vweird.f32 %v9100_v34  ;;  %7009 = vtanh.f32 %v9297_v0  ;;  %v1104_v37 = vmul.f32 %v6996_v43, %v9173_v47  ;;  %v16299_v47 = vld [vmem:[#allocation50_spill] sm:$0xff] }
 0x16c   : > { %v7000_v49 = vpop.eup %6999  ;;  %v1020_v58 = vsel %vm9326_vm6, %v9113_v46, %v1016_v6  ;;  %v1035_v22 = vsel %vm9340_vm5, %v9164_v48, %v1031_v52  ;;  %v1039_v24 = vor.u32 1.1754944e-38, %v1038_v20  ;;  %vm9355_vm9 = vmor %vm1047_vm15, %vm1048_vm4  ;;  %v1105_v34 = vmul.f32 %v6998_v33, %v9181_v55 }
 0x16d   : > { %v7002_v26 = vpop.eup %7001  ;;  %v1010_v40 = vsel %vm9257_vm11, %v16299_v47, %v1005_v1  ;;  %v1050_v46 = vsel %vm9355_vm9, %v9192_v21, %v1046_v9  ;;  %v1106_v23 = vmul.f32 %v7000_v49, %v980_v13  ;;  %v1128_v48 = vpack.c.bf16 %v1104_v37, %v1104_v37  ;;  %v16304_v49 = vld [vmem:[#allocation18_spill] sm:$0xff]  ;;  %v16311_v47 = vld [vmem:[#allocation25_spill] sm:$0xff] }
 0x16e   : > { %v7004_v62 = vpop.eup %7003  ;;  %vm1052_vm13 = vcmp.eq.f32.partialorder %v1051_v16, 8.507059e+37  ;;  %v1054_v11 = vor.u32 1.1754944e-38, %v1053_v27  ;;  %v1107_v53 = vmul.f32 %v7002_v26, %v995_v63  ;;  %v1129_v7 = vpack.c.bf16 %v1105_v34, %v1105_v34  ;;  %v16309_v34 = vld [vmem:[#allocation23_spill] sm:$0xff]  ;;  %v16310_v26 = vld [vmem:[#allocation24_spill] sm:$0xff] }
 0x16f   : > { %v7006_v50 = vpop.eup %7005  ;;  %v1025_v55 = vsel %vm9285_vm0, %v16300_v17, %v1020_v58  ;;  %v1040_v15 = vsel %vm9312_vm12, %v1039_v24, %v1035_v22  ;;  %v1108_v25 = vmul.f32 %v7004_v62, %v1010_v40  ;;  %v1130_v42 = vpack.c.bf16 %v1106_v23, %v1106_v23  ;;  %v16305_v58 = vld [vmem:[#allocation19_spill] sm:$0xff]  ;;  %v16306_v22 = vld [vmem:[#allocation20_spill] sm:$0xff]  ;;  %v16307_v24 = vld [vmem:[#allocation21_spill] sm:$0xff] }
 0x170   : > { %v7008_v35 = vpop.eup %7007  ;;  %v1055_v56 = vsel %vm1052_vm13, %v1054_v11, %v1050_v46  ;;  %v1109_v21 = vmul.f32 %v7006_v50, %v1025_v55  ;;  %v1131_v29 = vpack.c.bf16 %v1107_v53, %v1107_v53  ;;  %v1145_v59 = vunpack.c.l.b16 %v1129_v7  ;;  %v16312_v40 = vld [vmem:[#allocation26_spill] sm:$0xff]  ;;  %v16313_v46 = vld [vmem:[#allocation27_spill] sm:$0xff]  ;;  %v16314_v23 = vld [vmem:[#allocation28_spill] sm:$0xff] }
 0x171   : > { %v7010_v45 = vpop.eup %7009  ;;  %v1110_v10 = vmul.f32 %v7008_v35, %v1040_v15  ;;  %v1132_v51 = vpack.c.bf16 %v1108_v25, %v1108_v25  ;;  %v1144_v36 = vunpack.c.l.b16 %v1128_v48  ;;  %v1146_v19 = vunpack.c.l.b16 %v1130_v42  ;;  %v16315_v48 = vld [vmem:[#allocation29_spill] sm:$0xff]  ;;  %v16316_v62 = vld [vmem:[#allocation30_spill] sm:$0xff]  ;;  %v16317_v11 = vld [vmem:[#allocation31_spill] sm:$0xff] }
 0x172   : > { %v1111_v28 = vmul.f32 %v7010_v45, %v1055_v56  ;;  %v1133_v44 = vpack.c.bf16 %v1109_v21, %v1109_v21  ;;  %v1147_v12 = vunpack.c.l.b16 %v1131_v29  ;;  %v1152_v8 = vrot.slane %v1145_v59, 7  ;;  %v16318_v53 = vld [vmem:[#allocation32_spill] sm:$0xff]  ;;  %v16319_v7 = vld [vmem:[#allocation33_spill] sm:$0xff]  ;;  %v16320_v50 = vld [vmem:[#allocation34_spill] sm:$0xff] }
 0x173   : > { %v1134_v13 = vpack.c.bf16 %v1110_v10, %v1110_v10  ;;  %v1148_v18 = vunpack.c.l.b16 %v1132_v51  ;;  %v1154_v31 = vrot.slane %v1146_v19, 6  ;;  %vm16301_vm7 = vcmask 1044484   ;;  %v16321_v17 = vld [vmem:[#allocation35_spill] sm:$0xff]  ;;  %v16322_v55 = vld [vmem:[#allocation36_spill] sm:$0xff]  ;;  %v16323_v15 = vld [vmem:[#allocation37_spill] sm:$0xff] }
 0x174   : > { %v1135_v57 = vpack.c.bf16 %v1111_v28, %v1111_v28  ;;  %v1149_v39 = vunpack.c.l.b16 %v1133_v44  ;;  %v1153_v20 = vsel %vm480_vm2, %v1152_v8, %v1144_v36  ;;  %v1156_v6 = vrot.slane %v1147_v12, 5  ;;  %v16324_v25 = vld [vmem:[#allocation38_spill] sm:$0xff]  ;;  %v16325_v42 = vld [vmem:[#allocation39_spill] sm:$0xff]  ;;  %v16326_v35 = vld [vmem:[#allocation40_spill] sm:$0xff] }
 0x175   : > { %v1150_v52 = vunpack.c.l.b16 %v1134_v13  ;;  %v1155_v32 = vsel %vm476_vm1, %v1154_v31, %v1153_v20  ;;  %v1158_v5 = vrot.slane %v1148_v18, 4  ;;  %vm1165_vm11 = vcmask 1047559   ;;  %v16327_v56 = vld [vmem:[#allocation41_spill] sm:$0xff]  ;;  %v16328_v21 = vld [vmem:[#allocation42_spill] sm:$0xff]  ;;  %v16329_v29 = vld [vmem:[#allocation43_spill] sm:$0xff] }
 0x176   : > { %v1151_v9 = vunpack.c.l.b16 %v1135_v57  ;;  %v1157_v43 = vsel %vm482_vm3, %v1156_v6, %v1155_v32  ;;  %v1160_v1 = vrot.slane %v1149_v39, 3  ;;  %vm16302_vm14 = vcmask 1045509   ;;  %v16330_v59 = vld [vmem:[#allocation44_spill] sm:$0xff]  ;;  %v16331_v45 = vld [vmem:[#allocation45_spill] sm:$0xff]  ;;  %v16332_v10 = vld [vmem:[#allocation46_spill] sm:$0xff] }
 0x177   : > { %v1159_v60 = vsel %vm16301_vm7, %v1158_v5, %v1157_v43  ;;  %v1162_v16 = vrot.slane %v1150_v52, 2  ;;  %vm16303_vm0 = vcmask 1046534   ;;  %v16333_v51 = vld [vmem:[#allocation47_spill] sm:$0xff]  ;;  %v16334_v36 = vld [vmem:[#allocation48_spill] sm:$0xff]  ;;  %v16335_v19 = vld [vmem:[#allocation49_spill] sm:$0xff]  ;;  %vm16336_vm8 = vcmask 1040384  }
 0x178   : > { %v1161_v27 = vsel %vm16302_vm14, %v1160_v1, %v1159_v60  ;;  %v1164_v33 = vrot.slane %v1151_v9, 1  ;;  %vm16337_vm10 = vmmov %vm16301_vm7  ;;  %vm16340_vm6 = vcmask 1046528   ;;  %vm16343_vm9 = vcmask 1041408  }
 0x179   : > { %v1163_v63 = vsel %vm16303_vm0, %v1162_v16, %v1161_v27  ;;  %vm16338_vm12 = vmmov %vm16302_vm14  ;;  %vm16344_vm13 = vcmask 1042433   ;;  %vm16346_vm14 = vcmask 1044483  }
 0x17a   : > { %v1166_v61 = vsel %vm1165_vm11, %v1164_v33, %v1163_v63  ;;  %vm16339_vm4 = vmmov %vm16303_vm0 }
 0x17b   : > { %v1167_v37 = vpack.c.b16 %v1166_v61, %v1166_v61  ;;  %vm16341_vm5 = vmmov %vm16301_vm7  ;;  %vm16345_vm7 = vcmask 1043458  }
 0x17c   : > { %vm16342_vm15 = vmmov %vm16338_vm12 }
 0x17d   : > { %1177 = vmatmul.bf16.vlgmr.msrb.gmra.mxu0 %v1167_v37  ;;  %1190 = vmatmul.bf16.vlgmr.msrb.gmra.mxu1 %v1167_v37 }
 0x17e   : > { %1203 = vmatmul.bf16.vlgmr.msrb.gmra.mxu2 %v1167_v37  ;;  %1216 = vmatmul.bf16.vlgmr.msrb.gmra.mxu3 %v1167_v37 }
 0x17f   : > { %2613 = vmatpush.bf16.msrb.mxu0 %v16304_v49  ;;  %2626 = vmatpush.bf16.msrb.mxu1 %v16305_v58 }
 0x180   : > { %2639 = vmatpush.bf16.msrb.mxu2 %v16306_v22  ;;  %2652 = vmatpush.bf16.msrb.mxu3 %v16307_v24 }
 0x183   : > { %2614 = vmatpush.bf16.msrb.mxu0 %v16308_v38  ;;  %2627 = vmatpush.bf16.msrb.mxu1 %v16309_v34 }
 0x184   : > { %2640 = vmatpush.bf16.msrb.mxu2 %v16310_v26  ;;  %2653 = vmatpush.bf16.msrb.mxu3 %v16311_v47 }
 0x187   : > { %2615 = vmatpush.bf16.msrb.mxu0 %v16312_v40  ;;  %2628 = vmatpush.bf16.msrb.mxu1 %v16313_v46 }
 0x188   : > { %2641 = vmatpush.bf16.msrb.mxu2 %v16314_v23  ;;  %2654 = vmatpush.bf16.msrb.mxu3 %v16315_v48 }
 0x18b   : > { %2616 = vmatpush.bf16.msrb.mxu0 %v16316_v62  ;;  %2629 = vmatpush.bf16.msrb.mxu1 %v16317_v11 }
 0x18c   : > { %2642 = vmatpush.bf16.msrb.mxu2 %v16318_v53  ;;  %2655 = vmatpush.bf16.msrb.mxu3 %v16319_v7 }
 0x18f   : > { %2617 = vmatpush.bf16.msrb.mxu0 %v16320_v50  ;;  %2630 = vmatpush.bf16.msrb.mxu1 %v16321_v17 }
 0x190   : > { %2643 = vmatpush.bf16.msrb.mxu2 %v16322_v55  ;;  %2656 = vmatpush.bf16.msrb.mxu3 %v16323_v15 }
 0x193   : > { %2618 = vmatpush.bf16.msrb.mxu0 %v16324_v25  ;;  %2631 = vmatpush.bf16.msrb.mxu1 %v16325_v42 }
 0x194   : > { %2644 = vmatpush.bf16.msrb.mxu2 %v16326_v35  ;;  %2657 = vmatpush.bf16.msrb.mxu3 %v16327_v56 }
 0x197   : > { %2619 = vmatpush.bf16.msrb.mxu0 %v16328_v21  ;;  %2632 = vmatpush.bf16.msrb.mxu1 %v16329_v29 }
 0x198   : > { %2645 = vmatpush.bf16.msrb.mxu2 %v16330_v59  ;;  %2658 = vmatpush.bf16.msrb.mxu3 %v16331_v45 }
 0x19b   : > { %2620 = vmatpush.bf16.msrb.mxu0 %v16332_v10  ;;  %2633 = vmatpush.bf16.msrb.mxu1 %v16333_v51 }
 0x19c   : > { %2646 = vmatpush.bf16.msrb.mxu2 %v16334_v36  ;;  %2659 = vmatpush.bf16.msrb.mxu3 %v16335_v19 }
 0x1fa   : > { %v1178_v28 = vpop.f32.mrf.mxu0  ;;  %v1191_v44 = vpop.f32.mrf.mxu1 }
 0x1fb   : > { %v1225_v12 = vrot.slane %v1191_v44, 7  ;;  %v6503_v44 = vld [vmem:[%s8250_s21 + $0x1] ss:$8 sm:$0xf] }
 0x1fd   : > { %v1228_v8 = vsel %vm16336_vm8, %v1178_v28, %v1225_v12  ;;  %v1231_v13 = vsel %vm480_vm2, %v1178_v28, %v1225_v12  ;;  %v1235_v18 = vsel %vm476_vm1, %v1178_v28, %v1225_v12  ;;  %v1239_v31 = vsel %vm482_vm3, %v1178_v28, %v1225_v12 }
 0x1fe   : > { %v1243_v57 = vsel %vm16337_vm10, %v1178_v28, %v1225_v12  ;;  %v1247_v39 = vsel %vm16338_vm12, %v1178_v28, %v1225_v12  ;;  %v1251_v20 = vsel %vm16339_vm4, %v1178_v28, %v1225_v12  ;;  %v1255_v6 = vsel %vm16340_vm6, %v1225_v12, %v1178_v28  ;;  %vm16348_vm10 = vmmov %vm16340_vm6 }
 0x1ff   : > { %vm16347_vm8 = vcmask 1045508   ;;  %vm16349_vm12 = vcmask 1040384   ;;  %vm16350_vm4 = vcmask 1046533   ;;  %vm16351_vm6 = vcmask 1045504  }
 0x201   : > { %v1204_v52 = vpop.f32.mrf.mxu2  ;;  %v1217_v32 = vpop.f32.mrf.mxu3 }
 0x202   : > { %v1226_v5 = vrot.slane %v1204_v52, 6  ;;  %v1227_v9 = vrot.slane %v1217_v32, 5  ;;  %v1180_v43 = vpop.f32.mrf.mxu0  ;;  %v1193_v1 = vpop.f32.mrf.mxu1 }
 0x203   : > { %v6504_v43 = vld [vmem:[%s8250_s21 + $0x21] ss:$8 sm:$0xf] }
 0x204   : > { %v1229_v60 = vsel %vm476_vm1, %v1226_v5, %v1227_v9  ;;  %v1232_v16 = vsel %vm482_vm3, %v1226_v5, %v1227_v9  ;;  %v1236_v27 = vsel %vm16341_vm5, %v1226_v5, %v1227_v9  ;;  %v1240_v33 = vsel %vm16342_vm15, %v1226_v5, %v1227_v9 }
 0x205   : > { %v1230_v63 = vsel %vm16343_vm9, %v1228_v8, %v1229_v60  ;;  %v1233_v61 = vsel %vm16344_vm13, %v1231_v13, %v1232_v16  ;;  %v1237_v37 = vsel %vm16345_vm7, %v1235_v18, %v1236_v27  ;;  %v1241_v28 = vsel %vm16346_vm14, %v1239_v31, %v1240_v33  ;;  %v6505_v13 = vld [vmem:[%s8250_s21 + $0x41] ss:$8 sm:$0xf] }
 0x206   : > { %v1234_v12 = vrot.slane %v1233_v61, 1  ;;  %v1238_v52 = vrot.slane %v1237_v37, 2  ;;  %v1244_v32 = vsel %vm16303_vm0, %v1226_v5, %v1227_v9  ;;  %v1248_v19 = vsel %vm16348_vm10, %v1227_v9, %v1226_v5  ;;  %v6506_v27 = vld [vmem:[%s8250_s21 + $0x61] ss:$8 sm:$0xf] }
 0x207   : > { %v1245_v1 = vsel %vm16347_vm8, %v1243_v57, %v1244_v32  ;;  %v1252_v36 = vsel %vm16349_vm12, %v1226_v5, %v1227_v9  ;;  %v1256_v8 = vsel %vm480_vm2, %v1226_v5, %v1227_v9  ;;  %v1242_v18 = vrot.slane %v1241_v28, 3 }
 0x208   : > { %v1249_v60 = vsel %vm16350_vm4, %v1247_v39, %v1248_v19  ;;  %v1253_v31 = vsel %vm16351_vm6, %v1252_v36, %v1251_v20  ;;  %vm16352_vm5 = vcmask 1046529   ;;  %v9438_v33 = vadd.f32 %v6503_v44, %v1230_v63  ;;  %v6507_v36 = vld [vmem:[%s8250_s21 + $0x81] ss:$8 sm:$0xf] }
 0x209   : > { %v1257_v16 = vsel %vm16352_vm5, %v1256_v8, %v1255_v6  ;;  %v1206_v61 = vpop.f32.mrf.mxu2  ;;  %v1219_v57 = vpop.f32.mrf.mxu3  ;;  %v9440_v37 = vadd.f32 %v6504_v43, %v1234_v12  ;;  %v9442_v32 = vadd.f32 %v6505_v13, %v1238_v52  ;;  %v9444_v51 = vadd.f32 %v6506_v27, %v1242_v18  ;;  %v6508_v52 = vld [vmem:[%s8250_s21 + $0xa1] ss:$8 sm:$0xf] }
 0x20a   : > { %v6511_v5 = vmul.f32 -1.442695, %v9438_v33  ;;  %v1246_v9 = vrot.slane %v1245_v1, 4  ;;  %v1250_v44 = vrot.slane %v1249_v60, 5  ;;  %v1254_v43 = vrot.slane %v1253_v31, 6 }
 0x20b   : > { %v6512_v19 = vmul.f32 -1.442695, %v9440_v37  ;;  %v6513_v39 = vmul.f32 -1.442695, %v9442_v32  ;;  %v6514_v20 = vmul.f32 -1.442695, %v9444_v51 }
 0x20c   : > { %7011 = vpow2.f32 %v6511_v5  ;;  %v9451_v6 = vadd.f32 %v6507_v36, %v1246_v9  ;;  %v6509_v8 = vld [vmem:[%s8250_s21 + $0xc1] ss:$8 sm:$0xf]  ;;  %v1258_v13 = vrot.slane %v1257_v16, 7  ;;  %v1435_v57 = vrot.slane %v9438_v33, 1 }
 0x20d   : > { %7013 = vpow2.f32 %v6512_v19  ;;  %v6510_v27 = vld [vmem:[%s8250_s21 + $0xe1] ss:$8 sm:$0xf]  ;;  %v9460_v5 = vadd.f32 %v6508_v52, %v1250_v44  ;;  %v9464_v19 = vadd.f32 %v6509_v8, %v1254_v43  ;;  %v1438_v43 = vrot.slane %v9444_v51, 1 }
 0x20e   : > { %7015 = vpow2.f32 %v6513_v39  ;;  %v6515_v63 = vmul.f32 -1.442695, %v9451_v6  ;;  %v9468_v36 = vadd.f32 %v6510_v27, %v1258_v13  ;;  %v6519_v16 = vmul.f32 -1.442695, %v1435_v57 }
 0x20f   : > { %7017 = vpow2.f32 %v6514_v20  ;;  %v6516_v39 = vmul.f32 -1.442695, %v9460_v5  ;;  %v1439_v8 = vrot.slane %v9451_v6, 1  ;;  %v1440_v27 = vrot.slane %v9460_v5, 1 }
 0x210   : > { %7019 = vpow2.f32 %v6515_v63  ;;  %v6517_v63 = vmul.f32 -1.442695, %v9464_v19  ;;  %v6518_v44 = vmul.f32 -1.442695, %v9468_v36  ;;  %v1627_v45 = vrot.slane %v9438_v33, 3 }
 0x211   : > { %v9500_v21 = vmul.f32 -1.442695, %v1440_v27  ;;  %v16363_v26 = vrot.slane %v9438_v33, 2 }
 0x212   : > { %v7012_v28 = vpop.eup %7011  ;;  %v9513_v15 = vmul.f32 -1.442695, %v1627_v45 }
 0x213   : > { %v7014_v12 = vpop.eup %7013  ;;  %v9457_v61 = vadd.f32 1.0, %v7012_v28  ;;  %v1436_v28 = vrot.slane %v9440_v37, 1 }
 0x214   : > { %v7016_v1 = vpop.eup %7015  ;;  %v9462_v9 = vadd.f32 1.0, %v7014_v12  ;;  %v1437_v12 = vrot.slane %v9442_v32, 1 }
 0x215   : > { %v7018_v18 = vpop.eup %7017  ;;  %v9466_v60 = vadd.f32 1.0, %v7016_v1  ;;  %7021 = vrcp.f32 %v9457_v61  ;;  %v6520_v13 = vmul.f32 -1.442695, %v1436_v28  ;;  %v1628_v28 = vrot.slane %v9440_v37, 3 }
 0x216   : > { %v9470_v31 = vadd.f32 1.0, %v7018_v18  ;;  %7023 = vrcp.f32 %v9462_v9  ;;  %v7020_v20 = vpop.eup %7019  ;;  %v6521_v10 = vmul.f32 -1.442695, %v1437_v12  ;;  %v1318_v56 = vand.u32 2147483648, %v9457_v61 }
 0x217   : > { %7025 = vrcp.f32 %v9466_v60  ;;  %v9481_v52 = vadd.f32 1.0, %v7020_v20  ;;  %v6522_v20 = vmul.f32 -1.442695, %v1438_v43  ;;  %v9518_v55 = vmul.f32 -1.442695, %v1628_v28 }
 0x218   : > { %7027 = vrcp.f32 %v9470_v31  ;;  %vm1312_vm15 = vweird.f32 %v9457_v61  ;;  %v1333_v42 = vand.u32 2147483648, %v9462_v9  ;;  %vm1327_vm9 = vweird.f32 %v9462_v9 }
 0x219   : > { %7029 = vpow2.f32 %v6519_v16  ;;  %vm1342_vm13 = vweird.f32 %v9466_v60  ;;  %v1346_v62 = vand.u32 2147483647, %v9466_v60  ;;  %vm1357_vm8 = vweird.f32 %v9470_v31 }
 0x21a   : > { %7031 = vpow2.f32 %v6516_v39  ;;  %v1441_v39 = vrot.slane %v9464_v19, 1 }
 0x21b   : > { %v9484_v1 = vpop.eup %7021  ;;  %7033 = vpow2.f32 %v6517_v63  ;;  %v6523_v63 = vmul.f32 -1.442695, %v1439_v8 }
 0x21c   : > { %v9487_v18 = vpop.eup %7023  ;;  %7035 = vpow2.f32 %v6518_v44  ;;  %v1308_v44 = vmul.f32 %v9484_v1, %v9457_v61  ;;  %v9516_v12 = vmul.f32 -1.442695, %v1441_v39  ;;  %vm1313_vm14 = vweird.f32 %v9484_v1 }
 0x21d   : > { %v9490_v57 = vpop.eup %7025  ;;  %7037 = vrcp.f32 %v9481_v52  ;;  %v1323_v43 = vmul.f32 %v9487_v18, %v9462_v9  ;;  %vm1328_vm10 = vweird.f32 %v9487_v18  ;;  %vm9579_vm4 = vmor %vm1312_vm15, %vm1313_vm14  ;;  %vm9597_vm15 = vcmp.eq.f32.partialorder %v1346_v62, 8.507059e+37 }
 0x21e   : > { %v9492_v16 = vpop.eup %7027  ;;  %7039 = vpow2.f32 %v6520_v13  ;;  %v1338_v8 = vmul.f32 %v9490_v57, %v9466_v60  ;;  %v1309_v17 = vsub.f32 1.0, %v1308_v44  ;;  %vm1343_vm12 = vweird.f32 %v9490_v57  ;;  %vm9593_vm5 = vmor %vm1327_vm9, %vm1328_vm10 }
 0x21f   : > { %v7030_v59 = vpop.eup %7029  ;;  %7041 = vpow2.f32 %v6521_v10  ;;  %v1353_v13 = vmul.f32 %v9492_v16, %v9470_v31  ;;  %v1324_v45 = vsub.f32 1.0, %v1323_v43  ;;  %vm1358_vm6 = vweird.f32 %v9492_v16  ;;  %vm9613_vm9 = vmor %vm1342_vm13, %vm1343_vm12 }
 0x220   : > { %v7032_v29 = vpop.eup %7031  ;;  %v9511_v27 = vadd.f32 1.0, %v7030_v59  ;;  %7043 = vpow2.f32 %v6522_v20  ;;  %v1316_v59 = vand.u32 2147483647, %v9457_v61  ;;  %v1339_v20 = vsub.f32 1.0, %v1338_v8  ;;  %vm9630_vm13 = vmor %vm1357_vm8, %vm1358_vm6 }
 0x221   : > { %v7034_v35 = vpop.eup %7033  ;;  %v9520_v10 = vadd.f32 1.0, %v7032_v29  ;;  %7045 = vpow2.f32 %v6523_v63  ;;  %v1354_v28 = vsub.f32 1.0, %v1353_v13  ;;  %v1319_v29 = vor.u32 1.1754944e-38, %v1318_v56 }
 0x222   : > { %v7036_v25 = vpop.eup %7035  ;;  %v9524_v7 = vadd.f32 1.0, %v7034_v35  ;;  %7047 = vrcp.f32 %v9511_v27  ;;  %v1331_v35 = vand.u32 2147483647, %v9462_v9  ;;  %v1310_v11 = vmul.f32 %v9484_v1, %v1309_v17 }
 0x223   : > { %v9522_v50 = vpop.eup %7037  ;;  %v9529_v39 = vadd.f32 1.0, %v7036_v25  ;;  %7049 = vrcp.f32 %v9520_v10  ;;  %v1325_v63 = vmul.f32 %v9487_v18, %v1324_v45  ;;  %v1334_v8 = vor.u32 1.1754944e-38, %v1333_v42 }
 0x224   : > { %v7040_v53 = vpop.eup %7039  ;;  %v1368_v43 = vmul.f32 %v9522_v50, %v9481_v52  ;;  %7051 = vrcp.f32 %v9524_v7  ;;  %vm9543_vm7 = vcmp.eq.f32.partialorder %v1316_v59, 8.507059e+37  ;;  %v1340_v17 = vmul.f32 %v9490_v57, %v1339_v20 }
 0x225   : > { %v7042_v44 = vpop.eup %7041  ;;  %v9539_v25 = vadd.f32 1.0, %v7040_v53  ;;  %v1355_v48 = vmul.f32 %v9492_v16, %v1354_v28  ;;  %7053 = vrcp.f32 %v9529_v39  ;;  %vm9554_vm0 = vcmp.eq.f32.partialorder %v1331_v35, 8.507059e+37 }
 0x226   : > { %v7044_v56 = vpop.eup %7043  ;;  %v9551_v53 = vadd.f32 1.0, %v7042_v44  ;;  %v1348_v59 = vand.u32 2147483648, %v9466_v60  ;;  %v1311_v20 = vadd.f32 %v9484_v1, %v1310_v11  ;;  %v1361_v28 = vand.u32 2147483647, %v9470_v31 }
 0x227   : > { %v9560_v45 = vpop.eup %7045  ;;  %v1369_v44 = vsub.f32 1.0, %v1368_v43  ;;  %v9567_v46 = vadd.f32 1.0, %v7044_v56  ;;  %7055 = vrcp.f32 %v9539_v25  ;;  %v1326_v35 = vadd.f32 %v9487_v18, %v1325_v63 }
 0x228   : > { %v9565_v23 = vpop.eup %7047  ;;  %7057 = vpow2.f32 %v9500_v21  ;;  %v1341_v43 = vadd.f32 %v9490_v57, %v1340_v17  ;;  %v1356_v56 = vadd.f32 %v9492_v16, %v1355_v48  ;;  %v1349_v17 = vor.u32 1.1754944e-38, %v1348_v59 }
 0x229   : > { %v9572_v40 = vpop.eup %7049  ;;  %7059 = vrcp.f32 %v9551_v53  ;;  %v1363_v48 = vand.u32 2147483648, %v9470_v31  ;;  %v1315_v9 = vsel %vm9579_vm4, %v9484_v1, %v1311_v20  ;;  %vm9617_vm14 = vcmp.eq.f32.partialorder %v1361_v28, 8.507059e+37 }
 0x22a   : > { %v9586_v63 = vpop.eup %7051  ;;  %7061 = vtanh.f32 %v16363_v26  ;;  %v1370_v34 = vmul.f32 %v9522_v50, %v1369_v44  ;;  %v1330_v26 = vsel %vm9593_vm5, %v9487_v18, %v1326_v35  ;;  %v1376_v60 = vand.u32 2147483647, %v9481_v52 }
 0x22b   : > { %v9602_v47 = vpop.eup %7053  ;;  %7063 = vrcp.f32 %v9567_v46  ;;  %v1383_v1 = vmul.f32 %v9572_v40, %v9520_v10  ;;  %v1345_v20 = vsel %vm9613_vm9, %v9490_v57, %v1341_v43  ;;  %v1360_v18 = vsel %vm9630_vm13, %v9492_v16, %v1356_v56 }
 0x22c   : > { %v1398_v31 = vmul.f32 %v9586_v63, %v9524_v7  ;;  %v1484_v28 = vmul.f32 %v9565_v23, %v9511_v27  ;;  %v9651_v35 = vsel %vm9543_vm7, %v1319_v29, %v1315_v9  ;;  %v1364_v11 = vor.u32 1.1754944e-38, %v1363_v48 }
 0x22d   : > { %v9647_v44 = vpop.eup %7055  ;;  %vm1372_vm8 = vweird.f32 %v9481_v52  ;;  %v1413_v57 = vmul.f32 %v9602_v47, %v9529_v39  ;;  %v9658_v16 = vsel %vm9554_vm0, %v1334_v8, %v1330_v26  ;;  %v1371_v56 = vadd.f32 %v9522_v50, %v1370_v34 }
 0x22e   : > { %v7058_v43 = vpop.eup %7057  ;;  %vm1373_vm10 = vweird.f32 %v9522_v50  ;;  %v1378_v21 = vand.u32 2147483648, %v9481_v52  ;;  %v9667_v29 = vsel %vm9597_vm15, %v1349_v17, %v1345_v20  ;;  %v9671_v48 = vsel %vm9617_vm14, %v1364_v11, %v1360_v18 }
 0x22f   : > { %v9663_v13 = vpop.eup %7059  ;;  %vm9673_vm7 = vcmp.eq.f32.partialorder %v1376_v60, 8.507059e+37  ;;  %v1384_v8 = vsub.f32 1.0, %v1383_v1  ;;  %v1393_v9 = vand.u32 2147483648, %v9520_v10  ;;  %v1399_v62 = vsub.f32 1.0, %v1398_v31  ;;  %vm9686_vm0 = vmor %vm1372_vm8, %vm1373_vm10 }
 0x230   : > { %v9677_v34 = vpop.eup %7061  ;;  %v1485_v26 = vsub.f32 1.0, %v1484_v28  ;;  %v1499_v61 = vmul.f32 %v9647_v44, %v9539_v25  ;;  %v1391_v33 = vand.u32 2147483647, %v9520_v10  ;;  %v1414_v60 = vsub.f32 1.0, %v1413_v57 }
 0x231   : > { %v9682_v17 = vpop.eup %7063  ;;  %7065 = vpow2.f32 %v9516_v12  ;;  %v16374_v1 = vrot.slane %v9468_v36, 1  ;;  %v1375_v18 = vsel %vm9686_vm0, %v9522_v50, %v1371_v56  ;;  %v1379_v31 = vor.u32 1.1754944e-38, %v1378_v21 }
 0x232   : > { %v1406_v28 = vand.u32 2147483647, %v9524_v7  ;;  %v1408_v52 = vand.u32 2147483648, %v9524_v7  ;;  %v1385_v11 = vmul.f32 %v9572_v40, %v1384_v8  ;;  %vm1387_vm12 = vweird.f32 %v9520_v10 }
 0x233   : > { %v6526_v20 = vmul.f32 -1.442695, %v16374_v1  ;;  %vm1402_vm4 = vweird.f32 %v9524_v7  ;;  %v1421_v12 = vand.u32 2147483647, %v9529_v39  ;;  %v1394_v57 = vor.u32 1.1754944e-38, %v1393_v9 }
 0x234   : > { %v1400_v1 = vmul.f32 %v9586_v63, %v1399_v62  ;;  %v1486_v38 = vmul.f32 %v9565_v23, %v1485_v26  ;;  %v1500_v59 = vsub.f32 1.0, %v1499_v61  ;;  %v9707_v50 = vsel %vm9673_vm7, %v1379_v31, %v1375_v18 }
 0x235   : > { %vm9709_vm6 = vcmp.eq.f32.partialorder %v1391_v33, 8.507059e+37  ;;  %v1415_v21 = vmul.f32 %v9602_v47, %v1414_v60  ;;  %vm1417_vm5 = vweird.f32 %v9529_v39  ;;  %7067 = vpow2.f32 %v6526_v20 }
 0x236   : > { %vm1388_vm15 = vweird.f32 %v9572_v40  ;;  %vm9716_vm9 = vcmp.eq.f32.partialorder %v1406_v28, 8.507059e+37  ;;  %v1409_v9 = vor.u32 1.1754944e-38, %v1408_v52  ;;  %v1423_v42 = vand.u32 2147483648, %v9529_v39 }
 0x237   : > { %v9722_v62 = vadd.f32 1.0, %v9560_v45  ;;  %v7066_v26 = vpop.eup %7065  ;;  %v1386_v61 = vadd.f32 %v9572_v40, %v1385_v11  ;;  %vm1403_vm14 = vweird.f32 %v9586_v63  ;;  %vm9726_vm13 = vcmp.eq.f32.partialorder %v1421_v12, 8.507059e+37  ;;  %vm9742_vm10 = vmor %vm1387_vm12, %vm1388_vm15 }
 0x238   : > { %v9730_v60 = vadd.f32 1.0, %v7058_v43  ;;  %vm1489_vm8 = vweird.f32 %v9565_v23  ;;  %v1401_v20 = vadd.f32 %v9586_v63, %v1400_v1  ;;  %v1487_v18 = vadd.f32 %v9565_v23, %v1486_v38  ;;  %vm9752_vm0 = vmor %vm1402_vm4, %vm1403_vm14 }
 0x239   : > { %v1501_v45 = vmul.f32 %v9647_v44, %v1500_v59  ;;  %v1514_v31 = vmul.f32 %v9663_v13, %v9551_v53  ;;  %v1416_v43 = vadd.f32 %v9602_v47, %v1415_v21  ;;  %vm1418_vm7 = vweird.f32 %v9602_v47 }
 0x23a   : > { %v1492_v52 = vand.u32 2147483647, %v9511_v27  ;;  %v1494_v38 = vand.u32 2147483648, %v9511_v27  ;;  %v1424_v12 = vor.u32 1.1754944e-38, %v1423_v42  ;;  %v9756_v10 = vadd.f32 1.0, %v7066_v26  ;;  %vm9780_vm14 = vmor %vm1417_vm5, %vm1418_vm7 }
 0x23b   : > { %vm1488_vm12 = vweird.f32 %v9511_v27  ;;  %v1529_v1 = vmul.f32 %v9682_v17, %v9567_v46  ;;  %v7068_v59 = vpop.eup %7067  ;;  %v1390_v21 = vsel %vm9742_vm10, %v9572_v40, %v1386_v61  ;;  %vm1504_vm4 = vweird.f32 %v9647_v44 }
 0x23c   : > { %vm9766_vm15 = vmor %vm1488_vm12, %vm1489_vm8  ;;  %v1507_v42 = vand.u32 2147483647, %v9539_v25  ;;  %7069 = vrcp.f32 %v9722_v62  ;;  %v1405_v27 = vsel %vm9752_vm0, %v9586_v63, %v1401_v20  ;;  %v1502_v61 = vadd.f32 %v9647_v44, %v1501_v45 }
 0x23d   : > { %v1491_v26 = vsel %vm9766_vm15, %v9565_v23, %v1487_v18  ;;  %v1515_v28 = vsub.f32 1.0, %v1514_v31  ;;  %v1420_v11 = vsel %vm9780_vm14, %v9602_v47, %v1416_v43  ;;  %vm1493_vm8 = vcmp.eq.f32.partialorder %v1492_v52, 8.507059e+37 }
 0x23e   : > { %v1495_v63 = vor.u32 1.1754944e-38, %v1494_v38  ;;  %v1509_v20 = vand.u32 2147483648, %v9539_v25  ;;  %v9794_v39 = vsel %vm9709_vm6, %v1394_v57, %v1390_v21  ;;  %v9796_v24 = vadd.f32 1.0, %v7068_v59 }
 0x23f   : > { %vm1503_vm5 = vweird.f32 %v9539_v25  ;;  %v1530_v23 = vsub.f32 1.0, %v1529_v1  ;;  %v9801_v18 = vsel %vm9716_vm9, %v1409_v9, %v1405_v27  ;;  %vm1508_vm7 = vcmp.eq.f32.partialorder %v1507_v42, 8.507059e+37 }
 0x240   : > { %16389 = vst [vmem:[#allocation50_spill] sm:$0xff] %v9801_v18  ;;  %v9803_v45 = vsel %vm1493_vm8, %v1495_v63, %v1491_v26  ;;  %vm9807_vm10 = vmor %vm1503_vm5, %vm1504_vm4  ;;  %7071 = vrcp.f32 %v9730_v60  ;;  %v9814_v57 = vsel %vm9726_vm13, %v1424_v12, %v1420_v11  ;;  %v1516_v56 = vmul.f32 %v9663_v13, %v1515_v28 }
 0x241   : > { %16392 = vst [vmem:[#allocation51_spill] sm:$0xff] %v9814_v57  ;;  %v1506_v25 = vsel %vm9807_vm10, %v9647_v44, %v1502_v61  ;;  %7073 = vrcp.f32 %v9756_v10  ;;  %v1510_v9 = vor.u32 1.1754944e-38, %v1509_v20  ;;  %v1522_v31 = vand.u32 2147483647, %v9551_v53 }
 0x242   : > { %v9821_v8 = vpop.eup %7069  ;;  %v1524_v43 = vand.u32 2147483648, %v9551_v53  ;;  %v1629_v52 = vrot.slane %v9442_v32, 3  ;;  %v1531_v33 = vmul.f32 %v9682_v17, %v1530_v23  ;;  %v1537_v38 = vand.u32 2147483647, %v9567_v46 }
 0x243   : > { %7075 = vrcp.f32 %v9796_v24  ;;  %v1630_v44 = vrot.slane %v9444_v51, 3  ;;  %v9830_v12 = vsel %vm1508_vm7, %v1510_v9, %v1506_v25  ;;  %vm1518_vm6 = vweird.f32 %v9551_v53 }
 0x244   : > { %vm1519_vm9 = vweird.f32 %v9663_v13  ;;  %v1631_v1 = vrot.slane %v9451_v6, 3  ;;  %v1517_v59 = vadd.f32 %v9663_v13, %v1516_v56  ;;  %vm1533_vm13 = vweird.f32 %v9567_v46 }
 0x245   : > { %v1539_v21 = vand.u32 2147483648, %v9567_v46  ;;  %v1544_v7 = vmul.f32 %v9821_v8, %v9722_v62  ;;  %vm9842_vm0 = vcmp.eq.f32.partialorder %v1522_v31, 8.507059e+37  ;;  %v1525_v40 = vor.u32 1.1754944e-38, %v1524_v43  ;;  %vm9859_vm4 = vmor %vm1518_vm6, %vm1519_vm9 }
 0x246   : > { %v9840_v42 = vpop.eup %7071  ;;  %vm1534_vm12 = vweird.f32 %v9682_v17  ;;  %v6529_v26 = vmul.f32 -1.442695, %v1629_v52  ;;  %v1532_v28 = vadd.f32 %v9682_v17, %v1531_v33  ;;  %vm9850_vm15 = vcmp.eq.f32.partialorder %v1537_v38, 8.507059e+37 }
 0x247   : > { %v9847_v61 = vpop.eup %7073  ;;  %v1554_v63 = vand.u32 2147483648, %v9722_v62  ;;  %v6530_v20 = vmul.f32 -1.442695, %v1630_v44  ;;  %v1552_v47 = vand.u32 2147483647, %v9722_v62  ;;  %v1632_v25 = vrot.slane %v9460_v5, 3  ;;  %vm9876_vm14 = vmor %vm1533_vm13, %vm1534_vm12 }
 0x248   : > { %7077 = vpow2.f32 %v9513_v15  ;;  %v6531_v56 = vmul.f32 -1.442695, %v1631_v1  ;;  %v1521_v31 = vsel %vm9859_vm4, %v9663_v13, %v1517_v59  ;;  %v1540_v43 = vor.u32 1.1754944e-38, %v1539_v21 }
 0x249   : > { %v9866_v9 = vpop.eup %7075  ;;  %v1545_v52 = vsub.f32 1.0, %v1544_v7  ;;  %7079 = vpow2.f32 %v9518_v55  ;;  %v1559_v15 = vmul.f32 %v9840_v42, %v9730_v60  ;;  %v1569_v33 = vand.u32 2147483648, %v9730_v60 }
 0x24a   : > { %v1574_v13 = vmul.f32 %v9847_v61, %v9756_v10  ;;  %7081 = vpow2.f32 %v6529_v26  ;;  %v1536_v55 = vsel %vm9876_vm14, %v9682_v17, %v1532_v28  ;;  %v9888_v38 = vor.u32 1.1754944e-38, %v1554_v63 }
 0x24b   : > { %v1633_v46 = vrot.slane %v9464_v19, 3  ;;  %7083 = vpow2.f32 %v6530_v20  ;;  %vm1548_vm8 = vweird.f32 %v9722_v62  ;;  %v1567_v44 = vand.u32 2147483647, %v9730_v60 }
 0x24c   : > { %v1589_v1 = vmul.f32 %v9866_v9, %v9796_v24  ;;  %7085 = vpow2.f32 %v6531_v56  ;;  %v6532_v59 = vmul.f32 -1.442695, %v1632_v25  ;;  %v9897_v21 = vsel %vm9842_vm0, %v1525_v40, %v1521_v31 }
 0x24d   : > { %v1546_v17 = vmul.f32 %v9821_v8, %v1545_v52  ;;  %v1582_v7 = vand.u32 2147483647, %v9756_v10  ;;  %v1584_v26 = vand.u32 2147483648, %v9756_v10  ;;  %v9904_v63 = vsel %vm9850_vm15, %v1540_v43, %v1536_v55 }
 0x24e   : > { %v7078_v28 = vpop.eup %7077  ;;  %v1560_v20 = vsub.f32 1.0, %v1559_v15  ;;  %v9906_v23 = vor.u32 1.1754944e-38, %v1569_v33  ;;  %v1575_v56 = vsub.f32 1.0, %v1574_v13  ;;  %vm1549_vm5 = vweird.f32 %v9821_v8 }
 0x24f   : > { %v7080_v25 = vpop.eup %7079  ;;  %vm1563_vm10 = vweird.f32 %v9730_v60  ;;  %v1597_v27 = vand.u32 2147483647, %v9796_v24  ;;  %v6533_v40 = vmul.f32 -1.442695, %v1633_v46  ;;  %v9911_v31 = vadd.f32 1.0, %v7078_v28  ;;  %vm9949_vm15 = vmor %vm1548_vm8, %vm1549_vm5 }
 0x250   : > { %v7082_v52 = vpop.eup %7081  ;;  %vm9913_vm7 = vcmp.eq.f32.partialorder %v1552_v47, 8.507059e+37  ;;  %vm1578_vm6 = vweird.f32 %v9756_v10  ;;  %v1590_v11 = vsub.f32 1.0, %v1589_v1  ;;  %v1634_v43 = vrot.slane %v9468_v36, 3 }
 0x251   : > { %7087 = vpow2.f32 %v6532_v59  ;;  %v9919_v15 = vadd.f32 1.0, %v7080_v25  ;;  %v7084_v33 = vpop.eup %7083  ;;  %v1547_v13 = vadd.f32 %v9821_v8, %v1546_v17  ;;  %v1599_v55 = vand.u32 2147483648, %v9796_v24 }
 0x252   : > { %v9923_v46 = vadd.f32 1.0, %v7082_v52  ;;  %7089 = vrcp.f32 %v9911_v31  ;;  %v7086_v47 = vpop.eup %7085  ;;  %v1561_v28 = vmul.f32 %v9840_v42, %v1560_v20  ;;  %v1576_v22 = vmul.f32 %v9847_v61, %v1575_v56 }
 0x253   : > { %vm1593_vm9 = vweird.f32 %v9796_v24  ;;  %v9929_v1 = vadd.f32 1.0, %v7084_v33  ;;  %7091 = vrcp.f32 %v9919_v15  ;;  %vm1564_vm13 = vweird.f32 %v9840_v42 }
 0x254   : > { %v1585_v59 = vor.u32 1.1754944e-38, %v1584_v26  ;;  %v1605_v17 = vrot.slane %v9442_v32, 2  ;;  %7093 = vpow2.f32 %v6533_v40  ;;  %vm9934_vm0 = vcmp.eq.f32.partialorder %v1567_v44, 8.507059e+37  ;;  %vm9979_vm8 = vmor %vm1563_vm10, %vm1564_vm13 }
 0x255   : > { %vm9938_vm12 = vcmp.eq.f32.partialorder %v1582_v7, 8.507059e+37  ;;  %v1591_v56 = vmul.f32 %v9866_v9, %v1590_v11  ;;  %v1606_v52 = vrot.slane %v9444_v51, 2  ;;  %v6534_v33 = vmul.f32 -1.442695, %v1634_v43 }
 0x256   : > { %7095 = vrcp.f32 %v9923_v46  ;;  %vm1579_vm4 = vweird.f32 %v9847_v61  ;;  %v1600_v44 = vor.u32 1.1754944e-38, %v1599_v55  ;;  %v16409_v7 = vrot.slane %v9440_v37, 2 }
 0x257   : > { %v9956_v26 = vadd.f32 1.0, %v7086_v47  ;;  %v7088_v51 = vpop.eup %7087  ;;  %v1551_v40 = vsel %vm9949_vm15, %v9821_v8, %v1547_v13  ;;  %v1562_v11 = vadd.f32 %v9840_v42, %v1561_v28  ;;  %v1577_v62 = vadd.f32 %v9847_v61, %v1576_v22  ;;  %vm9996_vm10 = vmor %vm1578_vm6, %vm1579_vm4 }
 0x258   : > { %7097 = vtanh.f32 %v16409_v7  ;;  %vm9963_vm14 = vcmp.eq.f32.partialorder %v1597_v27, 8.507059e+37  ;;  %v9968_v55 = vpop.eup %7089  ;;  %v1607_v37 = vrot.slane %v9451_v6, 2  ;;  %v1608_v47 = vrot.slane %v9460_v5, 2 }
 0x259   : > { %7099 = vrcp.f32 %v9929_v1  ;;  %v1609_v7 = vrot.slane %v9464_v19, 2  ;;  %v9973_v8 = vpop.eup %7091  ;;  %v1592_v27 = vadd.f32 %v9866_v9, %v1591_v56  ;;  %vm1594_vm5 = vweird.f32 %v9866_v9 }
 0x25a   : > { %7101 = vtanh.f32 %v1605_v17  ;;  %v1676_v6 = vmul.f32 %v9968_v55, %v9911_v31  ;;  %v7094_v5 = vpop.eup %7093  ;;  %v9990_v19 = vsel %vm9913_vm7, %v9888_v38, %v1551_v40  ;;  %v1610_v13 = vrot.slane %v9468_v36, 2  ;;  %vm10018_vm7 = vmor %vm1593_vm9, %vm1594_vm5 }
 0x25b   : > { %7103 = vpow2.f32 %v6534_v33  ;;  %v1691_v28 = vmul.f32 %v9973_v8, %v9919_v15  ;;  %v1566_v38 = vsel %vm9979_vm8, %v9840_v42, %v1562_v11  ;;  %v1581_v10 = vsel %vm9996_vm10, %v9847_v61, %v1577_v62 }
 0x25c   : > { %7105 = vrcp.f32 %v9956_v26  ;;  %v10004_v17 = vpop.eup %7095  ;;  %v1677_v53 = vsub.f32 1.0, %v1676_v6  ;;  %v10022_v33 = vadd.f32 1.0, %v7088_v51  ;;  %v10031_v40 = vadd.f32 1.0, %v7094_v5 }
 0x25d   : > { %7107 = vtanh.f32 %v1606_v52  ;;  %v1692_v42 = vsub.f32 1.0, %v1691_v28  ;;  %v1706_v32 = vmul.f32 %v10004_v17, %v9923_v46  ;;  %v1596_v52 = vsel %vm10018_vm7, %v9866_v9, %v1592_v27 }
 0x25e   : > { %v10012_v56 = vpop.eup %7097  ;;  %7109 = vtanh.f32 %v1607_v37  ;;  %v1684_v24 = vand.u32 2147483647, %v9911_v31  ;;  %v10039_v51 = vsel %vm9934_vm0, %v9906_v23, %v1566_v38  ;;  %v10043_v62 = vsel %vm9938_vm12, %v1585_v59, %v1581_v10 }
 0x25f   : > { %v10026_v61 = vpop.eup %7099  ;;  %7111 = vtanh.f32 %v1608_v47  ;;  %v1678_v37 = vmul.f32 %v9968_v55, %v1677_v53  ;;  %v1693_v47 = vmul.f32 %v9973_v8, %v1692_v42  ;;  %v1707_v22 = vsub.f32 1.0, %v1706_v32 }
 0x260   : > { %v10034_v11 = vpop.eup %7101  ;;  %7113 = vtanh.f32 %v1609_v7  ;;  %v1721_v27 = vmul.f32 %v10026_v61, %v9929_v1  ;;  %v10053_v23 = vsel %vm9963_vm14, %v1600_v44, %v1596_v52  ;;  %vm1680_vm6 = vweird.f32 %v9911_v31 }
 0x261   : > { %v7104_v9 = vpop.eup %7103  ;;  %7115 = vtanh.f32 %v1610_v13  ;;  %v1686_v59 = vand.u32 2147483648, %v9911_v31  ;;  %vm10060_vm9 = vcmp.eq.f32.partialorder %v1684_v24, 8.507059e+37  ;;  %vm1695_vm13 = vweird.f32 %v9919_v15 }
 0x262   : > { %v10049_v6 = vpop.eup %7105  ;;  %7117 = vrcp.f32 %v10022_v33  ;;  %v1699_v7 = vand.u32 2147483647, %v9919_v15  ;;  %v10069_v43 = vadd.f32 1.0, %v7104_v9  ;;  %v1679_v5 = vadd.f32 %v9968_v55, %v1678_v37 }
 0x263   : > { %v10058_v25 = vpop.eup %7107  ;;  %7119 = vrcp.f32 %v10031_v40  ;;  %vm1681_vm0 = vweird.f32 %v9968_v55  ;;  %vm1696_vm12 = vweird.f32 %v9973_v8  ;;  %v1694_v13 = vadd.f32 %v9973_v8, %v1693_v47 }
 0x264   : > { %v10067_v44 = vpop.eup %7109  ;;  %v1708_v28 = vmul.f32 %v10004_v17, %v1707_v22  ;;  %v1722_v38 = vsub.f32 1.0, %v1721_v27  ;;  %v1736_v10 = vmul.f32 %v10049_v6, %v9956_v26  ;;  %v1687_v36 = vor.u32 1.1754944e-38, %v1686_v59  ;;  %vm10089_vm15 = vmor %vm1680_vm6, %vm1681_vm0 }
 0x265   : > { %v10074_v60 = vpop.eup %7111  ;;  %v1701_v42 = vand.u32 2147483648, %v9919_v15  ;;  %v1716_v32 = vand.u32 2147483648, %v9923_v46  ;;  %v1731_v52 = vand.u32 2147483648, %v9929_v1  ;;  %vm10093_vm4 = vcmp.eq.f32.partialorder %v1699_v7, 8.507059e+37  ;;  %vm10109_vm8 = vmor %vm1695_vm13, %vm1696_vm12 }
 0x266   : > { %16420 = vst [vmem:[#allocation52_spill] sm:$0xff] %v10074_v60  ;;  %v10080_v53 = vpop.eup %7113  ;;  %vm1710_vm14 = vweird.f32 %v9923_v46  ;;  %v1714_v47 = vand.u32 2147483647, %v9923_v46  ;;  %v1746_v22 = vand.u32 2147483648, %v9956_v26  ;;  %v1683_v31 = vsel %vm10089_vm15, %v9968_v55, %v1679_v5 }
 0x267   : > { %16421 = vst [vmem:[#allocation53_spill] sm:$0xff] %v10080_v53  ;;  %v10085_v24 = vpop.eup %7115  ;;  %vm1711_vm5 = vweird.f32 %v10004_v17  ;;  %v1761_v7 = vand.u32 2147483648, %v10022_v33  ;;  %7121 = vrcp.f32 %v10069_v43  ;;  %v1698_v55 = vsel %vm10109_vm8, %v9973_v8, %v1694_v13 }
 0x268   : > { %16422 = vst [vmem:[#allocation54_spill] sm:$0xff] %v10085_v24  ;;  %v10100_v27 = vpop.eup %7117  ;;  %v10122_v5 = vadd.f32 %v10004_v17, %v1708_v28  ;;  %v1723_v15 = vmul.f32 %v10026_v61, %v1722_v38  ;;  %v1737_v37 = vsub.f32 1.0, %v1736_v10  ;;  %v1702_v49 = vor.u32 1.1754944e-38, %v1701_v42  ;;  %vm10147_vm10 = vmor %vm1710_vm14, %vm1711_vm5 }
 0x269   : > { %v10116_v58 = vpop.eup %7119  ;;  %v1717_v24 = vor.u32 1.1754944e-38, %v1716_v32  ;;  %v1729_v57 = vand.u32 2147483647, %v9929_v1  ;;  %v10126_v53 = vor.u32 1.1754944e-38, %v1731_v52  ;;  %v1744_v18 = vand.u32 2147483647, %v9956_v26 }
 0x26a   : > { %v10129_v60 = vor.u32 1.1754944e-38, %v1746_v22  ;;  %v1751_v59 = vmul.f32 %v10100_v27, %v10022_v33  ;;  %v1766_v8 = vmul.f32 %v10116_v58, %v10031_v40  ;;  %v10137_v13 = vsel %vm10060_vm9, %v1687_v36, %v1683_v31 }
 0x26b   : > { %v10141_v28 = vsel %vm10093_vm4, %v1702_v49, %v1698_v55  ;;  %vm1726_vm7 = vweird.f32 %v10026_v61  ;;  %v1759_v10 = vand.u32 2147483647, %v10022_v33  ;;  %v1713_v20 = vsel %vm10147_vm10, %v10004_v17, %v10122_v5 }
 0x26c   : > { %vm10157_vm6 = vcmp.eq.f32.partialorder %v1714_v47, 8.507059e+37  ;;  %v10162_v36 = vadd.f32 %v10026_v61, %v1723_v15  ;;  %vm1725_vm9 = vweird.f32 %v9929_v1  ;;  %v1738_v46 = vmul.f32 %v10049_v6, %v1737_v37 }
 0x26d   : > { %v10166_v42 = vor.u32 1.1754944e-38, %v1761_v7  ;;  %v10168_v32 = vpop.eup %7121  ;;  %vm1741_vm13 = vweird.f32 %v10049_v6  ;;  %v1774_v52 = vand.u32 2147483647, %v10031_v40  ;;  %v1795_v17 = vmul.f32 %v9803_v45, %v9246_v41  ;;  %vm10241_vm5 = vmor %vm1725_vm9, %vm1726_vm7 }
 0x26e   : > { %v1796_v9 = vmul.f32 %v9830_v12, %v9248_v14  ;;  %v1797_v47 = vmul.f32 %v9897_v21, %v9253_v30  ;;  %v1752_v22 = vsub.f32 1.0, %v1751_v59  ;;  %vm1756_vm0 = vweird.f32 %v10100_v27 }
 0x26f   : > { %v1767_v31 = vsub.f32 1.0, %v1766_v8  ;;  %v1781_v7 = vmul.f32 %v10168_v32, %v10069_v43  ;;  %v1798_v55 = vmul.f32 %v9904_v63, %v9255_v2  ;;  %vm1740_vm12 = vweird.f32 %v9956_v26 }
 0x270   : > { %v1799_v41 = vmul.f32 %v9990_v19, %v9264_v3  ;;  %v1803_v14 = vmul.f32 %v9677_v34, %v9651_v35  ;;  %v1804_v30 = vmul.f32 %v10012_v56, %v9658_v16  ;;  %v1805_v45 = vmul.f32 %v10034_v11, %v9667_v29  ;;  %v16438_v11 = vld [vmem:[#allocation50_spill] sm:$0xff] }
 0x271   : > { %vm1755_vm15 = vweird.f32 %v10022_v33  ;;  %v1782_v12 = vsub.f32 1.0, %v1781_v7  ;;  %v1800_v2 = vmul.f32 %v10039_v51, %v9270_v4  ;;  %v1801_v21 = vmul.f32 %v10043_v62, %v9289_v54  ;;  %v16439_v51 = vld [vmem:[#allocation53_spill] sm:$0xff]  ;;  %v16459_v33 = vld [vmem:[#allocation18_spill] sm:$0xff] }
 0x272   : > { %v1806_v3 = vmul.f32 %v10058_v25, %v9671_v48  ;;  %vm10199_vm4 = vcmp.eq.f32.partialorder %v1729_v57, 8.507059e+37  ;;  %vm1770_vm14 = vweird.f32 %v10031_v40  ;;  %v1807_v16 = vmul.f32 %v10067_v44, %v9707_v50  ;;  %v16435_v57 = vld [vmem:[#allocation52_spill] sm:$0xff]  ;;  %v16441_v44 = vld [vmem:[#allocation54_spill] sm:$0xff] }
 0x273   : > { %v10206_v29 = vadd.f32 %v1803_v14, %v1795_v17  ;;  %v10208_v34 = vadd.f32 %v1804_v30, %v1796_v9  ;;  %v10210_v4 = vadd.f32 %v1805_v45, %v1797_v47  ;;  %v1753_v54 = vmul.f32 %v10100_v27, %v1752_v22 }
 0x274   : > { %v1802_v48 = vmul.f32 %v10053_v23, %v9297_v0  ;;  %v1808_v63 = vmul.f32 %v16435_v57, %v9794_v39  ;;  %v10217_v19 = vadd.f32 %v1806_v3, %v1798_v55  ;;  %vm10219_vm8 = vcmp.eq.f32.partialorder %v1744_v18, 8.507059e+37  ;;  %v16440_v23 = vld [vmem:[#allocation51_spill] sm:$0xff]  ;;  %v16465_v55 = vld [vmem:[#allocation24_spill] sm:$0xff] }
 0x275   : > { %v1768_v50 = vmul.f32 %v10116_v58, %v1767_v31  ;;  %v1809_v62 = vmul.f32 %v16439_v51, %v16438_v11  ;;  %v10226_v25 = vadd.f32 %v1807_v16, %v1799_v41  ;;  %7123 = vtanh.f32 %v10206_v29 }
 0x276   : > { %v1783_v0 = vmul.f32 %v10168_v32, %v1782_v12  ;;  %v1810_v39 = vmul.f32 %v16441_v44, %v16440_v23  ;;  %v10232_v5 = vadd.f32 %v1808_v63, %v1800_v2  ;;  %7125 = vtanh.f32 %v10208_v34 }
 0x277   : > { %v1718_v18 = vsel %vm10157_vm6, %v1717_v24, %v1713_v20  ;;  %v1739_v37 = vadd.f32 %v10049_v6, %v1738_v46  ;;  %vm10246_vm10 = vcmp.eq.f32.partialorder %v1759_v10, 8.507059e+37  ;;  %v10250_v8 = vadd.f32 %v1809_v62, %v1801_v21  ;;  %vm10269_vm6 = vmor %vm1740_vm12, %vm1741_vm13 }
 0x278   : > { %7127 = vtanh.f32 %v10210_v4  ;;  %v1728_v24 = vsel %vm10241_vm5, %v10026_v61, %v10162_v36  ;;  %v1776_v1 = vand.u32 2147483648, %v10031_v40  ;;  %v10258_v38 = vadd.f32 %v1810_v39, %v1802_v48  ;;  %vm10287_vm13 = vmor %vm1755_vm15, %vm1756_vm0 }
 0x279   : > { %7129 = vtanh.f32 %v10217_v19  ;;  %v1754_v10 = vadd.f32 %v10100_v27, %v1753_v54  ;;  %v1769_v20 = vadd.f32 %v10116_v58, %v1768_v50  ;;  %vm1771_vm7 = vweird.f32 %v10116_v58 }
 0x27a   : > { %7131 = vtanh.f32 %v10226_v25  ;;  %vm10273_vm9 = vcmp.eq.f32.partialorder %v1774_v52, 8.507059e+37  ;;  %v1784_v36 = vadd.f32 %v10168_v32, %v1783_v0  ;;  %vm1786_vm5 = vweird.f32 %v10168_v32  ;;  %vm10301_vm12 = vmor %vm1770_vm14, %vm1771_vm7 }
 0x27b   : > { %7133 = vtanh.f32 %v10232_v5  ;;  %v7124_v46 = vpop.eup %7123  ;;  %v1743_v17 = vsel %vm10269_vm6, %v10049_v6, %v1739_v37  ;;  %v1789_v52 = vand.u32 2147483647, %v10069_v43  ;;  %v1791_v9 = vand.u32 2147483648, %v10069_v43 }
 0x27c   : > { %7135 = vtanh.f32 %v10250_v8  ;;  %v7126_v47 = vpop.eup %7125  ;;  %v1733_v22 = vsel %vm10199_vm4, %v10126_v53, %v1728_v24  ;;  %vm1785_vm0 = vweird.f32 %v10069_v43  ;;  %v1827_v6 = vmul.f32 %v7124_v46, %v10137_v13 }
 0x27d   : > { %7137 = vtanh.f32 %v10258_v38  ;;  %v1758_v7 = vsel %vm10287_vm13, %v10100_v27, %v1754_v10  ;;  %v1773_v53 = vsel %vm10301_vm12, %v10116_v58, %v1769_v20  ;;  %v1777_v40 = vor.u32 1.1754944e-38, %v1776_v1  ;;  %vm10316_vm15 = vmor %vm1785_vm0, %vm1786_vm5 }
 0x27e   : > { %v7128_v31 = vpop.eup %7127  ;;  %v1828_v43 = vmul.f32 %v7126_v47, %v10141_v28  ;;  %v1748_v13 = vsel %vm10219_vm8, %v10129_v60, %v1743_v17  ;;  %v1788_v27 = vsel %vm10316_vm15, %v10168_v32, %v1784_v36  ;;  %v1851_v58 = vpack.c.bf16 %v1827_v6, %v1827_v6  ;;  %v16460_v6 = vld [vmem:[#allocation19_spill] sm:$0xff] }
 0x27f   : > { %v7130_v41 = vpop.eup %7129  ;;  %v1829_v14 = vmul.f32 %v7128_v31, %v1718_v18  ;;  %vm1790_vm4 = vcmp.eq.f32.partialorder %v1789_v52, 8.507059e+37  ;;  %v1792_v45 = vor.u32 1.1754944e-38, %v1791_v9  ;;  %v1763_v28 = vsel %vm10246_vm10, %v10166_v42, %v1758_v7  ;;  %v16461_v31 = vld [vmem:[#allocation20_spill] sm:$0xff]  ;;  %v16462_v7 = vld [vmem:[#allocation21_spill] sm:$0xff] }
 0x280   : > { %v7132_v30 = vpop.eup %7131  ;;  %v1830_v12 = vmul.f32 %v7130_v41, %v1733_v22  ;;  %v1852_v2 = vpack.c.bf16 %v1828_v43, %v1828_v43  ;;  %v1778_v3 = vsel %vm10273_vm9, %v1777_v40, %v1773_v53  ;;  %v1867_v11 = vunpack.c.l.b16 %v1851_v58  ;;  %v16463_v53 = vld [vmem:[#allocation22_spill] sm:$0xff]  ;;  %v16464_v40 = vld [vmem:[#allocation23_spill] sm:$0xff]  ;;  %v16466_v43 = vld [vmem:[#allocation25_spill] sm:$0xff] }
 0x281   : > { %v7134_v21 = vpop.eup %7133  ;;  %v1831_v60 = vmul.f32 %v7132_v30, %v1748_v13  ;;  %v1853_v35 = vpack.c.bf16 %v1829_v14, %v1829_v14  ;;  %v1793_v54 = vsel %vm1790_vm4, %v1792_v45, %v1788_v27  ;;  %vm16456_vm14 = vcmask 1044484   ;;  %v16467_v41 = vld [vmem:[#allocation26_spill] sm:$0xff]  ;;  %v16468_v13 = vld [vmem:[#allocation27_spill] sm:$0xff]  ;;  %v16469_v27 = vld [vmem:[#allocation28_spill] sm:$0xff] }
 0x282   : > { %v7136_v16 = vpop.eup %7135  ;;  %v1832_v32 = vmul.f32 %v7134_v21, %v1763_v28  ;;  %v1854_v48 = vpack.c.bf16 %v1830_v12, %v1830_v12  ;;  %v1868_v57 = vunpack.c.l.b16 %v1852_v2  ;;  %vm16457_vm8 = vcmask 1045509   ;;  %v16470_v14 = vld [vmem:[#allocation29_spill] sm:$0xff]  ;;  %v16471_v58 = vld [vmem:[#allocation30_spill] sm:$0xff]  ;;  %v16472_v30 = vld [vmem:[#allocation31_spill] sm:$0xff] }
 0x283   : > { %v7138_v63 = vpop.eup %7137  ;;  %v1833_v56 = vmul.f32 %v7136_v16, %v1778_v3  ;;  %v1855_v50 = vpack.c.bf16 %v1831_v60, %v1831_v60  ;;  %v1869_v51 = vunpack.c.l.b16 %v1853_v35  ;;  %vm16458_vm10 = vcmask 1046534   ;;  %v16473_v45 = vld [vmem:[#allocation32_spill] sm:$0xff]  ;;  %v16474_v12 = vld [vmem:[#allocation33_spill] sm:$0xff]  ;;  %v16475_v2 = vld [vmem:[#allocation34_spill] sm:$0xff] }
 0x284   : > { %v1834_v62 = vmul.f32 %v7138_v63, %v1793_v54  ;;  %v1856_v0 = vpack.c.bf16 %v1832_v32, %v1832_v32  ;;  %v1870_v23 = vunpack.c.l.b16 %v1854_v48  ;;  %v1875_v44 = vrot.slane %v1868_v57, 7  ;;  %v16476_v21 = vld [vmem:[#allocation35_spill] sm:$0xff]  ;;  %v16477_v28 = vld [vmem:[#allocation36_spill] sm:$0xff]  ;;  %v16478_v3 = vld [vmem:[#allocation37_spill] sm:$0xff] }
 0x285   : > { %v1857_v42 = vpack.c.bf16 %v1833_v56, %v1833_v56  ;;  %v1871_v39 = vunpack.c.l.b16 %v1855_v50  ;;  %v1877_v18 = vrot.slane %v1869_v51, 6  ;;  %v16479_v60 = vld [vmem:[#allocation38_spill] sm:$0xff]  ;;  %v16480_v35 = vld [vmem:[#allocation39_spill] sm:$0xff]  ;;  %v16481_v16 = vld [vmem:[#allocation40_spill] sm:$0xff]  ;;  %vm16491_vm7 = vcmask 1040384  }
 0x286   : > { %v1858_v15 = vpack.c.bf16 %v1834_v62, %v1834_v62  ;;  %v1872_v37 = vunpack.c.l.b16 %v1856_v0  ;;  %v1876_v59 = vsel %vm480_vm2, %v1875_v44, %v1867_v11  ;;  %v1879_v24 = vrot.slane %v1870_v23, 5  ;;  %v16482_v54 = vld [vmem:[#allocation41_spill] sm:$0xff]  ;;  %v16483_v32 = vld [vmem:[#allocation42_spill] sm:$0xff]  ;;  %v16484_v48 = vld [vmem:[#allocation43_spill] sm:$0xff] }
 0x287   : > { %v1873_v1 = vunpack.c.l.b16 %v1857_v42  ;;  %v1878_v10 = vsel %vm476_vm1, %v1877_v18, %v1876_v59  ;;  %v1881_v20 = vrot.slane %v1871_v39, 4  ;;  %v16485_v57 = vld [vmem:[#allocation44_spill] sm:$0xff]  ;;  %v16486_v63 = vld [vmem:[#allocation45_spill] sm:$0xff]  ;;  %v16487_v56 = vld [vmem:[#allocation46_spill] sm:$0xff]  ;;  %vm16495_vm13 = vcmask 1046528  }
 0x288   : > { %v1874_v61 = vunpack.c.l.b16 %v1858_v15  ;;  %v1880_v49 = vsel %vm482_vm3, %v1879_v24, %v1878_v10  ;;  %v1883_v36 = vrot.slane %v1872_v37, 3  ;;  %v16488_v50 = vld [vmem:[#allocation47_spill] sm:$0xff]  ;;  %v16489_v11 = vld [vmem:[#allocation48_spill] sm:$0xff]  ;;  %v16490_v51 = vld [vmem:[#allocation49_spill] sm:$0xff]  ;;  %vm16498_vm15 = vcmask 1041408  }
 0x289   : > { %v1882_v46 = vsel %vm16456_vm14, %v1881_v20, %v1880_v49  ;;  %v1885_v17 = vrot.slane %v1873_v1, 2  ;;  %vm16492_vm6 = vmmov %vm16456_vm14  ;;  %vm16499_vm4 = vcmask 1042433   ;;  %vm16500_vm14 = vcmask 1043458  }
 0x28a   : > { %v1884_v26 = vsel %vm16457_vm8, %v1883_v36, %v1882_v46  ;;  %v1887_v52 = vrot.slane %v1874_v61, 1  ;;  %vm16493_vm9 = vmmov %vm16457_vm8 }
 0x28b   : > { %v1886_v9 = vsel %vm16458_vm10, %v1885_v17, %v1884_v26  ;;  %vm16494_vm5 = vmmov %vm16458_vm10 }
 0x28c   : > { %v1888_v47 = vsel %vm1165_vm11, %v1887_v52, %v1886_v9  ;;  %vm16496_vm12 = vmmov %vm16492_vm6 }
 0x28d   : > { %v1889_v22 = vpack.c.b16 %v1888_v47, %v1888_v47  ;;  %vm16497_vm0 = vmmov %vm16457_vm8  ;;  %vm16501_vm8 = vcmask 1044483  }
 0x28e   : > { %vm16502_vm10 = vmmov %vm16494_vm5 }
 0x28f   : > { %1899 = vmatmul.bf16.vlgmr.msra.gmra.mxu0 %v1889_v22  ;;  %1912 = vmatmul.bf16.vlgmr.msra.gmra.mxu1 %v1889_v22 }
 0x290   : > { %1925 = vmatmul.bf16.vlgmr.msra.gmra.mxu2 %v1889_v22  ;;  %1938 = vmatmul.bf16.vlgmr.msra.gmra.mxu3 %v1889_v22 }
 0x291   : > { %3335 = vmatpush.bf16.msra.mxu0 %v16459_v33  ;;  %3348 = vmatpush.bf16.msra.mxu1 %v16460_v6 }
 0x292   : > { %3361 = vmatpush.bf16.msra.mxu2 %v16461_v31  ;;  %3374 = vmatpush.bf16.msra.mxu3 %v16462_v7 }
 0x295   : > { %3336 = vmatpush.bf16.msra.mxu0 %v16463_v53  ;;  %3349 = vmatpush.bf16.msra.mxu1 %v16464_v40 }
 0x296   : > { %3362 = vmatpush.bf16.msra.mxu2 %v16465_v55  ;;  %3375 = vmatpush.bf16.msra.mxu3 %v16466_v43 }
 0x299   : > { %3337 = vmatpush.bf16.msra.mxu0 %v16467_v41  ;;  %3350 = vmatpush.bf16.msra.mxu1 %v16468_v13 }
 0x29a   : > { %3363 = vmatpush.bf16.msra.mxu2 %v16469_v27  ;;  %3376 = vmatpush.bf16.msra.mxu3 %v16470_v14 }
 0x29d   : > { %3338 = vmatpush.bf16.msra.mxu0 %v16471_v58  ;;  %3351 = vmatpush.bf16.msra.mxu1 %v16472_v30 }
 0x29e   : > { %3364 = vmatpush.bf16.msra.mxu2 %v16473_v45  ;;  %3377 = vmatpush.bf16.msra.mxu3 %v16474_v12 }
 0x2a1   : > { %3339 = vmatpush.bf16.msra.mxu0 %v16475_v2  ;;  %3352 = vmatpush.bf16.msra.mxu1 %v16476_v21 }
 0x2a2   : > { %3365 = vmatpush.bf16.msra.mxu2 %v16477_v28  ;;  %3378 = vmatpush.bf16.msra.mxu3 %v16478_v3 }
 0x2a5   : > { %3340 = vmatpush.bf16.msra.mxu0 %v16479_v60  ;;  %3353 = vmatpush.bf16.msra.mxu1 %v16480_v35 }
 0x2a6   : > { %3366 = vmatpush.bf16.msra.mxu2 %v16481_v16  ;;  %3379 = vmatpush.bf16.msra.mxu3 %v16482_v54 }
 0x2a9   : > { %3341 = vmatpush.bf16.msra.mxu0 %v16483_v32  ;;  %3354 = vmatpush.bf16.msra.mxu1 %v16484_v48 }
 0x2aa   : > { %3367 = vmatpush.bf16.msra.mxu2 %v16485_v57  ;;  %3380 = vmatpush.bf16.msra.mxu3 %v16486_v63 }
 0x2ad   : > { %3342 = vmatpush.bf16.msra.mxu0 %v16487_v56  ;;  %3355 = vmatpush.bf16.msra.mxu1 %v16488_v50 }
 0x2ae   : > { %3368 = vmatpush.bf16.msra.mxu2 %v16489_v11  ;;  %3381 = vmatpush.bf16.msra.mxu3 %v16490_v51 }
 0x30c   : > { %v1900_v62 = vpop.f32.mrf.mxu0  ;;  %v1913_v0 = vpop.f32.mrf.mxu1 }
 0x30d   : > { %v1947_v23 = vrot.slane %v1913_v0, 7  ;;  %v6535_v0 = vld [vmem:[%s8250_s21 + $0x2] ss:$8 sm:$0xf] }
 0x30f   : > { %v1950_v44 = vsel %vm16491_vm7, %v1900_v62, %v1947_v23  ;;  %v1953_v42 = vsel %vm480_vm2, %v1900_v62, %v1947_v23  ;;  %v1957_v39 = vsel %vm476_vm1, %v1900_v62, %v1947_v23  ;;  %v1961_v18 = vsel %vm482_vm3, %v1900_v62, %v1947_v23 }
 0x310   : > { %v1965_v15 = vsel %vm16492_vm6, %v1900_v62, %v1947_v23  ;;  %v1969_v37 = vsel %vm16493_vm9, %v1900_v62, %v1947_v23  ;;  %v1973_v59 = vsel %vm16494_vm5, %v1900_v62, %v1947_v23  ;;  %v1977_v24 = vsel %vm16495_vm13, %v1947_v23, %v1900_v62  ;;  %vm16504_vm6 = vmmov %vm16495_vm13 }
 0x311   : > { %vm16503_vm7 = vcmask 1045508   ;;  %vm16505_vm9 = vcmask 1040384   ;;  %vm16506_vm5 = vcmask 1046533   ;;  %vm16507_vm13 = vcmask 1045504  }
 0x313   : > { %v1926_v1 = vpop.f32.mrf.mxu2  ;;  %v1939_v10 = vpop.f32.mrf.mxu3 }
 0x314   : > { %v1948_v20 = vrot.slane %v1926_v1, 6  ;;  %v1949_v61 = vrot.slane %v1939_v10, 5  ;;  %v1902_v49 = vpop.f32.mrf.mxu0  ;;  %v1915_v36 = vpop.f32.mrf.mxu1 }
 0x315   : > { %v6536_v49 = vld [vmem:[%s8250_s21 + $0x22] ss:$8 sm:$0xf] }
 0x316   : > { %v1951_v46 = vsel %vm476_vm1, %v1948_v20, %v1949_v61  ;;  %v1954_v17 = vsel %vm482_vm3, %v1948_v20, %v1949_v61  ;;  %v1958_v26 = vsel %vm16496_vm12, %v1948_v20, %v1949_v61  ;;  %v1962_v52 = vsel %vm16497_vm0, %v1948_v20, %v1949_v61 }
 0x317   : > { %v1952_v9 = vsel %vm16498_vm15, %v1950_v44, %v1951_v46  ;;  %v1955_v47 = vsel %vm16499_vm4, %v1953_v42, %v1954_v17  ;;  %v1959_v22 = vsel %vm16500_vm14, %v1957_v39, %v1958_v26  ;;  %v1963_v62 = vsel %vm16501_vm8, %v1961_v18, %v1962_v52  ;;  %v6537_v42 = vld [vmem:[%s8250_s21 + $0x42] ss:$8 sm:$0xf] }
 0x318   : > { %v1956_v23 = vrot.slane %v1955_v47, 1  ;;  %v1960_v1 = vrot.slane %v1959_v22, 2  ;;  %v1966_v10 = vsel %vm16502_vm10, %v1948_v20, %v1949_v61  ;;  %v1970_v51 = vsel %vm16504_vm6, %v1949_v61, %v1948_v20  ;;  %v6538_v26 = vld [vmem:[%s8250_s21 + $0x62] ss:$8 sm:$0xf] }
 0x319   : > { %v1967_v36 = vsel %vm16503_vm7, %v1965_v15, %v1966_v10  ;;  %v1974_v11 = vsel %vm16505_vm9, %v1948_v20, %v1949_v61  ;;  %v1978_v44 = vsel %vm480_vm2, %v1948_v20, %v1949_v61  ;;  %v1964_v39 = vrot.slane %v1963_v62, 3 }
 0x31a   : > { %v1971_v46 = vsel %vm16506_vm5, %v1969_v37, %v1970_v51  ;;  %v1975_v18 = vsel %vm16507_vm13, %v1974_v11, %v1973_v59  ;;  %vm16508_vm12 = vcmask 1046529   ;;  %v10399_v52 = vadd.f32 %v6535_v0, %v1952_v9  ;;  %v6539_v11 = vld [vmem:[%s8250_s21 + $0x82] ss:$8 sm:$0xf] }
 0x31b   : > { %v1979_v17 = vsel %vm16508_vm12, %v1978_v44, %v1977_v24  ;;  %v1928_v47 = vpop.f32.mrf.mxu2  ;;  %v1941_v15 = vpop.f32.mrf.mxu3  ;;  %v10401_v22 = vadd.f32 %v6536_v49, %v1956_v23  ;;  %v10403_v10 = vadd.f32 %v6537_v42, %v1960_v1  ;;  %v10405_v50 = vadd.f32 %v6538_v26, %v1964_v39  ;;  %v6540_v1 = vld [vmem:[%s8250_s21 + $0xa2] ss:$8 sm:$0xf] }
 0x31c   : > { %v6543_v20 = vmul.f32 -1.442695, %v10399_v52  ;;  %v1968_v61 = vrot.slane %v1967_v36, 4  ;;  %v1972_v0 = vrot.slane %v1971_v46, 5  ;;  %v1976_v49 = vrot.slane %v1975_v18, 6 }
 0x31d   : > { %v6544_v51 = vmul.f32 -1.442695, %v10401_v22  ;;  %v6545_v37 = vmul.f32 -1.442695, %v10403_v10  ;;  %v6546_v59 = vmul.f32 -1.442695, %v10405_v50 }
 0x31e   : > { %7139 = vpow2.f32 %v6543_v20  ;;  %v10412_v24 = vadd.f32 %v6539_v11, %v1968_v61  ;;  %v6541_v44 = vld [vmem:[%s8250_s21 + $0xc2] ss:$8 sm:$0xf]  ;;  %v1980_v42 = vrot.slane %v1979_v17, 7  ;;  %v2157_v15 = vrot.slane %v10399_v52, 1 }
 0x31f   : > { %7141 = vpow2.f32 %v6544_v51  ;;  %v6542_v26 = vld [vmem:[%s8250_s21 + $0xe2] ss:$8 sm:$0xf]  ;;  %v10421_v20 = vadd.f32 %v6540_v1, %v1972_v0  ;;  %v10425_v51 = vadd.f32 %v6541_v44, %v1976_v49  ;;  %v2160_v49 = vrot.slane %v10405_v50, 1 }
 0x320   : > { %7143 = vpow2.f32 %v6545_v37  ;;  %v6547_v9 = vmul.f32 -1.442695, %v10412_v24  ;;  %v10429_v11 = vadd.f32 %v6542_v26, %v1980_v42  ;;  %v6551_v17 = vmul.f32 -1.442695, %v2157_v15 }
 0x321   : > { %7145 = vpow2.f32 %v6546_v59  ;;  %v6548_v37 = vmul.f32 -1.442695, %v10421_v20  ;;  %v2161_v44 = vrot.slane %v10412_v24, 1  ;;  %v2162_v26 = vrot.slane %v10421_v20, 1 }
 0x322   : > { %7147 = vpow2.f32 %v6547_v9  ;;  %v6549_v9 = vmul.f32 -1.442695, %v10425_v51  ;;  %v6550_v0 = vmul.f32 -1.442695, %v10429_v11  ;;  %v2349_v63 = vrot.slane %v10399_v52, 3 }
 0x323   : > { %v10461_v32 = vmul.f32 -1.442695, %v2162_v26  ;;  %v16519_v55 = vrot.slane %v10399_v52, 2 }
 0x324   : > { %v7140_v62 = vpop.eup %7139  ;;  %v10474_v3 = vmul.f32 -1.442695, %v2349_v63 }
 0x325   : > { %v7142_v23 = vpop.eup %7141  ;;  %v10418_v47 = vadd.f32 1.0, %v7140_v62  ;;  %v2158_v62 = vrot.slane %v10401_v22, 1 }
 0x326   : > { %v7144_v36 = vpop.eup %7143  ;;  %v10423_v61 = vadd.f32 1.0, %v7142_v23  ;;  %v2159_v23 = vrot.slane %v10403_v10, 1 }
 0x327   : > { %v7146_v39 = vpop.eup %7145  ;;  %v10427_v46 = vadd.f32 1.0, %v7144_v36  ;;  %7149 = vrcp.f32 %v10418_v47  ;;  %v6552_v42 = vmul.f32 -1.442695, %v2158_v62  ;;  %v2350_v62 = vrot.slane %v10401_v22, 3 }
 0x328   : > { %v10431_v18 = vadd.f32 1.0, %v7146_v39  ;;  %7151 = vrcp.f32 %v10423_v61  ;;  %v7148_v59 = vpop.eup %7147  ;;  %v6553_v56 = vmul.f32 -1.442695, %v2159_v23  ;;  %v2040_v54 = vand.u32 2147483648, %v10418_v47 }
 0x329   : > { %7153 = vrcp.f32 %v10427_v46  ;;  %v10442_v1 = vadd.f32 1.0, %v7148_v59  ;;  %v6554_v59 = vmul.f32 -1.442695, %v2160_v49  ;;  %v10479_v28 = vmul.f32 -1.442695, %v2350_v62 }
 0x32a   : > { %7155 = vrcp.f32 %v10431_v18  ;;  %vm2034_vm0 = vweird.f32 %v10418_v47  ;;  %v2055_v35 = vand.u32 2147483648, %v10423_v61  ;;  %vm2049_vm15 = vweird.f32 %v10423_v61 }
 0x32b   : > { %7157 = vpow2.f32 %v6551_v17  ;;  %vm2064_vm4 = vweird.f32 %v10427_v46  ;;  %v2068_v58 = vand.u32 2147483647, %v10427_v46  ;;  %vm2079_vm7 = vweird.f32 %v10431_v18 }
 0x32c   : > { %7159 = vpow2.f32 %v6548_v37  ;;  %v2163_v37 = vrot.slane %v10425_v51, 1 }
 0x32d   : > { %v10445_v36 = vpop.eup %7149  ;;  %7161 = vpow2.f32 %v6549_v9  ;;  %v6555_v9 = vmul.f32 -1.442695, %v2161_v44 }
 0x32e   : > { %v10448_v39 = vpop.eup %7151  ;;  %7163 = vpow2.f32 %v6550_v0  ;;  %v2030_v0 = vmul.f32 %v10445_v36, %v10418_v47  ;;  %v10477_v23 = vmul.f32 -1.442695, %v2163_v37  ;;  %vm2035_vm8 = vweird.f32 %v10445_v36 }
 0x32f   : > { %v10451_v15 = vpop.eup %7153  ;;  %7165 = vrcp.f32 %v10442_v1  ;;  %v2045_v49 = vmul.f32 %v10448_v39, %v10423_v61  ;;  %vm2050_vm6 = vweird.f32 %v10448_v39  ;;  %vm10540_vm5 = vmor %vm2034_vm0, %vm2035_vm8  ;;  %vm10558_vm0 = vcmp.eq.f32.partialorder %v2068_v58, 8.507059e+37 }
 0x330   : > { %v10453_v17 = vpop.eup %7155  ;;  %7167 = vpow2.f32 %v6552_v42  ;;  %v2060_v44 = vmul.f32 %v10451_v15, %v10427_v46  ;;  %v2031_v21 = vsub.f32 1.0, %v2030_v0  ;;  %vm2065_vm9 = vweird.f32 %v10451_v15  ;;  %vm10554_vm12 = vmor %vm2049_vm15, %vm2050_vm6 }
 0x331   : > { %v7158_v57 = vpop.eup %7157  ;;  %7169 = vpow2.f32 %v6553_v56  ;;  %v2075_v42 = vmul.f32 %v10453_v17, %v10431_v18  ;;  %v2046_v63 = vsub.f32 1.0, %v2045_v49  ;;  %vm2080_vm13 = vweird.f32 %v10453_v17  ;;  %vm10574_vm15 = vmor %vm2064_vm4, %vm2065_vm9 }
 0x332   : > { %v7160_v48 = vpop.eup %7159  ;;  %v10472_v26 = vadd.f32 1.0, %v7158_v57  ;;  %7171 = vpow2.f32 %v6554_v59  ;;  %v2038_v57 = vand.u32 2147483647, %v10418_v47  ;;  %v2061_v59 = vsub.f32 1.0, %v2060_v44  ;;  %vm10591_vm4 = vmor %vm2079_vm7, %vm2080_vm13 }
 0x333   : > { %v7162_v16 = vpop.eup %7161  ;;  %v10481_v56 = vadd.f32 1.0, %v7160_v48  ;;  %7173 = vpow2.f32 %v6555_v9  ;;  %v2076_v62 = vsub.f32 1.0, %v2075_v42  ;;  %v2041_v48 = vor.u32 1.1754944e-38, %v2040_v54 }
 0x334   : > { %v7164_v60 = vpop.eup %7163  ;;  %v10485_v12 = vadd.f32 1.0, %v7162_v16  ;;  %7175 = vrcp.f32 %v10472_v26  ;;  %v2053_v16 = vand.u32 2147483647, %v10423_v61  ;;  %v2032_v30 = vmul.f32 %v10445_v36, %v2031_v21 }
 0x335   : > { %v10483_v2 = vpop.eup %7165  ;;  %v10490_v37 = vadd.f32 1.0, %v7164_v60  ;;  %7177 = vrcp.f32 %v10481_v56  ;;  %v2047_v9 = vmul.f32 %v10448_v39, %v2046_v63  ;;  %v2056_v44 = vor.u32 1.1754944e-38, %v2055_v35 }
 0x336   : > { %v7168_v45 = vpop.eup %7167  ;;  %v2090_v49 = vmul.f32 %v10483_v2, %v10442_v1  ;;  %7179 = vrcp.f32 %v10485_v12  ;;  %vm10504_vm14 = vcmp.eq.f32.partialorder %v2038_v57, 8.507059e+37  ;;  %v2062_v21 = vmul.f32 %v10451_v15, %v2061_v59 }
 0x337   : > { %v7170_v0 = vpop.eup %7169  ;;  %v10500_v60 = vadd.f32 1.0, %v7168_v45  ;;  %v2077_v14 = vmul.f32 %v10453_v17, %v2076_v62  ;;  %7181 = vrcp.f32 %v10490_v37  ;;  %vm10515_vm10 = vcmp.eq.f32.partialorder %v2053_v16, 8.507059e+37 }
 0x338   : > { %v7172_v54 = vpop.eup %7171  ;;  %v10512_v45 = vadd.f32 1.0, %v7170_v0  ;;  %v2070_v57 = vand.u32 2147483648, %v10427_v46  ;;  %v2033_v59 = vadd.f32 %v10445_v36, %v2032_v30  ;;  %v2083_v62 = vand.u32 2147483647, %v10431_v18 }
 0x339   : > { %v10521_v63 = vpop.eup %7173  ;;  %v2091_v0 = vsub.f32 1.0, %v2090_v49  ;;  %v10528_v13 = vadd.f32 1.0, %v7172_v54  ;;  %7183 = vrcp.f32 %v10500_v60  ;;  %v2048_v16 = vadd.f32 %v10448_v39, %v2047_v9 }
 0x33a   : > { %v10526_v27 = vpop.eup %7175  ;;  %7185 = vpow2.f32 %v10461_v32  ;;  %v2063_v49 = vadd.f32 %v10451_v15, %v2062_v21  ;;  %v2078_v54 = vadd.f32 %v10453_v17, %v2077_v14  ;;  %v2071_v21 = vor.u32 1.1754944e-38, %v2070_v57 }
 0x33b   : > { %v10533_v41 = vpop.eup %7177  ;;  %7187 = vrcp.f32 %v10512_v45  ;;  %v2085_v14 = vand.u32 2147483648, %v10431_v18  ;;  %v2037_v61 = vsel %vm10540_vm5, %v10445_v36, %v2033_v59  ;;  %vm10578_vm8 = vcmp.eq.f32.partialorder %v2083_v62, 8.507059e+37 }
 0x33c   : > { %v10547_v9 = vpop.eup %7179  ;;  %7189 = vtanh.f32 %v16519_v55  ;;  %v2092_v40 = vmul.f32 %v10483_v2, %v2091_v0  ;;  %v2052_v55 = vsel %vm10554_vm12, %v10448_v39, %v2048_v16  ;;  %v2098_v46 = vand.u32 2147483647, %v10442_v1 }
 0x33d   : > { %v10563_v43 = vpop.eup %7181  ;;  %7191 = vrcp.f32 %v10528_v13  ;;  %v2105_v36 = vmul.f32 %v10533_v41, %v10481_v56  ;;  %v2067_v59 = vsel %vm10574_vm15, %v10451_v15, %v2063_v49  ;;  %v2082_v39 = vsel %vm10591_vm4, %v10453_v17, %v2078_v54 }
 0x33e   : > { %v2120_v18 = vmul.f32 %v10547_v9, %v10485_v12  ;;  %v2206_v62 = vmul.f32 %v10526_v27, %v10472_v26  ;;  %v10612_v16 = vsel %vm10504_vm14, %v2041_v48, %v2037_v61  ;;  %v2086_v30 = vor.u32 1.1754944e-38, %v2085_v14 }
 0x33f   : > { %v10608_v0 = vpop.eup %7183  ;;  %vm2094_vm7 = vweird.f32 %v10442_v1  ;;  %v2135_v15 = vmul.f32 %v10563_v43, %v10490_v37  ;;  %v10619_v17 = vsel %vm10515_vm10, %v2056_v44, %v2052_v55  ;;  %v2093_v54 = vadd.f32 %v10483_v2, %v2092_v40 }
 0x340   : > { %v7186_v49 = vpop.eup %7185  ;;  %vm2095_vm6 = vweird.f32 %v10483_v2  ;;  %v2100_v32 = vand.u32 2147483648, %v10442_v1  ;;  %v10628_v48 = vsel %vm10558_vm0, %v2071_v21, %v2067_v59  ;;  %v10632_v14 = vsel %vm10578_vm8, %v2086_v30, %v2082_v39 }
 0x341   : > { %v10624_v42 = vpop.eup %7187  ;;  %vm10634_vm14 = vcmp.eq.f32.partialorder %v2098_v46, 8.507059e+37  ;;  %v2106_v44 = vsub.f32 1.0, %v2105_v36  ;;  %v2115_v61 = vand.u32 2147483648, %v10481_v56  ;;  %v2121_v58 = vsub.f32 1.0, %v2120_v18  ;;  %vm10647_vm10 = vmor %vm2094_vm7, %vm2095_vm6 }
 0x342   : > { %v10638_v40 = vpop.eup %7189  ;;  %v2207_v55 = vsub.f32 1.0, %v2206_v62  ;;  %v2221_v47 = vmul.f32 %v10608_v0, %v10500_v60  ;;  %v2113_v52 = vand.u32 2147483647, %v10481_v56  ;;  %v2136_v46 = vsub.f32 1.0, %v2135_v15 }
 0x343   : > { %v10643_v21 = vpop.eup %7191  ;;  %7193 = vpow2.f32 %v10477_v23  ;;  %v16530_v36 = vrot.slane %v10429_v11, 1  ;;  %v2097_v39 = vsel %vm10647_vm10, %v10483_v2, %v2093_v54  ;;  %v2101_v18 = vor.u32 1.1754944e-38, %v2100_v32 }
 0x344   : > { %v2128_v62 = vand.u32 2147483647, %v10485_v12  ;;  %v2130_v1 = vand.u32 2147483648, %v10485_v12  ;;  %v2107_v30 = vmul.f32 %v10533_v41, %v2106_v44  ;;  %vm2109_vm9 = vweird.f32 %v10481_v56 }
 0x345   : > { %v6558_v59 = vmul.f32 -1.442695, %v16530_v36  ;;  %vm2124_vm5 = vweird.f32 %v10485_v12  ;;  %v2143_v23 = vand.u32 2147483647, %v10490_v37  ;;  %v2116_v15 = vor.u32 1.1754944e-38, %v2115_v61 }
 0x346   : > { %v2122_v36 = vmul.f32 %v10547_v9, %v2121_v58  ;;  %v2208_v53 = vmul.f32 %v10526_v27, %v2207_v55  ;;  %v2222_v57 = vsub.f32 1.0, %v2221_v47  ;;  %v10668_v2 = vsel %vm10634_vm14, %v2101_v18, %v2097_v39 }
 0x347   : > { %vm10670_vm13 = vcmp.eq.f32.partialorder %v2113_v52, 8.507059e+37  ;;  %v2137_v32 = vmul.f32 %v10563_v43, %v2136_v46  ;;  %vm2139_vm12 = vweird.f32 %v10490_v37  ;;  %7195 = vpow2.f32 %v6558_v59 }
 0x348   : > { %vm2110_vm0 = vweird.f32 %v10533_v41  ;;  %vm10677_vm15 = vcmp.eq.f32.partialorder %v2128_v62, 8.507059e+37  ;;  %v2131_v61 = vor.u32 1.1754944e-38, %v2130_v1  ;;  %v2145_v35 = vand.u32 2147483648, %v10490_v37 }
 0x349   : > { %v10683_v58 = vadd.f32 1.0, %v10521_v63  ;;  %v7194_v55 = vpop.eup %7193  ;;  %v2108_v47 = vadd.f32 %v10533_v41, %v2107_v30  ;;  %vm2125_vm8 = vweird.f32 %v10547_v9  ;;  %vm10687_vm4 = vcmp.eq.f32.partialorder %v2143_v23, 8.507059e+37  ;;  %vm10703_vm6 = vmor %vm2109_vm9, %vm2110_vm0 }
 0x34a   : > { %v10691_v46 = vadd.f32 1.0, %v7186_v49  ;;  %vm2211_vm7 = vweird.f32 %v10526_v27  ;;  %v2123_v59 = vadd.f32 %v10547_v9, %v2122_v36  ;;  %v2209_v39 = vadd.f32 %v10526_v27, %v2208_v53  ;;  %vm10713_vm10 = vmor %vm2124_vm5, %vm2125_vm8 }
 0x34b   : > { %v2223_v63 = vmul.f32 %v10608_v0, %v2222_v57  ;;  %v2236_v18 = vmul.f32 %v10624_v42, %v10512_v45  ;;  %v2138_v49 = vadd.f32 %v10563_v43, %v2137_v32  ;;  %vm2140_vm14 = vweird.f32 %v10563_v43 }
 0x34c   : > { %v2214_v1 = vand.u32 2147483647, %v10472_v26  ;;  %v2216_v53 = vand.u32 2147483648, %v10472_v26  ;;  %v2146_v23 = vor.u32 1.1754944e-38, %v2145_v35  ;;  %v10717_v56 = vadd.f32 1.0, %v7194_v55  ;;  %vm10741_vm8 = vmor %vm2139_vm12, %vm2140_vm14 }
 0x34d   : > { %vm2210_vm9 = vweird.f32 %v10472_v26  ;;  %v2251_v36 = vmul.f32 %v10643_v21, %v10528_v13  ;;  %v7196_v57 = vpop.eup %7195  ;;  %v2112_v32 = vsel %vm10703_vm6, %v10533_v41, %v2108_v47  ;;  %vm2226_vm5 = vweird.f32 %v10608_v0 }
 0x34e   : > { %vm10727_vm0 = vmor %vm2210_vm9, %vm2211_vm7  ;;  %v2229_v35 = vand.u32 2147483647, %v10500_v60  ;;  %7197 = vrcp.f32 %v10683_v58  ;;  %v2127_v26 = vsel %vm10713_vm10, %v10547_v9, %v2123_v59  ;;  %v2224_v47 = vadd.f32 %v10608_v0, %v2223_v63 }
 0x34f   : > { %v2213_v55 = vsel %vm10727_vm0, %v10526_v27, %v2209_v39  ;;  %v2237_v62 = vsub.f32 1.0, %v2236_v18  ;;  %v2142_v30 = vsel %vm10741_vm8, %v10563_v43, %v2138_v49  ;;  %vm2215_vm7 = vcmp.eq.f32.partialorder %v2214_v1, 8.507059e+37 }
 0x350   : > { %v2217_v9 = vor.u32 1.1754944e-38, %v2216_v53  ;;  %v2231_v59 = vand.u32 2147483648, %v10500_v60  ;;  %v10755_v37 = vsel %vm10670_vm13, %v2116_v15, %v2112_v32  ;;  %v10757_v7 = vadd.f32 1.0, %v7196_v57 }
 0x351   : > { %vm2225_vm12 = vweird.f32 %v10500_v60  ;;  %v2252_v27 = vsub.f32 1.0, %v2251_v36  ;;  %v10762_v39 = vsel %vm10677_vm15, %v2131_v61, %v2127_v26  ;;  %vm2230_vm14 = vcmp.eq.f32.partialorder %v2229_v35, 8.507059e+37 }
 0x352   : > { %16545 = vst [vmem:[#allocation52_spill] sm:$0xff] %v10762_v39  ;;  %v10764_v63 = vsel %vm2215_vm7, %v2217_v9, %v2213_v55  ;;  %vm10768_vm6 = vmor %vm2225_vm12, %vm2226_vm5  ;;  %7199 = vrcp.f32 %v10691_v46  ;;  %v10775_v15 = vsel %vm10687_vm4, %v2146_v23, %v2142_v30  ;;  %v2238_v54 = vmul.f32 %v10624_v42, %v2237_v62 }
 0x353   : > { %16548 = vst [vmem:[#allocation50_spill] sm:$0xff] %v10775_v15  ;;  %v2228_v60 = vsel %vm10768_vm6, %v10608_v0, %v2224_v47  ;;  %7201 = vrcp.f32 %v10717_v56  ;;  %v2232_v61 = vor.u32 1.1754944e-38, %v2231_v59  ;;  %v2244_v18 = vand.u32 2147483647, %v10512_v45 }
 0x354   : > { %v10782_v44 = vpop.eup %7197  ;;  %v2246_v49 = vand.u32 2147483648, %v10512_v45  ;;  %v2351_v1 = vrot.slane %v10403_v10, 3  ;;  %v2253_v52 = vmul.f32 %v10643_v21, %v2252_v27  ;;  %v2259_v53 = vand.u32 2147483647, %v10528_v13 }
 0x355   : > { %7203 = vrcp.f32 %v10757_v7  ;;  %v2352_v0 = vrot.slane %v10405_v50, 3  ;;  %v10791_v23 = vsel %vm2230_vm14, %v2232_v61, %v2228_v60  ;;  %vm2240_vm13 = vweird.f32 %v10512_v45 }
 0x356   : > { %vm2241_vm15 = vweird.f32 %v10624_v42  ;;  %v2353_v36 = vrot.slane %v10412_v24, 3  ;;  %v2239_v57 = vadd.f32 %v10624_v42, %v2238_v54  ;;  %vm2255_vm4 = vweird.f32 %v10528_v13 }
 0x357   : > { %v2261_v32 = vand.u32 2147483648, %v10528_v13  ;;  %v2266_v12 = vmul.f32 %v10782_v44, %v10683_v58  ;;  %vm10803_vm10 = vcmp.eq.f32.partialorder %v2244_v18, 8.507059e+37  ;;  %v2247_v41 = vor.u32 1.1754944e-38, %v2246_v49  ;;  %vm10820_vm5 = vmor %vm2240_vm13, %vm2241_vm15 }
 0x358   : > { %v10801_v35 = vpop.eup %7199  ;;  %vm2256_vm9 = vweird.f32 %v10643_v21  ;;  %v6561_v55 = vmul.f32 -1.442695, %v2351_v1  ;;  %v2254_v62 = vadd.f32 %v10643_v21, %v2253_v52  ;;  %vm10811_vm0 = vcmp.eq.f32.partialorder %v2259_v53, 8.507059e+37 }
 0x359   : > { %v10808_v47 = vpop.eup %7201  ;;  %v2276_v9 = vand.u32 2147483648, %v10683_v58  ;;  %v6562_v59 = vmul.f32 -1.442695, %v2352_v0  ;;  %v2274_v43 = vand.u32 2147483647, %v10683_v58  ;;  %v2354_v60 = vrot.slane %v10421_v20, 3  ;;  %vm10837_vm8 = vmor %vm2255_vm4, %vm2256_vm9 }
 0x35a   : > { %7205 = vpow2.f32 %v10474_v3  ;;  %v6563_v54 = vmul.f32 -1.442695, %v2353_v36  ;;  %v2243_v18 = vsel %vm10820_vm5, %v10624_v42, %v2239_v57  ;;  %v2262_v49 = vor.u32 1.1754944e-38, %v2261_v32 }
 0x35b   : > { %v10827_v61 = vpop.eup %7203  ;;  %v2267_v1 = vsub.f32 1.0, %v2266_v12  ;;  %7207 = vpow2.f32 %v10479_v28  ;;  %v2281_v3 = vmul.f32 %v10801_v35, %v10691_v46  ;;  %v2291_v52 = vand.u32 2147483648, %v10691_v46 }
 0x35c   : > { %v2296_v42 = vmul.f32 %v10808_v47, %v10717_v56  ;;  %7209 = vpow2.f32 %v6561_v55  ;;  %v2258_v28 = vsel %vm10837_vm8, %v10643_v21, %v2254_v62  ;;  %v10849_v53 = vor.u32 1.1754944e-38, %v2276_v9 }
 0x35d   : > { %v2355_v13 = vrot.slane %v10425_v51, 3  ;;  %7211 = vpow2.f32 %v6562_v59  ;;  %vm2270_vm7 = vweird.f32 %v10683_v58  ;;  %v2289_v0 = vand.u32 2147483647, %v10691_v46 }
 0x35e   : > { %v2311_v36 = vmul.f32 %v10827_v61, %v10757_v7  ;;  %7213 = vpow2.f32 %v6563_v54  ;;  %v6564_v57 = vmul.f32 -1.442695, %v2354_v60  ;;  %v10858_v32 = vsel %vm10803_vm10, %v2247_v41, %v2243_v18 }
 0x35f   : > { %v2268_v21 = vmul.f32 %v10782_v44, %v2267_v1  ;;  %v2304_v12 = vand.u32 2147483647, %v10717_v56  ;;  %v2306_v55 = vand.u32 2147483648, %v10717_v56  ;;  %v10865_v9 = vsel %vm10811_vm0, %v2262_v49, %v2258_v28 }
 0x360   : > { %v7206_v62 = vpop.eup %7205  ;;  %v2282_v59 = vsub.f32 1.0, %v2281_v3  ;;  %v10867_v27 = vor.u32 1.1754944e-38, %v2291_v52  ;;  %v2297_v54 = vsub.f32 1.0, %v2296_v42  ;;  %vm2271_vm12 = vweird.f32 %v10782_v44 }
 0x361   : > { %v7208_v60 = vpop.eup %7207  ;;  %vm2285_vm6 = vweird.f32 %v10691_v46  ;;  %v2319_v26 = vand.u32 2147483647, %v10757_v7  ;;  %v6565_v41 = vmul.f32 -1.442695, %v2355_v13  ;;  %v10872_v18 = vadd.f32 1.0, %v7206_v62  ;;  %vm10910_vm0 = vmor %vm2270_vm7, %vm2271_vm12 }
 0x362   : > { %v7210_v1 = vpop.eup %7209  ;;  %vm10874_vm14 = vcmp.eq.f32.partialorder %v2274_v43, 8.507059e+37  ;;  %vm2300_vm13 = vweird.f32 %v10717_v56  ;;  %v2312_v30 = vsub.f32 1.0, %v2311_v36  ;;  %v2356_v49 = vrot.slane %v10429_v11, 3 }
 0x363   : > { %7215 = vpow2.f32 %v6564_v57  ;;  %v10880_v3 = vadd.f32 1.0, %v7208_v60  ;;  %v7212_v52 = vpop.eup %7211  ;;  %v2269_v42 = vadd.f32 %v10782_v44, %v2268_v21  ;;  %v2321_v28 = vand.u32 2147483648, %v10757_v7 }
 0x364   : > { %v10884_v13 = vadd.f32 1.0, %v7210_v1  ;;  %7217 = vrcp.f32 %v10872_v18  ;;  %v7214_v43 = vpop.eup %7213  ;;  %v2283_v62 = vmul.f32 %v10801_v35, %v2282_v59  ;;  %v2298_v31 = vmul.f32 %v10808_v47, %v2297_v54 }
 0x365   : > { %vm2315_vm15 = vweird.f32 %v10757_v7  ;;  %v10890_v36 = vadd.f32 1.0, %v7212_v52  ;;  %7219 = vrcp.f32 %v10880_v3  ;;  %vm2286_vm4 = vweird.f32 %v10801_v35 }
 0x366   : > { %v2307_v57 = vor.u32 1.1754944e-38, %v2306_v55  ;;  %v2327_v21 = vrot.slane %v10403_v10, 2  ;;  %7221 = vpow2.f32 %v6565_v41  ;;  %vm10895_vm10 = vcmp.eq.f32.partialorder %v2289_v0, 8.507059e+37  ;;  %vm10940_vm7 = vmor %vm2285_vm6, %vm2286_vm4 }
 0x367   : > { %vm10899_vm9 = vcmp.eq.f32.partialorder %v2304_v12, 8.507059e+37  ;;  %v2313_v54 = vmul.f32 %v10827_v61, %v2312_v30  ;;  %v2328_v1 = vrot.slane %v10405_v50, 2  ;;  %v6566_v52 = vmul.f32 -1.442695, %v2356_v49 }
 0x368   : > { %7223 = vrcp.f32 %v10884_v13  ;;  %vm2301_vm5 = vweird.f32 %v10808_v47  ;;  %v2322_v0 = vor.u32 1.1754944e-38, %v2321_v28  ;;  %v16565_v12 = vrot.slane %v10401_v22, 2 }
 0x369   : > { %v10917_v55 = vadd.f32 1.0, %v7214_v43  ;;  %v7216_v50 = vpop.eup %7215  ;;  %v2273_v41 = vsel %vm10910_vm0, %v10782_v44, %v2269_v42  ;;  %v2284_v30 = vadd.f32 %v10801_v35, %v2283_v62  ;;  %v2299_v58 = vadd.f32 %v10808_v47, %v2298_v31  ;;  %vm10957_vm6 = vmor %vm2300_vm13, %vm2301_vm5 }
 0x36a   : > { %7225 = vtanh.f32 %v16565_v12  ;;  %vm10924_vm8 = vcmp.eq.f32.partialorder %v2319_v26, 8.507059e+37  ;;  %v10929_v28 = vpop.eup %7217  ;;  %v2329_v22 = vrot.slane %v10412_v24, 2  ;;  %v2330_v43 = vrot.slane %v10421_v20, 2 }
 0x36b   : > { %7227 = vrcp.f32 %v10890_v36  ;;  %v2331_v12 = vrot.slane %v10425_v51, 2  ;;  %v10934_v44 = vpop.eup %7219  ;;  %v2314_v26 = vadd.f32 %v10827_v61, %v2313_v54  ;;  %vm2316_vm12 = vweird.f32 %v10827_v61 }
 0x36c   : > { %7229 = vtanh.f32 %v2327_v21  ;;  %v2398_v24 = vmul.f32 %v10929_v28, %v10872_v18  ;;  %v7222_v20 = vpop.eup %7221  ;;  %v10951_v51 = vsel %vm10874_vm14, %v10849_v53, %v2273_v41  ;;  %v2332_v42 = vrot.slane %v10429_v11, 2  ;;  %vm10979_vm14 = vmor %vm2315_vm15, %vm2316_vm12 }
 0x36d   : > { %7231 = vpow2.f32 %v6566_v52  ;;  %v2413_v62 = vmul.f32 %v10934_v44, %v10880_v3  ;;  %v2288_v53 = vsel %vm10940_vm7, %v10801_v35, %v2284_v30  ;;  %v2303_v56 = vsel %vm10957_vm6, %v10808_v47, %v2299_v58 }
 0x36e   : > { %7233 = vrcp.f32 %v10917_v55  ;;  %v10965_v21 = vpop.eup %7223  ;;  %v2399_v45 = vsub.f32 1.0, %v2398_v24  ;;  %v10983_v52 = vadd.f32 1.0, %v7216_v50  ;;  %v10992_v41 = vadd.f32 1.0, %v7222_v20 }
 0x36f   : > { %7235 = vtanh.f32 %v2328_v1  ;;  %v2414_v35 = vsub.f32 1.0, %v2413_v62  ;;  %v2428_v10 = vmul.f32 %v10965_v21, %v10884_v13  ;;  %v2318_v1 = vsel %vm10979_vm14, %v10827_v61, %v2314_v26 }
 0x370   : > { %v10973_v54 = vpop.eup %7225  ;;  %7237 = vtanh.f32 %v2329_v22  ;;  %v2406_v7 = vand.u32 2147483647, %v10872_v18  ;;  %v11000_v50 = vsel %vm10895_vm10, %v10867_v27, %v2288_v53  ;;  %v11004_v58 = vsel %vm10899_vm9, %v2307_v57, %v2303_v56 }
 0x371   : > { %v10987_v47 = vpop.eup %7227  ;;  %7239 = vtanh.f32 %v2330_v43  ;;  %v2400_v22 = vmul.f32 %v10929_v28, %v2399_v45  ;;  %v2415_v43 = vmul.f32 %v10934_v44, %v2414_v35  ;;  %v2429_v31 = vsub.f32 1.0, %v2428_v10 }
 0x372   : > { %v10995_v30 = vpop.eup %7229  ;;  %7241 = vtanh.f32 %v2331_v12  ;;  %v2443_v26 = vmul.f32 %v10987_v47, %v10890_v36  ;;  %v11014_v27 = vsel %vm10924_vm8, %v2322_v0, %v2318_v1  ;;  %vm2402_vm13 = vweird.f32 %v10872_v18 }
 0x373   : > { %v7232_v61 = vpop.eup %7231  ;;  %7243 = vtanh.f32 %v2332_v42  ;;  %v2408_v57 = vand.u32 2147483648, %v10872_v18  ;;  %vm11021_vm15 = vcmp.eq.f32.partialorder %v2406_v7, 8.507059e+37  ;;  %vm2417_vm4 = vweird.f32 %v10880_v3 }
 0x374   : > { %v11010_v24 = vpop.eup %7233  ;;  %7245 = vrcp.f32 %v10983_v52  ;;  %v2421_v12 = vand.u32 2147483647, %v10880_v3  ;;  %v11030_v49 = vadd.f32 1.0, %v7232_v61  ;;  %v2401_v20 = vadd.f32 %v10929_v28, %v2400_v22 }
 0x375   : > { %v11019_v60 = vpop.eup %7235  ;;  %7247 = vrcp.f32 %v10992_v41  ;;  %vm2403_vm10 = vweird.f32 %v10929_v28  ;;  %vm2418_vm9 = vweird.f32 %v10934_v44  ;;  %v2416_v42 = vadd.f32 %v10934_v44, %v2415_v43 }
 0x376   : > { %v11028_v0 = vpop.eup %7237  ;;  %v2430_v62 = vmul.f32 %v10965_v21, %v2429_v31  ;;  %v2444_v53 = vsub.f32 1.0, %v2443_v26  ;;  %v2458_v56 = vmul.f32 %v11010_v24, %v10917_v55  ;;  %v2409_v11 = vor.u32 1.1754944e-38, %v2408_v57  ;;  %vm11050_vm0 = vmor %vm2402_vm13, %vm2403_vm10 }
 0x377   : > { %v11035_v46 = vpop.eup %7239  ;;  %v2423_v35 = vand.u32 2147483648, %v10880_v3  ;;  %v2438_v10 = vand.u32 2147483648, %v10884_v13  ;;  %v2453_v1 = vand.u32 2147483648, %v10890_v36  ;;  %vm11054_vm5 = vcmp.eq.f32.partialorder %v2421_v12, 8.507059e+37  ;;  %vm11070_vm7 = vmor %vm2417_vm4, %vm2418_vm9 }
 0x378   : > { %16576 = vst [vmem:[#allocation53_spill] sm:$0xff] %v11035_v46  ;;  %v11041_v45 = vpop.eup %7241  ;;  %vm2432_vm8 = vweird.f32 %v10884_v13  ;;  %v2436_v43 = vand.u32 2147483647, %v10884_v13  ;;  %v2468_v31 = vand.u32 2147483648, %v10917_v55  ;;  %v2405_v18 = vsel %vm11050_vm0, %v10929_v28, %v2401_v20 }
 0x379   : > { %16577 = vst [vmem:[#allocation51_spill] sm:$0xff] %v11041_v45  ;;  %v11046_v7 = vpop.eup %7243  ;;  %vm2433_vm12 = vweird.f32 %v10965_v21  ;;  %v2483_v12 = vand.u32 2147483648, %v10983_v52  ;;  %7249 = vrcp.f32 %v11030_v49  ;;  %v2420_v28 = vsel %vm11070_vm7, %v10934_v44, %v2416_v42 }
 0x37a   : > { %16578 = vst [vmem:[#allocation54_spill] sm:$0xff] %v11046_v7  ;;  %v11061_v26 = vpop.eup %7245  ;;  %v11083_v20 = vadd.f32 %v10965_v21, %v2430_v62  ;;  %v2445_v3 = vmul.f32 %v10987_v47, %v2444_v53  ;;  %v2459_v22 = vsub.f32 1.0, %v2458_v56  ;;  %v2424_v33 = vor.u32 1.1754944e-38, %v2423_v35  ;;  %vm11108_vm6 = vmor %vm2432_vm8, %vm2433_vm12 }
 0x37b   : > { %v11077_v6 = vpop.eup %7247  ;;  %v2439_v7 = vor.u32 1.1754944e-38, %v2438_v10  ;;  %v2451_v15 = vand.u32 2147483647, %v10890_v36  ;;  %v11087_v45 = vor.u32 1.1754944e-38, %v2453_v1  ;;  %v2466_v39 = vand.u32 2147483647, %v10917_v55 }
 0x37c   : > { %v11090_v46 = vor.u32 1.1754944e-38, %v2468_v31  ;;  %v2473_v57 = vmul.f32 %v11061_v26, %v10983_v52  ;;  %v2488_v44 = vmul.f32 %v11077_v6, %v10992_v41  ;;  %v11098_v42 = vsel %vm11021_vm15, %v2409_v11, %v2405_v18 }
 0x37d   : > { %v11102_v62 = vsel %vm11054_vm5, %v2424_v33, %v2420_v28  ;;  %vm2448_vm14 = vweird.f32 %v10987_v47  ;;  %v2481_v56 = vand.u32 2147483647, %v10983_v52  ;;  %v2435_v59 = vsel %vm11108_vm6, %v10965_v21, %v11083_v20 }
 0x37e   : > { %vm11118_vm13 = vcmp.eq.f32.partialorder %v2436_v43, 8.507059e+37  ;;  %v11123_v11 = vadd.f32 %v10987_v47, %v2445_v3  ;;  %vm2447_vm15 = vweird.f32 %v10890_v36  ;;  %v2460_v13 = vmul.f32 %v11010_v24, %v2459_v22 }
 0x37f   : > { %v11127_v35 = vor.u32 1.1754944e-38, %v2483_v12  ;;  %v11129_v10 = vpop.eup %7249  ;;  %vm2463_vm4 = vweird.f32 %v11010_v24  ;;  %v2496_v1 = vand.u32 2147483647, %v10992_v41  ;;  %v2517_v21 = vmul.f32 %v10764_v63, %v10206_v29  ;;  %vm11202_vm12 = vmor %vm2447_vm15, %vm2448_vm14 }
 0x380   : > { %v2518_v61 = vmul.f32 %v10791_v23, %v10208_v34  ;;  %v2519_v43 = vmul.f32 %v10858_v32, %v10210_v4  ;;  %v2474_v31 = vsub.f32 1.0, %v2473_v57  ;;  %vm2478_vm10 = vweird.f32 %v11061_v26 }
 0x381   : > { %v2489_v18 = vsub.f32 1.0, %v2488_v44  ;;  %v2503_v12 = vmul.f32 %v11129_v10, %v11030_v49  ;;  %v2520_v28 = vmul.f32 %v10865_v9, %v10217_v19  ;;  %vm2462_vm9 = vweird.f32 %v10917_v55 }
 0x382   : > { %v2521_v29 = vmul.f32 %v10951_v51, %v10226_v25  ;;  %v2525_v34 = vmul.f32 %v10638_v40, %v10612_v16  ;;  %v2526_v4 = vmul.f32 %v10973_v54, %v10619_v17  ;;  %v2527_v63 = vmul.f32 %v10995_v30, %v10628_v48  ;;  %v16594_v30 = vld [vmem:[#allocation52_spill] sm:$0xff] }
 0x383   : > { %vm2477_vm0 = vweird.f32 %v10983_v52  ;;  %v2504_v23 = vsub.f32 1.0, %v2503_v12  ;;  %v2522_v19 = vmul.f32 %v11000_v50, %v10232_v5  ;;  %v2523_v32 = vmul.f32 %v11004_v58, %v10250_v8  ;;  %v16595_v50 = vld [vmem:[#allocation51_spill] sm:$0xff]  ;;  %v16615_v52 = vld [vmem:[#allocation18_spill] sm:$0xff] }
 0x384   : > { %v2528_v25 = vmul.f32 %v11019_v60, %v10632_v14  ;;  %vm11160_vm5 = vcmp.eq.f32.partialorder %v2451_v15, 8.507059e+37  ;;  %vm2492_vm8 = vweird.f32 %v10992_v41  ;;  %v2529_v17 = vmul.f32 %v11028_v0, %v10668_v2  ;;  %v16591_v15 = vld [vmem:[#allocation53_spill] sm:$0xff]  ;;  %v16597_v0 = vld [vmem:[#allocation54_spill] sm:$0xff] }
 0x385   : > { %v11167_v48 = vadd.f32 %v2525_v34, %v2517_v21  ;;  %v11169_v40 = vadd.f32 %v2526_v4, %v2518_v61  ;;  %v11171_v5 = vadd.f32 %v2527_v63, %v2519_v43  ;;  %v2475_v8 = vmul.f32 %v11061_v26, %v2474_v31 }
 0x386   : > { %v2524_v14 = vmul.f32 %v11014_v27, %v10258_v38  ;;  %v2530_v9 = vmul.f32 %v16591_v15, %v10755_v37  ;;  %v11178_v51 = vadd.f32 %v2528_v25, %v2520_v28  ;;  %vm11180_vm7 = vcmp.eq.f32.partialorder %v2466_v39, 8.507059e+37  ;;  %v16596_v27 = vld [vmem:[#allocation50_spill] sm:$0xff]  ;;  %v16621_v28 = vld [vmem:[#allocation24_spill] sm:$0xff] }
 0x387   : > { %v2490_v2 = vmul.f32 %v11077_v6, %v2489_v18  ;;  %v2531_v58 = vmul.f32 %v16595_v50, %v16594_v30  ;;  %v11187_v60 = vadd.f32 %v2529_v17, %v2521_v29  ;;  %7251 = vtanh.f32 %v11167_v48 }
 0x388   : > { %v2505_v38 = vmul.f32 %v11129_v10, %v2504_v23  ;;  %v2532_v37 = vmul.f32 %v16597_v0, %v16596_v27  ;;  %v11193_v20 = vadd.f32 %v2530_v9, %v2522_v19  ;;  %7253 = vtanh.f32 %v11169_v40 }
 0x389   : > { %v2440_v39 = vsel %vm11118_vm13, %v2439_v7, %v2435_v59  ;;  %v2461_v22 = vadd.f32 %v11010_v24, %v2460_v13  ;;  %vm11207_vm6 = vcmp.eq.f32.partialorder %v2481_v56, 8.507059e+37  ;;  %v11211_v44 = vadd.f32 %v2531_v58, %v2523_v32  ;;  %vm11230_vm13 = vmor %vm2462_vm9, %vm2463_vm4 }
 0x38a   : > { %7255 = vtanh.f32 %v11171_v5  ;;  %v2450_v7 = vsel %vm11202_vm12, %v10987_v47, %v11123_v11  ;;  %v2498_v36 = vand.u32 2147483648, %v10992_v41  ;;  %v11219_v53 = vadd.f32 %v2532_v37, %v2524_v14  ;;  %vm11248_vm4 = vmor %vm2477_vm0, %vm2478_vm10 }
 0x38b   : > { %7257 = vtanh.f32 %v11178_v51  ;;  %v2476_v56 = vadd.f32 %v11061_v26, %v2475_v8  ;;  %v2491_v59 = vadd.f32 %v11077_v6, %v2490_v2  ;;  %vm2493_vm14 = vweird.f32 %v11077_v6 }
 0x38c   : > { %7259 = vtanh.f32 %v11187_v60  ;;  %vm11234_vm15 = vcmp.eq.f32.partialorder %v2496_v1, 8.507059e+37  ;;  %v2506_v11 = vadd.f32 %v11129_v10, %v2505_v38  ;;  %vm2508_vm12 = vweird.f32 %v11129_v10  ;;  %vm11262_vm9 = vmor %vm2492_vm8, %vm2493_vm14 }
 0x38d   : > { %7261 = vtanh.f32 %v11193_v20  ;;  %v7252_v13 = vpop.eup %7251  ;;  %v2465_v21 = vsel %vm11230_vm13, %v11010_v24, %v2461_v22  ;;  %v2511_v1 = vand.u32 2147483647, %v11030_v49  ;;  %v2513_v61 = vand.u32 2147483648, %v11030_v49 }
 0x38e   : > { %7263 = vtanh.f32 %v11211_v44  ;;  %v7254_v43 = vpop.eup %7253  ;;  %v2455_v31 = vsel %vm11160_vm5, %v11087_v45, %v2450_v7  ;;  %vm2507_vm10 = vweird.f32 %v11030_v49  ;;  %v2549_v24 = vmul.f32 %v7252_v13, %v11098_v42 }
 0x38f   : > { %7265 = vtanh.f32 %v11219_v53  ;;  %v2480_v12 = vsel %vm11248_vm4, %v11061_v26, %v2476_v56  ;;  %v2495_v45 = vsel %vm11262_vm9, %v11077_v6, %v2491_v59  ;;  %v2499_v41 = vor.u32 1.1754944e-38, %v2498_v36  ;;  %vm11277_vm0 = vmor %vm2507_vm10, %vm2508_vm12 }
 0x390   : > { %v7256_v18 = vpop.eup %7255  ;;  %v2550_v49 = vmul.f32 %v7254_v43, %v11102_v62  ;;  %v2470_v42 = vsel %vm11180_vm7, %v11090_v46, %v2465_v21  ;;  %v2510_v26 = vsel %vm11277_vm0, %v11129_v10, %v2506_v11  ;;  %v2573_v6 = vpack.c.bf16 %v2549_v24, %v2549_v24  ;;  %v16616_v24 = vld [vmem:[#allocation19_spill] sm:$0xff] }
 0x391   : > { %v7258_v29 = vpop.eup %7257  ;;  %v2551_v34 = vmul.f32 %v7256_v18, %v2440_v39  ;;  %vm2512_vm5 = vcmp.eq.f32.partialorder %v2511_v1, 8.507059e+37  ;;  %v2514_v63 = vor.u32 1.1754944e-38, %v2513_v61  ;;  %v2485_v62 = vsel %vm11207_vm6, %v11127_v35, %v2480_v12  ;;  %v16617_v18 = vld [vmem:[#allocation20_spill] sm:$0xff]  ;;  %v16618_v12 = vld [vmem:[#allocation21_spill] sm:$0xff] }
 0x392   : > { %v7260_v4 = vpop.eup %7259  ;;  %v2552_v23 = vmul.f32 %v7258_v29, %v2455_v31  ;;  %v2574_v19 = vpack.c.bf16 %v2550_v49, %v2550_v49  ;;  %v2500_v25 = vsel %vm11234_vm15, %v2499_v41, %v2495_v45  ;;  %v2589_v30 = vunpack.c.l.b16 %v2573_v6  ;;  %v16619_v45 = vld [vmem:[#allocation22_spill] sm:$0xff]  ;;  %v16620_v41 = vld [vmem:[#allocation23_spill] sm:$0xff]  ;;  %v16622_v49 = vld [vmem:[#allocation25_spill] sm:$0xff] }
 0x393   : > { %v7262_v32 = vpop.eup %7261  ;;  %v2553_v46 = vmul.f32 %v7260_v4, %v2470_v42  ;;  %v2575_v16 = vpack.c.bf16 %v2551_v34, %v2551_v34  ;;  %v2515_v8 = vsel %vm2512_vm5, %v2514_v63, %v2510_v26  ;;  %vm16612_vm8 = vcmask 1044484   ;;  %v16623_v29 = vld [vmem:[#allocation26_spill] sm:$0xff]  ;;  %v16624_v42 = vld [vmem:[#allocation27_spill] sm:$0xff]  ;;  %v16625_v26 = vld [vmem:[#allocation28_spill] sm:$0xff] }
 0x394   : > { %v7264_v17 = vpop.eup %7263  ;;  %v2554_v10 = vmul.f32 %v7262_v32, %v2485_v62  ;;  %v2576_v14 = vpack.c.bf16 %v2552_v23, %v2552_v23  ;;  %v2590_v15 = vunpack.c.l.b16 %v2574_v19  ;;  %vm16613_vm7 = vcmask 1045509   ;;  %v16626_v34 = vld [vmem:[#allocation29_spill] sm:$0xff]  ;;  %v16627_v6 = vld [vmem:[#allocation30_spill] sm:$0xff]  ;;  %v16628_v4 = vld [vmem:[#allocation31_spill] sm:$0xff] }
 0x395   : > { %v7266_v9 = vpop.eup %7265  ;;  %v2555_v54 = vmul.f32 %v7264_v17, %v2500_v25  ;;  %v2577_v2 = vpack.c.bf16 %v2553_v46, %v2553_v46  ;;  %v2591_v50 = vunpack.c.l.b16 %v2575_v16  ;;  %vm16614_vm6 = vcmask 1046534   ;;  %v16629_v63 = vld [vmem:[#allocation32_spill] sm:$0xff]  ;;  %v16630_v23 = vld [vmem:[#allocation33_spill] sm:$0xff]  ;;  %v16631_v19 = vld [vmem:[#allocation34_spill] sm:$0xff] }
 0x396   : > { %v2556_v58 = vmul.f32 %v7266_v9, %v2515_v8  ;;  %v2578_v38 = vpack.c.bf16 %v2554_v10, %v2554_v10  ;;  %v2592_v27 = vunpack.c.l.b16 %v2576_v14  ;;  %v2597_v0 = vrot.slane %v2590_v15, 7  ;;  %v16632_v32 = vld [vmem:[#allocation35_spill] sm:$0xff]  ;;  %v16633_v62 = vld [vmem:[#allocation36_spill] sm:$0xff]  ;;  %v16634_v25 = vld [vmem:[#allocation37_spill] sm:$0xff] }
 0x397   : > { %v2579_v35 = vpack.c.bf16 %v2555_v54, %v2555_v54  ;;  %v2593_v37 = vunpack.c.l.b16 %v2577_v2  ;;  %v2599_v39 = vrot.slane %v2591_v50, 6  ;;  %v16635_v46 = vld [vmem:[#allocation38_spill] sm:$0xff]  ;;  %v16636_v16 = vld [vmem:[#allocation39_spill] sm:$0xff]  ;;  %v16637_v17 = vld [vmem:[#allocation40_spill] sm:$0xff]  ;;  %vm16647_vm14 = vcmask 1040384  }
 0x398   : > { %v2580_v3 = vpack.c.bf16 %v2556_v58, %v2556_v58  ;;  %v2594_v22 = vunpack.c.l.b16 %v2578_v38  ;;  %v2598_v57 = vsel %vm480_vm2, %v2597_v0, %v2589_v30  ;;  %v2601_v7 = vrot.slane %v2592_v27, 5  ;;  %v16638_v8 = vld [vmem:[#allocation41_spill] sm:$0xff]  ;;  %v16639_v10 = vld [vmem:[#allocation42_spill] sm:$0xff]  ;;  %v16640_v14 = vld [vmem:[#allocation43_spill] sm:$0xff] }
 0x399   : > { %v2595_v36 = vunpack.c.l.b16 %v2579_v35  ;;  %v2600_v56 = vsel %vm476_vm1, %v2599_v39, %v2598_v57  ;;  %v2603_v59 = vrot.slane %v2593_v37, 4  ;;  %v16641_v15 = vld [vmem:[#allocation44_spill] sm:$0xff]  ;;  %v16642_v9 = vld [vmem:[#allocation45_spill] sm:$0xff]  ;;  %v16643_v54 = vld [vmem:[#allocation46_spill] sm:$0xff]  ;;  %vm16651_vm4 = vcmask 1046528  }
 0x39a   : > { %v2596_v47 = vunpack.c.l.b16 %v2580_v3  ;;  %v2602_v33 = vsel %vm482_vm3, %v2601_v7, %v2600_v56  ;;  %v2605_v11 = vrot.slane %v2594_v22, 3  ;;  %v16644_v2 = vld [vmem:[#allocation47_spill] sm:$0xff]  ;;  %v16645_v30 = vld [vmem:[#allocation48_spill] sm:$0xff]  ;;  %v16646_v50 = vld [vmem:[#allocation49_spill] sm:$0xff]  ;;  %vm16654_vm0 = vcmask 1041408  }
 0x39b   : > { %v2604_v13 = vsel %vm16612_vm8, %v2603_v59, %v2602_v33  ;;  %v2607_v21 = vrot.slane %v2595_v36, 2  ;;  %vm16648_vm13 = vmmov %vm16612_vm8  ;;  %vm16655_vm5 = vcmask 1042433  }
 0x39c   : > { %v2606_v55 = vsel %vm16613_vm7, %v2605_v11, %v2604_v13  ;;  %v2609_v1 = vrot.slane %v2596_v47, 1  ;;  %vm16649_vm15 = vmmov %vm16613_vm7 }
 0x39d   : > { %v2608_v61 = vsel %vm16614_vm6, %v2607_v21, %v2606_v55  ;;  %vm16650_vm12 = vmmov %vm16614_vm6 }
 0x39e   : > { %v2610_v43 = vsel %vm1165_vm11, %v2609_v1, %v2608_v61  ;;  %vm16652_vm9 = vmmov %vm16612_vm8  ;;  %vm16656_vm8 = vcmask 1043458  }
 0x39f   : > { %v2611_v31 = vpack.c.b16 %v2610_v43, %v2610_v43  ;;  %vm16653_vm10 = vmmov %vm16613_vm7  ;;  %vm16657_vm7 = vcmask 1044483  }
 0x3a1   : > { %2621 = vmatmul.bf16.vlgmr.msrb.gmra.mxu0 %v2611_v31  ;;  %2634 = vmatmul.bf16.vlgmr.msrb.gmra.mxu1 %v2611_v31 }
 0x3a2   : > { %2647 = vmatmul.bf16.vlgmr.msrb.gmra.mxu2 %v2611_v31  ;;  %2660 = vmatmul.bf16.vlgmr.msrb.gmra.mxu3 %v2611_v31 }
 0x3a3   : > { %4057 = vmatpush.bf16.msrb.mxu0 %v16615_v52  ;;  %4070 = vmatpush.bf16.msrb.mxu1 %v16616_v24 }
 0x3a4   : > { %4083 = vmatpush.bf16.msrb.mxu2 %v16617_v18  ;;  %4096 = vmatpush.bf16.msrb.mxu3 %v16618_v12 }
 0x3a7   : > { %4058 = vmatpush.bf16.msrb.mxu0 %v16619_v45  ;;  %4071 = vmatpush.bf16.msrb.mxu1 %v16620_v41 }
 0x3a8   : > { %4084 = vmatpush.bf16.msrb.mxu2 %v16621_v28  ;;  %4097 = vmatpush.bf16.msrb.mxu3 %v16622_v49 }
 0x3ab   : > { %4059 = vmatpush.bf16.msrb.mxu0 %v16623_v29  ;;  %4072 = vmatpush.bf16.msrb.mxu1 %v16624_v42 }
 0x3ac   : > { %4085 = vmatpush.bf16.msrb.mxu2 %v16625_v26  ;;  %4098 = vmatpush.bf16.msrb.mxu3 %v16626_v34 }
 0x3af   : > { %4060 = vmatpush.bf16.msrb.mxu0 %v16627_v6  ;;  %4073 = vmatpush.bf16.msrb.mxu1 %v16628_v4 }
 0x3b0   : > { %4086 = vmatpush.bf16.msrb.mxu2 %v16629_v63  ;;  %4099 = vmatpush.bf16.msrb.mxu3 %v16630_v23 }
 0x3b3   : > { %4061 = vmatpush.bf16.msrb.mxu0 %v16631_v19  ;;  %4074 = vmatpush.bf16.msrb.mxu1 %v16632_v32 }
 0x3b4   : > { %4087 = vmatpush.bf16.msrb.mxu2 %v16633_v62  ;;  %4100 = vmatpush.bf16.msrb.mxu3 %v16634_v25 }
 0x3b7   : > { %4062 = vmatpush.bf16.msrb.mxu0 %v16635_v46  ;;  %4075 = vmatpush.bf16.msrb.mxu1 %v16636_v16 }
 0x3b8   : > { %4088 = vmatpush.bf16.msrb.mxu2 %v16637_v17  ;;  %4101 = vmatpush.bf16.msrb.mxu3 %v16638_v8 }
 0x3bb   : > { %4063 = vmatpush.bf16.msrb.mxu0 %v16639_v10  ;;  %4076 = vmatpush.bf16.msrb.mxu1 %v16640_v14 }
 0x3bc   : > { %4089 = vmatpush.bf16.msrb.mxu2 %v16641_v15  ;;  %4102 = vmatpush.bf16.msrb.mxu3 %v16642_v9 }
 0x3bf   : > { %4064 = vmatpush.bf16.msrb.mxu0 %v16643_v54  ;;  %4077 = vmatpush.bf16.msrb.mxu1 %v16644_v2 }
 0x3c0   : > { %4090 = vmatpush.bf16.msrb.mxu2 %v16645_v30  ;;  %4103 = vmatpush.bf16.msrb.mxu3 %v16646_v50 }
 0x41e   : > { %v2622_v58 = vpop.f32.mrf.mxu0  ;;  %v2635_v38 = vpop.f32.mrf.mxu1 }
 0x41f   : > { %v2669_v27 = vrot.slane %v2635_v38, 7  ;;  %v6567_v38 = vld [vmem:[%s8250_s21 + $0x3] ss:$8 sm:$0xf] }
 0x421   : > { %v2672_v0 = vsel %vm16647_vm14, %v2622_v58, %v2669_v27  ;;  %v2675_v35 = vsel %vm480_vm2, %v2622_v58, %v2669_v27  ;;  %v2679_v37 = vsel %vm476_vm1, %v2622_v58, %v2669_v27  ;;  %v2683_v39 = vsel %vm482_vm3, %v2622_v58, %v2669_v27 }
 0x422   : > { %v2687_v3 = vsel %vm16648_vm13, %v2622_v58, %v2669_v27  ;;  %v2691_v22 = vsel %vm16649_vm15, %v2622_v58, %v2669_v27  ;;  %v2695_v57 = vsel %vm16650_vm12, %v2622_v58, %v2669_v27  ;;  %v2699_v7 = vsel %vm16651_vm4, %v2669_v27, %v2622_v58  ;;  %vm16659_vm13 = vmmov %vm16651_vm4 }
 0x423   : > { %vm16658_vm14 = vcmask 1045508   ;;  %vm16660_vm15 = vcmask 1040384   ;;  %vm16661_vm12 = vcmask 1046533   ;;  %vm16662_vm4 = vcmask 1045504  }
 0x425   : > { %v2648_v36 = vpop.f32.mrf.mxu2  ;;  %v2661_v56 = vpop.f32.mrf.mxu3 }
 0x426   : > { %v2670_v59 = vrot.slane %v2648_v36, 6  ;;  %v2671_v47 = vrot.slane %v2661_v56, 5  ;;  %v2624_v33 = vpop.f32.mrf.mxu0  ;;  %v2637_v11 = vpop.f32.mrf.mxu1 }
 0x427   : > { %v6568_v33 = vld [vmem:[%s8250_s21 + $0x23] ss:$8 sm:$0xf] }
 0x428   : > { %v2673_v13 = vsel %vm476_vm1, %v2670_v59, %v2671_v47  ;;  %v2676_v21 = vsel %vm482_vm3, %v2670_v59, %v2671_v47  ;;  %v2680_v55 = vsel %vm16652_vm9, %v2670_v59, %v2671_v47  ;;  %v2684_v1 = vsel %vm16653_vm10, %v2670_v59, %v2671_v47 }
 0x429   : > { %v2674_v61 = vsel %vm16654_vm0, %v2672_v0, %v2673_v13  ;;  %v2677_v43 = vsel %vm16655_vm5, %v2675_v35, %v2676_v21  ;;  %v2681_v31 = vsel %vm16656_vm8, %v2679_v37, %v2680_v55  ;;  %v2685_v58 = vsel %vm16657_vm7, %v2683_v39, %v2684_v1  ;;  %v6569_v35 = vld [vmem:[%s8250_s21 + $0x43] ss:$8 sm:$0xf] }
 0x42a   : > { %v2678_v27 = vrot.slane %v2677_v43, 1  ;;  %v2682_v36 = vrot.slane %v2681_v31, 2  ;;  %v2688_v56 = vsel %vm16614_vm6, %v2670_v59, %v2671_v47  ;;  %v2692_v50 = vsel %vm16659_vm13, %v2671_v47, %v2670_v59  ;;  %v6570_v55 = vld [vmem:[%s8250_s21 + $0x63] ss:$8 sm:$0xf] }
 0x42b   : > { %v2689_v11 = vsel %vm16658_vm14, %v2687_v3, %v2688_v56  ;;  %v2696_v30 = vsel %vm16660_vm15, %v2670_v59, %v2671_v47  ;;  %v2700_v0 = vsel %vm480_vm2, %v2670_v59, %v2671_v47  ;;  %v2686_v37 = vrot.slane %v2685_v58, 3 }
 0x42c   : > { %v2693_v13 = vsel %vm16661_vm12, %v2691_v22, %v2692_v50  ;;  %v2697_v39 = vsel %vm16662_vm4, %v2696_v30, %v2695_v57  ;;  %vm16663_vm9 = vcmask 1046529   ;;  %v11360_v1 = vadd.f32 %v6567_v38, %v2674_v61  ;;  %v6571_v30 = vld [vmem:[%s8250_s21 + $0x83] ss:$8 sm:$0xf] }
 0x42d   : > { %v2701_v21 = vsel %vm16663_vm9, %v2700_v0, %v2699_v7  ;;  %v2650_v43 = vpop.f32.mrf.mxu2  ;;  %v2663_v3 = vpop.f32.mrf.mxu3  ;;  %v11362_v31 = vadd.f32 %v6568_v33, %v2678_v27  ;;  %v11364_v56 = vadd.f32 %v6569_v35, %v2682_v36  ;;  %v11366_v2 = vadd.f32 %v6570_v55, %v2686_v37  ;;  %v6572_v36 = vld [vmem:[%s8250_s21 + $0xa3] ss:$8 sm:$0xf] }
 0x42e   : > { %v6575_v59 = vmul.f32 -1.442695, %v11360_v1  ;;  %v2690_v47 = vrot.slane %v2689_v11, 4  ;;  %v2694_v38 = vrot.slane %v2693_v13, 5  ;;  %v2698_v33 = vrot.slane %v2697_v39, 6 }
 0x42f   : > { %v6576_v50 = vmul.f32 -1.442695, %v11362_v31  ;;  %v6577_v22 = vmul.f32 -1.442695, %v11364_v56  ;;  %v6578_v57 = vmul.f32 -1.442695, %v11366_v2 }
 0x430   : > { %7267 = vpow2.f32 %v6575_v59  ;;  %v11373_v7 = vadd.f32 %v6571_v30, %v2690_v47  ;;  %v6573_v0 = vld [vmem:[%s8250_s21 + $0xc3] ss:$8 sm:$0xf]  ;;  %v2702_v35 = vrot.slane %v2701_v21, 7  ;;  %v2879_v3 = vrot.slane %v11360_v1, 1 }
 0x431   : > { %7269 = vpow2.f32 %v6576_v50  ;;  %v6574_v55 = vld [vmem:[%s8250_s21 + $0xe3] ss:$8 sm:$0xf]  ;;  %v11382_v59 = vadd.f32 %v6572_v36, %v2694_v38  ;;  %v11386_v50 = vadd.f32 %v6573_v0, %v2698_v33  ;;  %v2882_v33 = vrot.slane %v11366_v2, 1 }
 0x432   : > { %7271 = vpow2.f32 %v6577_v22  ;;  %v6579_v61 = vmul.f32 -1.442695, %v11373_v7  ;;  %v11390_v30 = vadd.f32 %v6574_v55, %v2702_v35  ;;  %v6583_v21 = vmul.f32 -1.442695, %v2879_v3 }
 0x433   : > { %7273 = vpow2.f32 %v6578_v57  ;;  %v6580_v22 = vmul.f32 -1.442695, %v11382_v59  ;;  %v2883_v0 = vrot.slane %v11373_v7, 1  ;;  %v2884_v55 = vrot.slane %v11382_v59, 1 }
 0x434   : > { %7275 = vpow2.f32 %v6579_v61  ;;  %v6581_v61 = vmul.f32 -1.442695, %v11386_v50  ;;  %v6582_v38 = vmul.f32 -1.442695, %v11390_v30  ;;  %v3071_v9 = vrot.slane %v11360_v1, 3 }
 0x435   : > { %v11422_v10 = vmul.f32 -1.442695, %v2884_v55  ;;  %v16674_v28 = vrot.slane %v11360_v1, 2 }
 0x436   : > { %v7268_v58 = vpop.eup %7267  ;;  %v11435_v25 = vmul.f32 -1.442695, %v3071_v9 }
 0x437   : > { %v7270_v27 = vpop.eup %7269  ;;  %v11379_v43 = vadd.f32 1.0, %v7268_v58  ;;  %v2880_v58 = vrot.slane %v11362_v31, 1 }
 0x438   : > { %v7272_v11 = vpop.eup %7271  ;;  %v11384_v47 = vadd.f32 1.0, %v7270_v27  ;;  %v2881_v27 = vrot.slane %v11364_v56, 1 }
 0x439   : > { %v7274_v37 = vpop.eup %7273  ;;  %v11388_v13 = vadd.f32 1.0, %v7272_v11  ;;  %7277 = vrcp.f32 %v11379_v43  ;;  %v6584_v35 = vmul.f32 -1.442695, %v2880_v58  ;;  %v3072_v58 = vrot.slane %v11362_v31, 3 }
 0x43a   : > { %v11392_v39 = vadd.f32 1.0, %v7274_v37  ;;  %7279 = vrcp.f32 %v11384_v47  ;;  %v7276_v57 = vpop.eup %7275  ;;  %v6585_v54 = vmul.f32 -1.442695, %v2881_v27  ;;  %v2762_v8 = vand.u32 2147483648, %v11379_v43 }
 0x43b   : > { %7281 = vrcp.f32 %v11388_v13  ;;  %v11403_v36 = vadd.f32 1.0, %v7276_v57  ;;  %v6586_v57 = vmul.f32 -1.442695, %v2882_v33  ;;  %v11440_v62 = vmul.f32 -1.442695, %v3072_v58 }
 0x43c   : > { %7283 = vrcp.f32 %v11392_v39  ;;  %vm2756_vm10 = vweird.f32 %v11379_v43  ;;  %v2777_v16 = vand.u32 2147483648, %v11384_v47  ;;  %vm2771_vm0 = vweird.f32 %v11384_v47 }
 0x43d   : > { %7285 = vpow2.f32 %v6583_v21  ;;  %vm2786_vm5 = vweird.f32 %v11388_v13  ;;  %v2790_v6 = vand.u32 2147483647, %v11388_v13  ;;  %vm2801_vm14 = vweird.f32 %v11392_v39 }
 0x43e   : > { %7287 = vpow2.f32 %v6580_v22  ;;  %v2885_v22 = vrot.slane %v11386_v50, 1 }
 0x43f   : > { %v11406_v11 = vpop.eup %7277  ;;  %7289 = vpow2.f32 %v6581_v61  ;;  %v6587_v61 = vmul.f32 -1.442695, %v2883_v0 }
 0x440   : > { %v11409_v37 = vpop.eup %7279  ;;  %7291 = vpow2.f32 %v6582_v38  ;;  %v2752_v38 = vmul.f32 %v11406_v11, %v11379_v43  ;;  %v11438_v27 = vmul.f32 -1.442695, %v2885_v22  ;;  %vm2757_vm7 = vweird.f32 %v11406_v11 }
 0x441   : > { %v11412_v3 = vpop.eup %7281  ;;  %7293 = vrcp.f32 %v11403_v36  ;;  %v2767_v33 = vmul.f32 %v11409_v37, %v11384_v47  ;;  %vm2772_vm13 = vweird.f32 %v11409_v37  ;;  %vm11501_vm12 = vmor %vm2756_vm10, %vm2757_vm7  ;;  %vm11519_vm10 = vcmp.eq.f32.partialorder %v2790_v6, 8.507059e+37 }
 0x442   : > { %v11414_v21 = vpop.eup %7283  ;;  %7295 = vpow2.f32 %v6584_v35  ;;  %v2782_v0 = vmul.f32 %v11412_v3, %v11388_v13  ;;  %v2753_v32 = vsub.f32 1.0, %v2752_v38  ;;  %vm2787_vm15 = vweird.f32 %v11412_v3  ;;  %vm11515_vm9 = vmor %vm2771_vm0, %vm2772_vm13 }
 0x443   : > { %v7286_v15 = vpop.eup %7285  ;;  %7297 = vpow2.f32 %v6585_v54  ;;  %v2797_v35 = vmul.f32 %v11414_v21, %v11392_v39  ;;  %v2768_v9 = vsub.f32 1.0, %v2767_v33  ;;  %vm2802_vm4 = vweird.f32 %v11414_v21  ;;  %vm11535_vm0 = vmor %vm2786_vm5, %vm2787_vm15 }
 0x444   : > { %v7288_v14 = vpop.eup %7287  ;;  %v11433_v55 = vadd.f32 1.0, %v7286_v15  ;;  %7299 = vpow2.f32 %v6586_v57  ;;  %v2760_v15 = vand.u32 2147483647, %v11379_v43  ;;  %v2783_v57 = vsub.f32 1.0, %v2782_v0  ;;  %vm11552_vm5 = vmor %vm2801_vm14, %vm2802_vm4 }
 0x445   : > { %v7290_v17 = vpop.eup %7289  ;;  %v11442_v54 = vadd.f32 1.0, %v7288_v14  ;;  %7301 = vpow2.f32 %v6587_v61  ;;  %v2798_v58 = vsub.f32 1.0, %v2797_v35  ;;  %v2763_v14 = vor.u32 1.1754944e-38, %v2762_v8 }
 0x446   : > { %v7292_v46 = vpop.eup %7291  ;;  %v11446_v23 = vadd.f32 1.0, %v7290_v17  ;;  %7303 = vrcp.f32 %v11433_v55  ;;  %v2775_v17 = vand.u32 2147483647, %v11384_v47  ;;  %v2754_v4 = vmul.f32 %v11406_v11, %v2753_v32 }
 0x447   : > { %v11444_v19 = vpop.eup %7293  ;;  %v11451_v22 = vadd.f32 1.0, %v7292_v46  ;;  %7305 = vrcp.f32 %v11442_v54  ;;  %v2769_v61 = vmul.f32 %v11409_v37, %v2768_v9  ;;  %v2778_v0 = vor.u32 1.1754944e-38, %v2777_v16 }
 0x448   : > { %v7296_v63 = vpop.eup %7295  ;;  %v2812_v33 = vmul.f32 %v11444_v19, %v11403_v36  ;;  %7307 = vrcp.f32 %v11446_v23  ;;  %vm11465_vm8 = vcmp.eq.f32.partialorder %v2760_v15, 8.507059e+37  ;;  %v2784_v32 = vmul.f32 %v11412_v3, %v2783_v57 }
 0x449   : > { %v7298_v38 = vpop.eup %7297  ;;  %v11461_v46 = vadd.f32 1.0, %v7296_v63  ;;  %v2799_v34 = vmul.f32 %v11414_v21, %v2798_v58  ;;  %7309 = vrcp.f32 %v11451_v22  ;;  %vm11476_vm6 = vcmp.eq.f32.partialorder %v2775_v17, 8.507059e+37 }
 0x44a   : > { %v7300_v8 = vpop.eup %7299  ;;  %v11473_v63 = vadd.f32 1.0, %v7298_v38  ;;  %v2792_v15 = vand.u32 2147483648, %v11388_v13  ;;  %v2755_v57 = vadd.f32 %v11406_v11, %v2754_v4  ;;  %v2805_v58 = vand.u32 2147483647, %v11392_v39 }
 0x44b   : > { %v11482_v9 = vpop.eup %7301  ;;  %v2813_v38 = vsub.f32 1.0, %v2812_v33  ;;  %v11489_v42 = vadd.f32 1.0, %v7300_v8  ;;  %7311 = vrcp.f32 %v11461_v46  ;;  %v2770_v17 = vadd.f32 %v11409_v37, %v2769_v61 }
 0x44c   : > { %v11487_v26 = vpop.eup %7303  ;;  %7313 = vpow2.f32 %v11422_v10  ;;  %v2785_v33 = vadd.f32 %v11412_v3, %v2784_v32  ;;  %v2800_v8 = vadd.f32 %v11414_v21, %v2799_v34  ;;  %v2793_v32 = vor.u32 1.1754944e-38, %v2792_v15 }
 0x44d   : > { %v11494_v29 = vpop.eup %7305  ;;  %7315 = vrcp.f32 %v11473_v63  ;;  %v2807_v34 = vand.u32 2147483648, %v11392_v39  ;;  %v2759_v47 = vsel %vm11501_vm12, %v11406_v11, %v2755_v57  ;;  %vm11539_vm7 = vcmp.eq.f32.partialorder %v2805_v58, 8.507059e+37 }
 0x44e   : > { %v11508_v61 = vpop.eup %7307  ;;  %7317 = vtanh.f32 %v16674_v28  ;;  %v2814_v41 = vmul.f32 %v11444_v19, %v2813_v38  ;;  %v2774_v28 = vsel %vm11515_vm9, %v11409_v37, %v2770_v17  ;;  %v2820_v13 = vand.u32 2147483647, %v11403_v36 }
 0x44f   : > { %v11524_v49 = vpop.eup %7309  ;;  %7319 = vrcp.f32 %v11489_v42  ;;  %v2827_v11 = vmul.f32 %v11494_v29, %v11442_v54  ;;  %v2789_v57 = vsel %vm11535_vm0, %v11412_v3, %v2785_v33  ;;  %v2804_v37 = vsel %vm11552_vm5, %v11414_v21, %v2800_v8 }
 0x450   : > { %v2842_v39 = vmul.f32 %v11508_v61, %v11446_v23  ;;  %v2928_v58 = vmul.f32 %v11487_v26, %v11433_v55  ;;  %v11573_v17 = vsel %vm11465_vm8, %v2763_v14, %v2759_v47  ;;  %v2808_v4 = vor.u32 1.1754944e-38, %v2807_v34 }
 0x451   : > { %v11569_v38 = vpop.eup %7311  ;;  %vm2816_vm14 = vweird.f32 %v11403_v36  ;;  %v2857_v3 = vmul.f32 %v11524_v49, %v11451_v22  ;;  %v11580_v21 = vsel %vm11476_vm6, %v2778_v0, %v2774_v28  ;;  %v2815_v8 = vadd.f32 %v11444_v19, %v2814_v41 }
 0x452   : > { %v7314_v33 = vpop.eup %7313  ;;  %vm2817_vm13 = vweird.f32 %v11444_v19  ;;  %v2822_v10 = vand.u32 2147483648, %v11403_v36  ;;  %v11589_v14 = vsel %vm11519_vm10, %v2793_v32, %v2789_v57  ;;  %v11593_v34 = vsel %vm11539_vm7, %v2808_v4, %v2804_v37 }
 0x453   : > { %v11585_v35 = vpop.eup %7315  ;;  %vm11595_vm8 = vcmp.eq.f32.partialorder %v2820_v13, 8.507059e+37  ;;  %v2828_v0 = vsub.f32 1.0, %v2827_v11  ;;  %v2837_v47 = vand.u32 2147483648, %v11442_v54  ;;  %v2843_v6 = vsub.f32 1.0, %v2842_v39  ;;  %vm11608_vm6 = vmor %vm2816_vm14, %vm2817_vm13 }
 0x454   : > { %v11599_v41 = vpop.eup %7317  ;;  %v2929_v28 = vsub.f32 1.0, %v2928_v58  ;;  %v2943_v43 = vmul.f32 %v11569_v38, %v11461_v46  ;;  %v2835_v1 = vand.u32 2147483647, %v11442_v54  ;;  %v2858_v13 = vsub.f32 1.0, %v2857_v3 }
 0x455   : > { %v11604_v32 = vpop.eup %7319  ;;  %7321 = vpow2.f32 %v11438_v27  ;;  %v16685_v11 = vrot.slane %v11390_v30, 1  ;;  %v2819_v37 = vsel %vm11608_vm6, %v11444_v19, %v2815_v8  ;;  %v2823_v39 = vor.u32 1.1754944e-38, %v2822_v10 }
 0x456   : > { %v2850_v58 = vand.u32 2147483647, %v11446_v23  ;;  %v2852_v36 = vand.u32 2147483648, %v11446_v23  ;;  %v2829_v4 = vmul.f32 %v11494_v29, %v2828_v0  ;;  %vm2831_vm15 = vweird.f32 %v11442_v54 }
 0x457   : > { %v6590_v57 = vmul.f32 -1.442695, %v16685_v11  ;;  %vm2846_vm12 = vweird.f32 %v11446_v23  ;;  %v2865_v27 = vand.u32 2147483647, %v11451_v22  ;;  %v2838_v3 = vor.u32 1.1754944e-38, %v2837_v47 }
 0x458   : > { %v2844_v11 = vmul.f32 %v11508_v61, %v2843_v6  ;;  %v2930_v45 = vmul.f32 %v11487_v26, %v2929_v28  ;;  %v2944_v15 = vsub.f32 1.0, %v2943_v43  ;;  %v11629_v19 = vsel %vm11595_vm8, %v2823_v39, %v2819_v37 }
 0x459   : > { %vm11631_vm4 = vcmp.eq.f32.partialorder %v2835_v1, 8.507059e+37  ;;  %v2859_v10 = vmul.f32 %v11524_v49, %v2858_v13  ;;  %vm2861_vm9 = vweird.f32 %v11451_v22  ;;  %7323 = vpow2.f32 %v6590_v57 }
 0x45a   : > { %vm2832_vm10 = vweird.f32 %v11494_v29  ;;  %vm11638_vm0 = vcmp.eq.f32.partialorder %v2850_v58, 8.507059e+37  ;;  %v2853_v47 = vor.u32 1.1754944e-38, %v2852_v36  ;;  %v2867_v16 = vand.u32 2147483648, %v11451_v22 }
 0x45b   : > { %v11644_v6 = vadd.f32 1.0, %v11482_v9  ;;  %v7322_v28 = vpop.eup %7321  ;;  %v2830_v43 = vadd.f32 %v11494_v29, %v2829_v4  ;;  %vm2847_vm7 = vweird.f32 %v11508_v61  ;;  %vm11648_vm5 = vcmp.eq.f32.partialorder %v2865_v27, 8.507059e+37  ;;  %vm11664_vm13 = vmor %vm2831_vm15, %vm2832_vm10 }
 0x45c   : > { %v11652_v13 = vadd.f32 1.0, %v7314_v33  ;;  %vm2933_vm14 = vweird.f32 %v11487_v26  ;;  %v2845_v57 = vadd.f32 %v11508_v61, %v2844_v11  ;;  %v2931_v37 = vadd.f32 %v11487_v26, %v2930_v45  ;;  %vm11674_vm6 = vmor %vm2846_vm12, %vm2847_vm7 }
 0x45d   : > { %v2945_v9 = vmul.f32 %v11569_v38, %v2944_v15  ;;  %v2958_v39 = vmul.f32 %v11585_v35, %v11473_v63  ;;  %v2860_v33 = vadd.f32 %v11524_v49, %v2859_v10  ;;  %vm2862_vm8 = vweird.f32 %v11524_v49 }
 0x45e   : > { %v2936_v36 = vand.u32 2147483647, %v11433_v55  ;;  %v2938_v45 = vand.u32 2147483648, %v11433_v55  ;;  %v2868_v27 = vor.u32 1.1754944e-38, %v2867_v16  ;;  %v11678_v54 = vadd.f32 1.0, %v7322_v28  ;;  %vm11702_vm7 = vmor %vm2861_vm9, %vm2862_vm8 }
 0x45f   : > { %vm2932_vm15 = vweird.f32 %v11433_v55  ;;  %v2973_v11 = vmul.f32 %v11604_v32, %v11489_v42  ;;  %v7324_v15 = vpop.eup %7323  ;;  %v2834_v10 = vsel %vm11664_vm13, %v11494_v29, %v2830_v43  ;;  %vm2948_vm12 = vweird.f32 %v11569_v38 }
 0x460   : > { %vm11688_vm10 = vmor %vm2932_vm15, %vm2933_vm14  ;;  %v2951_v16 = vand.u32 2147483647, %v11461_v46  ;;  %7325 = vrcp.f32 %v11644_v6  ;;  %v2849_v55 = vsel %vm11674_vm6, %v11508_v61, %v2845_v57  ;;  %v2946_v43 = vadd.f32 %v11569_v38, %v2945_v9 }
 0x461   : > { %v2935_v28 = vsel %vm11688_vm10, %v11487_v26, %v2931_v37  ;;  %v2959_v58 = vsub.f32 1.0, %v2958_v39  ;;  %v2864_v4 = vsel %vm11702_vm7, %v11524_v49, %v2860_v33  ;;  %vm2937_vm14 = vcmp.eq.f32.partialorder %v2936_v36, 8.507059e+37 }
 0x462   : > { %v2939_v61 = vor.u32 1.1754944e-38, %v2938_v45  ;;  %v2953_v57 = vand.u32 2147483648, %v11461_v46  ;;  %v11716_v22 = vsel %vm11631_vm4, %v2838_v3, %v2834_v10  ;;  %v11718_v12 = vadd.f32 1.0, %v7324_v15 }
 0x463   : > { %vm2947_vm9 = vweird.f32 %v11461_v46  ;;  %v2974_v26 = vsub.f32 1.0, %v2973_v11  ;;  %v11723_v37 = vsel %vm11638_vm0, %v2853_v47, %v2849_v55  ;;  %vm2952_vm8 = vcmp.eq.f32.partialorder %v2951_v16, 8.507059e+37 }
 0x464   : > { %16700 = vst [vmem:[#allocation53_spill] sm:$0xff] %v11723_v37  ;;  %v11725_v9 = vsel %vm2937_vm14, %v2939_v61, %v2935_v28  ;;  %vm11729_vm13 = vmor %vm2947_vm9, %vm2948_vm12  ;;  %7327 = vrcp.f32 %v11652_v13  ;;  %v11736_v3 = vsel %vm11648_vm5, %v2868_v27, %v2864_v4  ;;  %v2960_v8 = vmul.f32 %v11585_v35, %v2959_v58 }
 0x465   : > { %16703 = vst [vmem:[#allocation52_spill] sm:$0xff] %v11736_v3  ;;  %v2950_v46 = vsel %vm11729_vm13, %v11569_v38, %v2946_v43  ;;  %7329 = vrcp.f32 %v11678_v54  ;;  %v2954_v47 = vor.u32 1.1754944e-38, %v2953_v57  ;;  %v2966_v39 = vand.u32 2147483647, %v11473_v63 }
 0x466   : > { %v11743_v0 = vpop.eup %7325  ;;  %v2968_v33 = vand.u32 2147483648, %v11473_v63  ;;  %v3073_v36 = vrot.slane %v11364_v56, 3  ;;  %v2975_v1 = vmul.f32 %v11604_v32, %v2974_v26  ;;  %v2981_v45 = vand.u32 2147483647, %v11489_v42 }
 0x467   : > { %7331 = vrcp.f32 %v11718_v12  ;;  %v3074_v38 = vrot.slane %v11366_v2, 3  ;;  %v11752_v27 = vsel %vm2952_vm8, %v2954_v47, %v2950_v46  ;;  %vm2962_vm4 = vweird.f32 %v11473_v63 }
 0x468   : > { %vm2963_vm0 = vweird.f32 %v11585_v35  ;;  %v3075_v11 = vrot.slane %v11373_v7, 3  ;;  %v2961_v15 = vadd.f32 %v11585_v35, %v2960_v8  ;;  %vm2977_vm5 = vweird.f32 %v11489_v42 }
 0x469   : > { %v2983_v10 = vand.u32 2147483648, %v11489_v42  ;;  %v2988_v23 = vmul.f32 %v11743_v0, %v11644_v6  ;;  %vm11764_vm6 = vcmp.eq.f32.partialorder %v2966_v39, 8.507059e+37  ;;  %v2969_v29 = vor.u32 1.1754944e-38, %v2968_v33  ;;  %vm11781_vm12 = vmor %vm2962_vm4, %vm2963_vm0 }
 0x46a   : > { %v11762_v16 = vpop.eup %7327  ;;  %vm2978_vm15 = vweird.f32 %v11604_v32  ;;  %v6593_v28 = vmul.f32 -1.442695, %v3073_v36  ;;  %v2976_v58 = vadd.f32 %v11604_v32, %v2975_v1  ;;  %vm11772_vm10 = vcmp.eq.f32.partialorder %v2981_v45, 8.507059e+37 }
 0x46b   : > { %v11769_v43 = vpop.eup %7329  ;;  %v2998_v61 = vand.u32 2147483648, %v11644_v6  ;;  %v6594_v57 = vmul.f32 -1.442695, %v3074_v38  ;;  %v2996_v49 = vand.u32 2147483647, %v11644_v6  ;;  %v3076_v46 = vrot.slane %v11382_v59, 3  ;;  %vm11798_vm7 = vmor %vm2977_vm5, %vm2978_vm15 }
 0x46c   : > { %7333 = vpow2.f32 %v11435_v25  ;;  %v6595_v8 = vmul.f32 -1.442695, %v3075_v11  ;;  %v2965_v39 = vsel %vm11781_vm12, %v11585_v35, %v2961_v15  ;;  %v2984_v33 = vor.u32 1.1754944e-38, %v2983_v10 }
 0x46d   : > { %v11788_v47 = vpop.eup %7331  ;;  %v2989_v36 = vsub.f32 1.0, %v2988_v23  ;;  %7335 = vpow2.f32 %v11440_v62  ;;  %v3003_v25 = vmul.f32 %v11762_v16, %v11652_v13  ;;  %v3013_v1 = vand.u32 2147483648, %v11652_v13 }
 0x46e   : > { %v3018_v35 = vmul.f32 %v11769_v43, %v11678_v54  ;;  %7337 = vpow2.f32 %v6593_v28  ;;  %v2980_v62 = vsel %vm11798_vm7, %v11604_v32, %v2976_v58  ;;  %v11810_v45 = vor.u32 1.1754944e-38, %v2998_v61 }
 0x46f   : > { %v3077_v42 = vrot.slane %v11386_v50, 3  ;;  %7339 = vpow2.f32 %v6594_v57  ;;  %vm2992_vm14 = vweird.f32 %v11644_v6  ;;  %v3011_v38 = vand.u32 2147483647, %v11652_v13 }
 0x470   : > { %v3033_v11 = vmul.f32 %v11788_v47, %v11718_v12  ;;  %7341 = vpow2.f32 %v6595_v8  ;;  %v6596_v15 = vmul.f32 -1.442695, %v3076_v46  ;;  %v11819_v10 = vsel %vm11764_vm6, %v2969_v29, %v2965_v39 }
 0x471   : > { %v2990_v32 = vmul.f32 %v11743_v0, %v2989_v36  ;;  %v3026_v23 = vand.u32 2147483647, %v11678_v54  ;;  %v3028_v28 = vand.u32 2147483648, %v11678_v54  ;;  %v11826_v61 = vsel %vm11772_vm10, %v2984_v33, %v2980_v62 }
 0x472   : > { %v7334_v58 = vpop.eup %7333  ;;  %v3004_v57 = vsub.f32 1.0, %v3003_v25  ;;  %v11828_v26 = vor.u32 1.1754944e-38, %v3013_v1  ;;  %v3019_v8 = vsub.f32 1.0, %v3018_v35  ;;  %vm2993_vm9 = vweird.f32 %v11743_v0 }
 0x473   : > { %v7336_v46 = vpop.eup %7335  ;;  %vm3007_vm13 = vweird.f32 %v11652_v13  ;;  %v3041_v55 = vand.u32 2147483647, %v11718_v12  ;;  %v6597_v29 = vmul.f32 -1.442695, %v3077_v42  ;;  %v11833_v39 = vadd.f32 1.0, %v7334_v58  ;;  %vm11871_vm10 = vmor %vm2992_vm14, %vm2993_vm9 }
 0x474   : > { %v7338_v36 = vpop.eup %7337  ;;  %vm11835_vm8 = vcmp.eq.f32.partialorder %v2996_v49, 8.507059e+37  ;;  %vm3022_vm4 = vweird.f32 %v11678_v54  ;;  %v3034_v4 = vsub.f32 1.0, %v3033_v11  ;;  %v3078_v33 = vrot.slane %v11390_v30, 3 }
 0x475   : > { %7343 = vpow2.f32 %v6596_v15  ;;  %v11841_v25 = vadd.f32 1.0, %v7336_v46  ;;  %v7340_v1 = vpop.eup %7339  ;;  %v2991_v35 = vadd.f32 %v11743_v0, %v2990_v32  ;;  %v3043_v62 = vand.u32 2147483648, %v11718_v12 }
 0x476   : > { %v11845_v42 = vadd.f32 1.0, %v7338_v36  ;;  %7345 = vrcp.f32 %v11833_v39  ;;  %v7342_v49 = vpop.eup %7341  ;;  %v3005_v58 = vmul.f32 %v11762_v16, %v3004_v57  ;;  %v3020_v18 = vmul.f32 %v11769_v43, %v3019_v8 }
 0x477   : > { %vm3037_vm0 = vweird.f32 %v11718_v12  ;;  %v11851_v11 = vadd.f32 1.0, %v7340_v1  ;;  %7347 = vrcp.f32 %v11841_v25  ;;  %vm3008_vm5 = vweird.f32 %v11762_v16 }
 0x478   : > { %v3029_v15 = vor.u32 1.1754944e-38, %v3028_v28  ;;  %v3049_v32 = vrot.slane %v11364_v56, 2  ;;  %7349 = vpow2.f32 %v6597_v29  ;;  %vm11856_vm6 = vcmp.eq.f32.partialorder %v3011_v38, 8.507059e+37  ;;  %vm11901_vm14 = vmor %vm3007_vm13, %vm3008_vm5 }
 0x479   : > { %vm11860_vm15 = vcmp.eq.f32.partialorder %v3026_v23, 8.507059e+37  ;;  %v3035_v8 = vmul.f32 %v11788_v47, %v3034_v4  ;;  %v3050_v36 = vrot.slane %v11366_v2, 2  ;;  %v6598_v1 = vmul.f32 -1.442695, %v3078_v33 }
 0x47a   : > { %7351 = vrcp.f32 %v11845_v42  ;;  %vm3023_vm12 = vweird.f32 %v11769_v43  ;;  %v3044_v38 = vor.u32 1.1754944e-38, %v3043_v62  ;;  %v16720_v23 = vrot.slane %v11362_v31, 2 }
 0x47b   : > { %v11878_v28 = vadd.f32 1.0, %v7342_v49  ;;  %v7344_v2 = vpop.eup %7343  ;;  %v2995_v29 = vsel %vm11871_vm10, %v11743_v0, %v2991_v35  ;;  %v3006_v4 = vadd.f32 %v11762_v16, %v3005_v58  ;;  %v3021_v6 = vadd.f32 %v11769_v43, %v3020_v18  ;;  %vm11918_vm13 = vmor %vm3022_vm4, %vm3023_vm12 }
 0x47c   : > { %7353 = vtanh.f32 %v16720_v23  ;;  %vm11885_vm7 = vcmp.eq.f32.partialorder %v3041_v55, 8.507059e+37  ;;  %v11890_v62 = vpop.eup %7345  ;;  %v3051_v31 = vrot.slane %v11373_v7, 2  ;;  %v3052_v49 = vrot.slane %v11382_v59, 2 }
 0x47d   : > { %7355 = vrcp.f32 %v11851_v11  ;;  %v3053_v23 = vrot.slane %v11386_v50, 2  ;;  %v11895_v0 = vpop.eup %7347  ;;  %v3036_v55 = vadd.f32 %v11788_v47, %v3035_v8  ;;  %vm3038_vm9 = vweird.f32 %v11788_v47 }
 0x47e   : > { %7357 = vtanh.f32 %v3049_v32  ;;  %v3120_v7 = vmul.f32 %v11890_v62, %v11833_v39  ;;  %v7350_v59 = vpop.eup %7349  ;;  %v11912_v50 = vsel %vm11835_vm8, %v11810_v45, %v2995_v29  ;;  %v3054_v35 = vrot.slane %v11390_v30, 2  ;;  %vm11940_vm8 = vmor %vm3037_vm0, %vm3038_vm9 }
 0x47f   : > { %7359 = vpow2.f32 %v6598_v1  ;;  %v3135_v58 = vmul.f32 %v11895_v0, %v11841_v25  ;;  %v3010_v45 = vsel %vm11901_vm14, %v11762_v16, %v3006_v4  ;;  %v3025_v54 = vsel %vm11918_vm13, %v11769_v43, %v3021_v6 }
 0x480   : > { %7361 = vrcp.f32 %v11878_v28  ;;  %v11926_v32 = vpop.eup %7351  ;;  %v3121_v63 = vsub.f32 1.0, %v3120_v7  ;;  %v11944_v1 = vadd.f32 1.0, %v7344_v2  ;;  %v11953_v29 = vadd.f32 1.0, %v7350_v59 }
 0x481   : > { %7363 = vtanh.f32 %v3050_v36  ;;  %v3136_v16 = vsub.f32 1.0, %v3135_v58  ;;  %v3150_v56 = vmul.f32 %v11926_v32, %v11845_v42  ;;  %v3040_v36 = vsel %vm11940_vm8, %v11788_v47, %v3036_v55 }
 0x482   : > { %v11934_v8 = vpop.eup %7353  ;;  %7365 = vtanh.f32 %v3051_v31  ;;  %v3128_v12 = vand.u32 2147483647, %v11833_v39  ;;  %v11961_v2 = vsel %vm11856_vm6, %v11828_v26, %v3010_v45  ;;  %v11965_v6 = vsel %vm11860_vm15, %v3029_v15, %v3025_v54 }
 0x483   : > { %v11948_v43 = vpop.eup %7355  ;;  %7367 = vtanh.f32 %v3052_v49  ;;  %v3122_v31 = vmul.f32 %v11890_v62, %v3121_v63  ;;  %v3137_v49 = vmul.f32 %v11895_v0, %v3136_v16  ;;  %v3151_v18 = vsub.f32 1.0, %v3150_v56 }
 0x484   : > { %v11956_v4 = vpop.eup %7357  ;;  %7369 = vtanh.f32 %v3053_v23  ;;  %v3165_v55 = vmul.f32 %v11948_v43, %v11851_v11  ;;  %v11975_v26 = vsel %vm11885_vm7, %v3044_v38, %v3040_v36  ;;  %vm3124_vm4 = vweird.f32 %v11833_v39 }
 0x485   : > { %v7360_v47 = vpop.eup %7359  ;;  %7371 = vtanh.f32 %v3054_v35  ;;  %v3130_v15 = vand.u32 2147483648, %v11833_v39  ;;  %vm11982_vm0 = vcmp.eq.f32.partialorder %v3128_v12, 8.507059e+37  ;;  %vm3139_vm5 = vweird.f32 %v11841_v25 }
 0x486   : > { %v11971_v7 = vpop.eup %7361  ;;  %7373 = vrcp.f32 %v11944_v1  ;;  %v3143_v23 = vand.u32 2147483647, %v11841_v25  ;;  %v11991_v33 = vadd.f32 1.0, %v7360_v47  ;;  %v3123_v59 = vadd.f32 %v11890_v62, %v3122_v31 }
 0x487   : > { %v11980_v46 = vpop.eup %7363  ;;  %7375 = vrcp.f32 %v11953_v29  ;;  %vm3125_vm6 = vweird.f32 %v11890_v62  ;;  %vm3140_vm15 = vweird.f32 %v11895_v0  ;;  %v3138_v35 = vadd.f32 %v11895_v0, %v3137_v49 }
 0x488   : > { %v11989_v38 = vpop.eup %7365  ;;  %v3152_v58 = vmul.f32 %v11926_v32, %v3151_v18  ;;  %v3166_v45 = vsub.f32 1.0, %v3165_v55  ;;  %v3180_v54 = vmul.f32 %v11971_v7, %v11878_v28  ;;  %v3131_v30 = vor.u32 1.1754944e-38, %v3130_v15  ;;  %vm12011_vm10 = vmor %vm3124_vm4, %vm3125_vm6 }
 0x489   : > { %v11996_v13 = vpop.eup %7367  ;;  %v3145_v16 = vand.u32 2147483648, %v11841_v25  ;;  %v3160_v56 = vand.u32 2147483648, %v11845_v42  ;;  %v3175_v36 = vand.u32 2147483648, %v11851_v11  ;;  %vm12015_vm12 = vcmp.eq.f32.partialorder %v3143_v23, 8.507059e+37  ;;  %vm12031_vm14 = vmor %vm3139_vm5, %vm3140_vm15 }
 0x48a   : > { %16731 = vst [vmem:[#allocation51_spill] sm:$0xff] %v11996_v13  ;;  %v12002_v63 = vpop.eup %7369  ;;  %vm3154_vm7 = vweird.f32 %v11845_v42  ;;  %v3158_v49 = vand.u32 2147483647, %v11845_v42  ;;  %v3190_v18 = vand.u32 2147483648, %v11878_v28  ;;  %v3127_v39 = vsel %vm12011_vm10, %v11890_v62, %v3123_v59 }
 0x48b   : > { %16732 = vst [vmem:[#allocation50_spill] sm:$0xff] %v12002_v63  ;;  %v12007_v12 = vpop.eup %7371  ;;  %vm3155_vm9 = vweird.f32 %v11926_v32  ;;  %v3205_v23 = vand.u32 2147483648, %v11944_v1  ;;  %7377 = vrcp.f32 %v11991_v33  ;;  %v3142_v62 = vsel %vm12031_vm14, %v11895_v0, %v3138_v35 }
 0x48c   : > { %16733 = vst [vmem:[#allocation54_spill] sm:$0xff] %v12007_v12  ;;  %v12022_v55 = vpop.eup %7373  ;;  %v12044_v59 = vadd.f32 %v11926_v32, %v3152_v58  ;;  %v3167_v25 = vmul.f32 %v11948_v43, %v3166_v45  ;;  %v3181_v31 = vsub.f32 1.0, %v3180_v54  ;;  %v3146_v52 = vor.u32 1.1754944e-38, %v3145_v16  ;;  %vm12069_vm13 = vmor %vm3154_vm7, %vm3155_vm9 }
 0x48d   : > { %v12038_v24 = vpop.eup %7375  ;;  %v3161_v12 = vor.u32 1.1754944e-38, %v3160_v56  ;;  %v3173_v3 = vand.u32 2147483647, %v11851_v11  ;;  %v12048_v63 = vor.u32 1.1754944e-38, %v3175_v36  ;;  %v3188_v37 = vand.u32 2147483647, %v11878_v28 }
 0x48e   : > { %v12051_v13 = vor.u32 1.1754944e-38, %v3190_v18  ;;  %v3195_v15 = vmul.f32 %v12022_v55, %v11944_v1  ;;  %v3210_v0 = vmul.f32 %v12038_v24, %v11953_v29  ;;  %v12059_v35 = vsel %vm11982_vm0, %v3131_v30, %v3127_v39 }
 0x48f   : > { %v12063_v58 = vsel %vm12015_vm12, %v3146_v52, %v3142_v62  ;;  %vm3170_vm8 = vweird.f32 %v11948_v43  ;;  %v3203_v54 = vand.u32 2147483647, %v11944_v1  ;;  %v3157_v57 = vsel %vm12069_vm13, %v11926_v32, %v12044_v59 }
 0x490   : > { %vm12079_vm4 = vcmp.eq.f32.partialorder %v3158_v49, 8.507059e+37  ;;  %v12084_v30 = vadd.f32 %v11948_v43, %v3167_v25  ;;  %vm3169_vm0 = vweird.f32 %v11851_v11  ;;  %v3182_v42 = vmul.f32 %v11971_v7, %v3181_v31 }
 0x491   : > { %v12088_v16 = vor.u32 1.1754944e-38, %v3205_v23  ;;  %v12090_v56 = vpop.eup %7377  ;;  %vm3185_vm5 = vweird.f32 %v11971_v7  ;;  %v3218_v36 = vand.u32 2147483647, %v11953_v29  ;;  %v3239_v32 = vmul.f32 %v11725_v9, %v11167_v48  ;;  %vm12163_vm9 = vmor %vm3169_vm0, %vm3170_vm8 }
 0x492   : > { %v3240_v47 = vmul.f32 %v11752_v27, %v11169_v40  ;;  %v3241_v49 = vmul.f32 %v11819_v10, %v11171_v5  ;;  %v3196_v18 = vsub.f32 1.0, %v3195_v15  ;;  %vm3200_vm6 = vweird.f32 %v12022_v55 }
 0x493   : > { %v3211_v39 = vsub.f32 1.0, %v3210_v0  ;;  %v3225_v23 = vmul.f32 %v12090_v56, %v11991_v33  ;;  %v3242_v62 = vmul.f32 %v11826_v61, %v11178_v51  ;;  %vm3184_vm15 = vweird.f32 %v11878_v28 }
 0x494   : > { %v3243_v48 = vmul.f32 %v11912_v50, %v11187_v60  ;;  %v3247_v40 = vmul.f32 %v11599_v41, %v11573_v17  ;;  %v3248_v5 = vmul.f32 %v11934_v8, %v11580_v21  ;;  %v3249_v9 = vmul.f32 %v11956_v4, %v11589_v14  ;;  %v16749_v4 = vld [vmem:[#allocation53_spill] sm:$0xff] }
 0x495   : > { %vm3199_vm10 = vweird.f32 %v11944_v1  ;;  %v3226_v27 = vsub.f32 1.0, %v3225_v23  ;;  %v3244_v51 = vmul.f32 %v11961_v2, %v11193_v20  ;;  %v3245_v10 = vmul.f32 %v11965_v6, %v11211_v44  ;;  %v16750_v2 = vld [vmem:[#allocation50_spill] sm:$0xff] }
 0x496   : > { %v3250_v60 = vmul.f32 %v11980_v46, %v11593_v34  ;;  %vm12121_vm12 = vcmp.eq.f32.partialorder %v3173_v3, 8.507059e+37  ;;  %vm3214_vm7 = vweird.f32 %v11953_v29  ;;  %v3251_v21 = vmul.f32 %v11989_v38, %v11629_v19  ;;  %v16746_v3 = vld [vmem:[#allocation51_spill] sm:$0xff]  ;;  %v16752_v38 = vld [vmem:[#allocation54_spill] sm:$0xff] }
 0x497   : > { %v12128_v14 = vadd.f32 %v3247_v40, %v3239_v32  ;;  %v12130_v41 = vadd.f32 %v3248_v5, %v3240_v47  ;;  %v12132_v20 = vadd.f32 %v3249_v9, %v3241_v49  ;;  %v3197_v44 = vmul.f32 %v12022_v55, %v3196_v18  ;;  %v16770_v1 = vld [vmem:[#allocation18_spill] sm:$0xff] }
 0x498   : > { %v3246_v34 = vmul.f32 %v11975_v26, %v11219_v53  ;;  %v3252_v61 = vmul.f32 %v16746_v3, %v11716_v22  ;;  %v12139_v50 = vadd.f32 %v3250_v60, %v3242_v62  ;;  %vm12141_vm14 = vcmp.eq.f32.partialorder %v3188_v37, 8.507059e+37  ;;  %v16751_v26 = vld [vmem:[#allocation52_spill] sm:$0xff] }
 0x499   : > { %v3212_v19 = vmul.f32 %v12038_v24, %v3211_v39  ;;  %v3253_v6 = vmul.f32 %v16750_v2, %v16749_v4  ;;  %v12148_v46 = vadd.f32 %v3251_v21, %v3243_v48  ;;  %7379 = vtanh.f32 %v12128_v14  ;;  %v16776_v62 = vld [vmem:[#allocation24_spill] sm:$0xff] }
 0x49a   : > { %v3227_v53 = vmul.f32 %v12090_v56, %v3226_v27  ;;  %v3254_v22 = vmul.f32 %v16752_v38, %v16751_v26  ;;  %v12154_v59 = vadd.f32 %v3252_v61, %v3244_v51  ;;  %7381 = vtanh.f32 %v12130_v41 }
 0x49b   : > { %v3162_v37 = vsel %vm12079_vm4, %v3161_v12, %v3157_v57  ;;  %v3183_v31 = vadd.f32 %v11971_v7, %v3182_v42  ;;  %vm12168_vm13 = vcmp.eq.f32.partialorder %v3203_v54, 8.507059e+37  ;;  %v12172_v0 = vadd.f32 %v3253_v6, %v3245_v10  ;;  %vm12191_vm4 = vmor %vm3184_vm15, %vm3185_vm5 }
 0x49c   : > { %7383 = vtanh.f32 %v12132_v20  ;;  %v3172_v12 = vsel %vm12163_vm9, %v11948_v43, %v12084_v30  ;;  %v3220_v11 = vand.u32 2147483648, %v11953_v29  ;;  %v12180_v45 = vadd.f32 %v3254_v22, %v3246_v34  ;;  %vm12209_vm5 = vmor %vm3199_vm10, %vm3200_vm6 }
 0x49d   : > { %7385 = vtanh.f32 %v12139_v50  ;;  %v3198_v54 = vadd.f32 %v12022_v55, %v3197_v44  ;;  %v3213_v57 = vadd.f32 %v12038_v24, %v3212_v19  ;;  %vm3215_vm8 = vweird.f32 %v12038_v24 }
 0x49e   : > { %7387 = vtanh.f32 %v12148_v46  ;;  %vm12195_vm0 = vcmp.eq.f32.partialorder %v3218_v36, 8.507059e+37  ;;  %v3228_v30 = vadd.f32 %v12090_v56, %v3227_v53  ;;  %vm3230_vm9 = vweird.f32 %v12090_v56  ;;  %vm12223_vm15 = vmor %vm3214_vm7, %vm3215_vm8 }
 0x49f   : > { %7389 = vtanh.f32 %v12154_v59  ;;  %v7380_v42 = vpop.eup %7379  ;;  %v3187_v32 = vsel %vm12191_vm4, %v11971_v7, %v3183_v31  ;;  %v3233_v36 = vand.u32 2147483647, %v11991_v33  ;;  %v3235_v47 = vand.u32 2147483648, %v11991_v33 }
 0x4a0   : > { %7391 = vtanh.f32 %v12172_v0  ;;  %v7382_v49 = vpop.eup %7381  ;;  %v3177_v18 = vsel %vm12121_vm12, %v12048_v63, %v3172_v12  ;;  %vm3229_vm6 = vweird.f32 %v11991_v33  ;;  %v3271_v7 = vmul.f32 %v7380_v42, %v12059_v35 }
 0x4a1   : > { %7393 = vtanh.f32 %v12180_v45  ;;  %v3202_v23 = vsel %vm12209_vm5, %v12022_v55, %v3198_v54  ;;  %v3217_v63 = vsel %vm12223_vm15, %v12038_v24, %v3213_v57  ;;  %v3221_v29 = vor.u32 1.1754944e-38, %v3220_v11  ;;  %vm12238_vm10 = vmor %vm3229_vm6, %vm3230_vm9 }
 0x4a2   : > { %v7384_v39 = vpop.eup %7383  ;;  %v3272_v33 = vmul.f32 %v7382_v49, %v12063_v58  ;;  %v3192_v35 = vsel %vm12141_vm14, %v12051_v13, %v3187_v32  ;;  %v3232_v55 = vsel %vm12238_vm10, %v12090_v56, %v3228_v30  ;;  %v3295_v24 = vpack.c.bf16 %v3271_v7, %v3271_v7  ;;  %v16771_v7 = vld [vmem:[#allocation19_spill] sm:$0xff] }
 0x4a3   : > { %v7386_v48 = vpop.eup %7385  ;;  %v3273_v40 = vmul.f32 %v7384_v39, %v3162_v37  ;;  %vm3234_vm12 = vcmp.eq.f32.partialorder %v3233_v36, 8.507059e+37  ;;  %v3236_v9 = vor.u32 1.1754944e-38, %v3235_v47  ;;  %v3207_v58 = vsel %vm12168_vm13, %v12088_v16, %v3202_v23  ;;  %v16772_v39 = vld [vmem:[#allocation20_spill] sm:$0xff]  ;;  %v16773_v23 = vld [vmem:[#allocation21_spill] sm:$0xff] }
 0x4a4   : > { %v7388_v5 = vpop.eup %7387  ;;  %v3274_v27 = vmul.f32 %v7386_v48, %v3177_v18  ;;  %v3296_v51 = vpack.c.bf16 %v3272_v33, %v3272_v33  ;;  %v3222_v60 = vsel %vm12195_vm0, %v3221_v29, %v3217_v63  ;;  %v3311_v4 = vunpack.c.l.b16 %v3295_v24  ;;  %v16774_v63 = vld [vmem:[#allocation22_spill] sm:$0xff]  ;;  %v16775_v29 = vld [vmem:[#allocation23_spill] sm:$0xff]  ;;  %v16777_v33 = vld [vmem:[#allocation25_spill] sm:$0xff] }
 0x4a5   : > { %v7390_v10 = vpop.eup %7389  ;;  %v3275_v13 = vmul.f32 %v7388_v5, %v3192_v35  ;;  %v3297_v17 = vpack.c.bf16 %v3273_v40, %v3273_v40  ;;  %v3237_v44 = vsel %vm3234_vm12, %v3236_v9, %v3232_v55  ;;  %vm16767_vm7 = vcmask 1044484   ;;  %v16778_v48 = vld [vmem:[#allocation26_spill] sm:$0xff]  ;;  %v16779_v35 = vld [vmem:[#allocation27_spill] sm:$0xff]  ;;  %v16780_v55 = vld [vmem:[#allocation28_spill] sm:$0xff] }
 0x4a6   : > { %v7392_v21 = vpop.eup %7391  ;;  %v3276_v56 = vmul.f32 %v7390_v10, %v3207_v58  ;;  %v3298_v34 = vpack.c.bf16 %v3274_v27, %v3274_v27  ;;  %v3312_v3 = vunpack.c.l.b16 %v3296_v51  ;;  %vm16768_vm14 = vcmask 1045509   ;;  %v16781_v40 = vld [vmem:[#allocation29_spill] sm:$0xff]  ;;  %v16782_v24 = vld [vmem:[#allocation30_spill] sm:$0xff]  ;;  %v16783_v5 = vld [vmem:[#allocation31_spill] sm:$0xff] }
 0x4a7   : > { %v7394_v61 = vpop.eup %7393  ;;  %v3277_v8 = vmul.f32 %v7392_v21, %v3222_v60  ;;  %v3299_v19 = vpack.c.bf16 %v3275_v13, %v3275_v13  ;;  %v3313_v2 = vunpack.c.l.b16 %v3297_v17  ;;  %vm16769_vm13 = vcmask 1046534   ;;  %v16784_v9 = vld [vmem:[#allocation32_spill] sm:$0xff]  ;;  %v16785_v27 = vld [vmem:[#allocation33_spill] sm:$0xff]  ;;  %v16786_v51 = vld [vmem:[#allocation34_spill] sm:$0xff] }
 0x4a8   : > { %v3278_v6 = vmul.f32 %v7394_v61, %v3237_v44  ;;  %v3300_v53 = vpack.c.bf16 %v3276_v56, %v3276_v56  ;;  %v3314_v26 = vunpack.c.l.b16 %v3298_v34  ;;  %v3319_v38 = vrot.slane %v3312_v3, 7  ;;  %v16787_v10 = vld [vmem:[#allocation35_spill] sm:$0xff]  ;;  %v16788_v58 = vld [vmem:[#allocation36_spill] sm:$0xff]  ;;  %v16789_v60 = vld [vmem:[#allocation37_spill] sm:$0xff] }
 0x4a9   : > { %v3301_v16 = vpack.c.bf16 %v3277_v8, %v3277_v8  ;;  %v3315_v22 = vunpack.c.l.b16 %v3299_v19  ;;  %v3321_v37 = vrot.slane %v3313_v2, 6  ;;  %v16790_v13 = vld [vmem:[#allocation38_spill] sm:$0xff]  ;;  %v16791_v17 = vld [vmem:[#allocation39_spill] sm:$0xff]  ;;  %v16792_v21 = vld [vmem:[#allocation40_spill] sm:$0xff]  ;;  %vm16802_vm8 = vcmask 1040384  }
 0x4aa   : > { %v3302_v25 = vpack.c.bf16 %v3278_v6, %v3278_v6  ;;  %v3316_v31 = vunpack.c.l.b16 %v3300_v53  ;;  %v3320_v15 = vsel %vm480_vm2, %v3319_v38, %v3311_v4  ;;  %v3323_v12 = vrot.slane %v3314_v26, 5  ;;  %v16793_v44 = vld [vmem:[#allocation41_spill] sm:$0xff]  ;;  %v16794_v56 = vld [vmem:[#allocation42_spill] sm:$0xff]  ;;  %v16795_v34 = vld [vmem:[#allocation43_spill] sm:$0xff] }
 0x4ab   : > { %v3317_v11 = vunpack.c.l.b16 %v3301_v16  ;;  %v3322_v54 = vsel %vm476_vm1, %v3321_v37, %v3320_v15  ;;  %v3325_v57 = vrot.slane %v3315_v22, 4  ;;  %v16796_v3 = vld [vmem:[#allocation44_spill] sm:$0xff]  ;;  %v16797_v61 = vld [vmem:[#allocation45_spill] sm:$0xff]  ;;  %v16798_v8 = vld [vmem:[#allocation46_spill] sm:$0xff]  ;;  %vm16806_vm5 = vcmask 1046528  }
 0x4ac   : > { %v3318_v43 = vunpack.c.l.b16 %v3302_v25  ;;  %v3324_v52 = vsel %vm482_vm3, %v3323_v12, %v3322_v54  ;;  %v3327_v30 = vrot.slane %v3316_v31, 3  ;;  %v16799_v19 = vld [vmem:[#allocation47_spill] sm:$0xff]  ;;  %v16800_v4 = vld [vmem:[#allocation48_spill] sm:$0xff]  ;;  %v16801_v2 = vld [vmem:[#allocation49_spill] sm:$0xff]  ;;  %vm16809_vm10 = vcmask 1041408  }
 0x4ad   : > { %v3326_v42 = vsel %vm16767_vm7, %v3325_v57, %v3324_v52  ;;  %v3329_v32 = vrot.slane %v3317_v11, 2  ;;  %vm16803_vm4 = vmmov %vm16767_vm7  ;;  %vm16810_vm12 = vcmask 1042433   ;;  %vm16811_vm7 = vcmask 1043458  }
 0x4ae   : > { %v3328_v28 = vsel %vm16768_vm14, %v3327_v30, %v3326_v42  ;;  %v3331_v36 = vrot.slane %v3318_v43, 1  ;;  %vm16804_vm0 = vmmov %vm16768_vm14  ;;  %vm16812_vm14 = vcmask 1044483  }
 0x4af   : > { %v3330_v47 = vsel %vm16769_vm13, %v3329_v32, %v3328_v28  ;;  %vm16805_vm9 = vmmov %vm16769_vm13 }
 0x4b0   : > { %v3332_v49 = vsel %vm1165_vm11, %v3331_v36, %v3330_v47  ;;  %vm16807_vm15 = vmmov %vm16803_vm4 }
 0x4b1   : > { %v3333_v18 = vpack.c.b16 %v3332_v49, %v3332_v49  ;;  %vm16808_vm6 = vmmov %vm16804_vm0 }
 0x4b2   : > { %vm16813_vm13 = vmmov %vm16805_vm9 }
 0x4b3   : > { %3343 = vmatmul.bf16.vlgmr.msra.gmra.mxu0 %v3333_v18  ;;  %3356 = vmatmul.bf16.vlgmr.msra.gmra.mxu1 %v3333_v18 }
 0x4b4   : > { %3369 = vmatmul.bf16.vlgmr.msra.gmra.mxu2 %v3333_v18  ;;  %3382 = vmatmul.bf16.vlgmr.msra.gmra.mxu3 %v3333_v18 }
 0x4b5   : > { %4779 = vmatpush.bf16.msra.mxu0 %v16770_v1  ;;  %4792 = vmatpush.bf16.msra.mxu1 %v16771_v7 }
 0x4b6   : > { %4805 = vmatpush.bf16.msra.mxu2 %v16772_v39  ;;  %4818 = vmatpush.bf16.msra.mxu3 %v16773_v23 }
 0x4b9   : > { %4780 = vmatpush.bf16.msra.mxu0 %v16774_v63  ;;  %4793 = vmatpush.bf16.msra.mxu1 %v16775_v29 }
 0x4ba   : > { %4806 = vmatpush.bf16.msra.mxu2 %v16776_v62  ;;  %4819 = vmatpush.bf16.msra.mxu3 %v16777_v33 }
 0x4bd   : > { %4781 = vmatpush.bf16.msra.mxu0 %v16778_v48  ;;  %4794 = vmatpush.bf16.msra.mxu1 %v16779_v35 }
 0x4be   : > { %4807 = vmatpush.bf16.msra.mxu2 %v16780_v55  ;;  %4820 = vmatpush.bf16.msra.mxu3 %v16781_v40 }
 0x4c1   : > { %4782 = vmatpush.bf16.msra.mxu0 %v16782_v24  ;;  %4795 = vmatpush.bf16.msra.mxu1 %v16783_v5 }
 0x4c2   : > { %4808 = vmatpush.bf16.msra.mxu2 %v16784_v9  ;;  %4821 = vmatpush.bf16.msra.mxu3 %v16785_v27 }
 0x4c5   : > { %4783 = vmatpush.bf16.msra.mxu0 %v16786_v51  ;;  %4796 = vmatpush.bf16.msra.mxu1 %v16787_v10 }
 0x4c6   : > { %4809 = vmatpush.bf16.msra.mxu2 %v16788_v58  ;;  %4822 = vmatpush.bf16.msra.mxu3 %v16789_v60 }
 0x4c9   : > { %4784 = vmatpush.bf16.msra.mxu0 %v16790_v13  ;;  %4797 = vmatpush.bf16.msra.mxu1 %v16791_v17 }
 0x4ca   : > { %4810 = vmatpush.bf16.msra.mxu2 %v16792_v21  ;;  %4823 = vmatpush.bf16.msra.mxu3 %v16793_v44 }
 0x4cd   : > { %4785 = vmatpush.bf16.msra.mxu0 %v16794_v56  ;;  %4798 = vmatpush.bf16.msra.mxu1 %v16795_v34 }
 0x4ce   : > { %4811 = vmatpush.bf16.msra.mxu2 %v16796_v3  ;;  %4824 = vmatpush.bf16.msra.mxu3 %v16797_v61 }
 0x4d1   : > { %4786 = vmatpush.bf16.msra.mxu0 %v16798_v8  ;;  %4799 = vmatpush.bf16.msra.mxu1 %v16799_v19 }
 0x4d2   : > { %4812 = vmatpush.bf16.msra.mxu2 %v16800_v4  ;;  %4825 = vmatpush.bf16.msra.mxu3 %v16801_v2 }
 0x530   : > { %v3344_v6 = vpop.f32.mrf.mxu0  ;;  %v3357_v53 = vpop.f32.mrf.mxu1 }
 0x531   : > { %v3391_v26 = vrot.slane %v3357_v53, 7  ;;  %v6599_v53 = vld [vmem:[%s8250_s21 + $0x4] ss:$8 sm:$0xf] }
 0x533   : > { %v3394_v38 = vsel %vm16802_vm8, %v3344_v6, %v3391_v26  ;;  %v3397_v16 = vsel %vm480_vm2, %v3344_v6, %v3391_v26  ;;  %v3401_v22 = vsel %vm476_vm1, %v3344_v6, %v3391_v26  ;;  %v3405_v37 = vsel %vm482_vm3, %v3344_v6, %v3391_v26 }
 0x534   : > { %v3409_v25 = vsel %vm16803_vm4, %v3344_v6, %v3391_v26  ;;  %v3413_v31 = vsel %vm16804_vm0, %v3344_v6, %v3391_v26  ;;  %v3417_v15 = vsel %vm16805_vm9, %v3344_v6, %v3391_v26  ;;  %v3421_v12 = vsel %vm16806_vm5, %v3391_v26, %v3344_v6  ;;  %vm16815_vm4 = vmmov %vm16806_vm5 }
 0x535   : > { %vm16814_vm8 = vcmask 1045508   ;;  %vm16816_vm0 = vcmask 1040384   ;;  %vm16817_vm9 = vcmask 1046533   ;;  %vm16818_vm5 = vcmask 1045504  }
 0x537   : > { %v3370_v11 = vpop.f32.mrf.mxu2  ;;  %v3383_v54 = vpop.f32.mrf.mxu3 }
 0x538   : > { %v3392_v57 = vrot.slane %v3370_v11, 6  ;;  %v3393_v43 = vrot.slane %v3383_v54, 5  ;;  %v3346_v52 = vpop.f32.mrf.mxu0  ;;  %v3359_v30 = vpop.f32.mrf.mxu1 }
 0x539   : > { %v6600_v52 = vld [vmem:[%s8250_s21 + $0x24] ss:$8 sm:$0xf] }
 0x53a   : > { %v3395_v42 = vsel %vm476_vm1, %v3392_v57, %v3393_v43  ;;  %v3398_v32 = vsel %vm482_vm3, %v3392_v57, %v3393_v43  ;;  %v3402_v28 = vsel %vm16807_vm15, %v3392_v57, %v3393_v43  ;;  %v3406_v36 = vsel %vm16808_vm6, %v3392_v57, %v3393_v43 }
 0x53b   : > { %v3396_v47 = vsel %vm16809_vm10, %v3394_v38, %v3395_v42  ;;  %v3399_v49 = vsel %vm16810_vm12, %v3397_v16, %v3398_v32  ;;  %v3403_v18 = vsel %vm16811_vm7, %v3401_v22, %v3402_v28  ;;  %v3407_v6 = vsel %vm16812_vm14, %v3405_v37, %v3406_v36  ;;  %v6601_v16 = vld [vmem:[%s8250_s21 + $0x44] ss:$8 sm:$0xf] }
 0x53c   : > { %v3400_v26 = vrot.slane %v3399_v49, 1  ;;  %v3404_v11 = vrot.slane %v3403_v18, 2  ;;  %v3410_v54 = vsel %vm16813_vm13, %v3392_v57, %v3393_v43  ;;  %v3414_v2 = vsel %vm16815_vm4, %v3393_v43, %v3392_v57  ;;  %v6602_v28 = vld [vmem:[%s8250_s21 + $0x64] ss:$8 sm:$0xf] }
 0x53d   : > { %v3411_v30 = vsel %vm16814_vm8, %v3409_v25, %v3410_v54  ;;  %v3418_v4 = vsel %vm16816_vm0, %v3392_v57, %v3393_v43  ;;  %v3422_v38 = vsel %vm480_vm2, %v3392_v57, %v3393_v43  ;;  %v3408_v22 = vrot.slane %v3407_v6, 3 }
 0x53e   : > { %v3415_v42 = vsel %vm16817_vm9, %v3413_v31, %v3414_v2  ;;  %v3419_v37 = vsel %vm16818_vm5, %v3418_v4, %v3417_v15  ;;  %vm16819_vm15 = vcmask 1046529   ;;  %v12321_v36 = vadd.f32 %v6599_v53, %v3396_v47  ;;  %v6603_v4 = vld [vmem:[%s8250_s21 + $0x84] ss:$8 sm:$0xf] }
 0x53f   : > { %v3423_v32 = vsel %vm16819_vm15, %v3422_v38, %v3421_v12  ;;  %v3372_v49 = vpop.f32.mrf.mxu2  ;;  %v3385_v25 = vpop.f32.mrf.mxu3  ;;  %v12323_v18 = vadd.f32 %v6600_v52, %v3400_v26  ;;  %v12325_v54 = vadd.f32 %v6601_v16, %v3404_v11  ;;  %v12327_v19 = vadd.f32 %v6602_v28, %v3408_v22  ;;  %v6604_v11 = vld [vmem:[%s8250_s21 + $0xa4] ss:$8 sm:$0xf] }
 0x540   : > { %v6607_v57 = vmul.f32 -1.442695, %v12321_v36  ;;  %v3412_v43 = vrot.slane %v3411_v30, 4  ;;  %v3416_v53 = vrot.slane %v3415_v42, 5  ;;  %v3420_v52 = vrot.slane %v3419_v37, 6 }
 0x541   : > { %v6608_v2 = vmul.f32 -1.442695, %v12323_v18  ;;  %v6609_v31 = vmul.f32 -1.442695, %v12325_v54  ;;  %v6610_v15 = vmul.f32 -1.442695, %v12327_v19 }
 0x542   : > { %7395 = vpow2.f32 %v6607_v57  ;;  %v12334_v12 = vadd.f32 %v6603_v4, %v3412_v43  ;;  %v6605_v38 = vld [vmem:[%s8250_s21 + $0xc4] ss:$8 sm:$0xf]  ;;  %v3424_v16 = vrot.slane %v3423_v32, 7  ;;  %v3601_v25 = vrot.slane %v12321_v36, 1 }
 0x543   : > { %7397 = vpow2.f32 %v6608_v2  ;;  %v6606_v28 = vld [vmem:[%s8250_s21 + $0xe4] ss:$8 sm:$0xf]  ;;  %v12343_v57 = vadd.f32 %v6604_v11, %v3416_v53  ;;  %v12347_v2 = vadd.f32 %v6605_v38, %v3420_v52  ;;  %v3604_v52 = vrot.slane %v12327_v19, 1 }
 0x544   : > { %7399 = vpow2.f32 %v6609_v31  ;;  %v6611_v47 = vmul.f32 -1.442695, %v12334_v12  ;;  %v12351_v4 = vadd.f32 %v6606_v28, %v3424_v16  ;;  %v6615_v32 = vmul.f32 -1.442695, %v3601_v25 }
 0x545   : > { %7401 = vpow2.f32 %v6610_v15  ;;  %v6612_v31 = vmul.f32 -1.442695, %v12343_v57  ;;  %v3605_v38 = vrot.slane %v12334_v12, 1  ;;  %v3606_v28 = vrot.slane %v12343_v57, 1 }
 0x546   : > { %7403 = vpow2.f32 %v6611_v47  ;;  %v6613_v47 = vmul.f32 -1.442695, %v12347_v2  ;;  %v6614_v53 = vmul.f32 -1.442695, %v12351_v4  ;;  %v3793_v61 = vrot.slane %v12321_v36, 3 }
 0x547   : > { %v12383_v56 = vmul.f32 -1.442695, %v3606_v28  ;;  %v16830_v62 = vrot.slane %v12321_v36, 2 }
 0x548   : > { %v7396_v6 = vpop.eup %7395  ;;  %v12396_v60 = vmul.f32 -1.442695, %v3793_v61 }
 0x549   : > { %v7398_v26 = vpop.eup %7397  ;;  %v12340_v49 = vadd.f32 1.0, %v7396_v6  ;;  %v3602_v6 = vrot.slane %v12323_v18, 1 }
 0x54a   : > { %v7400_v30 = vpop.eup %7399  ;;  %v12345_v43 = vadd.f32 1.0, %v7398_v26  ;;  %v3603_v26 = vrot.slane %v12325_v54, 1 }
 0x54b   : > { %v7402_v22 = vpop.eup %7401  ;;  %v12349_v42 = vadd.f32 1.0, %v7400_v30  ;;  %7405 = vrcp.f32 %v12340_v49  ;;  %v6616_v16 = vmul.f32 -1.442695, %v3602_v6  ;;  %v3794_v6 = vrot.slane %v12323_v18, 3 }
 0x54c   : > { %v12353_v37 = vadd.f32 1.0, %v7402_v22  ;;  %7407 = vrcp.f32 %v12345_v43  ;;  %v7404_v15 = vpop.eup %7403  ;;  %v6617_v8 = vmul.f32 -1.442695, %v3603_v26  ;;  %v3484_v44 = vand.u32 2147483648, %v12340_v49 }
 0x54d   : > { %7409 = vrcp.f32 %v12349_v42  ;;  %v12364_v11 = vadd.f32 1.0, %v7404_v15  ;;  %v6618_v15 = vmul.f32 -1.442695, %v3604_v52  ;;  %v12401_v58 = vmul.f32 -1.442695, %v3794_v6 }
 0x54e   : > { %7411 = vrcp.f32 %v12353_v37  ;;  %vm3478_vm6 = vweird.f32 %v12340_v49  ;;  %v3499_v17 = vand.u32 2147483648, %v12345_v43  ;;  %vm3493_vm10 = vweird.f32 %v12345_v43 }
 0x54f   : > { %7413 = vpow2.f32 %v6615_v32  ;;  %vm3508_vm12 = vweird.f32 %v12349_v42  ;;  %v3512_v24 = vand.u32 2147483647, %v12349_v42  ;;  %vm3523_vm8 = vweird.f32 %v12353_v37 }
 0x550   : > { %7415 = vpow2.f32 %v6612_v31  ;;  %v3607_v31 = vrot.slane %v12347_v2, 1 }
 0x551   : > { %v12367_v30 = vpop.eup %7405  ;;  %7417 = vpow2.f32 %v6613_v47  ;;  %v6619_v47 = vmul.f32 -1.442695, %v3605_v38 }
 0x552   : > { %v12370_v22 = vpop.eup %7407  ;;  %7419 = vpow2.f32 %v6614_v53  ;;  %v3474_v53 = vmul.f32 %v12367_v30, %v12340_v49  ;;  %v12399_v26 = vmul.f32 -1.442695, %v3607_v31  ;;  %vm3479_vm14 = vweird.f32 %v12367_v30 }
 0x553   : > { %v12373_v25 = vpop.eup %7409  ;;  %7421 = vrcp.f32 %v12364_v11  ;;  %v3489_v52 = vmul.f32 %v12370_v22, %v12345_v43  ;;  %vm3494_vm4 = vweird.f32 %v12370_v22  ;;  %vm12462_vm9 = vmor %vm3478_vm6, %vm3479_vm14  ;;  %vm12480_vm6 = vcmp.eq.f32.partialorder %v3512_v24, 8.507059e+37 }
 0x554   : > { %v12375_v32 = vpop.eup %7411  ;;  %7423 = vpow2.f32 %v6616_v16  ;;  %v3504_v38 = vmul.f32 %v12373_v25, %v12349_v42  ;;  %v3475_v10 = vsub.f32 1.0, %v3474_v53  ;;  %vm3509_vm0 = vweird.f32 %v12373_v25  ;;  %vm12476_vm15 = vmor %vm3493_vm10, %vm3494_vm4 }
 0x555   : > { %v7414_v3 = vpop.eup %7413  ;;  %7425 = vpow2.f32 %v6617_v8  ;;  %v3519_v16 = vmul.f32 %v12375_v32, %v12353_v37  ;;  %v3490_v61 = vsub.f32 1.0, %v3489_v52  ;;  %vm3524_vm5 = vweird.f32 %v12375_v32  ;;  %vm12496_vm10 = vmor %vm3508_vm12, %vm3509_vm0 }
 0x556   : > { %v7416_v34 = vpop.eup %7415  ;;  %v12394_v28 = vadd.f32 1.0, %v7414_v3  ;;  %7427 = vpow2.f32 %v6618_v15  ;;  %v3482_v3 = vand.u32 2147483647, %v12340_v49  ;;  %v3505_v15 = vsub.f32 1.0, %v3504_v38  ;;  %vm12513_vm12 = vmor %vm3523_vm8, %vm3524_vm5 }
 0x557   : > { %v7418_v21 = vpop.eup %7417  ;;  %v12403_v8 = vadd.f32 1.0, %v7416_v34  ;;  %7429 = vpow2.f32 %v6619_v47  ;;  %v3520_v6 = vsub.f32 1.0, %v3519_v16  ;;  %v3485_v34 = vor.u32 1.1754944e-38, %v3484_v44 }
 0x558   : > { %v7420_v13 = vpop.eup %7419  ;;  %v12407_v27 = vadd.f32 1.0, %v7418_v21  ;;  %7431 = vrcp.f32 %v12394_v28  ;;  %v3497_v21 = vand.u32 2147483647, %v12345_v43  ;;  %v3476_v5 = vmul.f32 %v12367_v30, %v3475_v10 }
 0x559   : > { %v12405_v51 = vpop.eup %7421  ;;  %v12412_v31 = vadd.f32 1.0, %v7420_v13  ;;  %7433 = vrcp.f32 %v12403_v8  ;;  %v3491_v47 = vmul.f32 %v12370_v22, %v3490_v61  ;;  %v3500_v38 = vor.u32 1.1754944e-38, %v3499_v17 }
 0x55a   : > { %v7424_v9 = vpop.eup %7423  ;;  %v3534_v52 = vmul.f32 %v12405_v51, %v12364_v11  ;;  %7435 = vrcp.f32 %v12407_v27  ;;  %vm12426_vm7 = vcmp.eq.f32.partialorder %v3482_v3, 8.507059e+37  ;;  %v3506_v10 = vmul.f32 %v12373_v25, %v3505_v15 }
 0x55b   : > { %v7426_v53 = vpop.eup %7425  ;;  %v12422_v13 = vadd.f32 1.0, %v7424_v9  ;;  %v3521_v40 = vmul.f32 %v12375_v32, %v3520_v6  ;;  %7437 = vrcp.f32 %v12412_v31  ;;  %vm12437_vm13 = vcmp.eq.f32.partialorder %v3497_v21, 8.507059e+37 }
 0x55c   : > { %v7428_v44 = vpop.eup %7427  ;;  %v12434_v9 = vadd.f32 1.0, %v7426_v53  ;;  %v3514_v3 = vand.u32 2147483648, %v12349_v42  ;;  %v3477_v15 = vadd.f32 %v12367_v30, %v3476_v5  ;;  %v3527_v6 = vand.u32 2147483647, %v12353_v37 }
 0x55d   : > { %v12443_v61 = vpop.eup %7429  ;;  %v3535_v53 = vsub.f32 1.0, %v3534_v52  ;;  %v12450_v35 = vadd.f32 1.0, %v7428_v44  ;;  %7439 = vrcp.f32 %v12422_v13  ;;  %v3492_v21 = vadd.f32 %v12370_v22, %v3491_v47 }
 0x55e   : > { %v12448_v55 = vpop.eup %7431  ;;  %7441 = vpow2.f32 %v12383_v56  ;;  %v3507_v52 = vadd.f32 %v12373_v25, %v3506_v10  ;;  %v3522_v44 = vadd.f32 %v12375_v32, %v3521_v40  ;;  %v3515_v10 = vor.u32 1.1754944e-38, %v3514_v3 }
 0x55f   : > { %v12455_v48 = vpop.eup %7433  ;;  %7443 = vrcp.f32 %v12434_v9  ;;  %v3529_v40 = vand.u32 2147483648, %v12353_v37  ;;  %v3481_v43 = vsel %vm12462_vm9, %v12367_v30, %v3477_v15  ;;  %vm12500_vm14 = vcmp.eq.f32.partialorder %v3527_v6, 8.507059e+37 }
 0x560   : > { %v12469_v47 = vpop.eup %7435  ;;  %7445 = vtanh.f32 %v16830_v62  ;;  %v3536_v29 = vmul.f32 %v12405_v51, %v3535_v53  ;;  %v3496_v62 = vsel %vm12476_vm15, %v12370_v22, %v3492_v21  ;;  %v3542_v42 = vand.u32 2147483647, %v12364_v11 }
 0x561   : > { %v12485_v33 = vpop.eup %7437  ;;  %7447 = vrcp.f32 %v12450_v35  ;;  %v3549_v30 = vmul.f32 %v12455_v48, %v12403_v8  ;;  %v3511_v15 = vsel %vm12496_vm10, %v12373_v25, %v3507_v52  ;;  %v3526_v22 = vsel %vm12513_vm12, %v12375_v32, %v3522_v44 }
 0x562   : > { %v3564_v37 = vmul.f32 %v12469_v47, %v12407_v27  ;;  %v3650_v6 = vmul.f32 %v12448_v55, %v12394_v28  ;;  %v12534_v21 = vsel %vm12426_vm7, %v3485_v34, %v3481_v43  ;;  %v3530_v5 = vor.u32 1.1754944e-38, %v3529_v40 }
 0x563   : > { %v12530_v53 = vpop.eup %7439  ;;  %vm3538_vm8 = vweird.f32 %v12364_v11  ;;  %v3579_v25 = vmul.f32 %v12485_v33, %v12412_v31  ;;  %v12541_v32 = vsel %vm12437_vm13, %v3500_v38, %v3496_v62  ;;  %v3537_v44 = vadd.f32 %v12405_v51, %v3536_v29 }
 0x564   : > { %v7442_v52 = vpop.eup %7441  ;;  %vm3539_vm4 = vweird.f32 %v12405_v51  ;;  %v3544_v56 = vand.u32 2147483648, %v12364_v11  ;;  %v12550_v34 = vsel %vm12480_vm6, %v3515_v10, %v3511_v15  ;;  %v12554_v40 = vsel %vm12500_vm14, %v3530_v5, %v3526_v22 }
 0x565   : > { %v12546_v16 = vpop.eup %7443  ;;  %vm12556_vm7 = vcmp.eq.f32.partialorder %v3542_v42, 8.507059e+37  ;;  %v3550_v38 = vsub.f32 1.0, %v3549_v30  ;;  %v3559_v43 = vand.u32 2147483648, %v12403_v8  ;;  %v3565_v24 = vsub.f32 1.0, %v3564_v37  ;;  %vm12569_vm13 = vmor %vm3538_vm8, %vm3539_vm4 }
 0x566   : > { %v12560_v29 = vpop.eup %7445  ;;  %v3651_v62 = vsub.f32 1.0, %v3650_v6  ;;  %v3665_v49 = vmul.f32 %v12530_v53, %v12422_v13  ;;  %v3557_v36 = vand.u32 2147483647, %v12403_v8  ;;  %v3580_v42 = vsub.f32 1.0, %v3579_v25 }
 0x567   : > { %v12565_v10 = vpop.eup %7447  ;;  %7449 = vpow2.f32 %v12399_v26  ;;  %v16841_v30 = vrot.slane %v12351_v4, 1  ;;  %v3541_v22 = vsel %vm12569_vm13, %v12405_v51, %v3537_v44  ;;  %v3545_v37 = vor.u32 1.1754944e-38, %v3544_v56 }
 0x568   : > { %v3572_v6 = vand.u32 2147483647, %v12407_v27  ;;  %v3574_v11 = vand.u32 2147483648, %v12407_v27  ;;  %v3551_v5 = vmul.f32 %v12455_v48, %v3550_v38  ;;  %vm3553_vm0 = vweird.f32 %v12403_v8 }
 0x569   : > { %v6622_v15 = vmul.f32 -1.442695, %v16841_v30  ;;  %vm3568_vm9 = vweird.f32 %v12407_v27  ;;  %v3587_v26 = vand.u32 2147483647, %v12412_v31  ;;  %v3560_v25 = vor.u32 1.1754944e-38, %v3559_v43 }
 0x56a   : > { %v3566_v30 = vmul.f32 %v12469_v47, %v3565_v24  ;;  %v3652_v63 = vmul.f32 %v12448_v55, %v3651_v62  ;;  %v3666_v3 = vsub.f32 1.0, %v3665_v49  ;;  %v12590_v51 = vsel %vm12556_vm7, %v3545_v37, %v3541_v22 }
 0x56b   : > { %vm12592_vm5 = vcmp.eq.f32.partialorder %v3557_v36, 8.507059e+37  ;;  %v3581_v56 = vmul.f32 %v12485_v33, %v3580_v42  ;;  %vm3583_vm15 = vweird.f32 %v12412_v31  ;;  %7451 = vpow2.f32 %v6622_v15 }
 0x56c   : > { %vm3554_vm6 = vweird.f32 %v12455_v48  ;;  %vm12599_vm10 = vcmp.eq.f32.partialorder %v3572_v6, 8.507059e+37  ;;  %v3575_v43 = vor.u32 1.1754944e-38, %v3574_v11  ;;  %v3589_v17 = vand.u32 2147483648, %v12412_v31 }
 0x56d   : > { %v12605_v24 = vadd.f32 1.0, %v12443_v61  ;;  %v7450_v62 = vpop.eup %7449  ;;  %v3552_v49 = vadd.f32 %v12455_v48, %v3551_v5  ;;  %vm3569_vm14 = vweird.f32 %v12469_v47  ;;  %vm12609_vm12 = vcmp.eq.f32.partialorder %v3587_v26, 8.507059e+37  ;;  %vm12625_vm4 = vmor %vm3553_vm0, %vm3554_vm6 }
 0x56e   : > { %v12613_v42 = vadd.f32 1.0, %v7442_v52  ;;  %vm3655_vm8 = vweird.f32 %v12448_v55  ;;  %v3567_v15 = vadd.f32 %v12469_v47, %v3566_v30  ;;  %v3653_v22 = vadd.f32 %v12448_v55, %v3652_v63  ;;  %vm12635_vm13 = vmor %vm3568_vm9, %vm3569_vm14 }
 0x56f   : > { %v3667_v61 = vmul.f32 %v12530_v53, %v3666_v3  ;;  %v3680_v37 = vmul.f32 %v12546_v16, %v12434_v9  ;;  %v3582_v52 = vadd.f32 %v12485_v33, %v3581_v56  ;;  %vm3584_vm7 = vweird.f32 %v12485_v33 }
 0x570   : > { %v3658_v11 = vand.u32 2147483647, %v12394_v28  ;;  %v3660_v63 = vand.u32 2147483648, %v12394_v28  ;;  %v3590_v26 = vor.u32 1.1754944e-38, %v3589_v17  ;;  %v12639_v8 = vadd.f32 1.0, %v7450_v62  ;;  %vm12663_vm14 = vmor %vm3583_vm15, %vm3584_vm7 }
 0x571   : > { %vm3654_vm0 = vweird.f32 %v12394_v28  ;;  %v3695_v30 = vmul.f32 %v12565_v10, %v12450_v35  ;;  %v7452_v3 = vpop.eup %7451  ;;  %v3556_v56 = vsel %vm12625_vm4, %v12455_v48, %v3552_v49  ;;  %vm3670_vm9 = vweird.f32 %v12530_v53 }
 0x572   : > { %vm12649_vm6 = vmor %vm3654_vm0, %vm3655_vm8  ;;  %v3673_v17 = vand.u32 2147483647, %v12422_v13  ;;  %7453 = vrcp.f32 %v12605_v24  ;;  %v3571_v28 = vsel %vm12635_vm13, %v12469_v47, %v3567_v15  ;;  %v3668_v49 = vadd.f32 %v12530_v53, %v3667_v61 }
 0x573   : > { %v3657_v62 = vsel %vm12649_vm6, %v12448_v55, %v3653_v22  ;;  %v3681_v6 = vsub.f32 1.0, %v3680_v37  ;;  %v3586_v5 = vsel %vm12663_vm14, %v12485_v33, %v3582_v52  ;;  %vm3659_vm8 = vcmp.eq.f32.partialorder %v3658_v11, 8.507059e+37 }
 0x574   : > { %v3661_v47 = vor.u32 1.1754944e-38, %v3660_v63  ;;  %v3675_v15 = vand.u32 2147483648, %v12422_v13  ;;  %v12677_v31 = vsel %vm12592_vm5, %v3560_v25, %v3556_v56  ;;  %v12679_v23 = vadd.f32 1.0, %v7452_v3 }
 0x575   : > { %vm3669_vm15 = vweird.f32 %v12422_v13  ;;  %v3696_v55 = vsub.f32 1.0, %v3695_v30  ;;  %v12684_v22 = vsel %vm12599_vm10, %v3575_v43, %v3571_v28  ;;  %vm3674_vm7 = vcmp.eq.f32.partialorder %v3673_v17, 8.507059e+37 }
 0x576   : > { %16856 = vst [vmem:[#allocation51_spill] sm:$0xff] %v12684_v22  ;;  %v12686_v61 = vsel %vm3659_vm8, %v3661_v47, %v3657_v62  ;;  %vm12690_vm4 = vmor %vm3669_vm15, %vm3670_vm9  ;;  %7455 = vrcp.f32 %v12613_v42  ;;  %v12697_v25 = vsel %vm12609_vm12, %v3590_v26, %v3586_v5  ;;  %v3682_v44 = vmul.f32 %v12546_v16, %v3681_v6 }
 0x577   : > { %16859 = vst [vmem:[#allocation53_spill] sm:$0xff] %v12697_v25  ;;  %v3672_v13 = vsel %vm12690_vm4, %v12530_v53, %v3668_v49  ;;  %7457 = vrcp.f32 %v12639_v8  ;;  %v3676_v43 = vor.u32 1.1754944e-38, %v3675_v15  ;;  %v3688_v37 = vand.u32 2147483647, %v12434_v9 }
 0x578   : > { %v12704_v38 = vpop.eup %7453  ;;  %v3690_v52 = vand.u32 2147483648, %v12434_v9  ;;  %v3795_v11 = vrot.slane %v12325_v54, 3  ;;  %v3697_v36 = vmul.f32 %v12565_v10, %v3696_v55  ;;  %v3703_v63 = vand.u32 2147483647, %v12450_v35 }
 0x579   : > { %7459 = vrcp.f32 %v12679_v23  ;;  %v3796_v53 = vrot.slane %v12327_v19, 3  ;;  %v12713_v26 = vsel %vm3674_vm7, %v3676_v43, %v3672_v13  ;;  %vm3684_vm5 = vweird.f32 %v12434_v9 }
 0x57a   : > { %vm3685_vm10 = vweird.f32 %v12546_v16  ;;  %v3797_v30 = vrot.slane %v12334_v12, 3  ;;  %v3683_v3 = vadd.f32 %v12546_v16, %v3682_v44  ;;  %vm3699_vm12 = vweird.f32 %v12450_v35 }
 0x57b   : > { %v3705_v56 = vand.u32 2147483648, %v12450_v35  ;;  %v3710_v27 = vmul.f32 %v12704_v38, %v12605_v24  ;;  %vm12725_vm13 = vcmp.eq.f32.partialorder %v3688_v37, 8.507059e+37  ;;  %v3691_v48 = vor.u32 1.1754944e-38, %v3690_v52  ;;  %vm12742_vm9 = vmor %vm3684_vm5, %vm3685_vm10 }
 0x57c   : > { %v12723_v17 = vpop.eup %7455  ;;  %vm3700_vm0 = vweird.f32 %v12565_v10  ;;  %v6625_v62 = vmul.f32 -1.442695, %v3795_v11  ;;  %v3698_v6 = vadd.f32 %v12565_v10, %v3697_v36  ;;  %vm12733_vm6 = vcmp.eq.f32.partialorder %v3703_v63, 8.507059e+37 }
 0x57d   : > { %v12730_v49 = vpop.eup %7457  ;;  %v3720_v47 = vand.u32 2147483648, %v12605_v24  ;;  %v6626_v15 = vmul.f32 -1.442695, %v3796_v53  ;;  %v3718_v33 = vand.u32 2147483647, %v12605_v24  ;;  %v3798_v13 = vrot.slane %v12343_v57, 3  ;;  %vm12759_vm14 = vmor %vm3699_vm12, %vm3700_vm0 }
 0x57e   : > { %7461 = vpow2.f32 %v12396_v60  ;;  %v6627_v44 = vmul.f32 -1.442695, %v3797_v30  ;;  %v3687_v37 = vsel %vm12742_vm9, %v12546_v16, %v3683_v3  ;;  %v3706_v52 = vor.u32 1.1754944e-38, %v3705_v56 }
 0x57f   : > { %v12749_v43 = vpop.eup %7459  ;;  %v3711_v11 = vsub.f32 1.0, %v3710_v27  ;;  %7463 = vpow2.f32 %v12401_v58  ;;  %v3725_v60 = vmul.f32 %v12723_v17, %v12613_v42  ;;  %v3735_v36 = vand.u32 2147483648, %v12613_v42 }
 0x580   : > { %v3740_v16 = vmul.f32 %v12730_v49, %v12639_v8  ;;  %7465 = vpow2.f32 %v6625_v62  ;;  %v3702_v58 = vsel %vm12759_vm14, %v12565_v10, %v3698_v6  ;;  %v12771_v63 = vor.u32 1.1754944e-38, %v3720_v47 }
 0x581   : > { %v3799_v35 = vrot.slane %v12347_v2, 3  ;;  %7467 = vpow2.f32 %v6626_v15  ;;  %vm3714_vm8 = vweird.f32 %v12605_v24  ;;  %v3733_v53 = vand.u32 2147483647, %v12613_v42 }
 0x582   : > { %v3755_v30 = vmul.f32 %v12749_v43, %v12679_v23  ;;  %7469 = vpow2.f32 %v6627_v44  ;;  %v6628_v3 = vmul.f32 -1.442695, %v3798_v13  ;;  %v12780_v56 = vsel %vm12725_vm13, %v3691_v48, %v3687_v37 }
 0x583   : > { %v3712_v10 = vmul.f32 %v12704_v38, %v3711_v11  ;;  %v3748_v27 = vand.u32 2147483647, %v12639_v8  ;;  %v3750_v62 = vand.u32 2147483648, %v12639_v8  ;;  %v12787_v47 = vsel %vm12733_vm6, %v3706_v52, %v3702_v58 }
 0x584   : > { %v7462_v6 = vpop.eup %7461  ;;  %v3726_v15 = vsub.f32 1.0, %v3725_v60  ;;  %v12789_v55 = vor.u32 1.1754944e-38, %v3735_v36  ;;  %v3741_v44 = vsub.f32 1.0, %v3740_v16  ;;  %vm3715_vm15 = vweird.f32 %v12704_v38 }
 0x585   : > { %v7464_v13 = vpop.eup %7463  ;;  %vm3729_vm4 = vweird.f32 %v12613_v42  ;;  %v3763_v28 = vand.u32 2147483647, %v12679_v23  ;;  %v6629_v48 = vmul.f32 -1.442695, %v3799_v35  ;;  %v12794_v37 = vadd.f32 1.0, %v7462_v6  ;;  %vm12832_vm6 = vmor %vm3714_vm8, %vm3715_vm15 }
 0x586   : > { %v7466_v11 = vpop.eup %7465  ;;  %vm12796_vm7 = vcmp.eq.f32.partialorder %v3718_v33, 8.507059e+37  ;;  %vm3744_vm5 = vweird.f32 %v12639_v8  ;;  %v3756_v5 = vsub.f32 1.0, %v3755_v30  ;;  %v3800_v52 = vrot.slane %v12351_v4, 3 }
 0x587   : > { %7471 = vpow2.f32 %v6628_v3  ;;  %v12802_v60 = vadd.f32 1.0, %v7464_v13  ;;  %v7468_v36 = vpop.eup %7467  ;;  %v3713_v16 = vadd.f32 %v12704_v38, %v3712_v10  ;;  %v3765_v58 = vand.u32 2147483648, %v12679_v23 }
 0x588   : > { %v12806_v35 = vadd.f32 1.0, %v7466_v11  ;;  %7473 = vrcp.f32 %v12794_v37  ;;  %v7470_v33 = vpop.eup %7469  ;;  %v3727_v6 = vmul.f32 %v12723_v17, %v3726_v15  ;;  %v3742_v39 = vmul.f32 %v12730_v49, %v3741_v44 }
 0x589   : > { %vm3759_vm10 = vweird.f32 %v12679_v23  ;;  %v12812_v30 = vadd.f32 1.0, %v7468_v36  ;;  %7475 = vrcp.f32 %v12802_v60  ;;  %vm3730_vm12 = vweird.f32 %v12723_v17 }
 0x58a   : > { %v3751_v3 = vor.u32 1.1754944e-38, %v3750_v62  ;;  %v3771_v10 = vrot.slane %v12325_v54, 2  ;;  %7477 = vpow2.f32 %v6629_v48  ;;  %vm12817_vm13 = vcmp.eq.f32.partialorder %v3733_v53, 8.507059e+37  ;;  %vm12862_vm8 = vmor %vm3729_vm4, %vm3730_vm12 }
 0x58b   : > { %vm12821_vm0 = vcmp.eq.f32.partialorder %v3748_v27, 8.507059e+37  ;;  %v3757_v44 = vmul.f32 %v12749_v43, %v3756_v5  ;;  %v3772_v11 = vrot.slane %v12327_v19, 2  ;;  %v6630_v36 = vmul.f32 -1.442695, %v3800_v52 }
 0x58c   : > { %7479 = vrcp.f32 %v12806_v35  ;;  %vm3745_vm9 = vweird.f32 %v12730_v49  ;;  %v3766_v53 = vor.u32 1.1754944e-38, %v3765_v58  ;;  %v16876_v27 = vrot.slane %v12323_v18, 2 }
 0x58d   : > { %v12839_v62 = vadd.f32 1.0, %v7470_v33  ;;  %v7472_v19 = vpop.eup %7471  ;;  %v3717_v48 = vsel %vm12832_vm6, %v12704_v38, %v3713_v16  ;;  %v3728_v5 = vadd.f32 %v12723_v17, %v3727_v6  ;;  %v3743_v24 = vadd.f32 %v12730_v49, %v3742_v39  ;;  %vm12879_vm4 = vmor %vm3744_vm5, %vm3745_vm9 }
 0x58e   : > { %7481 = vtanh.f32 %v16876_v27  ;;  %vm12846_vm14 = vcmp.eq.f32.partialorder %v3763_v28, 8.507059e+37  ;;  %v12851_v58 = vpop.eup %7473  ;;  %v3773_v18 = vrot.slane %v12334_v12, 2  ;;  %v3774_v33 = vrot.slane %v12343_v57, 2 }
 0x58f   : > { %7483 = vrcp.f32 %v12812_v30  ;;  %v3775_v27 = vrot.slane %v12347_v2, 2  ;;  %v12856_v38 = vpop.eup %7475  ;;  %v3758_v28 = vadd.f32 %v12749_v43, %v3757_v44  ;;  %vm3760_vm15 = vweird.f32 %v12749_v43 }
 0x590   : > { %7485 = vtanh.f32 %v3771_v10  ;;  %v3842_v12 = vmul.f32 %v12851_v58, %v12794_v37  ;;  %v7478_v57 = vpop.eup %7477  ;;  %v12873_v2 = vsel %vm12796_vm7, %v12771_v63, %v3717_v48  ;;  %v3776_v16 = vrot.slane %v12351_v4, 2  ;;  %vm12901_vm7 = vmor %vm3759_vm10, %vm3760_vm15 }
 0x591   : > { %7487 = vpow2.f32 %v6630_v36  ;;  %v3857_v6 = vmul.f32 %v12856_v38, %v12802_v60  ;;  %v3732_v63 = vsel %vm12862_vm8, %v12723_v17, %v3728_v5  ;;  %v3747_v8 = vsel %vm12879_vm4, %v12730_v49, %v3743_v24 }
 0x592   : > { %7489 = vrcp.f32 %v12839_v62  ;;  %v12887_v10 = vpop.eup %7479  ;;  %v3843_v9 = vsub.f32 1.0, %v3842_v12  ;;  %v12905_v36 = vadd.f32 1.0, %v7472_v19  ;;  %v12914_v48 = vadd.f32 1.0, %v7478_v57 }
 0x593   : > { %7491 = vtanh.f32 %v3772_v11  ;;  %v3858_v17 = vsub.f32 1.0, %v3857_v6  ;;  %v3872_v54 = vmul.f32 %v12887_v10, %v12806_v35  ;;  %v3762_v11 = vsel %vm12901_vm7, %v12749_v43, %v3758_v28 }
 0x594   : > { %v12895_v44 = vpop.eup %7481  ;;  %7493 = vtanh.f32 %v3773_v18  ;;  %v3850_v23 = vand.u32 2147483647, %v12794_v37  ;;  %v12922_v19 = vsel %vm12817_vm13, %v12789_v55, %v3732_v63  ;;  %v12926_v24 = vsel %vm12821_vm0, %v3751_v3, %v3747_v8 }
 0x595   : > { %v12909_v49 = vpop.eup %7483  ;;  %7495 = vtanh.f32 %v3774_v33  ;;  %v3844_v18 = vmul.f32 %v12851_v58, %v3843_v9  ;;  %v3859_v33 = vmul.f32 %v12856_v38, %v3858_v17  ;;  %v3873_v39 = vsub.f32 1.0, %v3872_v54 }
 0x596   : > { %v12917_v5 = vpop.eup %7485  ;;  %7497 = vtanh.f32 %v3775_v27  ;;  %v3887_v28 = vmul.f32 %v12909_v49, %v12812_v30  ;;  %v12936_v55 = vsel %vm12846_vm14, %v3766_v53, %v3762_v11  ;;  %vm3846_vm5 = vweird.f32 %v12794_v37 }
 0x597   : > { %v7488_v43 = vpop.eup %7487  ;;  %7499 = vtanh.f32 %v3776_v16  ;;  %v3852_v3 = vand.u32 2147483648, %v12794_v37  ;;  %vm12943_vm10 = vcmp.eq.f32.partialorder %v3850_v23, 8.507059e+37  ;;  %vm3861_vm12 = vweird.f32 %v12802_v60 }
 0x598   : > { %v12932_v12 = vpop.eup %7489  ;;  %7501 = vrcp.f32 %v12905_v36  ;;  %v3865_v27 = vand.u32 2147483647, %v12802_v60  ;;  %v12952_v52 = vadd.f32 1.0, %v7488_v43  ;;  %v3845_v57 = vadd.f32 %v12851_v58, %v3844_v18 }
 0x599   : > { %v12941_v13 = vpop.eup %7491  ;;  %7503 = vrcp.f32 %v12914_v48  ;;  %vm3847_vm13 = vweird.f32 %v12851_v58  ;;  %vm3862_vm0 = vweird.f32 %v12856_v38  ;;  %v3860_v16 = vadd.f32 %v12856_v38, %v3859_v33 }
 0x59a   : > { %v12950_v53 = vpop.eup %7493  ;;  %v3874_v6 = vmul.f32 %v12887_v10, %v3873_v39  ;;  %v3888_v63 = vsub.f32 1.0, %v3887_v28  ;;  %v3902_v8 = vmul.f32 %v12932_v12, %v12839_v62  ;;  %v3853_v4 = vor.u32 1.1754944e-38, %v3852_v3  ;;  %vm12972_vm6 = vmor %vm3846_vm5, %vm3847_vm13 }
 0x59b   : > { %v12957_v42 = vpop.eup %7495  ;;  %v3867_v17 = vand.u32 2147483648, %v12802_v60  ;;  %v3882_v54 = vand.u32 2147483648, %v12806_v35  ;;  %v3897_v11 = vand.u32 2147483648, %v12812_v30  ;;  %vm12976_vm9 = vcmp.eq.f32.partialorder %v3865_v27, 8.507059e+37  ;;  %vm12992_vm8 = vmor %vm3861_vm12, %vm3862_vm0 }
 0x59c   : > { %16887 = vst [vmem:[#allocation50_spill] sm:$0xff] %v12957_v42  ;;  %v12963_v9 = vpop.eup %7497  ;;  %vm3876_vm14 = vweird.f32 %v12806_v35  ;;  %v3880_v33 = vand.u32 2147483647, %v12806_v35  ;;  %v3912_v39 = vand.u32 2147483648, %v12839_v62  ;;  %v3849_v37 = vsel %vm12972_vm6, %v12851_v58, %v3845_v57 }
 0x59d   : > { %16888 = vst [vmem:[#allocation52_spill] sm:$0xff] %v12963_v9  ;;  %v12968_v23 = vpop.eup %7499  ;;  %vm3877_vm15 = vweird.f32 %v12887_v10  ;;  %v3927_v27 = vand.u32 2147483648, %v12905_v36  ;;  %7505 = vrcp.f32 %v12952_v52  ;;  %v3864_v58 = vsel %vm12992_vm8, %v12856_v38, %v3860_v16 }
 0x59e   : > { %16889 = vst [vmem:[#allocation54_spill] sm:$0xff] %v12968_v23  ;;  %v12983_v28 = vpop.eup %7501  ;;  %v13005_v57 = vadd.f32 %v12887_v10, %v3874_v6  ;;  %v3889_v60 = vmul.f32 %v12909_v49, %v3888_v63  ;;  %v3903_v18 = vsub.f32 1.0, %v3902_v8  ;;  %v3868_v1 = vor.u32 1.1754944e-38, %v3867_v17  ;;  %vm13030_vm4 = vmor %vm3876_vm14, %vm3877_vm15 }
 0x59f   : > { %v12999_v7 = vpop.eup %7503  ;;  %v3883_v23 = vor.u32 1.1754944e-38, %v3882_v54  ;;  %v3895_v25 = vand.u32 2147483647, %v12812_v30  ;;  %v13009_v9 = vor.u32 1.1754944e-38, %v3897_v11  ;;  %v3910_v22 = vand.u32 2147483647, %v12839_v62 }
 0x5a0   : > { %v13012_v42 = vor.u32 1.1754944e-38, %v3912_v39  ;;  %v3917_v3 = vmul.f32 %v12983_v28, %v12905_v36  ;;  %v3932_v38 = vmul.f32 %v12999_v7, %v12914_v48  ;;  %v13020_v16 = vsel %vm12943_vm10, %v3853_v4, %v3849_v37 }
 0x5a1   : > { %v13024_v6 = vsel %vm12976_vm9, %v3868_v1, %v3864_v58  ;;  %vm3892_vm7 = vweird.f32 %v12909_v49  ;;  %v3925_v8 = vand.u32 2147483647, %v12905_v36  ;;  %v3879_v15 = vsel %vm13030_vm4, %v12887_v10, %v13005_v57 }
 0x5a2   : > { %vm13040_vm5 = vcmp.eq.f32.partialorder %v3880_v33, 8.507059e+37  ;;  %v13045_v4 = vadd.f32 %v12909_v49, %v3889_v60  ;;  %vm3891_vm10 = vweird.f32 %v12812_v30  ;;  %v3904_v35 = vmul.f32 %v12932_v12, %v3903_v18 }
 0x5a3   : > { %v13049_v17 = vor.u32 1.1754944e-38, %v3927_v27  ;;  %v13051_v54 = vpop.eup %7505  ;;  %vm3907_vm12 = vweird.f32 %v12932_v12  ;;  %v3940_v11 = vand.u32 2147483647, %v12914_v48  ;;  %v3961_v10 = vmul.f32 %v12686_v61, %v12128_v14  ;;  %vm13124_vm15 = vmor %vm3891_vm10, %vm3892_vm7 }
 0x5a4   : > { %v3962_v43 = vmul.f32 %v12713_v26, %v12130_v41  ;;  %v3963_v33 = vmul.f32 %v12780_v56, %v12132_v20  ;;  %v3918_v39 = vsub.f32 1.0, %v3917_v3  ;;  %vm3922_vm13 = vweird.f32 %v12983_v28 }
 0x5a5   : > { %v3933_v37 = vsub.f32 1.0, %v3932_v38  ;;  %v3947_v27 = vmul.f32 %v13051_v54, %v12952_v52  ;;  %v3964_v58 = vmul.f32 %v12787_v47, %v12139_v50  ;;  %vm3906_vm0 = vweird.f32 %v12839_v62 }
 0x5a6   : > { %v3965_v14 = vmul.f32 %v12873_v2, %v12148_v46  ;;  %v3969_v41 = vmul.f32 %v12560_v29, %v12534_v21  ;;  %v3970_v20 = vmul.f32 %v12895_v44, %v12541_v32  ;;  %v3971_v61 = vmul.f32 %v12917_v5, %v12550_v34  ;;  %v16905_v5 = vld [vmem:[#allocation51_spill] sm:$0xff] }
 0x5a7   : > { %vm3921_vm6 = vweird.f32 %v12905_v36  ;;  %v3948_v26 = vsub.f32 1.0, %v3947_v27  ;;  %v3966_v50 = vmul.f32 %v12922_v19, %v12154_v59  ;;  %v3967_v56 = vmul.f32 %v12926_v24, %v12172_v0  ;;  %v16906_v19 = vld [vmem:[#allocation52_spill] sm:$0xff]  ;;  %v16926_v36 = vld [vmem:[#allocation18_spill] sm:$0xff] }
 0x5a8   : > { %v3972_v46 = vmul.f32 %v12941_v13, %v12554_v40  ;;  %vm13082_vm9 = vcmp.eq.f32.partialorder %v3895_v25, 8.507059e+37  ;;  %vm3936_vm14 = vweird.f32 %v12914_v48  ;;  %v3973_v32 = vmul.f32 %v12950_v53, %v12590_v51  ;;  %v16902_v25 = vld [vmem:[#allocation50_spill] sm:$0xff] }
 0x5a9   : > { %v13089_v34 = vadd.f32 %v3969_v41, %v3961_v10  ;;  %v13091_v29 = vadd.f32 %v3970_v20, %v3962_v43  ;;  %v13093_v59 = vadd.f32 %v3971_v61, %v3963_v33  ;;  %v3919_v0 = vmul.f32 %v12983_v28, %v3918_v39  ;;  %v16908_v53 = vld [vmem:[#allocation54_spill] sm:$0xff] }
 0x5aa   : > { %v3968_v40 = vmul.f32 %v12936_v55, %v12180_v45  ;;  %v3974_v47 = vmul.f32 %v16902_v25, %v12677_v31  ;;  %v13100_v2 = vadd.f32 %v3972_v46, %v3964_v58  ;;  %vm13102_vm8 = vcmp.eq.f32.partialorder %v3910_v22, 8.507059e+37  ;;  %v16907_v55 = vld [vmem:[#allocation53_spill] sm:$0xff]  ;;  %v16932_v58 = vld [vmem:[#allocation24_spill] sm:$0xff] }
 0x5ab   : > { %v3934_v51 = vmul.f32 %v12999_v7, %v3933_v37  ;;  %v3975_v24 = vmul.f32 %v16906_v19, %v16905_v5  ;;  %v13109_v13 = vadd.f32 %v3973_v32, %v3965_v14  ;;  %7507 = vtanh.f32 %v13089_v34 }
 0x5ac   : > { %v3949_v45 = vmul.f32 %v13051_v54, %v3948_v26  ;;  %v3976_v31 = vmul.f32 %v16908_v53, %v16907_v55  ;;  %v13115_v57 = vadd.f32 %v3974_v47, %v3966_v50  ;;  %7509 = vtanh.f32 %v13091_v29 }
 0x5ad   : > { %v3884_v22 = vsel %vm13040_vm5, %v3883_v23, %v3879_v15  ;;  %v3905_v18 = vadd.f32 %v12932_v12, %v3904_v35  ;;  %vm13129_vm4 = vcmp.eq.f32.partialorder %v3925_v8, 8.507059e+37  ;;  %v13133_v38 = vadd.f32 %v3975_v24, %v3967_v56  ;;  %vm13152_vm5 = vmor %vm3906_vm0, %vm3907_vm12 }
 0x5ae   : > { %7511 = vtanh.f32 %v13093_v59  ;;  %v3894_v23 = vsel %vm13124_vm15, %v12909_v49, %v13045_v4  ;;  %v3942_v30 = vand.u32 2147483648, %v12914_v48  ;;  %v13141_v63 = vadd.f32 %v3976_v31, %v3968_v40  ;;  %vm13170_vm12 = vmor %vm3921_vm6, %vm3922_vm13 }
 0x5af   : > { %7513 = vtanh.f32 %v13100_v2  ;;  %v3920_v8 = vadd.f32 %v12983_v28, %v3919_v0  ;;  %v3935_v15 = vadd.f32 %v12999_v7, %v3934_v51  ;;  %vm3937_vm7 = vweird.f32 %v12999_v7 }
 0x5b0   : > { %7515 = vtanh.f32 %v13109_v13  ;;  %vm13156_vm10 = vcmp.eq.f32.partialorder %v3940_v11, 8.507059e+37  ;;  %v3950_v4 = vadd.f32 %v13051_v54, %v3949_v45  ;;  %vm3952_vm15 = vweird.f32 %v13051_v54  ;;  %vm13184_vm0 = vmor %vm3936_vm14, %vm3937_vm7 }
 0x5b1   : > { %7517 = vtanh.f32 %v13115_v57  ;;  %v7508_v35 = vpop.eup %7507  ;;  %v3909_v10 = vsel %vm13152_vm5, %v12932_v12, %v3905_v18  ;;  %v3955_v11 = vand.u32 2147483647, %v12952_v52  ;;  %v3957_v43 = vand.u32 2147483648, %v12952_v52 }
 0x5b2   : > { %7519 = vtanh.f32 %v13133_v38  ;;  %v7510_v33 = vpop.eup %7509  ;;  %v3899_v39 = vsel %vm13082_vm9, %v13009_v9, %v3894_v23  ;;  %vm3951_vm13 = vweird.f32 %v12952_v52  ;;  %v3993_v12 = vmul.f32 %v7508_v35, %v13020_v16 }
 0x5b3   : > { %7521 = vtanh.f32 %v13141_v63  ;;  %v3924_v27 = vsel %vm13170_vm12, %v12983_v28, %v3920_v8  ;;  %v3939_v9 = vsel %vm13184_vm0, %v12999_v7, %v3935_v15  ;;  %v3943_v48 = vor.u32 1.1754944e-38, %v3942_v30  ;;  %vm13199_vm6 = vmor %vm3951_vm13, %vm3952_vm15 }
 0x5b4   : > { %v7512_v37 = vpop.eup %7511  ;;  %v3994_v52 = vmul.f32 %v7510_v33, %v13024_v6  ;;  %v3914_v16 = vsel %vm13102_vm8, %v13012_v42, %v3909_v10  ;;  %v3954_v28 = vsel %vm13199_vm6, %v13051_v54, %v3950_v4  ;;  %v4017_v7 = vpack.c.bf16 %v3993_v12, %v3993_v12  ;;  %v16927_v12 = vld [vmem:[#allocation19_spill] sm:$0xff] }
 0x5b5   : > { %v7514_v14 = vpop.eup %7513  ;;  %v3995_v41 = vmul.f32 %v7512_v37, %v3884_v22  ;;  %vm3956_vm9 = vcmp.eq.f32.partialorder %v3955_v11, 8.507059e+37  ;;  %v3958_v61 = vor.u32 1.1754944e-38, %v3957_v43  ;;  %v3929_v6 = vsel %vm13129_vm4, %v13049_v17, %v3924_v27  ;;  %v16928_v37 = vld [vmem:[#allocation20_spill] sm:$0xff]  ;;  %v16929_v27 = vld [vmem:[#allocation21_spill] sm:$0xff] }
 0x5b6   : > { %v7516_v20 = vpop.eup %7515  ;;  %v3996_v26 = vmul.f32 %v7514_v14, %v3899_v39  ;;  %v4018_v50 = vpack.c.bf16 %v3994_v52, %v3994_v52  ;;  %v3944_v46 = vsel %vm13156_vm10, %v3943_v48, %v3939_v9  ;;  %v4033_v5 = vunpack.c.l.b16 %v4017_v7  ;;  %v16930_v9 = vld [vmem:[#allocation22_spill] sm:$0xff]  ;;  %v16931_v48 = vld [vmem:[#allocation23_spill] sm:$0xff]  ;;  %v16933_v52 = vld [vmem:[#allocation25_spill] sm:$0xff] }
 0x5b7   : > { %v7518_v56 = vpop.eup %7517  ;;  %v3997_v42 = vmul.f32 %v7516_v20, %v3914_v16  ;;  %v4019_v21 = vpack.c.bf16 %v3995_v41, %v3995_v41  ;;  %v3959_v0 = vsel %vm3956_vm9, %v3958_v61, %v3954_v28  ;;  %vm16923_vm14 = vcmask 1044484   ;;  %v16934_v14 = vld [vmem:[#allocation26_spill] sm:$0xff]  ;;  %v16935_v16 = vld [vmem:[#allocation27_spill] sm:$0xff]  ;;  %v16936_v28 = vld [vmem:[#allocation28_spill] sm:$0xff] }
 0x5b8   : > { %v7520_v32 = vpop.eup %7519  ;;  %v3998_v54 = vmul.f32 %v7518_v56, %v3929_v6  ;;  %v4020_v40 = vpack.c.bf16 %v3996_v26, %v3996_v26  ;;  %v4034_v25 = vunpack.c.l.b16 %v4018_v50  ;;  %vm16924_vm8 = vcmask 1045509   ;;  %v16937_v41 = vld [vmem:[#allocation29_spill] sm:$0xff]  ;;  %v16938_v7 = vld [vmem:[#allocation30_spill] sm:$0xff]  ;;  %v16939_v20 = vld [vmem:[#allocation31_spill] sm:$0xff] }
 0x5b9   : > { %v7522_v47 = vpop.eup %7521  ;;  %v3999_v44 = vmul.f32 %v7520_v32, %v3944_v46  ;;  %v4021_v51 = vpack.c.bf16 %v3997_v42, %v3997_v42  ;;  %v4035_v19 = vunpack.c.l.b16 %v4019_v21  ;;  %vm16925_vm4 = vcmask 1046534   ;;  %v16940_v61 = vld [vmem:[#allocation32_spill] sm:$0xff]  ;;  %v16941_v26 = vld [vmem:[#allocation33_spill] sm:$0xff]  ;;  %v16942_v50 = vld [vmem:[#allocation34_spill] sm:$0xff] }
 0x5ba   : > { %v4000_v24 = vmul.f32 %v7522_v47, %v3959_v0  ;;  %v4022_v45 = vpack.c.bf16 %v3998_v54, %v3998_v54  ;;  %v4036_v55 = vunpack.c.l.b16 %v4020_v40  ;;  %v4041_v53 = vrot.slane %v4034_v25, 7  ;;  %v16943_v56 = vld [vmem:[#allocation35_spill] sm:$0xff]  ;;  %v16944_v6 = vld [vmem:[#allocation36_spill] sm:$0xff]  ;;  %v16945_v46 = vld [vmem:[#allocation37_spill] sm:$0xff] }
 0x5bb   : > { %v4023_v17 = vpack.c.bf16 %v3999_v44, %v3999_v44  ;;  %v4037_v31 = vunpack.c.l.b16 %v4021_v51  ;;  %v4043_v22 = vrot.slane %v4035_v19, 6  ;;  %v16946_v42 = vld [vmem:[#allocation38_spill] sm:$0xff]  ;;  %v16947_v21 = vld [vmem:[#allocation39_spill] sm:$0xff]  ;;  %v16948_v32 = vld [vmem:[#allocation40_spill] sm:$0xff]  ;;  %vm16958_vm7 = vcmask 1040384  }
 0x5bc   : > { %v4024_v60 = vpack.c.bf16 %v4000_v24, %v4000_v24  ;;  %v4038_v18 = vunpack.c.l.b16 %v4022_v45  ;;  %v4042_v3 = vsel %vm480_vm2, %v4041_v53, %v4033_v5  ;;  %v4045_v23 = vrot.slane %v4036_v55, 5  ;;  %v16949_v0 = vld [vmem:[#allocation41_spill] sm:$0xff]  ;;  %v16950_v54 = vld [vmem:[#allocation42_spill] sm:$0xff]  ;;  %v16951_v40 = vld [vmem:[#allocation43_spill] sm:$0xff] }
 0x5bd   : > { %v4039_v30 = vunpack.c.l.b16 %v4023_v17  ;;  %v4044_v8 = vsel %vm476_vm1, %v4043_v22, %v4042_v3  ;;  %v4047_v15 = vrot.slane %v4037_v31, 4  ;;  %v16952_v25 = vld [vmem:[#allocation44_spill] sm:$0xff]  ;;  %v16953_v47 = vld [vmem:[#allocation45_spill] sm:$0xff]  ;;  %v16954_v44 = vld [vmem:[#allocation46_spill] sm:$0xff]  ;;  %vm16962_vm12 = vcmask 1046528  }
 0x5be   : > { %v4040_v49 = vunpack.c.l.b16 %v4024_v60  ;;  %v4046_v1 = vsel %vm482_vm3, %v4045_v23, %v4044_v8  ;;  %v4049_v4 = vrot.slane %v4038_v18, 3  ;;  %v16955_v51 = vld [vmem:[#allocation47_spill] sm:$0xff]  ;;  %v16956_v5 = vld [vmem:[#allocation48_spill] sm:$0xff]  ;;  %v16957_v19 = vld [vmem:[#allocation49_spill] sm:$0xff]  ;;  %vm16965_vm6 = vcmask 1041408  }
 0x5bf   : > { %v4048_v35 = vsel %vm16923_vm14, %v4047_v15, %v4046_v1  ;;  %v4051_v10 = vrot.slane %v4039_v30, 2  ;;  %vm16959_vm5 = vmmov %vm16923_vm14  ;;  %vm16966_vm9 = vcmask 1042433   ;;  %vm16967_vm14 = vcmask 1043458  }
 0x5c0   : > { %v4050_v62 = vsel %vm16924_vm8, %v4049_v4, %v4048_v35  ;;  %v4053_v11 = vrot.slane %v4040_v49, 1  ;;  %vm16960_vm10 = vmmov %vm16924_vm8 }
 0x5c1   : > { %v4052_v43 = vsel %vm16925_vm4, %v4051_v10, %v4050_v62  ;;  %vm16961_vm15 = vmmov %vm16925_vm4 }
 0x5c2   : > { %v4054_v33 = vsel %vm1165_vm11, %v4053_v11, %v4052_v43  ;;  %vm16963_vm0 = vmmov %vm16959_vm5 }
 0x5c3   : > { %v4055_v39 = vpack.c.b16 %v4054_v33, %v4054_v33  ;;  %vm16964_vm13 = vmmov %vm16924_vm8  ;;  %vm16968_vm8 = vcmask 1044483  }
 0x5c5   : > { %4065 = vmatmul.bf16.vlgmr.msrb.gmra.mxu0 %v4055_v39  ;;  %4078 = vmatmul.bf16.vlgmr.msrb.gmra.mxu1 %v4055_v39 }
 0x5c6   : > { %4091 = vmatmul.bf16.vlgmr.msrb.gmra.mxu2 %v4055_v39  ;;  %4104 = vmatmul.bf16.vlgmr.msrb.gmra.mxu3 %v4055_v39 }
 0x5c7   : > { %5501 = vmatpush.bf16.msrb.mxu0 %v16926_v36  ;;  %5514 = vmatpush.bf16.msrb.mxu1 %v16927_v12  ;;  %v6631_v12 = vld [vmem:[%s8250_s21 + $0x5] ss:$8 sm:$0xf] }
 0x5c8   : > { %5527 = vmatpush.bf16.msrb.mxu2 %v16928_v37  ;;  %5540 = vmatpush.bf16.msrb.mxu3 %v16929_v27 }
 0x5cb   : > { %5502 = vmatpush.bf16.msrb.mxu0 %v16930_v9  ;;  %5515 = vmatpush.bf16.msrb.mxu1 %v16931_v48  ;;  %v6632_v48 = vld [vmem:[%s8250_s21 + $0x25] ss:$8 sm:$0xf] }
 0x5cc   : > { %5528 = vmatpush.bf16.msrb.mxu2 %v16932_v58  ;;  %5541 = vmatpush.bf16.msrb.mxu3 %v16933_v52 }
 0x5cf   : > { %5503 = vmatpush.bf16.msrb.mxu0 %v16934_v14  ;;  %5516 = vmatpush.bf16.msrb.mxu1 %v16935_v16 }
 0x5d0   : > { %5529 = vmatpush.bf16.msrb.mxu2 %v16936_v28  ;;  %5542 = vmatpush.bf16.msrb.mxu3 %v16937_v41  ;;  %v6633_v28 = vld [vmem:[%s8250_s21 + $0x45] ss:$8 sm:$0xf] }
 0x5d3   : > { %5504 = vmatpush.bf16.msrb.mxu0 %v16938_v7  ;;  %5517 = vmatpush.bf16.msrb.mxu1 %v16939_v20 }
 0x5d4   : > { %5530 = vmatpush.bf16.msrb.mxu2 %v16940_v61  ;;  %5543 = vmatpush.bf16.msrb.mxu3 %v16941_v26  ;;  %v6634_v26 = vld [vmem:[%s8250_s21 + $0x65] ss:$8 sm:$0xf] }
 0x5d7   : > { %5505 = vmatpush.bf16.msrb.mxu0 %v16942_v50  ;;  %5518 = vmatpush.bf16.msrb.mxu1 %v16943_v56 }
 0x5d8   : > { %5531 = vmatpush.bf16.msrb.mxu2 %v16944_v6  ;;  %5544 = vmatpush.bf16.msrb.mxu3 %v16945_v46 }
 0x5db   : > { %5506 = vmatpush.bf16.msrb.mxu0 %v16946_v42  ;;  %5519 = vmatpush.bf16.msrb.mxu1 %v16947_v21 }
 0x5dc   : > { %5532 = vmatpush.bf16.msrb.mxu2 %v16948_v32  ;;  %5545 = vmatpush.bf16.msrb.mxu3 %v16949_v0 }
 0x5df   : > { %5507 = vmatpush.bf16.msrb.mxu0 %v16950_v54  ;;  %5520 = vmatpush.bf16.msrb.mxu1 %v16951_v40  ;;  %v6635_v40 = vld [vmem:[%s8250_s21 + $0x85] ss:$8 sm:$0xf] }
 0x5e0   : > { %5533 = vmatpush.bf16.msrb.mxu2 %v16952_v25  ;;  %5546 = vmatpush.bf16.msrb.mxu3 %v16953_v47 }
 0x5e3   : > { %5508 = vmatpush.bf16.msrb.mxu0 %v16954_v44  ;;  %5521 = vmatpush.bf16.msrb.mxu1 %v16955_v51 }
 0x5e4   : > { %5534 = vmatpush.bf16.msrb.mxu2 %v16956_v5  ;;  %5547 = vmatpush.bf16.msrb.mxu3 %v16957_v19 }
 0x642   : > { %v4066_v24 = vpop.f32.mrf.mxu0  ;;  %v4079_v45 = vpop.f32.mrf.mxu1 }
 0x643   : > { %v4113_v55 = vrot.slane %v4079_v45, 7  ;;  %v6636_v45 = vld [vmem:[%s8250_s21 + $0xa5] ss:$8 sm:$0xf] }
 0x645   : > { %v4116_v53 = vsel %vm16958_vm7, %v4066_v24, %v4113_v55  ;;  %v4119_v17 = vsel %vm480_vm2, %v4066_v24, %v4113_v55  ;;  %v4123_v31 = vsel %vm476_vm1, %v4066_v24, %v4113_v55  ;;  %v4127_v22 = vsel %vm482_vm3, %v4066_v24, %v4113_v55 }
 0x646   : > { %v4131_v60 = vsel %vm16959_vm5, %v4066_v24, %v4113_v55  ;;  %v4135_v18 = vsel %vm16960_vm10, %v4066_v24, %v4113_v55  ;;  %v4139_v3 = vsel %vm16961_vm15, %v4066_v24, %v4113_v55  ;;  %v4143_v23 = vsel %vm16962_vm12, %v4113_v55, %v4066_v24  ;;  %vm16970_vm5 = vmmov %vm16962_vm12 }
 0x647   : > { %vm16969_vm7 = vcmask 1045508   ;;  %vm16971_vm10 = vcmask 1040384   ;;  %vm16972_vm15 = vcmask 1046533   ;;  %vm16973_vm12 = vcmask 1045504  }
 0x649   : > { %v4092_v30 = vpop.f32.mrf.mxu2  ;;  %v4105_v8 = vpop.f32.mrf.mxu3 }
 0x64a   : > { %v4114_v15 = vrot.slane %v4092_v30, 6  ;;  %v4115_v49 = vrot.slane %v4105_v8, 5  ;;  %v4068_v1 = vpop.f32.mrf.mxu0  ;;  %v4081_v4 = vpop.f32.mrf.mxu1 }
 0x64c   : > { %v4117_v35 = vsel %vm476_vm1, %v4114_v15, %v4115_v49  ;;  %v4120_v10 = vsel %vm482_vm3, %v4114_v15, %v4115_v49  ;;  %v4124_v62 = vsel %vm16963_vm0, %v4114_v15, %v4115_v49  ;;  %v4128_v11 = vsel %vm16964_vm13, %v4114_v15, %v4115_v49 }
 0x64d   : > { %v4118_v43 = vsel %vm16965_vm6, %v4116_v53, %v4117_v35  ;;  %v4121_v33 = vsel %vm16966_vm9, %v4119_v17, %v4120_v10  ;;  %v4125_v39 = vsel %vm16967_vm14, %v4123_v31, %v4124_v62  ;;  %v4129_v36 = vsel %vm16968_vm8, %v4127_v22, %v4128_v11  ;;  %v6637_v17 = vld [vmem:[%s8250_s21 + $0xc5] ss:$8 sm:$0xf] }
 0x64e   : > { %v4122_v37 = vrot.slane %v4121_v33, 1  ;;  %v4126_v27 = vrot.slane %v4125_v39, 2  ;;  %v4132_v9 = vsel %vm16925_vm4, %v4114_v15, %v4115_v49  ;;  %v4136_v52 = vsel %vm16970_vm5, %v4115_v49, %v4114_v15 }
 0x64f   : > { %v4133_v58 = vsel %vm16969_vm7, %v4131_v60, %v4132_v9  ;;  %v4140_v14 = vsel %vm16971_vm10, %v4114_v15, %v4115_v49  ;;  %v4144_v16 = vsel %vm480_vm2, %v4114_v15, %v4115_v49  ;;  %v4130_v41 = vrot.slane %v4129_v36, 3  ;;  %v6638_v60 = vld [vmem:[%s8250_s21 + $0xe5] ss:$8 sm:$0xf] }
 0x650   : > { %v4137_v7 = vsel %vm16972_vm15, %v4135_v18, %v4136_v52  ;;  %v4141_v20 = vsel %vm16973_vm12, %v4140_v14, %v4139_v3  ;;  %vm16974_vm0 = vcmask 1046529   ;;  %v13282_v50 = vadd.f32 %v6631_v12, %v4118_v43 }
 0x651   : > { %v4145_v61 = vsel %vm16974_vm0, %v4144_v16, %v4143_v23  ;;  %v4094_v56 = vpop.f32.mrf.mxu2  ;;  %v4107_v6 = vpop.f32.mrf.mxu3  ;;  %v13284_v46 = vadd.f32 %v6632_v48, %v4122_v37  ;;  %v13286_v42 = vadd.f32 %v6633_v28, %v4126_v27  ;;  %v13288_v21 = vadd.f32 %v6634_v26, %v4130_v41 }
 0x652   : > { %v6639_v32 = vmul.f32 -1.442695, %v13282_v50  ;;  %v4134_v0 = vrot.slane %v4133_v58, 4  ;;  %v4138_v19 = vrot.slane %v4137_v7, 5  ;;  %v4142_v55 = vrot.slane %v4141_v20, 6 }
 0x653   : > { %v6640_v54 = vmul.f32 -1.442695, %v13284_v46  ;;  %v6641_v25 = vmul.f32 -1.442695, %v13286_v42  ;;  %v6642_v47 = vmul.f32 -1.442695, %v13288_v21 }
 0x654   : > { %7523 = vpow2.f32 %v6639_v32  ;;  %v13295_v44 = vadd.f32 %v6635_v40, %v4134_v0  ;;  %v4146_v31 = vrot.slane %v4145_v61, 7  ;;  %v4323_v3 = vrot.slane %v13282_v50, 1 }
 0x655   : > { %7525 = vpow2.f32 %v6640_v54  ;;  %v13304_v23 = vadd.f32 %v6636_v45, %v4138_v19  ;;  %v13308_v8 = vadd.f32 %v6637_v17, %v4142_v55  ;;  %v4324_v11 = vrot.slane %v13284_v46, 1 }
 0x656   : > { %7527 = vpow2.f32 %v6641_v25  ;;  %v6643_v51 = vmul.f32 -1.442695, %v13295_v44  ;;  %v13312_v49 = vadd.f32 %v6638_v60, %v4146_v31  ;;  %v6647_v4 = vmul.f32 -1.442695, %v4323_v3 }
 0x657   : > { %7529 = vpow2.f32 %v6642_v47  ;;  %v6644_v35 = vmul.f32 -1.442695, %v13304_v23  ;;  %v6645_v62 = vmul.f32 -1.442695, %v13308_v8  ;;  %v4325_v33 = vrot.slane %v13286_v42, 1 }
 0x658   : > { %7531 = vpow2.f32 %v6643_v51  ;;  %v6646_v43 = vmul.f32 -1.442695, %v13312_v49  ;;  %v4326_v36 = vrot.slane %v13288_v21, 1  ;;  %v4327_v37 = vrot.slane %v13295_v44, 1 }
 0x659   : > { %v6648_v27 = vmul.f32 -1.442695, %v4324_v11  ;;  %v4328_v48 = vrot.slane %v13304_v23, 1  ;;  %v6649_v52 = vmul.f32 -1.442695, %v4325_v33  ;;  %v4329_v16 = vrot.slane %v13308_v8, 1 }
 0x65a   : > { %v7524_v5 = vpop.eup %7523  ;;  %v6650_v28 = vmul.f32 -1.442695, %v4326_v36  ;;  %v4515_v41 = vrot.slane %v13282_v50, 3  ;;  %v6651_v20 = vmul.f32 -1.442695, %v4327_v37  ;;  %v4516_v61 = vrot.slane %v13284_v46, 3 }
 0x65b   : > { %v7526_v24 = vpop.eup %7525  ;;  %v13301_v18 = vadd.f32 1.0, %v7524_v5  ;;  %v13344_v6 = vmul.f32 -1.442695, %v4328_v48  ;;  %v4491_v32 = vrot.slane %v13282_v50, 2  ;;  %v4492_v0 = vrot.slane %v13284_v46, 2 }
 0x65c   : > { %v7528_v53 = vpop.eup %7527  ;;  %v13306_v30 = vadd.f32 1.0, %v7526_v24  ;;  %v4330_v51 = vrot.slane %v13312_v49, 1  ;;  %v13357_v24 = vmul.f32 -1.442695, %v4515_v41  ;;  %v13360_v55 = vmul.f32 -1.442695, %v4329_v16 }
 0x65d   : > { %v7530_v22 = vpop.eup %7529  ;;  %v13310_v15 = vadd.f32 1.0, %v7528_v53  ;;  %7533 = vrcp.f32 %v13301_v18  ;;  %v4206_v45 = vand.u32 2147483648, %v13301_v18  ;;  %v13362_v53 = vmul.f32 -1.442695, %v4516_v61 }
 0x65e   : > { %v13314_v1 = vadd.f32 1.0, %v7530_v22  ;;  %7535 = vrcp.f32 %v13306_v30  ;;  %v7532_v10 = vpop.eup %7531  ;;  %vm4200_vm13 = vweird.f32 %v13301_v18  ;;  %v4204_v3 = vand.u32 2147483647, %v13301_v18 }
 0x65f   : > { %7537 = vrcp.f32 %v13310_v15  ;;  %v13325_v39 = vadd.f32 1.0, %v7532_v10  ;;  %v4207_v33 = vor.u32 1.1754944e-38, %v4206_v45  ;;  %vm4215_vm6 = vweird.f32 %v13306_v30 }
 0x660   : > { %7539 = vrcp.f32 %v13314_v1  ;;  %v4219_v36 = vand.u32 2147483647, %v13306_v30  ;;  %vm4230_vm9 = vweird.f32 %v13310_v15  ;;  %vm13387_vm14 = vcmp.eq.f32.partialorder %v4204_v3, 8.507059e+37 }
 0x661   : > { %7541 = vpow2.f32 %v6647_v4  ;;  %v4234_v61 = vand.u32 2147483647, %v13310_v15  ;;  %vm4245_vm7 = vweird.f32 %v13314_v1  ;;  %v4495_v46 = vrot.slane %v13295_v44, 2 }
 0x662   : > { %7543 = vpow2.f32 %v6644_v35  ;;  %v4221_v35 = vand.u32 2147483648, %v13306_v30  ;;  %vm13398_vm4 = vcmp.eq.f32.partialorder %v4219_v36, 8.507059e+37 }
 0x663   : > { %v13328_v12 = vpop.eup %7533  ;;  %7545 = vpow2.f32 %v6645_v62 }
 0x664   : > { %v13331_v9 = vpop.eup %7535  ;;  %7547 = vpow2.f32 %v6646_v43  ;;  %v4196_v26 = vmul.f32 %v13328_v12, %v13301_v18  ;;  %vm4201_vm8 = vweird.f32 %v13328_v12 }
 0x665   : > { %v13334_v58 = vpop.eup %7537  ;;  %7549 = vrcp.f32 %v13325_v39  ;;  %v4211_v54 = vmul.f32 %v13331_v9, %v13306_v30  ;;  %vm4216_vm5 = vweird.f32 %v13331_v9  ;;  %vm13423_vm15 = vmor %vm4200_vm13, %vm4201_vm8  ;;  %vm13441_vm13 = vcmp.eq.f32.partialorder %v4234_v61, 8.507059e+37 }
 0x666   : > { %v13336_v14 = vpop.eup %7539  ;;  %7551 = vpow2.f32 %v6648_v27  ;;  %v4226_v25 = vmul.f32 %v13334_v58, %v13310_v15  ;;  %v4197_v31 = vsub.f32 1.0, %v4196_v26  ;;  %vm4231_vm10 = vweird.f32 %v13334_v58  ;;  %vm13437_vm0 = vmor %vm4215_vm6, %vm4216_vm5 }
 0x667   : > { %v7542_v7 = vpop.eup %7541  ;;  %7553 = vpow2.f32 %v6649_v52  ;;  %v4241_v47 = vmul.f32 %v13336_v14, %v13314_v1  ;;  %v4212_v4 = vsub.f32 1.0, %v4211_v54  ;;  %vm4246_vm12 = vweird.f32 %v13336_v14  ;;  %vm13457_vm6 = vmor %vm4230_vm9, %vm4231_vm10 }
 0x668   : > { %v7544_v56 = vpop.eup %7543  ;;  %v13355_v19 = vadd.f32 1.0, %v7542_v7  ;;  %7555 = vpow2.f32 %v6650_v28  ;;  %v4227_v11 = vsub.f32 1.0, %v4226_v25  ;;  %v4198_v27 = vmul.f32 %v13328_v12, %v4197_v31  ;;  %vm13474_vm9 = vmor %vm4245_vm7, %vm4246_vm12 }
 0x669   : > { %v7546_v40 = vpop.eup %7545  ;;  %v13364_v17 = vadd.f32 1.0, %v7544_v56  ;;  %7557 = vpow2.f32 %v6651_v20  ;;  %v4242_v43 = vsub.f32 1.0, %v4241_v47  ;;  %v4213_v16 = vmul.f32 %v13331_v9, %v4212_v4 }
 0x66a   : > { %v7548_v5 = vpop.eup %7547  ;;  %v13368_v60 = vadd.f32 1.0, %v7546_v40  ;;  %7559 = vrcp.f32 %v13355_v19  ;;  %v4222_v28 = vor.u32 1.1754944e-38, %v4221_v35  ;;  %v4228_v20 = vmul.f32 %v13334_v58, %v4227_v11 }
 0x66b   : > { %v13366_v22 = vpop.eup %7549  ;;  %v13373_v62 = vadd.f32 1.0, %v7548_v5  ;;  %7561 = vrcp.f32 %v13364_v17  ;;  %v4243_v26 = vmul.f32 %v13336_v14, %v4242_v43  ;;  %v4236_v40 = vand.u32 2147483648, %v13310_v15 }
 0x66c   : > { %v7552_v10 = vpop.eup %7551  ;;  %v4256_v48 = vmul.f32 %v13366_v22, %v13325_v39  ;;  %7563 = vrcp.f32 %v13368_v60  ;;  %v4199_v47 = vadd.f32 %v13328_v12, %v4198_v27  ;;  %v4249_v5 = vand.u32 2147483647, %v13314_v1 }
 0x66d   : > { %v7554_v37 = vpop.eup %7553  ;;  %v13383_v52 = vadd.f32 1.0, %v7552_v10  ;;  %7565 = vrcp.f32 %v13373_v62  ;;  %v4214_v4 = vadd.f32 %v13331_v9, %v4213_v16  ;;  %v4229_v11 = vadd.f32 %v13334_v58, %v4228_v20 }
 0x66e   : > { %v7556_v41 = vpop.eup %7555  ;;  %v13395_v56 = vadd.f32 1.0, %v7554_v37  ;;  %v4257_v45 = vsub.f32 1.0, %v4256_v48  ;;  %v4244_v43 = vadd.f32 %v13336_v14, %v4243_v26  ;;  %v4237_v37 = vor.u32 1.1754944e-38, %v4236_v40 }
 0x66f   : > { %v13404_v25 = vpop.eup %7557  ;;  %v13411_v3 = vadd.f32 1.0, %v7556_v41  ;;  %7567 = vrcp.f32 %v13383_v52  ;;  %v4251_v27 = vand.u32 2147483648, %v13314_v1  ;;  %v4203_v30 = vsel %vm13423_vm15, %v13328_v12, %v4199_v47 }
 0x670   : > { %v13409_v31 = vpop.eup %7559  ;;  %7569 = vpow2.f32 %v13344_v6  ;;  %vm13461_vm8 = vcmp.eq.f32.partialorder %v4249_v5, 8.507059e+37  ;;  %v4258_v20 = vmul.f32 %v13366_v22, %v4257_v45  ;;  %v4218_v50 = vsel %vm13437_vm0, %v13331_v9, %v4214_v4 }
 0x671   : > { %v13416_v35 = vpop.eup %7561  ;;  %7571 = vrcp.f32 %v13395_v56  ;;  %v4264_v12 = vand.u32 2147483647, %v13325_v39  ;;  %v4233_v61 = vsel %vm13457_vm6, %v13334_v58, %v4229_v11  ;;  %v4248_v9 = vsel %vm13474_vm9, %v13336_v14, %v4244_v43 }
 0x672   : > { %v13430_v36 = vpop.eup %7563  ;;  %7573 = vtanh.f32 %v4491_v32  ;;  %v4271_v32 = vmul.f32 %v13416_v35, %v13364_v17  ;;  %v4372_v26 = vmul.f32 %v13409_v31, %v13355_v19  ;;  %v13495_v47 = vsel %vm13387_vm14, %v4207_v33, %v4203_v30 }
 0x673   : > { %v13446_v48 = vpop.eup %7565  ;;  %7575 = vrcp.f32 %v13411_v3  ;;  %v4286_v1 = vmul.f32 %v13430_v36, %v13368_v60  ;;  %v4252_v5 = vor.u32 1.1754944e-38, %v4251_v27  ;;  %vm4260_vm7 = vweird.f32 %v13325_v39 }
 0x674   : > { %v4301_v58 = vmul.f32 %v13446_v48, %v13373_v62  ;;  %v13502_v14 = vsel %vm13398_vm4, %v4222_v28, %v4218_v50  ;;  %v4259_v4 = vadd.f32 %v13366_v22, %v4258_v20  ;;  %vm4261_vm5 = vweird.f32 %v13366_v22 }
 0x675   : > { %v13491_v40 = vpop.eup %7567  ;;  %v4266_v10 = vand.u32 2147483648, %v13325_v39  ;;  %v13511_v33 = vsel %vm13441_vm13, %v4237_v37, %v4233_v61  ;;  %v13515_v11 = vsel %vm13461_vm8, %v4252_v5, %v4248_v9  ;;  %vm13517_vm14 = vcmp.eq.f32.partialorder %v4264_v12, 8.507059e+37  ;;  %vm13530_vm4 = vmor %vm4260_vm7, %vm4261_vm5 }
 0x676   : > { %v7570_v45 = vpop.eup %7569  ;;  %v4272_v28 = vsub.f32 1.0, %v4271_v32  ;;  %v4281_v18 = vand.u32 2147483648, %v13364_v17  ;;  %v4287_v27 = vsub.f32 1.0, %v4286_v1  ;;  %v4373_v30 = vsub.f32 1.0, %v4372_v26 }
 0x677   : > { %v13507_v7 = vpop.eup %7571  ;;  %v4387_v6 = vmul.f32 %v13491_v40, %v13383_v52  ;;  %v4279_v41 = vand.u32 2147483647, %v13364_v17  ;;  %v4302_v20 = vsub.f32 1.0, %v4301_v58  ;;  %7577 = vpow2.f32 %v13360_v55 }
 0x678   : > { %v13521_v43 = vpop.eup %7573  ;;  %v6654_v50 = vmul.f32 -1.442695, %v4330_v51  ;;  %v4263_v15 = vsel %vm13530_vm4, %v13366_v22, %v4259_v4  ;;  %v4267_v12 = vor.u32 1.1754944e-38, %v4266_v10  ;;  %v4294_v32 = vand.u32 2147483647, %v13368_v60 }
 0x679   : > { %v13526_v37 = vpop.eup %7575  ;;  %v4296_v39 = vand.u32 2147483648, %v13368_v60  ;;  %v4273_v61 = vmul.f32 %v13416_v35, %v4272_v28  ;;  %vm4275_vm10 = vweird.f32 %v13364_v17  ;;  %vm4290_vm15 = vweird.f32 %v13368_v60 }
 0x67a   : > { %v4309_v55 = vand.u32 2147483647, %v13373_v62  ;;  %v4282_v9 = vor.u32 1.1754944e-38, %v4281_v18  ;;  %v4288_v51 = vmul.f32 %v13430_v36, %v4287_v27  ;;  %v4374_v1 = vmul.f32 %v13409_v31, %v4373_v30 }
 0x67b   : > { %v4388_v26 = vsub.f32 1.0, %v4387_v6  ;;  %v13551_v22 = vsel %vm13517_vm14, %v4267_v12, %v4263_v15  ;;  %vm13553_vm12 = vcmp.eq.f32.partialorder %v4279_v41, 8.507059e+37  ;;  %v4303_v58 = vmul.f32 %v13446_v48, %v4302_v20 }
 0x67c   : > { %vm4305_vm0 = vweird.f32 %v13373_v62  ;;  %7579 = vpow2.f32 %v6654_v50  ;;  %vm4276_vm13 = vweird.f32 %v13416_v35  ;;  %vm13560_vm6 = vcmp.eq.f32.partialorder %v4294_v32, 8.507059e+37 }
 0x67d   : > { %v4297_v10 = vor.u32 1.1754944e-38, %v4296_v39  ;;  %v4311_v54 = vand.u32 2147483648, %v13373_v62  ;;  %v13566_v28 = vadd.f32 1.0, %v13404_v25  ;;  %v7578_v18 = vpop.eup %7577  ;;  %v4274_v27 = vadd.f32 %v13416_v35, %v4273_v61  ;;  %vm13586_vm5 = vmor %vm4275_vm10, %vm4276_vm13 }
 0x67e   : > { %vm4291_vm8 = vweird.f32 %v13430_v36  ;;  %vm13570_vm9 = vcmp.eq.f32.partialorder %v4309_v55, 8.507059e+37  ;;  %v13574_v6 = vadd.f32 1.0, %v7570_v45  ;;  %vm4377_vm7 = vweird.f32 %v13409_v31 }
 0x67f   : > { %v4289_v16 = vadd.f32 %v13430_v36, %v4288_v51  ;;  %v4375_v41 = vadd.f32 %v13409_v31, %v4374_v1  ;;  %v4389_v25 = vmul.f32 %v13491_v40, %v4388_v26  ;;  %v4402_v20 = vmul.f32 %v13507_v7, %v13395_v56  ;;  %vm13596_vm4 = vmor %vm4290_vm15, %vm4291_vm8 }
 0x680   : > { %v4304_v45 = vadd.f32 %v13446_v48, %v4303_v58  ;;  %vm4306_vm14 = vweird.f32 %v13446_v48  ;;  %v4380_v15 = vand.u32 2147483647, %v13355_v19  ;;  %v4382_v12 = vand.u32 2147483648, %v13355_v19 }
 0x681   : > { %v4312_v39 = vor.u32 1.1754944e-38, %v4311_v54  ;;  %v13600_v17 = vadd.f32 1.0, %v7578_v18  ;;  %vm4376_vm10 = vweird.f32 %v13355_v19  ;;  %v4417_v61 = vmul.f32 %v13526_v37, %v13411_v3  ;;  %vm13624_vm8 = vmor %vm4305_vm0, %vm4306_vm14 }
 0x682   : > { %v7580_v55 = vpop.eup %7579  ;;  %v4278_v51 = vsel %vm13586_vm5, %v13416_v35, %v4274_v27  ;;  %vm13610_vm13 = vmor %vm4376_vm10, %vm4377_vm7  ;;  %vm4392_vm15 = vweird.f32 %v13491_v40  ;;  %v4395_v1 = vand.u32 2147483647, %v13383_v52  ;;  %7581 = vrcp.f32 %v13566_v28 }
 0x683   : > { %v4293_v19 = vsel %vm13596_vm4, %v13430_v36, %v4289_v16  ;;  %v4379_v26 = vsel %vm13610_vm13, %v13409_v31, %v4375_v41  ;;  %v4390_v58 = vadd.f32 %v13491_v40, %v4389_v25  ;;  %v4403_v54 = vsub.f32 1.0, %v4402_v20 }
 0x684   : > { %v4308_v18 = vsel %vm13624_vm8, %v13446_v48, %v4304_v45  ;;  %vm4381_vm7 = vcmp.eq.f32.partialorder %v4380_v15, 8.507059e+37  ;;  %v4383_v36 = vor.u32 1.1754944e-38, %v4382_v12  ;;  %v4397_v27 = vand.u32 2147483648, %v13383_v52 }
 0x685   : > { %v13638_v62 = vsel %vm13553_vm12, %v4282_v9, %v4278_v51  ;;  %v13640_v16 = vadd.f32 1.0, %v7580_v55  ;;  %vm4391_vm0 = vweird.f32 %v13383_v52  ;;  %v4418_v31 = vsub.f32 1.0, %v4417_v61 }
 0x686   : > { %v13645_v41 = vsel %vm13560_vm6, %v4297_v10, %v4293_v19  ;;  %v13647_v25 = vsel %vm4381_vm7, %v4383_v36, %v4379_v26  ;;  %vm13651_vm5 = vmor %vm4391_vm0, %vm4392_vm15  ;;  %vm4396_vm14 = vcmp.eq.f32.partialorder %v4395_v1, 8.507059e+37  ;;  %7583 = vrcp.f32 %v13574_v6 }
 0x687   : > { %17009 = vst [vmem:[#allocation50_spill] sm:$0xff] %v13645_v41  ;;  %v13658_v9 = vsel %vm13570_vm9, %v4312_v39, %v4308_v18  ;;  %v4394_v52 = vsel %vm13651_vm5, %v13491_v40, %v4390_v58  ;;  %v4404_v5 = vmul.f32 %v13507_v7, %v4403_v54  ;;  %7585 = vrcp.f32 %v13600_v17 }
 0x688   : > { %17012 = vst [vmem:[#allocation51_spill] sm:$0xff] %v13658_v9  ;;  %v13665_v4 = vpop.eup %7581  ;;  %v4398_v10 = vor.u32 1.1754944e-38, %v4397_v27  ;;  %v4410_v20 = vand.u32 2147483647, %v13395_v56  ;;  %v4412_v50 = vand.u32 2147483648, %v13395_v56  ;;  %v4517_v45 = vrot.slane %v13286_v42, 3 }
 0x689   : > { %v4419_v30 = vmul.f32 %v13526_v37, %v4418_v31  ;;  %v4425_v15 = vand.u32 2147483647, %v13411_v3  ;;  %7587 = vrcp.f32 %v13640_v16  ;;  %v4518_v40 = vrot.slane %v13288_v21, 3 }
 0x68a   : > { %v13674_v12 = vsel %vm4396_vm14, %v4398_v10, %v4394_v52  ;;  %vm4406_vm12 = vweird.f32 %v13395_v56  ;;  %vm4407_vm6 = vweird.f32 %v13507_v7  ;;  %v4519_v32 = vrot.slane %v13295_v44, 3 }
 0x68b   : > { %v4405_v39 = vadd.f32 %v13507_v7, %v4404_v5  ;;  %vm4421_vm9 = vweird.f32 %v13411_v3  ;;  %v4427_v61 = vand.u32 2147483648, %v13411_v3  ;;  %v4432_v55 = vmul.f32 %v13665_v4, %v13566_v28  ;;  %vm13703_vm15 = vmor %vm4406_vm12, %vm4407_vm6 }
 0x68c   : > { %v13684_v51 = vpop.eup %7583  ;;  %vm13686_vm4 = vcmp.eq.f32.partialorder %v4410_v20, 8.507059e+37  ;;  %v4413_v1 = vor.u32 1.1754944e-38, %v4412_v50  ;;  %vm4422_vm10 = vweird.f32 %v13526_v37  ;;  %v6657_v19 = vmul.f32 -1.442695, %v4517_v45 }
 0x68d   : > { %v13691_v35 = vpop.eup %7585  ;;  %v4420_v26 = vadd.f32 %v13526_v37, %v4419_v30  ;;  %vm13694_vm13 = vcmp.eq.f32.partialorder %v4425_v15, 8.507059e+37  ;;  %v4442_v54 = vand.u32 2147483648, %v13566_v28  ;;  %v6658_v18 = vmul.f32 -1.442695, %v4518_v40  ;;  %vm13720_vm8 = vmor %vm4421_vm9, %vm4422_vm10 }
 0x68e   : > { %v4440_v27 = vand.u32 2147483647, %v13566_v28  ;;  %v4520_v31 = vrot.slane %v13304_v23, 3  ;;  %7589 = vpow2.f32 %v13357_v24  ;;  %v6659_v48 = vmul.f32 -1.442695, %v4519_v32 }
 0x68f   : > { %v13710_v52 = vpop.eup %7587  ;;  %v4409_v5 = vsel %vm13703_vm15, %v13507_v7, %v4405_v39  ;;  %v4428_v10 = vor.u32 1.1754944e-38, %v4427_v61  ;;  %v4433_v20 = vsub.f32 1.0, %v4432_v55  ;;  %7591 = vpow2.f32 %v13362_v53 }
 0x690   : > { %v4447_v24 = vmul.f32 %v13684_v51, %v13574_v6  ;;  %v4457_v50 = vand.u32 2147483648, %v13574_v6  ;;  %v4462_v7 = vmul.f32 %v13691_v35, %v13600_v17  ;;  %7593 = vpow2.f32 %v6657_v19 }
 0x691   : > { %v4424_v53 = vsel %vm13720_vm8, %v13526_v37, %v4420_v26  ;;  %v13732_v45 = vor.u32 1.1754944e-38, %v4442_v54  ;;  %v4521_v3 = vrot.slane %v13308_v8, 3  ;;  %7595 = vpow2.f32 %v6658_v18 }
 0x692   : > { %vm4436_vm7 = vweird.f32 %v13566_v28  ;;  %v4455_v30 = vand.u32 2147483647, %v13574_v6  ;;  %v4477_v15 = vmul.f32 %v13710_v52, %v13640_v16  ;;  %7597 = vpow2.f32 %v6659_v48 }
 0x693   : > { %v6660_v40 = vmul.f32 -1.442695, %v4520_v31  ;;  %v13741_v32 = vsel %vm13686_vm4, %v4413_v1, %v4409_v5  ;;  %v4434_v37 = vmul.f32 %v13665_v4, %v4433_v20  ;;  %v4470_v39 = vand.u32 2147483647, %v13600_v17 }
 0x694   : > { %v4472_v61 = vand.u32 2147483648, %v13600_v17  ;;  %v7590_v55 = vpop.eup %7589  ;;  %v13748_v19 = vsel %vm13694_vm13, %v4428_v10, %v4424_v53  ;;  %v4448_v26 = vsub.f32 1.0, %v4447_v24  ;;  %v13750_v54 = vor.u32 1.1754944e-38, %v4457_v50 }
 0x695   : > { %v4463_v18 = vsub.f32 1.0, %v4462_v7  ;;  %v7592_v36 = vpop.eup %7591  ;;  %vm4437_vm0 = vweird.f32 %v13665_v4  ;;  %vm4451_vm5 = vweird.f32 %v13574_v6  ;;  %v4485_v60 = vand.u32 2147483647, %v13640_v16 }
 0x696   : > { %v6661_v1 = vmul.f32 -1.442695, %v4521_v3  ;;  %v13755_v31 = vadd.f32 1.0, %v7590_v55  ;;  %v7594_v48 = vpop.eup %7593  ;;  %vm13757_vm14 = vcmp.eq.f32.partialorder %v4440_v27, 8.507059e+37  ;;  %vm4466_vm12 = vweird.f32 %v13600_v17  ;;  %vm13793_vm13 = vmor %vm4436_vm7, %vm4437_vm0 }
 0x697   : > { %v4478_v58 = vsub.f32 1.0, %v4477_v15  ;;  %v4522_v10 = vrot.slane %v13312_v49, 3  ;;  %7599 = vpow2.f32 %v6660_v40  ;;  %v13763_v20 = vadd.f32 1.0, %v7592_v36  ;;  %v7596_v56 = vpop.eup %7595 }
 0x698   : > { %v4435_v24 = vadd.f32 %v13665_v4, %v4434_v37  ;;  %v4487_v50 = vand.u32 2147483648, %v13640_v16  ;;  %v13767_v7 = vadd.f32 1.0, %v7594_v48  ;;  %7601 = vrcp.f32 %v13755_v31  ;;  %v7598_v27 = vpop.eup %7597 }
 0x699   : > { %v4449_v53 = vmul.f32 %v13684_v51, %v4448_v26  ;;  %v4464_v3 = vmul.f32 %v13691_v35, %v4463_v18  ;;  %vm4481_vm6 = vweird.f32 %v13640_v16  ;;  %v13773_v15 = vadd.f32 1.0, %v7596_v56 }
 0x69a   : > { %7603 = vrcp.f32 %v13763_v20  ;;  %vm4452_vm9 = vweird.f32 %v13684_v51  ;;  %v4473_v40 = vor.u32 1.1754944e-38, %v4472_v61  ;;  %v4493_v37 = vrot.slane %v13286_v42, 2 }
 0x69b   : > { %7605 = vpow2.f32 %v6661_v1  ;;  %vm13778_vm4 = vcmp.eq.f32.partialorder %v4455_v30, 8.507059e+37  ;;  %vm13782_vm10 = vcmp.eq.f32.partialorder %v4470_v39, 8.507059e+37  ;;  %v4479_v18 = vmul.f32 %v13710_v52, %v4478_v58  ;;  %vm13823_vm7 = vmor %vm4451_vm5, %vm4452_vm9 }
 0x69c   : > { %v4494_v36 = vrot.slane %v13288_v21, 2  ;;  %v6662_v48 = vmul.f32 -1.442695, %v4522_v10  ;;  %7607 = vrcp.f32 %v13767_v7  ;;  %vm4467_vm15 = vweird.f32 %v13691_v35 }
 0x69d   : > { %v4488_v30 = vor.u32 1.1754944e-38, %v4487_v50  ;;  %7609 = vtanh.f32 %v4492_v0  ;;  %v13800_v39 = vadd.f32 1.0, %v7598_v27  ;;  %v7600_v21 = vpop.eup %7599  ;;  %v4439_v61 = vsel %vm13793_vm13, %v13665_v4, %v4435_v24  ;;  %vm13840_vm5 = vmor %vm4466_vm12, %vm4467_vm15 }
 0x69e   : > { %v4450_v1 = vadd.f32 %v13684_v51, %v4449_v53  ;;  %v4465_v28 = vadd.f32 %v13691_v35, %v4464_v3  ;;  %vm13807_vm8 = vcmp.eq.f32.partialorder %v4485_v60, 8.507059e+37  ;;  %7611 = vrcp.f32 %v13773_v15  ;;  %v13812_v10 = vpop.eup %7601 }
 0x69f   : > { %v4496_v0 = vrot.slane %v13304_v23, 2  ;;  %v4497_v56 = vrot.slane %v13308_v8, 2  ;;  %7613 = vtanh.f32 %v4493_v37  ;;  %v4480_v24 = vadd.f32 %v13710_v52, %v4479_v18 }
 0x6a0   : > { %v13817_v4 = vpop.eup %7603  ;;  %vm4482_vm0 = vweird.f32 %v13710_v52  ;;  %7615 = vpow2.f32 %v6662_v48  ;;  %v4564_v44 = vmul.f32 %v13812_v10, %v13755_v31  ;;  %v13834_v8 = vsel %vm13757_vm14, %v13732_v45, %v4439_v61 }
 0x6a1   : > { %v7606_v23 = vpop.eup %7605  ;;  %v4498_v50 = vrot.slane %v13312_v49, 2  ;;  %v4579_v27 = vmul.f32 %v13817_v4, %v13763_v20  ;;  %7617 = vrcp.f32 %v13800_v39  ;;  %v4454_v45 = vsel %vm13823_vm7, %v13684_v51, %v4450_v1  ;;  %vm13862_vm14 = vmor %vm4481_vm6, %vm4482_vm0 }
 0x6a2   : > { %v13848_v53 = vpop.eup %7607  ;;  %v4469_v17 = vsel %vm13840_vm5, %v13691_v35, %v4465_v28  ;;  %7619 = vtanh.f32 %v4494_v36  ;;  %v4565_v5 = vsub.f32 1.0, %v4564_v44  ;;  %v13866_v37 = vadd.f32 1.0, %v7600_v21 }
 0x6a3   : > { %v13856_v3 = vpop.eup %7609  ;;  %7621 = vtanh.f32 %v4495_v46  ;;  %v4580_v51 = vsub.f32 1.0, %v4579_v27  ;;  %v4594_v18 = vmul.f32 %v13848_v53, %v13767_v7  ;;  %v4484_v36 = vsel %vm13862_vm14, %v13710_v52, %v4480_v24 }
 0x6a4   : > { %v13870_v35 = vpop.eup %7611  ;;  %7623 = vtanh.f32 %v4496_v0  ;;  %v13875_v48 = vadd.f32 1.0, %v7606_v23  ;;  %v4572_v16 = vand.u32 2147483647, %v13755_v31  ;;  %v13883_v21 = vsel %vm13778_vm4, %v13750_v54, %v4454_v45 }
 0x6a5   : > { %v13878_v42 = vpop.eup %7613  ;;  %v13887_v61 = vsel %vm13782_vm10, %v4473_v40, %v4469_v17  ;;  %7625 = vtanh.f32 %v4497_v56  ;;  %v4566_v1 = vmul.f32 %v13812_v10, %v4565_v5  ;;  %v4581_v28 = vmul.f32 %v13817_v4, %v4580_v51 }
 0x6a6   : > { %v7616_v52 = vpop.eup %7615  ;;  %7627 = vtanh.f32 %v4498_v50  ;;  %v4595_v46 = vsub.f32 1.0, %v4594_v18  ;;  %v4609_v0 = vmul.f32 %v13870_v35, %v13773_v15  ;;  %v13897_v54 = vsel %vm13807_vm8, %v4488_v30, %v4484_v36 }
 0x6a7   : > { %v13893_v60 = vpop.eup %7617  ;;  %vm4568_vm12 = vweird.f32 %v13755_v31  ;;  %v4574_v40 = vand.u32 2147483648, %v13755_v31  ;;  %7629 = vrcp.f32 %v13866_v37  ;;  %vm13904_vm6 = vcmp.eq.f32.partialorder %v4572_v16, 8.507059e+37 }
 0x6a8   : > { %v13902_v55 = vpop.eup %7619  ;;  %vm4583_vm9 = vweird.f32 %v13763_v20  ;;  %v4587_v56 = vand.u32 2147483647, %v13763_v20  ;;  %7631 = vrcp.f32 %v13875_v48  ;;  %v13913_v58 = vadd.f32 1.0, %v7616_v52 }
 0x6a9   : > { %v13911_v30 = vpop.eup %7621  ;;  %v4567_v24 = vadd.f32 %v13812_v10, %v4566_v1  ;;  %vm4569_vm4 = vweird.f32 %v13812_v10  ;;  %vm4584_vm10 = vweird.f32 %v13817_v4  ;;  %v4582_v23 = vadd.f32 %v13817_v4, %v4581_v28 }
 0x6aa   : > { %v13918_v44 = vpop.eup %7623  ;;  %v4596_v6 = vmul.f32 %v13848_v53, %v4595_v46  ;;  %v4610_v50 = vsub.f32 1.0, %v4609_v0  ;;  %v4624_v27 = vmul.f32 %v13893_v60, %v13800_v39  ;;  %v4575_v17 = vor.u32 1.1754944e-38, %v4574_v40  ;;  %vm13933_vm13 = vmor %vm4568_vm12, %vm4569_vm4 }
 0x6ab   : > { %17039 = vst [vmem:[#allocation52_spill] sm:$0xff] %v13918_v44  ;;  %v13924_v45 = vpop.eup %7625  ;;  %v4589_v5 = vand.u32 2147483648, %v13763_v20  ;;  %v4604_v49 = vand.u32 2147483648, %v13767_v7  ;;  %v4619_v51 = vand.u32 2147483648, %v13773_v15  ;;  %vm13937_vm15 = vcmp.eq.f32.partialorder %v4587_v56, 8.507059e+37  ;;  %vm13953_vm7 = vmor %vm4583_vm9, %vm4584_vm10 }
 0x6ac   : > { %17040 = vst [vmem:[#allocation53_spill] sm:$0xff] %v13924_v45  ;;  %v13929_v18 = vpop.eup %7627  ;;  %vm4598_vm8 = vweird.f32 %v13767_v7  ;;  %v4602_v1 = vand.u32 2147483647, %v13767_v7  ;;  %v4634_v52 = vand.u32 2147483648, %v13800_v39  ;;  %v4571_v31 = vsel %vm13933_vm13, %v13812_v10, %v4567_v24 }
 0x6ad   : > { %17041 = vst [vmem:[#allocation54_spill] sm:$0xff] %v13929_v18  ;;  %v13944_v28 = vpop.eup %7629  ;;  %vm4599_vm0 = vweird.f32 %v13848_v53  ;;  %v4649_v0 = vand.u32 2147483648, %v13866_v37  ;;  %7633 = vrcp.f32 %v13913_v58  ;;  %v4586_v10 = vsel %vm13953_vm7, %v13817_v4, %v4582_v23 }
 0x6ae   : > { %v13960_v40 = vpop.eup %7631  ;;  %v13966_v56 = vadd.f32 %v13848_v53, %v4596_v6  ;;  %v4611_v20 = vmul.f32 %v13870_v35, %v4610_v50  ;;  %v4625_v24 = vsub.f32 1.0, %v4624_v27  ;;  %v4590_v36 = vor.u32 1.1754944e-38, %v4589_v5  ;;  %vm13991_vm5 = vmor %vm4598_vm8, %vm4599_vm0 }
 0x6af   : > { %v4605_v18 = vor.u32 1.1754944e-38, %v4604_v49  ;;  %v4617_v9 = vand.u32 2147483647, %v13773_v15  ;;  %v13970_v45 = vor.u32 1.1754944e-38, %v4619_v51  ;;  %v4632_v41 = vand.u32 2147483647, %v13800_v39 }
 0x6b0   : > { %v13973_v44 = vor.u32 1.1754944e-38, %v4634_v52  ;;  %v4639_v46 = vmul.f32 %v13944_v28, %v13866_v37  ;;  %v4654_v4 = vmul.f32 %v13960_v40, %v13875_v48  ;;  %v13981_v23 = vsel %vm13904_vm6, %v4575_v17, %v4571_v31 }
 0x6b1   : > { %v13985_v6 = vsel %vm13937_vm15, %v4590_v36, %v4586_v10  ;;  %vm4614_vm14 = vweird.f32 %v13870_v35  ;;  %v4647_v27 = vand.u32 2147483647, %v13866_v37  ;;  %v4601_v26 = vsel %vm13991_vm5, %v13848_v53, %v13966_v56 }
 0x6b2   : > { %vm14001_vm12 = vcmp.eq.f32.partialorder %v4602_v1, 8.507059e+37  ;;  %v14006_v5 = vadd.f32 %v13870_v35, %v4611_v20  ;;  %vm4613_vm6 = vweird.f32 %v13773_v15  ;;  %v4626_v7 = vmul.f32 %v13893_v60, %v4625_v24 }
 0x6b3   : > { %v14010_v49 = vor.u32 1.1754944e-38, %v4649_v0  ;;  %v14012_v51 = vpop.eup %7633  ;;  %vm4629_vm9 = vweird.f32 %v13893_v60  ;;  %v4662_v16 = vand.u32 2147483647, %v13875_v48  ;;  %v4683_v53 = vmul.f32 %v13647_v25, %v13089_v34  ;;  %vm14085_vm0 = vmor %vm4613_vm6, %vm4614_vm14 }
 0x6b4   : > { %v4684_v1 = vmul.f32 %v13674_v12, %v13091_v29  ;;  %v4685_v52 = vmul.f32 %v13741_v32, %v13093_v59  ;;  %v4640_v31 = vsub.f32 1.0, %v4639_v46  ;;  %vm4644_vm4 = vweird.f32 %v13944_v28 }
 0x6b5   : > { %v4655_v0 = vsub.f32 1.0, %v4654_v4  ;;  %v4669_v10 = vmul.f32 %v14012_v51, %v13913_v58  ;;  %v4686_v56 = vmul.f32 %v13748_v19, %v13100_v2  ;;  %vm4628_vm10 = vweird.f32 %v13800_v39 }
 0x6b6   : > { %v4687_v34 = vmul.f32 %v13834_v8, %v13109_v13  ;;  %v4691_v29 = vmul.f32 %v13521_v43, %v13495_v47  ;;  %v4692_v59 = vmul.f32 %v13856_v3, %v13502_v14  ;;  %v4693_v25 = vmul.f32 %v13878_v42, %v13511_v33  ;;  %v17057_v42 = vld [vmem:[#allocation50_spill] sm:$0xff] }
 0x6b7   : > { %vm4643_vm13 = vweird.f32 %v13866_v37  ;;  %v4670_v12 = vsub.f32 1.0, %v4669_v10  ;;  %v4688_v2 = vmul.f32 %v13883_v21, %v13115_v57  ;;  %v4689_v32 = vmul.f32 %v13887_v61, %v13133_v38  ;;  %v17058_v21 = vld [vmem:[#allocation53_spill] sm:$0xff] }
 0x6b8   : > { %v4694_v13 = vmul.f32 %v13902_v55, %v13515_v11  ;;  %vm14043_vm15 = vcmp.eq.f32.partialorder %v4617_v9, 8.507059e+37  ;;  %vm4658_vm8 = vweird.f32 %v13875_v48  ;;  %v4695_v14 = vmul.f32 %v13911_v30, %v13551_v22  ;;  %v17054_v9 = vld [vmem:[#allocation52_spill] sm:$0xff]  ;;  %v17060_v30 = vld [vmem:[#allocation54_spill] sm:$0xff] }
 0x6b9   : > { %v14050_v33 = vadd.f32 %v4691_v29, %v4683_v53  ;;  %v14052_v43 = vadd.f32 %v4692_v59, %v4684_v1  ;;  %v14054_v57 = vadd.f32 %v4693_v25, %v4685_v52  ;;  %v4641_v38 = vmul.f32 %v13944_v28, %v4640_v31 }
 0x6ba   : > { %v4690_v11 = vmul.f32 %v13897_v54, %v13141_v63  ;;  %v4696_v19 = vmul.f32 %v17054_v9, %v13638_v62  ;;  %v14061_v8 = vadd.f32 %v4694_v13, %v4686_v56  ;;  %vm14063_vm7 = vcmp.eq.f32.partialorder %v4632_v41, 8.507059e+37  ;;  %v17059_v54 = vld [vmem:[#allocation51_spill] sm:$0xff] }
 0x6bb   : > { %v4656_v22 = vmul.f32 %v13960_v40, %v4655_v0  ;;  %v4697_v61 = vmul.f32 %v17058_v21, %v17057_v42  ;;  %v14070_v55 = vadd.f32 %v4695_v14, %v4687_v34  ;;  %7635 = vtanh.f32 %v14050_v33 }
 0x6bc   : > { %v4671_v63 = vmul.f32 %v14012_v51, %v4670_v12  ;;  %v4698_v62 = vmul.f32 %v17060_v30, %v17059_v54  ;;  %v14076_v20 = vadd.f32 %v4696_v19, %v4688_v2  ;;  %7637 = vtanh.f32 %v14052_v43 }
 0x6bd   : > { %v4606_v41 = vsel %vm14001_vm12, %v4605_v18, %v4601_v26  ;;  %v4627_v36 = vadd.f32 %v13893_v60, %v4626_v7  ;;  %vm14090_vm5 = vcmp.eq.f32.partialorder %v4647_v27, 8.507059e+37  ;;  %v14094_v4 = vadd.f32 %v4697_v61, %v4689_v32  ;;  %vm14113_vm12 = vmor %vm4628_vm10, %vm4629_vm9 }
 0x6be   : > { %7639 = vtanh.f32 %v14054_v57  ;;  %v4616_v18 = vsel %vm14085_vm0, %v13870_v35, %v14006_v5  ;;  %v4664_v15 = vand.u32 2147483648, %v13875_v48  ;;  %v14102_v50 = vadd.f32 %v4698_v62, %v4690_v11  ;;  %vm14131_vm9 = vmor %vm4643_vm13, %vm4644_vm4 }
 0x6bf   : > { %7641 = vtanh.f32 %v14061_v8  ;;  %v4642_v27 = vadd.f32 %v13944_v28, %v4641_v38  ;;  %v4657_v26 = vadd.f32 %v13960_v40, %v4656_v22  ;;  %vm4659_vm14 = vweird.f32 %v13960_v40 }
 0x6c0   : > { %7643 = vtanh.f32 %v14070_v55  ;;  %vm14117_vm6 = vcmp.eq.f32.partialorder %v4662_v16, 8.507059e+37  ;;  %v4672_v5 = vadd.f32 %v14012_v51, %v4671_v63  ;;  %vm4674_vm0 = vweird.f32 %v14012_v51  ;;  %vm14145_vm10 = vmor %vm4658_vm8, %vm4659_vm14 }
 0x6c1   : > { %7645 = vtanh.f32 %v14076_v20  ;;  %v7636_v7 = vpop.eup %7635  ;;  %v4631_v53 = vsel %vm14113_vm12, %v13893_v60, %v4627_v36  ;;  %v4677_v16 = vand.u32 2147483647, %v13913_v58  ;;  %v4679_v1 = vand.u32 2147483648, %v13913_v58 }
 0x6c2   : > { %7647 = vtanh.f32 %v14094_v4  ;;  %v7638_v52 = vpop.eup %7637  ;;  %v4621_v31 = vsel %vm14043_vm15, %v13970_v45, %v4616_v18  ;;  %vm4673_vm4 = vweird.f32 %v13913_v58  ;;  %v4715_v60 = vmul.f32 %v7636_v7, %v13981_v23 }
 0x6c3   : > { %7649 = vtanh.f32 %v14102_v50  ;;  %v4646_v10 = vsel %vm14131_vm9, %v13944_v28, %v4642_v27  ;;  %v4661_v45 = vsel %vm14145_vm10, %v13960_v40, %v4657_v26  ;;  %v4665_v48 = vor.u32 1.1754944e-38, %v4664_v15  ;;  %vm14160_vm13 = vmor %vm4673_vm4, %vm4674_vm0 }
 0x6c4   : > { %v7640_v0 = vpop.eup %7639  ;;  %v4716_v58 = vmul.f32 %v7638_v52, %v13985_v6  ;;  %v4636_v23 = vsel %vm14063_vm7, %v13973_v44, %v4631_v53  ;;  %v4676_v28 = vsel %vm14160_vm13, %v14012_v51, %v4672_v5  ;;  %v4739_v40 = vpack.c.bf16 %v4715_v60, %v4715_v60 }
 0x6c5   : > { %v7642_v34 = vpop.eup %7641  ;;  %v4717_v29 = vmul.f32 %v7640_v0, %v4606_v41  ;;  %vm4678_vm15 = vcmp.eq.f32.partialorder %v4677_v16, 8.507059e+37  ;;  %v4680_v25 = vor.u32 1.1754944e-38, %v4679_v1  ;;  %v4651_v6 = vsel %vm14090_vm5, %v14010_v49, %v4646_v10 }
 0x6c6   : > { %v7644_v59 = vpop.eup %7643  ;;  %v4718_v12 = vmul.f32 %v7642_v34, %v4621_v31  ;;  %v4740_v2 = vpack.c.bf16 %v4716_v58, %v4716_v58  ;;  %v4666_v13 = vsel %vm14117_vm6, %v4665_v48, %v4661_v45  ;;  %v4755_v42 = vunpack.c.l.b16 %v4739_v40 }
 0x6c7   : > { %v7646_v32 = vpop.eup %7645  ;;  %v4719_v44 = vmul.f32 %v7644_v59, %v4636_v23  ;;  %v4741_v47 = vpack.c.bf16 %v4717_v29, %v4717_v29  ;;  %v4681_v38 = vsel %vm4678_vm15, %v4680_v25, %v4676_v28  ;;  %vm17075_vm8 = vcmask 1044484  }
 0x6c8   : > { %v7648_v14 = vpop.eup %7647  ;;  %v4720_v51 = vmul.f32 %v7646_v32, %v4651_v6  ;;  %v4742_v11 = vpack.c.bf16 %v4718_v12, %v4718_v12  ;;  %v4756_v9 = vunpack.c.l.b16 %v4740_v2  ;;  %vm17076_vm7 = vcmask 1045509   ;;  %vm17079_vm12 = vmmov %vm17075_vm8 }
 0x6c9   : > { %v7650_v19 = vpop.eup %7649  ;;  %v4721_v3 = vmul.f32 %v7648_v14, %v4666_v13  ;;  %v4743_v22 = vpack.c.bf16 %v4719_v44, %v4719_v44  ;;  %v4757_v21 = vunpack.c.l.b16 %v4741_v47  ;;  %vm17077_vm5 = vcmask 1046534   ;;  %vm17080_vm6 = vmmov %vm17076_vm7 }
 0x6ca   : > { %v4722_v61 = vmul.f32 %v7650_v19, %v4681_v38  ;;  %v4744_v63 = vpack.c.bf16 %v4720_v51, %v4720_v51  ;;  %v4758_v54 = vunpack.c.l.b16 %v4742_v11  ;;  %v4763_v30 = vrot.slane %v4756_v9, 7  ;;  %vm17081_vm0 = vmmov %vm17077_vm5  ;;  %v6663_v11 = vld [vmem:[%s8250_s21 + $0x6] ss:$8 sm:$0xf] }
 0x6cb   : > { %v4745_v49 = vpack.c.bf16 %v4721_v3, %v4721_v3  ;;  %v4759_v62 = vunpack.c.l.b16 %v4743_v22  ;;  %v4765_v41 = vrot.slane %v4757_v21, 6  ;;  %vm17078_vm14 = vcmask 1040384   ;;  %vm17083_vm10 = vmmov %vm17075_vm8  ;;  %v6664_v22 = vld [vmem:[%s8250_s21 + $0x26] ss:$8 sm:$0xf] }
 0x6cc   : > { %v4746_v24 = vpack.c.bf16 %v4722_v61, %v4722_v61  ;;  %v4760_v36 = vunpack.c.l.b16 %v4744_v63  ;;  %v4764_v46 = vsel %vm480_vm2, %v4763_v30, %v4755_v42  ;;  %v4767_v18 = vrot.slane %v4758_v54, 5  ;;  %vm17084_vm4 = vmmov %vm17080_vm6  ;;  %v6665_v54 = vld [vmem:[%s8250_s21 + $0x46] ss:$8 sm:$0xf] }
 0x6cd   : > { %v4761_v15 = vunpack.c.l.b16 %v4745_v49  ;;  %v4766_v27 = vsel %vm476_vm1, %v4765_v41, %v4764_v46  ;;  %v4769_v26 = vrot.slane %v4759_v62, 4  ;;  %vm17082_vm9 = vcmask 1046528  }
 0x6ce   : > { %v4762_v35 = vunpack.c.l.b16 %v4746_v24  ;;  %v4768_v17 = vsel %vm482_vm3, %v4767_v18, %v4766_v27  ;;  %v4771_v5 = vrot.slane %v4760_v36, 3  ;;  %vm17085_vm13 = vcmask 1041408   ;;  %v6666_v24 = vld [vmem:[%s8250_s21 + $0x66] ss:$8 sm:$0xf] }
 0x6cf   : > { %v4770_v7 = vsel %vm17075_vm8, %v4769_v26, %v4768_v17  ;;  %v4773_v53 = vrot.slane %v4761_v15, 2  ;;  %vm17086_vm15 = vcmask 1042433   ;;  %vm17087_vm8 = vcmask 1043458  }
 0x6d0   : > { %v4772_v39 = vsel %vm17076_vm7, %v4771_v5, %v4770_v7  ;;  %v4775_v16 = vrot.slane %v4762_v35, 1  ;;  %vm17088_vm7 = vcmask 1044483   ;;  %v6667_v7 = vld [vmem:[%s8250_s21 + $0x86] ss:$8 sm:$0xf] }
 0x6d1   : > { %v4774_v1 = vsel %vm17077_vm5, %v4773_v53, %v4772_v39  ;;  %vm17089_vm5 = vmmov %vm17081_vm0 }
 0x6d2   : > { %v4776_v52 = vsel %vm1165_vm11, %v4775_v16, %v4774_v1 }
 0x6d3   : > { %v4777_v31 = vpack.c.b16 %v4776_v52, %v4776_v52 }
 0x6d5   : > { %4787 = vmatmul.bf16.vlgmr.msra.gmra.mxu0 %v4777_v31  ;;  %4800 = vmatmul.bf16.vlgmr.msra.gmra.mxu1 %v4777_v31 }
 0x6d6   : > { %4813 = vmatmul.bf16.vlgmr.msra.gmra.mxu2 %v4777_v31  ;;  %4826 = vmatmul.bf16.vlgmr.msra.gmra.mxu3 %v4777_v31 }
 0x752   : > { %v4788_v37 = vpop.f32.mrf.mxu0  ;;  %v4801_v60 = vpop.f32.mrf.mxu1 }
 0x753   : > { %v4835_v0 = vrot.slane %v4801_v60, 7  ;;  %v6668_v60 = vld [vmem:[%s8250_s21 + $0xa6] ss:$8 sm:$0xf] }
 0x755   : > { %v4838_v10 = vsel %vm17078_vm14, %v4788_v37, %v4835_v0  ;;  %v4841_v45 = vsel %vm480_vm2, %v4788_v37, %v4835_v0  ;;  %v4845_v48 = vsel %vm476_vm1, %v4788_v37, %v4835_v0  ;;  %v4849_v56 = vsel %vm482_vm3, %v4788_v37, %v4835_v0 }
 0x756   : > { %v4853_v58 = vsel %vm17079_vm12, %v4788_v37, %v4835_v0  ;;  %v4857_v34 = vsel %vm17080_vm6, %v4788_v37, %v4835_v0  ;;  %v4861_v23 = vsel %vm17081_vm0, %v4788_v37, %v4835_v0  ;;  %v4865_v28 = vsel %vm17082_vm9, %v4835_v0, %v4788_v37  ;;  %vm17091_vm12 = vmmov %vm17082_vm9 }
 0x757   : > { %vm17090_vm14 = vcmask 1045508   ;;  %vm17092_vm6 = vcmask 1040384   ;;  %vm17093_vm0 = vcmask 1046533   ;;  %vm17094_vm9 = vcmask 1045504  }
 0x759   : > { %v4814_v29 = vpop.f32.mrf.mxu2  ;;  %v4827_v40 = vpop.f32.mrf.mxu3 }
 0x75a   : > { %v4836_v59 = vrot.slane %v4814_v29, 6  ;;  %v4837_v25 = vrot.slane %v4827_v40, 5  ;;  %v4790_v12 = vpop.f32.mrf.mxu0  ;;  %v4803_v2 = vpop.f32.mrf.mxu1 }
 0x75c   : > { %v4839_v32 = vsel %vm476_vm1, %v4836_v59, %v4837_v25  ;;  %v4842_v6 = vsel %vm482_vm3, %v4836_v59, %v4837_v25  ;;  %v4846_v13 = vsel %vm17083_vm10, %v4836_v59, %v4837_v25  ;;  %v4850_v44 = vsel %vm17084_vm4, %v4836_v59, %v4837_v25 }
 0x75d   : > { %v4840_v47 = vsel %vm17085_vm13, %v4838_v10, %v4839_v32  ;;  %v4843_v14 = vsel %vm17086_vm15, %v4841_v45, %v4842_v6  ;;  %v4847_v38 = vsel %vm17087_vm8, %v4845_v48, %v4846_v13  ;;  %v4851_v51 = vsel %vm17088_vm7, %v4849_v56, %v4850_v44  ;;  %v6669_v45 = vld [vmem:[%s8250_s21 + $0xc6] ss:$8 sm:$0xf] }
 0x75e   : > { %v4844_v9 = vrot.slane %v4843_v14, 1  ;;  %v4848_v19 = vrot.slane %v4847_v38, 2  ;;  %v4854_v3 = vsel %vm17089_vm5, %v4836_v59, %v4837_v25  ;;  %v4858_v21 = vsel %vm17091_vm12, %v4837_v25, %v4836_v59 }
 0x75f   : > { %v4855_v42 = vsel %vm17090_vm14, %v4853_v58, %v4854_v3  ;;  %v4862_v61 = vsel %vm17092_vm6, %v4836_v59, %v4837_v25  ;;  %v4866_v63 = vsel %vm480_vm2, %v4836_v59, %v4837_v25  ;;  %v4852_v30 = vrot.slane %v4851_v51, 3  ;;  %v6670_v58 = vld [vmem:[%s8250_s21 + $0xe6] ss:$8 sm:$0xf] }
 0x760   : > { %v4859_v49 = vsel %vm17093_vm0, %v4857_v34, %v4858_v21  ;;  %v4863_v62 = vsel %vm17094_vm9, %v4862_v61, %v4861_v23  ;;  %vm17095_vm10 = vcmask 1046529   ;;  %v14211_v36 = vadd.f32 %v6663_v11, %v4840_v47 }
 0x761   : > { %v4867_v41 = vsel %vm17095_vm10, %v4866_v63, %v4865_v28  ;;  %v4816_v46 = vpop.f32.mrf.mxu2  ;;  %v4829_v18 = vpop.f32.mrf.mxu3  ;;  %v14213_v15 = vadd.f32 %v6664_v22, %v4844_v9  ;;  %v14215_v27 = vadd.f32 %v6665_v54, %v4848_v19  ;;  %v14217_v26 = vadd.f32 %v6666_v24, %v4852_v30 }
 0x762   : > { %v6671_v35 = vmul.f32 -1.442695, %v14211_v36  ;;  %v4856_v17 = vrot.slane %v4855_v42, 4  ;;  %v4860_v31 = vrot.slane %v4859_v49, 5  ;;  %v4864_v0 = vrot.slane %v4863_v62, 6 }
 0x763   : > { %v6672_v5 = vmul.f32 -1.442695, %v14213_v15  ;;  %v6673_v53 = vmul.f32 -1.442695, %v14215_v27  ;;  %v6674_v39 = vmul.f32 -1.442695, %v14217_v26 }
 0x764   : > { %7651 = vpow2.f32 %v6671_v35  ;;  %v14224_v16 = vadd.f32 %v6667_v7, %v4856_v17  ;;  %v4868_v48 = vrot.slane %v4867_v41, 7  ;;  %v5045_v23 = vrot.slane %v14211_v36, 1 }
 0x765   : > { %7653 = vpow2.f32 %v6672_v5  ;;  %v14233_v28 = vadd.f32 %v6668_v60, %v4860_v31  ;;  %v14237_v40 = vadd.f32 %v6669_v45, %v4864_v0  ;;  %v5046_v44 = vrot.slane %v14213_v15, 1 }
 0x766   : > { %7655 = vpow2.f32 %v6673_v53  ;;  %v6675_v1 = vmul.f32 -1.442695, %v14224_v16  ;;  %v14241_v25 = vadd.f32 %v6670_v58, %v4868_v48  ;;  %v6679_v2 = vmul.f32 -1.442695, %v5045_v23 }
 0x767   : > { %7657 = vpow2.f32 %v6674_v39  ;;  %v6676_v32 = vmul.f32 -1.442695, %v14233_v28  ;;  %v6677_v13 = vmul.f32 -1.442695, %v14237_v40  ;;  %v5047_v14 = vrot.slane %v14215_v27, 1 }
 0x768   : > { %7659 = vpow2.f32 %v6675_v1  ;;  %v6678_v47 = vmul.f32 -1.442695, %v14241_v25  ;;  %v5048_v51 = vrot.slane %v14217_v26, 1  ;;  %v5049_v9 = vrot.slane %v14224_v16, 1 }
 0x769   : > { %v6680_v19 = vmul.f32 -1.442695, %v5046_v44  ;;  %v5050_v22 = vrot.slane %v14233_v28, 1  ;;  %v6681_v21 = vmul.f32 -1.442695, %v5047_v14  ;;  %v5051_v63 = vrot.slane %v14237_v40, 1 }
 0x76a   : > { %v7652_v52 = vpop.eup %7651  ;;  %v6682_v54 = vmul.f32 -1.442695, %v5048_v51  ;;  %v5237_v30 = vrot.slane %v14211_v36, 3  ;;  %v6683_v62 = vmul.f32 -1.442695, %v5049_v9  ;;  %v5238_v41 = vrot.slane %v14213_v15, 3 }
 0x76b   : > { %v7654_v37 = vpop.eup %7653  ;;  %v14230_v34 = vadd.f32 1.0, %v7652_v52  ;;  %v14273_v18 = vmul.f32 -1.442695, %v5050_v22  ;;  %v5213_v35 = vrot.slane %v14211_v36, 2  ;;  %v5214_v17 = vrot.slane %v14213_v15, 2 }
 0x76c   : > { %v7656_v10 = vpop.eup %7655  ;;  %v14235_v29 = vadd.f32 1.0, %v7654_v37  ;;  %v5052_v1 = vrot.slane %v14241_v25, 1  ;;  %v14286_v37 = vmul.f32 -1.442695, %v5237_v30  ;;  %v14289_v0 = vmul.f32 -1.442695, %v5051_v63 }
 0x76d   : > { %v7658_v56 = vpop.eup %7657  ;;  %v14239_v59 = vadd.f32 1.0, %v7656_v10  ;;  %7661 = vrcp.f32 %v14230_v34  ;;  %v4928_v60 = vand.u32 2147483648, %v14230_v34  ;;  %v14291_v10 = vmul.f32 -1.442695, %v5238_v41 }
 0x76e   : > { %v14243_v12 = vadd.f32 1.0, %v7658_v56  ;;  %7663 = vrcp.f32 %v14235_v29  ;;  %v7660_v6 = vpop.eup %7659  ;;  %vm4922_vm4 = vweird.f32 %v14230_v34  ;;  %v4926_v23 = vand.u32 2147483647, %v14230_v34 }
 0x76f   : > { %7665 = vrcp.f32 %v14239_v59  ;;  %v14254_v38 = vadd.f32 1.0, %v7660_v6  ;;  %v4929_v14 = vor.u32 1.1754944e-38, %v4928_v60  ;;  %vm4937_vm13 = vweird.f32 %v14235_v29 }
 0x770   : > { %7667 = vrcp.f32 %v14243_v12  ;;  %v4941_v51 = vand.u32 2147483647, %v14235_v29  ;;  %vm4952_vm15 = vweird.f32 %v14239_v59  ;;  %vm14316_vm8 = vcmp.eq.f32.partialorder %v4926_v23, 8.507059e+37 }
 0x771   : > { %7669 = vpow2.f32 %v6679_v2  ;;  %v4956_v41 = vand.u32 2147483647, %v14239_v59  ;;  %vm4967_vm14 = vweird.f32 %v14243_v12  ;;  %v5217_v15 = vrot.slane %v14224_v16, 2 }
 0x772   : > { %7671 = vpow2.f32 %v6676_v32  ;;  %v4943_v32 = vand.u32 2147483648, %v14235_v29  ;;  %vm14327_vm5 = vcmp.eq.f32.partialorder %v4941_v51, 8.507059e+37 }
 0x773   : > { %v14257_v11 = vpop.eup %7661  ;;  %7673 = vpow2.f32 %v6677_v13 }
 0x774   : > { %v14260_v3 = vpop.eup %7663  ;;  %7675 = vpow2.f32 %v6678_v47  ;;  %v4918_v24 = vmul.f32 %v14257_v11, %v14230_v34  ;;  %vm4923_vm7 = vweird.f32 %v14257_v11 }
 0x775   : > { %v14263_v42 = vpop.eup %7665  ;;  %7677 = vrcp.f32 %v14254_v38  ;;  %v4933_v5 = vmul.f32 %v14260_v3, %v14235_v29  ;;  %vm4938_vm12 = vweird.f32 %v14260_v3  ;;  %vm14352_vm0 = vmor %vm4922_vm4, %vm4923_vm7  ;;  %vm14370_vm4 = vcmp.eq.f32.partialorder %v4956_v41, 8.507059e+37 }
 0x776   : > { %v14265_v61 = vpop.eup %7667  ;;  %7679 = vpow2.f32 %v6680_v19  ;;  %v4948_v53 = vmul.f32 %v14263_v42, %v14239_v59  ;;  %v4919_v48 = vsub.f32 1.0, %v4918_v24  ;;  %vm4953_vm6 = vweird.f32 %v14263_v42  ;;  %vm14366_vm10 = vmor %vm4937_vm13, %vm4938_vm12 }
 0x777   : > { %v7670_v49 = vpop.eup %7669  ;;  %7681 = vpow2.f32 %v6681_v21  ;;  %v4963_v39 = vmul.f32 %v14265_v61, %v14243_v12  ;;  %v4934_v2 = vsub.f32 1.0, %v4933_v5  ;;  %vm4968_vm9 = vweird.f32 %v14265_v61  ;;  %vm14386_vm13 = vmor %vm4952_vm15, %vm4953_vm6 }
 0x778   : > { %v7672_v46 = vpop.eup %7671  ;;  %v14284_v31 = vadd.f32 1.0, %v7670_v49  ;;  %7683 = vpow2.f32 %v6682_v54  ;;  %v4949_v44 = vsub.f32 1.0, %v4948_v53  ;;  %v4920_v19 = vmul.f32 %v14257_v11, %v4919_v48  ;;  %vm14403_vm15 = vmor %vm4967_vm14, %vm4968_vm9 }
 0x779   : > { %v7674_v7 = vpop.eup %7673  ;;  %v14293_v45 = vadd.f32 1.0, %v7672_v46  ;;  %7685 = vpow2.f32 %v6683_v62  ;;  %v4964_v47 = vsub.f32 1.0, %v4963_v39  ;;  %v4935_v63 = vmul.f32 %v14260_v3, %v4934_v2 }
 0x77a   : > { %v7676_v52 = vpop.eup %7675  ;;  %v14297_v58 = vadd.f32 1.0, %v7674_v7  ;;  %7687 = vrcp.f32 %v14284_v31  ;;  %v4944_v54 = vor.u32 1.1754944e-38, %v4943_v32  ;;  %v4950_v62 = vmul.f32 %v14263_v42, %v4949_v44 }
 0x77b   : > { %v14295_v56 = vpop.eup %7677  ;;  %v14302_v13 = vadd.f32 1.0, %v7676_v52  ;;  %7689 = vrcp.f32 %v14293_v45  ;;  %v4965_v24 = vmul.f32 %v14265_v61, %v4964_v47  ;;  %v4958_v7 = vand.u32 2147483648, %v14239_v59 }
 0x77c   : > { %v7680_v6 = vpop.eup %7679  ;;  %v4978_v22 = vmul.f32 %v14295_v56, %v14254_v38  ;;  %7691 = vrcp.f32 %v14297_v58  ;;  %v4921_v39 = vadd.f32 %v14257_v11, %v4920_v19  ;;  %v4971_v52 = vand.u32 2147483647, %v14243_v12 }
 0x77d   : > { %v7682_v9 = vpop.eup %7681  ;;  %v14312_v21 = vadd.f32 1.0, %v7680_v6  ;;  %7693 = vrcp.f32 %v14302_v13  ;;  %v4936_v2 = vadd.f32 %v14260_v3, %v4935_v63  ;;  %v4951_v44 = vadd.f32 %v14263_v42, %v4950_v62 }
 0x77e   : > { %v7684_v30 = vpop.eup %7683  ;;  %v14324_v46 = vadd.f32 1.0, %v7682_v9  ;;  %v4979_v60 = vsub.f32 1.0, %v4978_v22  ;;  %v4966_v47 = vadd.f32 %v14265_v61, %v4965_v24  ;;  %v4959_v9 = vor.u32 1.1754944e-38, %v4958_v7 }
 0x77f   : > { %v14333_v53 = vpop.eup %7685  ;;  %v14340_v23 = vadd.f32 1.0, %v7684_v30  ;;  %7695 = vrcp.f32 %v14312_v21  ;;  %v4973_v19 = vand.u32 2147483648, %v14243_v12  ;;  %v4925_v29 = vsel %vm14352_vm0, %v14257_v11, %v4921_v39 }
 0x780   : > { %v14338_v48 = vpop.eup %7687  ;;  %7697 = vpow2.f32 %v14273_v18  ;;  %vm14390_vm7 = vcmp.eq.f32.partialorder %v4971_v52, 8.507059e+37  ;;  %v4980_v62 = vmul.f32 %v14295_v56, %v4979_v60  ;;  %v4940_v36 = vsel %vm14366_vm10, %v14260_v3, %v4936_v2 }
 0x781   : > { %v14345_v32 = vpop.eup %7689  ;;  %7699 = vrcp.f32 %v14324_v46  ;;  %v4986_v11 = vand.u32 2147483647, %v14254_v38  ;;  %v4955_v41 = vsel %vm14386_vm13, %v14263_v42, %v4951_v44  ;;  %v4970_v3 = vsel %vm14403_vm15, %v14265_v61, %v4966_v47 }
 0x782   : > { %v14359_v51 = vpop.eup %7691  ;;  %7701 = vtanh.f32 %v5213_v35  ;;  %v4993_v35 = vmul.f32 %v14345_v32, %v14293_v45  ;;  %v5094_v24 = vmul.f32 %v14338_v48, %v14284_v31  ;;  %v14424_v39 = vsel %vm14316_vm8, %v4929_v14, %v4925_v29 }
 0x783   : > { %v14375_v22 = vpop.eup %7693  ;;  %7703 = vrcp.f32 %v14340_v23  ;;  %v5008_v12 = vmul.f32 %v14359_v51, %v14297_v58  ;;  %v4974_v52 = vor.u32 1.1754944e-38, %v4973_v19  ;;  %vm4982_vm14 = vweird.f32 %v14254_v38 }
 0x784   : > { %v5023_v42 = vmul.f32 %v14375_v22, %v14302_v13  ;;  %v14431_v61 = vsel %vm14327_vm5, %v4944_v54, %v4940_v36  ;;  %v4981_v2 = vadd.f32 %v14295_v56, %v4980_v62  ;;  %vm4983_vm12 = vweird.f32 %v14295_v56 }
 0x785   : > { %v14420_v7 = vpop.eup %7695  ;;  %v4988_v6 = vand.u32 2147483648, %v14254_v38  ;;  %v14440_v14 = vsel %vm14370_vm4, %v4959_v9, %v4955_v41  ;;  %v14444_v44 = vsel %vm14390_vm7, %v4974_v52, %v4970_v3  ;;  %vm14446_vm8 = vcmp.eq.f32.partialorder %v4986_v11, 8.507059e+37  ;;  %vm14459_vm5 = vmor %vm4982_vm14, %vm4983_vm12 }
 0x786   : > { %v7698_v60 = vpop.eup %7697  ;;  %v4994_v54 = vsub.f32 1.0, %v4993_v35  ;;  %v5003_v34 = vand.u32 2147483648, %v14293_v45  ;;  %v5009_v19 = vsub.f32 1.0, %v5008_v12  ;;  %v5095_v29 = vsub.f32 1.0, %v5094_v24 }
 0x787   : > { %v14436_v49 = vpop.eup %7699  ;;  %v5109_v18 = vmul.f32 %v14420_v7, %v14312_v21  ;;  %v5001_v30 = vand.u32 2147483647, %v14293_v45  ;;  %v5024_v62 = vsub.f32 1.0, %v5023_v42  ;;  %7705 = vpow2.f32 %v14289_v0 }
 0x788   : > { %v14450_v47 = vpop.eup %7701  ;;  %v6686_v36 = vmul.f32 -1.442695, %v5052_v1  ;;  %v4985_v59 = vsel %vm14459_vm5, %v14295_v56, %v4981_v2  ;;  %v4989_v11 = vor.u32 1.1754944e-38, %v4988_v6  ;;  %v5016_v35 = vand.u32 2147483647, %v14297_v58 }
 0x789   : > { %v14455_v9 = vpop.eup %7703  ;;  %v5018_v38 = vand.u32 2147483648, %v14297_v58  ;;  %v4995_v41 = vmul.f32 %v14345_v32, %v4994_v54  ;;  %vm4997_vm6 = vweird.f32 %v14293_v45  ;;  %vm5012_vm0 = vweird.f32 %v14297_v58 }
 0x78a   : > { %v5031_v0 = vand.u32 2147483647, %v14302_v13  ;;  %v5004_v3 = vor.u32 1.1754944e-38, %v5003_v34  ;;  %v5010_v1 = vmul.f32 %v14359_v51, %v5009_v19  ;;  %v5096_v12 = vmul.f32 %v14338_v48, %v5095_v29 }
 0x78b   : > { %v5110_v24 = vsub.f32 1.0, %v5109_v18  ;;  %v14480_v56 = vsel %vm14446_vm8, %v4989_v11, %v4985_v59  ;;  %vm14482_vm9 = vcmp.eq.f32.partialorder %v5001_v30, 8.507059e+37  ;;  %v5025_v42 = vmul.f32 %v14375_v22, %v5024_v62 }
 0x78c   : > { %vm5027_vm10 = vweird.f32 %v14302_v13  ;;  %7707 = vpow2.f32 %v6686_v36  ;;  %vm4998_vm4 = vweird.f32 %v14345_v32  ;;  %vm14489_vm13 = vcmp.eq.f32.partialorder %v5016_v35, 8.507059e+37 }
 0x78d   : > { %v5019_v6 = vor.u32 1.1754944e-38, %v5018_v38  ;;  %v5033_v5 = vand.u32 2147483648, %v14302_v13  ;;  %v14495_v54 = vadd.f32 1.0, %v14333_v53  ;;  %v7706_v34 = vpop.eup %7705  ;;  %v4996_v19 = vadd.f32 %v14345_v32, %v4995_v41  ;;  %vm14515_vm12 = vmor %vm4997_vm6, %vm4998_vm4 }
 0x78e   : > { %vm5013_vm7 = vweird.f32 %v14359_v51  ;;  %vm14499_vm15 = vcmp.eq.f32.partialorder %v5031_v0, 8.507059e+37  ;;  %v14503_v18 = vadd.f32 1.0, %v7698_v60  ;;  %vm5099_vm14 = vweird.f32 %v14338_v48 }
 0x78f   : > { %v5011_v63 = vadd.f32 %v14359_v51, %v5010_v1  ;;  %v5097_v30 = vadd.f32 %v14338_v48, %v5096_v12  ;;  %v5111_v53 = vmul.f32 %v14420_v7, %v5110_v24  ;;  %v5124_v62 = vmul.f32 %v14436_v49, %v14324_v46  ;;  %vm14525_vm5 = vmor %vm5012_vm0, %vm5013_vm7 }
 0x790   : > { %v5026_v60 = vadd.f32 %v14375_v22, %v5025_v42  ;;  %vm5028_vm8 = vweird.f32 %v14375_v22  ;;  %v5102_v59 = vand.u32 2147483647, %v14284_v31  ;;  %v5104_v11 = vand.u32 2147483648, %v14284_v31 }
 0x791   : > { %v5034_v38 = vor.u32 1.1754944e-38, %v5033_v5  ;;  %v14529_v45 = vadd.f32 1.0, %v7706_v34  ;;  %vm5098_vm6 = vweird.f32 %v14284_v31  ;;  %v5139_v41 = vmul.f32 %v14455_v9, %v14340_v23  ;;  %vm14553_vm7 = vmor %vm5027_vm10, %vm5028_vm8 }
 0x792   : > { %v7708_v0 = vpop.eup %7707  ;;  %v5000_v1 = vsel %vm14515_vm12, %v14345_v32, %v4996_v19  ;;  %vm14539_vm4 = vmor %vm5098_vm6, %vm5099_vm14  ;;  %vm5114_vm0 = vweird.f32 %v14420_v7  ;;  %v5117_v12 = vand.u32 2147483647, %v14312_v21  ;;  %7709 = vrcp.f32 %v14495_v54 }
 0x793   : > { %v5015_v31 = vsel %vm14525_vm5, %v14359_v51, %v5011_v63  ;;  %v5101_v24 = vsel %vm14539_vm4, %v14338_v48, %v5097_v30  ;;  %v5112_v42 = vadd.f32 %v14420_v7, %v5111_v53  ;;  %v5125_v5 = vsub.f32 1.0, %v5124_v62 }
 0x794   : > { %v5030_v34 = vsel %vm14553_vm7, %v14375_v22, %v5026_v60  ;;  %vm5103_vm14 = vcmp.eq.f32.partialorder %v5102_v59, 8.507059e+37  ;;  %v5105_v51 = vor.u32 1.1754944e-38, %v5104_v11  ;;  %v5119_v19 = vand.u32 2147483648, %v14312_v21 }
 0x795   : > { %v14567_v13 = vsel %vm14482_vm9, %v5004_v3, %v5000_v1  ;;  %v14569_v63 = vadd.f32 1.0, %v7708_v0  ;;  %vm5113_vm10 = vweird.f32 %v14312_v21  ;;  %v5140_v48 = vsub.f32 1.0, %v5139_v41 }
 0x796   : > { %v14574_v30 = vsel %vm14489_vm13, %v5019_v6, %v5015_v31  ;;  %v14576_v53 = vsel %vm5103_vm14, %v5105_v51, %v5101_v24  ;;  %vm14580_vm12 = vmor %vm5113_vm10, %vm5114_vm0  ;;  %vm5118_vm8 = vcmp.eq.f32.partialorder %v5117_v12, 8.507059e+37  ;;  %7711 = vrcp.f32 %v14503_v18 }
 0x797   : > { %17130 = vst [vmem:[#allocation18_spill] sm:$0xff] %v14574_v30  ;;  %v14587_v3 = vsel %vm14499_vm15, %v5034_v38, %v5030_v34  ;;  %v5116_v21 = vsel %vm14580_vm12, %v14420_v7, %v5112_v42  ;;  %v5126_v52 = vmul.f32 %v14436_v49, %v5125_v5  ;;  %7713 = vrcp.f32 %v14529_v45 }
 0x798   : > { %17133 = vst [vmem:[#allocation19_spill] sm:$0xff] %v14587_v3  ;;  %v14594_v2 = vpop.eup %7709  ;;  %v5120_v6 = vor.u32 1.1754944e-38, %v5119_v19  ;;  %v5132_v62 = vand.u32 2147483647, %v14324_v46  ;;  %v5134_v36 = vand.u32 2147483648, %v14324_v46  ;;  %v5239_v60 = vrot.slane %v14215_v27, 3 }
 0x799   : > { %v5141_v29 = vmul.f32 %v14455_v9, %v5140_v48  ;;  %v5147_v59 = vand.u32 2147483647, %v14340_v23  ;;  %7715 = vrcp.f32 %v14569_v63  ;;  %v5240_v7 = vrot.slane %v14217_v26, 3 }
 0x79a   : > { %v14603_v11 = vsel %vm5118_vm8, %v5120_v6, %v5116_v21  ;;  %vm5128_vm9 = vweird.f32 %v14324_v46  ;;  %vm5129_vm13 = vweird.f32 %v14436_v49  ;;  %v5241_v35 = vrot.slane %v14224_v16, 3 }
 0x79b   : > { %v5127_v38 = vadd.f32 %v14436_v49, %v5126_v52  ;;  %vm5143_vm15 = vweird.f32 %v14340_v23  ;;  %v5149_v41 = vand.u32 2147483648, %v14340_v23  ;;  %v5154_v0 = vmul.f32 %v14594_v2, %v14495_v54  ;;  %vm14632_vm0 = vmor %vm5128_vm9, %vm5129_vm13 }
 0x79c   : > { %v14613_v1 = vpop.eup %7711  ;;  %vm14615_vm5 = vcmp.eq.f32.partialorder %v5132_v62, 8.507059e+37  ;;  %v5135_v12 = vor.u32 1.1754944e-38, %v5134_v36  ;;  %vm5144_vm6 = vweird.f32 %v14455_v9  ;;  %v6689_v31 = vmul.f32 -1.442695, %v5239_v60 }
 0x79d   : > { %v14620_v32 = vpop.eup %7713  ;;  %v5142_v24 = vadd.f32 %v14455_v9, %v5141_v29  ;;  %vm14623_vm4 = vcmp.eq.f32.partialorder %v5147_v59, 8.507059e+37  ;;  %v5164_v5 = vand.u32 2147483648, %v14495_v54  ;;  %v6690_v34 = vmul.f32 -1.442695, %v5240_v7  ;;  %vm14649_vm7 = vmor %vm5143_vm15, %vm5144_vm6 }
 0x79e   : > { %v5162_v19 = vand.u32 2147483647, %v14495_v54  ;;  %v5242_v48 = vrot.slane %v14233_v28, 3  ;;  %7717 = vpow2.f32 %v14286_v37  ;;  %v6691_v22 = vmul.f32 -1.442695, %v5241_v35 }
 0x79f   : > { %v14639_v21 = vpop.eup %7715  ;;  %v5131_v52 = vsel %vm14632_vm0, %v14436_v49, %v5127_v38  ;;  %v5150_v6 = vor.u32 1.1754944e-38, %v5149_v41  ;;  %v5155_v62 = vsub.f32 1.0, %v5154_v0  ;;  %7719 = vpow2.f32 %v14291_v10 }
 0x7a0   : > { %v5169_v37 = vmul.f32 %v14613_v1, %v14503_v18  ;;  %v5179_v36 = vand.u32 2147483648, %v14503_v18  ;;  %v5184_v49 = vmul.f32 %v14620_v32, %v14529_v45  ;;  %7721 = vpow2.f32 %v6689_v31 }
 0x7a1   : > { %v5146_v10 = vsel %vm14649_vm7, %v14455_v9, %v5142_v24  ;;  %v14661_v60 = vor.u32 1.1754944e-38, %v5164_v5  ;;  %v5243_v23 = vrot.slane %v14237_v40, 3  ;;  %7723 = vpow2.f32 %v6690_v34 }
 0x7a2   : > { %vm5158_vm14 = vweird.f32 %v14495_v54  ;;  %v5177_v29 = vand.u32 2147483647, %v14503_v18  ;;  %v5199_v59 = vmul.f32 %v14639_v21, %v14569_v63  ;;  %7725 = vpow2.f32 %v6691_v22 }
 0x7a3   : > { %v6692_v7 = vmul.f32 -1.442695, %v5242_v48  ;;  %v14670_v35 = vsel %vm14615_vm5, %v5135_v12, %v5131_v52  ;;  %v5156_v9 = vmul.f32 %v14594_v2, %v5155_v62  ;;  %v5192_v38 = vand.u32 2147483647, %v14529_v45 }
 0x7a4   : > { %v5194_v41 = vand.u32 2147483648, %v14529_v45  ;;  %v7718_v0 = vpop.eup %7717  ;;  %v14677_v31 = vsel %vm14623_vm4, %v5150_v6, %v5146_v10  ;;  %v5170_v24 = vsub.f32 1.0, %v5169_v37  ;;  %v14679_v5 = vor.u32 1.1754944e-38, %v5179_v36 }
 0x7a5   : > { %v5185_v34 = vsub.f32 1.0, %v5184_v49  ;;  %v7720_v51 = vpop.eup %7719  ;;  %vm5159_vm10 = vweird.f32 %v14594_v2  ;;  %vm5173_vm12 = vweird.f32 %v14503_v18  ;;  %v5207_v58 = vand.u32 2147483647, %v14569_v63 }
 0x7a6   : > { %v6693_v12 = vmul.f32 -1.442695, %v5243_v23  ;;  %v14684_v48 = vadd.f32 1.0, %v7718_v0  ;;  %v7722_v22 = vpop.eup %7721  ;;  %vm14686_vm8 = vcmp.eq.f32.partialorder %v5162_v19, 8.507059e+37  ;;  %vm5188_vm9 = vweird.f32 %v14529_v45  ;;  %vm14722_vm4 = vmor %vm5158_vm14, %vm5159_vm10 }
 0x7a7   : > { %v5200_v42 = vsub.f32 1.0, %v5199_v59  ;;  %v5244_v6 = vrot.slane %v14241_v25, 3  ;;  %7727 = vpow2.f32 %v6692_v7  ;;  %v14692_v62 = vadd.f32 1.0, %v7720_v51  ;;  %v7724_v46 = vpop.eup %7723 }
 0x7a8   : > { %v5157_v37 = vadd.f32 %v14594_v2, %v5156_v9  ;;  %v5209_v36 = vand.u32 2147483648, %v14569_v63  ;;  %v14696_v49 = vadd.f32 1.0, %v7722_v22  ;;  %7729 = vrcp.f32 %v14684_v48  ;;  %v7726_v19 = vpop.eup %7725 }
 0x7a9   : > { %v5171_v10 = vmul.f32 %v14613_v1, %v5170_v24  ;;  %v5186_v23 = vmul.f32 %v14620_v32, %v5185_v34  ;;  %vm5203_vm13 = vweird.f32 %v14569_v63  ;;  %v14702_v59 = vadd.f32 1.0, %v7724_v46 }
 0x7aa   : > { %7731 = vrcp.f32 %v14692_v62  ;;  %vm5174_vm15 = vweird.f32 %v14613_v1  ;;  %v5195_v7 = vor.u32 1.1754944e-38, %v5194_v41  ;;  %v5215_v9 = vrot.slane %v14215_v27, 2 }
 0x7ab   : > { %7733 = vpow2.f32 %v6693_v12  ;;  %vm14707_vm5 = vcmp.eq.f32.partialorder %v5177_v29, 8.507059e+37  ;;  %vm14711_vm6 = vcmp.eq.f32.partialorder %v5192_v38, 8.507059e+37  ;;  %v5201_v34 = vmul.f32 %v14639_v21, %v5200_v42  ;;  %vm14752_vm14 = vmor %vm5173_vm12, %vm5174_vm15 }
 0x7ac   : > { %v5216_v51 = vrot.slane %v14217_v26, 2  ;;  %v6694_v22 = vmul.f32 -1.442695, %v5244_v6  ;;  %7735 = vrcp.f32 %v14696_v49  ;;  %vm5189_vm0 = vweird.f32 %v14620_v32 }
 0x7ad   : > { %v5210_v29 = vor.u32 1.1754944e-38, %v5209_v36  ;;  %7737 = vtanh.f32 %v5214_v17  ;;  %v14729_v38 = vadd.f32 1.0, %v7726_v19  ;;  %v7728_v26 = vpop.eup %7727  ;;  %v5161_v41 = vsel %vm14722_vm4, %v14594_v2, %v5157_v37  ;;  %vm14769_vm12 = vmor %vm5188_vm9, %vm5189_vm0 }
 0x7ae   : > { %v5172_v12 = vadd.f32 %v14613_v1, %v5171_v10  ;;  %v5187_v54 = vadd.f32 %v14620_v32, %v5186_v23  ;;  %vm14736_vm7 = vcmp.eq.f32.partialorder %v5207_v58, 8.507059e+37  ;;  %7739 = vrcp.f32 %v14702_v59  ;;  %v14741_v6 = vpop.eup %7729 }
 0x7af   : > { %v5218_v17 = vrot.slane %v14233_v28, 2  ;;  %v5219_v46 = vrot.slane %v14237_v40, 2  ;;  %7741 = vtanh.f32 %v5215_v9  ;;  %v5202_v37 = vadd.f32 %v14639_v21, %v5201_v34 }
 0x7b0   : > { %v14746_v2 = vpop.eup %7731  ;;  %vm5204_vm10 = vweird.f32 %v14639_v21  ;;  %7743 = vpow2.f32 %v6694_v22  ;;  %v5286_v16 = vmul.f32 %v14741_v6, %v14684_v48  ;;  %v14763_v40 = vsel %vm14686_vm8, %v14661_v60, %v5161_v41 }
 0x7b1   : > { %v7734_v28 = vpop.eup %7733  ;;  %v5220_v36 = vrot.slane %v14241_v25, 2  ;;  %v5301_v19 = vmul.f32 %v14746_v2, %v14692_v62  ;;  %7745 = vrcp.f32 %v14729_v38  ;;  %v5176_v60 = vsel %vm14752_vm14, %v14613_v1, %v5172_v12  ;;  %vm14791_vm8 = vmor %vm5203_vm13, %vm5204_vm10 }
 0x7b2   : > { %v14777_v10 = vpop.eup %7735  ;;  %v5191_v45 = vsel %vm14769_vm12, %v14620_v32, %v5187_v54  ;;  %7747 = vtanh.f32 %v5216_v51  ;;  %v5287_v52 = vsub.f32 1.0, %v5286_v16  ;;  %v14795_v9 = vadd.f32 1.0, %v7728_v26 }
 0x7b3   : > { %v14785_v23 = vpop.eup %7737  ;;  %7749 = vtanh.f32 %v5217_v15  ;;  %v5302_v1 = vsub.f32 1.0, %v5301_v19  ;;  %v5316_v34 = vmul.f32 %v14777_v10, %v14696_v49  ;;  %v5206_v51 = vsel %vm14791_vm8, %v14639_v21, %v5202_v37 }
 0x7b4   : > { %v14799_v32 = vpop.eup %7739  ;;  %7751 = vtanh.f32 %v5218_v17  ;;  %v14804_v22 = vadd.f32 1.0, %v7734_v28  ;;  %v5294_v63 = vand.u32 2147483647, %v14684_v48  ;;  %v14812_v26 = vsel %vm14707_vm5, %v14679_v5, %v5176_v60 }
 0x7b5   : > { %v14807_v27 = vpop.eup %7741  ;;  %v14816_v41 = vsel %vm14711_vm6, %v5195_v7, %v5191_v45  ;;  %7753 = vtanh.f32 %v5219_v46  ;;  %v5288_v12 = vmul.f32 %v14741_v6, %v5287_v52  ;;  %v5303_v54 = vmul.f32 %v14746_v2, %v5302_v1 }
 0x7b6   : > { %v7744_v21 = vpop.eup %7743  ;;  %7755 = vtanh.f32 %v5220_v36  ;;  %v5317_v15 = vsub.f32 1.0, %v5316_v34  ;;  %v5331_v17 = vmul.f32 %v14799_v32, %v14702_v59  ;;  %v14826_v5 = vsel %vm14736_vm7, %v5210_v29, %v5206_v51 }
 0x7b7   : > { %v14822_v58 = vpop.eup %7745  ;;  %vm5290_vm9 = vweird.f32 %v14684_v48  ;;  %v5296_v7 = vand.u32 2147483648, %v14684_v48  ;;  %7757 = vrcp.f32 %v14795_v9  ;;  %vm14833_vm13 = vcmp.eq.f32.partialorder %v5294_v63, 8.507059e+37 }
 0x7b8   : > { %v14831_v0 = vpop.eup %7747  ;;  %vm5305_vm15 = vweird.f32 %v14692_v62  ;;  %v5309_v46 = vand.u32 2147483647, %v14692_v62  ;;  %7759 = vrcp.f32 %v14804_v22  ;;  %v14842_v42 = vadd.f32 1.0, %v7744_v21 }
 0x7b9   : > { %v14840_v29 = vpop.eup %7749  ;;  %v5289_v37 = vadd.f32 %v14741_v6, %v5288_v12  ;;  %vm5291_vm5 = vweird.f32 %v14741_v6  ;;  %vm5306_vm6 = vweird.f32 %v14746_v2  ;;  %v5304_v28 = vadd.f32 %v14746_v2, %v5303_v54 }
 0x7ba   : > { %v14847_v16 = vpop.eup %7751  ;;  %v5318_v18 = vmul.f32 %v14777_v10, %v5317_v15  ;;  %v5332_v36 = vsub.f32 1.0, %v5331_v17  ;;  %v5346_v19 = vmul.f32 %v14822_v58, %v14729_v38  ;;  %v5297_v45 = vor.u32 1.1754944e-38, %v5296_v7  ;;  %vm14862_vm4 = vmor %vm5290_vm9, %vm5291_vm5 }
 0x7bb   : > { %17160 = vst [vmem:[#allocation20_spill] sm:$0xff] %v14847_v16  ;;  %v14853_v60 = vpop.eup %7753  ;;  %v5311_v52 = vand.u32 2147483648, %v14692_v62  ;;  %v5326_v25 = vand.u32 2147483648, %v14696_v49  ;;  %v5341_v1 = vand.u32 2147483648, %v14702_v59  ;;  %vm14866_vm0 = vcmp.eq.f32.partialorder %v5309_v46, 8.507059e+37  ;;  %vm14882_vm14 = vmor %vm5305_vm15, %vm5306_vm6 }
 0x7bc   : > { %17161 = vst [vmem:[#allocation21_spill] sm:$0xff] %v14853_v60  ;;  %v14858_v34 = vpop.eup %7755  ;;  %vm5320_vm7 = vweird.f32 %v14696_v49  ;;  %v5324_v12 = vand.u32 2147483647, %v14696_v49  ;;  %v5356_v21 = vand.u32 2147483648, %v14729_v38  ;;  %v5293_v48 = vsel %vm14862_vm4, %v14741_v6, %v5289_v37 }
 0x7bd   : > { %17162 = vst [vmem:[#allocation22_spill] sm:$0xff] %v14858_v34  ;;  %v14873_v54 = vpop.eup %7757  ;;  %vm5321_vm10 = vweird.f32 %v14777_v10  ;;  %v5371_v17 = vand.u32 2147483648, %v14795_v9  ;;  %7761 = vrcp.f32 %v14842_v42  ;;  %v5308_v6 = vsel %vm14882_vm14, %v14746_v2, %v5304_v28 }
 0x7be   : > { %v14889_v7 = vpop.eup %7759  ;;  %v14895_v46 = vadd.f32 %v14777_v10, %v5318_v18  ;;  %v5333_v62 = vmul.f32 %v14799_v32, %v5332_v36  ;;  %v5347_v37 = vsub.f32 1.0, %v5346_v19  ;;  %v5312_v51 = vor.u32 1.1754944e-38, %v5311_v52  ;;  %vm14920_vm12 = vmor %vm5320_vm7, %vm5321_vm10 }
 0x7bf   : > { %v5327_v34 = vor.u32 1.1754944e-38, %v5326_v25  ;;  %v5339_v3 = vand.u32 2147483647, %v14702_v59  ;;  %v14899_v60 = vor.u32 1.1754944e-38, %v5341_v1  ;;  %v5354_v30 = vand.u32 2147483647, %v14729_v38 }
 0x7c0   : > { %v14902_v16 = vor.u32 1.1754944e-38, %v5356_v21  ;;  %v5361_v15 = vmul.f32 %v14873_v54, %v14795_v9  ;;  %v5376_v2 = vmul.f32 %v14889_v7, %v14804_v22  ;;  %v14910_v28 = vsel %vm14833_vm13, %v5297_v45, %v5293_v48 }
 0x7c1   : > { %v14914_v18 = vsel %vm14866_vm0, %v5312_v51, %v5308_v6  ;;  %vm5336_vm8 = vweird.f32 %v14799_v32  ;;  %v5369_v19 = vand.u32 2147483647, %v14795_v9  ;;  %v5323_v24 = vsel %vm14920_vm12, %v14777_v10, %v14895_v46 }
 0x7c2   : > { %vm14930_vm9 = vcmp.eq.f32.partialorder %v5324_v12, 8.507059e+37  ;;  %v14935_v52 = vadd.f32 %v14799_v32, %v5333_v62  ;;  %vm5335_vm13 = vweird.f32 %v14702_v59  ;;  %v5348_v49 = vmul.f32 %v14822_v58, %v5347_v37 }
 0x7c3   : > { %v14939_v25 = vor.u32 1.1754944e-38, %v5371_v17  ;;  %v14941_v1 = vpop.eup %7761  ;;  %vm5351_vm15 = vweird.f32 %v14822_v58  ;;  %v5384_v63 = vand.u32 2147483647, %v14804_v22  ;;  %v5405_v10 = vmul.f32 %v14576_v53, %v14050_v33  ;;  %vm15014_vm10 = vmor %vm5335_vm13, %vm5336_vm8 }
 0x7c4   : > { %v5406_v12 = vmul.f32 %v14603_v11, %v14052_v43  ;;  %v5407_v21 = vmul.f32 %v14670_v35, %v14054_v57  ;;  %v5362_v48 = vsub.f32 1.0, %v5361_v15  ;;  %vm5366_vm5 = vweird.f32 %v14873_v54 }
 0x7c5   : > { %v5377_v17 = vsub.f32 1.0, %v5376_v2  ;;  %v5391_v6 = vmul.f32 %v14941_v1, %v14842_v42  ;;  %v5408_v46 = vmul.f32 %v14677_v31, %v14061_v8  ;;  %vm5350_vm6 = vweird.f32 %v14729_v38 }
 0x7c6   : > { %v5409_v33 = vmul.f32 %v14763_v40, %v14070_v55  ;;  %v5413_v43 = vmul.f32 %v14450_v47, %v14424_v39  ;;  %v5414_v57 = vmul.f32 %v14785_v23, %v14431_v61  ;;  %v5415_v53 = vmul.f32 %v14807_v27, %v14440_v14  ;;  %v17179_v27 = vld [vmem:[#allocation18_spill] sm:$0xff] }
 0x7c7   : > { %vm5365_vm4 = vweird.f32 %v14795_v9  ;;  %v5392_v11 = vsub.f32 1.0, %v5391_v6  ;;  %v5410_v8 = vmul.f32 %v14812_v26, %v14076_v20  ;;  %v5411_v35 = vmul.f32 %v14816_v41, %v14094_v4  ;;  %v17180_v26 = vld [vmem:[#allocation21_spill] sm:$0xff] }
 0x7c8   : > { %v5416_v55 = vmul.f32 %v14831_v0, %v14444_v44  ;;  %vm14972_vm0 = vcmp.eq.f32.partialorder %v5339_v3, 8.507059e+37  ;;  %vm5380_vm7 = vweird.f32 %v14804_v22  ;;  %v5417_v61 = vmul.f32 %v14840_v29, %v14480_v56  ;;  %v17175_v3 = vld [vmem:[#allocation20_spill] sm:$0xff]  ;;  %v17183_v29 = vld [vmem:[#allocation22_spill] sm:$0xff] }
 0x7c9   : > { %v14979_v14 = vadd.f32 %v5413_v43, %v5405_v10  ;;  %v14981_v47 = vadd.f32 %v5414_v57, %v5406_v12  ;;  %v14983_v20 = vadd.f32 %v5415_v53, %v5407_v21  ;;  %v5363_v4 = vmul.f32 %v14873_v54, %v5362_v48 }
 0x7ca   : > { %v5412_v44 = vmul.f32 %v14826_v5, %v14102_v50  ;;  %v5418_v31 = vmul.f32 %v17175_v3, %v14567_v13  ;;  %v14990_v40 = vadd.f32 %v5416_v55, %v5408_v46  ;;  %vm14992_vm14 = vcmp.eq.f32.partialorder %v5354_v30, 8.507059e+37  ;;  %v17182_v5 = vld [vmem:[#allocation19_spill] sm:$0xff] }
 0x7cb   : > { %v5378_v56 = vmul.f32 %v14889_v7, %v5377_v17  ;;  %v5419_v41 = vmul.f32 %v17180_v26, %v17179_v27  ;;  %v14999_v0 = vadd.f32 %v5417_v61, %v5409_v33  ;;  %7763 = vtanh.f32 %v14979_v14 }
 0x7cc   : > { %17176 = vst [vmem:[#allocation23_spill] sm:$0xff] %v14990_v40  ;;  %v5393_v50 = vmul.f32 %v14941_v1, %v5392_v11  ;;  %v5420_v13 = vmul.f32 %v17183_v29, %v17182_v5  ;;  %v15005_v62 = vadd.f32 %v5418_v31, %v5410_v8  ;;  %7765 = vtanh.f32 %v14981_v47 }
 0x7cd   : > { %17181 = vst [vmem:[#allocation24_spill] sm:$0xff] %v14999_v0  ;;  %v5328_v30 = vsel %vm14930_vm9, %v5327_v34, %v5323_v24  ;;  %v5349_v51 = vadd.f32 %v14822_v58, %v5348_v49  ;;  %vm15019_vm12 = vcmp.eq.f32.partialorder %v5369_v19, 8.507059e+37  ;;  %v15023_v2 = vadd.f32 %v5419_v41, %v5411_v35  ;;  %vm15042_vm9 = vmor %vm5350_vm6, %vm5351_vm15 }
 0x7ce   : > { %17184 = vst [vmem:[#allocation25_spill] sm:$0xff] %v15005_v62  ;;  %7767 = vtanh.f32 %v14983_v20  ;;  %v5338_v34 = vsel %vm15014_vm10, %v14799_v32, %v14935_v52  ;;  %v5386_v59 = vand.u32 2147483648, %v14804_v22  ;;  %v15031_v36 = vadd.f32 %v5420_v13, %v5412_v44  ;;  %vm15060_vm15 = vmor %vm5365_vm4, %vm5366_vm5 }
 0x7cf   : > { %17189 = vst [vmem:[#allocation26_spill] sm:$0xff] %v15023_v2  ;;  %7769 = vtanh.f32 %v14990_v40  ;;  %v5364_v19 = vadd.f32 %v14873_v54, %v5363_v4  ;;  %v5379_v24 = vadd.f32 %v14889_v7, %v5378_v56  ;;  %vm5381_vm8 = vweird.f32 %v14889_v7 }
 0x7d0   : > { %17190 = vst [vmem:[#allocation27_spill] sm:$0xff] %v15031_v36  ;;  %7771 = vtanh.f32 %v14999_v0  ;;  %vm15046_vm13 = vcmp.eq.f32.partialorder %v5384_v63, 8.507059e+37  ;;  %v5394_v52 = vadd.f32 %v14941_v1, %v5393_v50  ;;  %vm5396_vm10 = vweird.f32 %v14941_v1  ;;  %vm15074_vm6 = vmor %vm5380_vm7, %vm5381_vm8 }
 0x7d1   : > { %7773 = vtanh.f32 %v15005_v62  ;;  %v7764_v49 = vpop.eup %7763  ;;  %v5353_v10 = vsel %vm15042_vm9, %v14822_v58, %v5349_v51  ;;  %v5399_v63 = vand.u32 2147483647, %v14842_v42  ;;  %v5401_v12 = vand.u32 2147483648, %v14842_v42 }
 0x7d2   : > { %7775 = vtanh.f32 %v15023_v2  ;;  %v7766_v21 = vpop.eup %7765  ;;  %v5343_v48 = vsel %vm14972_vm0, %v14899_v60, %v5338_v34  ;;  %vm5395_vm5 = vweird.f32 %v14842_v42  ;;  %v5437_v58 = vmul.f32 %v7764_v49, %v14910_v28 }
 0x7d3   : > { %7777 = vtanh.f32 %v15031_v36  ;;  %v5368_v6 = vsel %vm15060_vm15, %v14873_v54, %v5364_v19  ;;  %v5383_v60 = vsel %vm15074_vm6, %v14889_v7, %v5379_v24  ;;  %v5387_v22 = vor.u32 1.1754944e-38, %v5386_v59  ;;  %vm15089_vm4 = vmor %vm5395_vm5, %vm5396_vm10 }
 0x7d4   : > { %v7768_v17 = vpop.eup %7767  ;;  %v5438_v42 = vmul.f32 %v7766_v21, %v14914_v18  ;;  %v5358_v28 = vsel %vm14992_vm14, %v14902_v16, %v5353_v10  ;;  %v5398_v54 = vsel %vm15089_vm4, %v14941_v1, %v5394_v52  ;;  %v5461_v7 = vpack.c.bf16 %v5437_v58, %v5437_v58 }
 0x7d5   : > { %v7770_v33 = vpop.eup %7769  ;;  %v5439_v43 = vmul.f32 %v7768_v17, %v5328_v30  ;;  %vm5400_vm0 = vcmp.eq.f32.partialorder %v5399_v63, 8.507059e+37  ;;  %v5402_v53 = vor.u32 1.1754944e-38, %v5401_v12  ;;  %v5373_v18 = vsel %vm15019_vm12, %v14939_v25, %v5368_v6 }
 0x7d6   : > { %v7772_v57 = vpop.eup %7771  ;;  %v5440_v11 = vmul.f32 %v7770_v33, %v5343_v48  ;;  %v5462_v8 = vpack.c.bf16 %v5438_v42, %v5438_v42  ;;  %v5388_v55 = vsel %vm15046_vm13, %v5387_v22, %v5383_v60  ;;  %v5477_v27 = vunpack.c.l.b16 %v5461_v7 }
 0x7d7   : > { %v7774_v35 = vpop.eup %7773  ;;  %v5441_v16 = vmul.f32 %v7772_v57, %v5358_v28  ;;  %v5463_v39 = vpack.c.bf16 %v5439_v43, %v5439_v43  ;;  %v5403_v4 = vsel %vm5400_vm0, %v5402_v53, %v5398_v54  ;;  %vm17201_vm7 = vcmask 1044484  }
 0x7d8   : > { %v7776_v61 = vpop.eup %7775  ;;  %v5442_v1 = vmul.f32 %v7774_v35, %v5373_v18  ;;  %v5464_v44 = vpack.c.bf16 %v5440_v11, %v5440_v11  ;;  %v5478_v3 = vunpack.c.l.b16 %v5462_v8  ;;  %vm17202_vm14 = vcmask 1045509   ;;  %vm17205_vm9 = vmmov %vm17201_vm7 }
 0x7d9   : > { %v7778_v31 = vpop.eup %7777  ;;  %v5443_v23 = vmul.f32 %v7776_v61, %v5388_v55  ;;  %v5465_v56 = vpack.c.bf16 %v5441_v16, %v5441_v16  ;;  %v5479_v26 = vunpack.c.l.b16 %v5463_v39  ;;  %vm17203_vm12 = vcmask 1046534   ;;  %vm17209_vm15 = vmmov %vm17201_vm7  ;;  %v6695_v39 = vld [vmem:[%s8250_s21 + $0x7] ss:$8 sm:$0xf] }
 0x7da   : > { %v5444_v41 = vmul.f32 %v7778_v31, %v5403_v4  ;;  %v5466_v50 = vpack.c.bf16 %v5442_v1, %v5442_v1  ;;  %v5480_v5 = vunpack.c.l.b16 %v5464_v44  ;;  %v5485_v29 = vrot.slane %v5478_v3, 7  ;;  %vm17207_vm13 = vmmov %vm17203_vm12  ;;  %v6696_v61 = vld [vmem:[%s8250_s21 + $0x27] ss:$8 sm:$0xf] }
 0x7db   : > { %v5467_v25 = vpack.c.bf16 %v5443_v23, %v5443_v23  ;;  %v5481_v13 = vunpack.c.l.b16 %v5465_v56  ;;  %v5487_v30 = vrot.slane %v5479_v26, 6  ;;  %vm17204_vm8 = vcmask 1040384   ;;  %v6697_v31 = vld [vmem:[%s8250_s21 + $0x47] ss:$8 sm:$0xf] }
 0x7dc   : > { %v5468_v37 = vpack.c.bf16 %v5444_v41, %v5444_v41  ;;  %v5482_v51 = vunpack.c.l.b16 %v5466_v50  ;;  %v5486_v15 = vsel %vm480_vm2, %v5485_v29, %v5477_v27  ;;  %v5489_v34 = vrot.slane %v5480_v5, 5  ;;  %v6698_v41 = vld [vmem:[%s8250_s21 + $0x67] ss:$8 sm:$0xf] }
 0x7dd   : > { %v5483_v59 = vunpack.c.l.b16 %v5467_v25  ;;  %v5488_v19 = vsel %vm476_vm1, %v5487_v30, %v5486_v15  ;;  %v5491_v24 = vrot.slane %v5481_v13, 4  ;;  %vm17208_vm10 = vcmask 1046528   ;;  %v6699_v50 = vld [vmem:[%s8250_s21 + $0x87] ss:$8 sm:$0xf] }
 0x7de   : > { %v5484_v32 = vunpack.c.l.b16 %v5468_v37  ;;  %v5490_v45 = vsel %vm482_vm3, %v5489_v34, %v5488_v19  ;;  %v5493_v52 = vrot.slane %v5482_v51, 3  ;;  %vm17211_vm5 = vcmask 1041408   ;;  %v6700_v30 = vld [vmem:[%s8250_s21 + $0xa7] ss:$8 sm:$0xf] }
 0x7df   : > { %v5492_v49 = vsel %vm17201_vm7, %v5491_v24, %v5490_v45  ;;  %v5495_v10 = vrot.slane %v5483_v59, 2  ;;  %vm17212_vm4 = vcmask 1042433   ;;  %vm17213_vm0 = vcmask 1043458  }
 0x7e0   : > { %v5494_v38 = vsel %vm17202_vm14, %v5493_v52, %v5492_v49  ;;  %v5497_v63 = vrot.slane %v5484_v32, 1  ;;  %vm17214_vm7 = vcmask 1044483  }
 0x7e1   : > { %v5496_v12 = vsel %vm17203_vm12, %v5495_v10, %v5494_v38 }
 0x7e2   : > { %v5498_v21 = vsel %vm1165_vm11, %v5497_v63, %v5496_v12  ;;  %vm17206_vm11 = vmmov %vm17202_vm14 }
 0x7e3   : > { %v5499_v48 = vpack.c.b16 %v5498_v21, %v5498_v21  ;;  %vm17210_vm6 = vmmov %vm17206_vm11 }
 0x7e4   : > { %vm17217_vm14 = vmmov %vm17208_vm10 }
 0x7e5   : > { %5509 = vmatmul.bf16.vlgmr.msrb.gmra.mxu0 %v5499_v48  ;;  %5522 = vmatmul.bf16.vlgmr.msrb.gmra.mxu1 %v5499_v48 }
 0x7e6   : > { %5535 = vmatmul.bf16.vlgmr.msrb.gmra.mxu2 %v5499_v48  ;;  %5548 = vmatmul.bf16.vlgmr.msrb.gmra.mxu3 %v5499_v48 }
 0x862   : > { %v5510_v9 = vpop.f32.mrf.mxu0  ;;  %v5523_v58 = vpop.f32.mrf.mxu1 }
 0x863   : > { %v5557_v17 = vrot.slane %v5523_v58, 7 }
 0x865   : > { %v5560_v6 = vsel %vm17204_vm8, %v5510_v9, %v5557_v17  ;;  %v5563_v60 = vsel %vm480_vm2, %v5510_v9, %v5557_v17  ;;  %v5567_v22 = vsel %vm476_vm1, %v5510_v9, %v5557_v17  ;;  %v5571_v46 = vsel %vm482_vm3, %v5510_v9, %v5557_v17 }
 0x866   : > { %v5575_v42 = vsel %vm17205_vm9, %v5510_v9, %v5557_v17  ;;  %v5579_v33 = vsel %vm17206_vm11, %v5510_v9, %v5557_v17  ;;  %v5583_v28 = vsel %vm17207_vm13, %v5510_v9, %v5557_v17  ;;  %v5587_v54 = vsel %vm17208_vm10, %v5557_v17, %v5510_v9  ;;  %v6701_v9 = vld [vmem:[%s8250_s21 + $0xc7] ss:$8 sm:$0xf] }
 0x867   : > { %vm17220_vm9 = vcmask 1045504   ;;  %vm17221_vm11 = vcmask 1046529  }
 0x869   : > { %v5536_v43 = vpop.f32.mrf.mxu2  ;;  %v5549_v7 = vpop.f32.mrf.mxu3 }
 0x86a   : > { %v5558_v57 = vrot.slane %v5536_v43, 6  ;;  %v5559_v53 = vrot.slane %v5549_v7, 5  ;;  %v5512_v11 = vpop.f32.mrf.mxu0  ;;  %v5525_v8 = vpop.f32.mrf.mxu1 }
 0x86c   : > { %v5561_v35 = vsel %vm476_vm1, %v5558_v57, %v5559_v53  ;;  %v5564_v18 = vsel %vm482_vm3, %v5558_v57, %v5559_v53  ;;  %v5568_v55 = vsel %vm17209_vm15, %v5558_v57, %v5559_v53  ;;  %v5572_v16 = vsel %vm17210_vm6, %v5558_v57, %v5559_v53  ;;  %vm17215_vm1 = vmmov %vm17203_vm12 }
 0x86d   : > { %v5562_v4 = vsel %vm17211_vm5, %v5560_v6, %v5561_v35  ;;  %v5565_v1 = vsel %vm17212_vm4, %v5563_v60, %v5564_v18  ;;  %v5569_v44 = vsel %vm17213_vm0, %v5567_v22, %v5568_v55  ;;  %v5573_v3 = vsel %vm17214_vm7, %v5571_v46, %v5572_v16  ;;  %vm17218_vm12 = vmmov %vm17204_vm8  ;;  %v6702_v6 = vld [vmem:[%s8250_s21 + $0xe7] ss:$8 sm:$0xf] }
 0x86e   : > { %v5566_v23 = vrot.slane %v5565_v1, 1  ;;  %v5570_v56 = vrot.slane %v5569_v44, 2  ;;  %v5574_v27 = vrot.slane %v5573_v3, 3  ;;  %v5576_v26 = vsel %vm17215_vm1, %v5558_v57, %v5559_v53 }
 0x86f   : > { %vm17216_vm3 = vcmask 1045508   ;;  %v5580_v29 = vsel %vm17217_vm14, %v5559_v53, %v5558_v57  ;;  %v5584_v25 = vsel %vm17218_vm12, %v5558_v57, %v5559_v53  ;;  %v5588_v13 = vsel %vm480_vm2, %v5558_v57, %v5559_v53 }
 0x870   : > { %v5577_v5 = vsel %vm17216_vm3, %v5575_v42, %v5576_v26  ;;  %vm17219_vm8 = vcmask 1046533   ;;  %v5585_v15 = vsel %vm17220_vm9, %v5584_v25, %v5583_v28  ;;  %v5589_v34 = vsel %vm17221_vm11, %v5588_v13, %v5587_v54 }
 0x871   : > { %v5578_v37 = vrot.slane %v5577_v5, 4  ;;  %v5581_v51 = vsel %vm17219_vm8, %v5579_v33, %v5580_v29  ;;  %v15142_v19 = vadd.f32 %v6695_v39, %v5562_v4  ;;  %v5538_v24 = vpop.f32.mrf.mxu2  ;;  %v5551_v32 = vpop.f32.mrf.mxu3  ;;  %v15144_v45 = vadd.f32 %v6696_v61, %v5566_v23 }
 0x872   : > { %v5582_v59 = vrot.slane %v5581_v51, 5  ;;  %v15146_v52 = vadd.f32 %v6697_v31, %v5570_v56  ;;  %v15148_v49 = vadd.f32 %v6698_v41, %v5574_v27  ;;  %v5586_v12 = vrot.slane %v5585_v15, 6 }
 0x873   : > { %v15150_v10 = vadd.f32 %v6699_v50, %v5578_v37  ;;  %v6703_v63 = vmul.f32 -1.442695, %v15142_v19  ;;  %v6704_v21 = vmul.f32 -1.442695, %v15144_v45  ;;  %v5590_v58 = vrot.slane %v5589_v34, 7 }
 0x874   : > { %v15152_v38 = vadd.f32 %v6700_v30, %v5582_v59  ;;  %v6705_v48 = vmul.f32 -1.442695, %v15146_v52  ;;  %v6706_v17 = vmul.f32 -1.442695, %v15148_v49  ;;  %v15162_v46 = vadd.f32 %v6701_v9, %v5586_v12 }
 0x875   : > { %7779 = vpow2.f32 %v6703_v63  ;;  %v6707_v60 = vmul.f32 -1.442695, %v15150_v10  ;;  %v15164_v42 = vadd.f32 %v6702_v6, %v5590_v58  ;;  %v5767_v33 = vrot.slane %v15142_v19, 1 }
 0x876   : > { %7781 = vpow2.f32 %v6704_v21  ;;  %v6708_v22 = vmul.f32 -1.442695, %v15152_v38  ;;  %v6709_v54 = vmul.f32 -1.442695, %v15162_v46  ;;  %v5768_v39 = vrot.slane %v15144_v45, 1 }
 0x877   : > { %7783 = vpow2.f32 %v6705_v48  ;;  %v6710_v7 = vmul.f32 -1.442695, %v15164_v42  ;;  %v6711_v53 = vmul.f32 -1.442695, %v5767_v33  ;;  %v5769_v4 = vrot.slane %v15146_v52, 1 }
 0x878   : > { %7785 = vpow2.f32 %v6706_v17  ;;  %v5770_v44 = vrot.slane %v15148_v49, 1  ;;  %v5771_v31 = vrot.slane %v15150_v10, 1  ;;  %v5772_v23 = vrot.slane %v15152_v38, 1 }
 0x879   : > { %7787 = vpow2.f32 %v6707_v60  ;;  %v5773_v56 = vrot.slane %v15162_v46, 1  ;;  %v6712_v27 = vmul.f32 -1.442695, %v5768_v39  ;;  %v5774_v41 = vrot.slane %v15164_v42, 1 }
 0x87a   : > { %7789 = vpow2.f32 %v6708_v22  ;;  %v6713_v50 = vmul.f32 -1.442695, %v5769_v4  ;;  %v6714_v29 = vmul.f32 -1.442695, %v5770_v44  ;;  %v6715_v13 = vmul.f32 -1.442695, %v5771_v31 }
 0x87b   : > { %v7780_v28 = vpop.eup %7779  ;;  %7791 = vpow2.f32 %v6709_v54  ;;  %v6716_v37 = vmul.f32 -1.442695, %v5772_v23  ;;  %v6717_v51 = vmul.f32 -1.442695, %v5773_v56  ;;  %v6718_v34 = vmul.f32 -1.442695, %v5774_v41 }
 0x87c   : > { %v7782_v43 = vpop.eup %7781  ;;  %v15169_v8 = vadd.f32 1.0, %v7780_v28  ;;  %7793 = vpow2.f32 %v6710_v7  ;;  %v5935_v59 = vrot.slane %v15142_v19, 2  ;;  %v5959_v17 = vrot.slane %v15142_v19, 3 }
 0x87d   : > { %v7784_v57 = vpop.eup %7783  ;;  %v15171_v18 = vadd.f32 1.0, %v7782_v43  ;;  %7795 = vpow2.f32 %v6711_v53  ;;  %v5960_v33 = vrot.slane %v15144_v45, 3  ;;  %v5961_v43 = vrot.slane %v15146_v52, 3 }
 0x87e   : > { %v7786_v11 = vpop.eup %7785  ;;  %v15173_v16 = vadd.f32 1.0, %v7784_v57  ;;  %7797 = vrcp.f32 %v15169_v8  ;;  %v5962_v7 = vrot.slane %v15148_v49, 3  ;;  %v5963_v53 = vrot.slane %v15150_v10, 3 }
 0x87f   : > { %v7788_v35 = vpop.eup %7787  ;;  %v15176_v61 = vadd.f32 1.0, %v7786_v11  ;;  %7799 = vrcp.f32 %v15171_v18  ;;  %v5964_v11 = vrot.slane %v15152_v38, 3  ;;  %v5965_v4 = vrot.slane %v15162_v46, 3 }
 0x880   : > { %v7790_v55 = vpop.eup %7789  ;;  %v15179_v1 = vadd.f32 1.0, %v7788_v35  ;;  %7801 = vrcp.f32 %v15173_v16  ;;  %v5966_v44 = vrot.slane %v15164_v42, 3  ;;  %v15233_v56 = vmul.f32 -1.442695, %v5959_v17 }
 0x881   : > { %v15183_v3 = vadd.f32 1.0, %v7790_v55  ;;  %v7792_v26 = vpop.eup %7791  ;;  %7803 = vrcp.f32 %v15176_v61  ;;  %vm5644_vm2 = vweird.f32 %v15169_v8  ;;  %v5650_v9 = vand.u32 2147483648, %v15169_v8 }
 0x882   : > { %v7794_v5 = vpop.eup %7793  ;;  %7805 = vrcp.f32 %v15179_v1  ;;  %v15212_v60 = vadd.f32 1.0, %v7792_v26  ;;  %v5663_v63 = vand.u32 2147483647, %v15171_v18  ;;  %v17225_v36 = vrot.slane %v15144_v45, 2 }
 0x883   : > { %v7796_v25 = vpop.eup %7795  ;;  %7807 = vrcp.f32 %v15183_v3  ;;  %v15219_v54 = vadd.f32 1.0, %v7794_v5  ;;  %v15242_v5 = vmul.f32 -1.442695, %v5962_v7  ;;  %vm5659_vm5 = vweird.f32 %v15171_v18 }
 0x884   : > { %v15194_v30 = vpop.eup %7797  ;;  %7809 = vpow2.f32 %v6712_v27  ;;  %v15228_v39 = vadd.f32 1.0, %v7796_v25  ;;  %v15235_v27 = vmul.f32 -1.442695, %v5960_v33  ;;  %v15255_v33 = vmul.f32 -1.442695, %v5965_v4 }
 0x885   : > { %v15196_v15 = vpop.eup %7799  ;;  %7811 = vpow2.f32 %v6713_v50  ;;  %v5640_v22 = vmul.f32 %v15194_v30, %v15169_v8  ;;  %v15240_v50 = vmul.f32 -1.442695, %v5961_v43  ;;  %vm5645_vm13 = vweird.f32 %v15194_v30 }
 0x886   : > { %v15200_v32 = vpop.eup %7801  ;;  %7813 = vpow2.f32 %v6714_v29  ;;  %v5655_v55 = vmul.f32 %v15196_v15, %v15171_v18  ;;  %vm15316_vm10 = vmor %vm5644_vm2, %vm5645_vm13  ;;  %vm5660_vm15 = vweird.f32 %v15196_v15  ;;  %vm15362_vm0 = vcmp.eq.f32.partialorder %v5663_v63, 8.507059e+37 }
 0x887   : > { %v15205_v48 = vpop.eup %7803  ;;  %7815 = vpow2.f32 %v6715_v13  ;;  %v5641_v23 = vsub.f32 1.0, %v5640_v22  ;;  %v5670_v25 = vmul.f32 %v15200_v32, %v15173_v16  ;;  %vm15349_vm4 = vmor %vm5659_vm5, %vm5660_vm15  ;;  %vm5674_vm7 = vweird.f32 %v15173_v16 }
 0x888   : > { %v15210_v6 = vpop.eup %7805  ;;  %7817 = vpow2.f32 %v6716_v37  ;;  %v15248_v37 = vmul.f32 -1.442695, %v5963_v53  ;;  %v5656_v17 = vsub.f32 1.0, %v5655_v55  ;;  %v15264_v53 = vmul.f32 %v15205_v48, %v15176_v61 }
 0x889   : > { %v15217_v28 = vpop.eup %7807  ;;  %7819 = vpow2.f32 %v6717_v51  ;;  %v15250_v51 = vmul.f32 -1.442695, %v5964_v11  ;;  %v15268_v11 = vmul.f32 %v15210_v6, %v15179_v1  ;;  %v17234_v63 = vrot.slane %v15162_v46, 2 }
 0x88a   : > { %v7810_v19 = vpop.eup %7809  ;;  %7821 = vpow2.f32 %v6718_v34  ;;  %v5686_v58 = vsub.f32 1.0, %v15264_v53  ;;  %vm5675_vm1 = vweird.f32 %v15200_v32  ;;  %vm5690_vm12 = vweird.f32 %v15205_v48 }
 0x88b   : > { %v7812_v35 = vpop.eup %7811  ;;  %7823 = vrcp.f32 %v15212_v60  ;;  %v15238_v41 = vadd.f32 1.0, %v7810_v19  ;;  %v15259_v19 = vmul.f32 -1.442695, %v5966_v44  ;;  %vm15422_vm3 = vmor %vm5674_vm7, %vm5675_vm1  ;;  %vm5689_vm8 = vweird.f32 %v15176_v61 }
 0x88c   : > { %v7814_v31 = vpop.eup %7813  ;;  %7825 = vrcp.f32 %v15219_v54  ;;  %v15246_v13 = vadd.f32 1.0, %v7812_v35  ;;  %v5642_v35 = vmul.f32 %v15194_v30, %v5641_v23  ;;  %vm5705_vm9 = vweird.f32 %v15210_v6  ;;  %vm15478_vm11 = vmor %vm5689_vm8, %vm5690_vm12 }
 0x88d   : > { %v7816_v26 = vpop.eup %7815  ;;  %v15252_v22 = vadd.f32 1.0, %v7814_v31  ;;  %7827 = vrcp.f32 %v15228_v39  ;;  %v5671_v31 = vsub.f32 1.0, %v5670_v25  ;;  %vm5704_vm2 = vweird.f32 %v15179_v1 }
 0x88e   : > { %v7818_v29 = vpop.eup %7817  ;;  %v15257_v7 = vadd.f32 1.0, %v7816_v26  ;;  %7829 = vtanh.f32 %v5935_v59  ;;  %v15277_v59 = vmul.f32 %v15217_v28, %v15183_v3  ;;  %v5643_v25 = vadd.f32 %v15194_v30, %v5642_v35 }
 0x88f   : > { %v7820_v34 = vpop.eup %7819  ;;  %v15270_v55 = vadd.f32 1.0, %v7818_v29  ;;  %7831 = vrcp.f32 %v15238_v41  ;;  %v5657_v29 = vmul.f32 %v15196_v15, %v5656_v17  ;;  %v5672_v0 = vmul.f32 %v15200_v32, %v5671_v31 }
 0x890   : > { %v7822_v43 = vpop.eup %7821  ;;  %v15279_v44 = vadd.f32 1.0, %v7820_v34  ;;  %7833 = vrcp.f32 %v15246_v13  ;;  %v5648_v34 = vand.u32 2147483647, %v15169_v8  ;;  %v5647_v2 = vsel %vm15316_vm10, %v15194_v30, %v5643_v25  ;;  %vm15498_vm10 = vmor %vm5704_vm2, %vm5705_vm9 }
 0x891   : > { %v15273_v4 = vpop.eup %7823  ;;  %v15284_v26 = vadd.f32 1.0, %v7822_v43  ;;  %7835 = vrcp.f32 %v15252_v22  ;;  %v5658_v17 = vadd.f32 %v15196_v15, %v5657_v29  ;;  %v5665_v8 = vand.u32 2147483648, %v15171_v18 }
 0x892   : > { %v15282_v23 = vpop.eup %7825  ;;  %7837 = vrcp.f32 %v15257_v7  ;;  %v15304_v35 = vmul.f32 %v15273_v4, %v15212_v60  ;;  %vm5649_vm6 = vcmp.eq.f32.partialorder %v5648_v34, 8.507059e+37  ;;  %v17226_v29 = vrot.slane %v15146_v52, 2 }
 0x893   : > { %v15293_v57 = vpop.eup %7827  ;;  %7839 = vrcp.f32 %v15270_v55  ;;  %v15308_v12 = vmul.f32 %v15282_v23, %v15219_v54  ;;  %v17227_v25 = vrot.slane %v15148_v49, 2  ;;  %v5662_v34 = vsel %vm15349_vm4, %v15196_v15, %v5658_v17 }
 0x894   : > { %v15299_v21 = vpop.eup %7829  ;;  %7841 = vrcp.f32 %v15279_v44  ;;  %v15343_v30 = vmul.f32 %v15293_v57, %v15228_v39  ;;  %v17235_v52 = vrot.slane %v15164_v42, 2  ;;  %vm5719_vm15 = vweird.f32 %v15183_v3 }
 0x895   : > { %17222 = vst [vmem:[#allocation28_spill] sm:$0xff] %v15299_v21  ;;  %v15311_v53 = vpop.eup %7831  ;;  %7843 = vrcp.f32 %v15284_v26  ;;  %v5651_v21 = vor.u32 1.1754944e-38, %v5650_v9  ;;  %v17230_v9 = vrot.slane %v15150_v10, 2  ;;  %v5666_v10 = vor.u32 1.1754944e-38, %v5665_v8 }
 0x896   : > { %v15323_v24 = vpop.eup %7833  ;;  %7845 = vtanh.f32 %v17225_v36  ;;  %vm5735_vm7 = vweird.f32 %v15273_v4  ;;  %vm5734_vm1 = vweird.f32 %v15212_v60  ;;  %vm5749_vm12 = vweird.f32 %v15219_v54 }
 0x897   : > { %v15331_v62 = vpop.eup %7835  ;;  %7847 = vtanh.f32 %v17226_v29  ;;  %v15357_v31 = vsel %vm5649_vm6, %v5651_v21, %v5647_v2  ;;  %v15370_v29 = vmul.f32 %v15311_v53, %v15238_v41  ;;  %v15379_v15 = vmul.f32 %v15323_v24, %v15246_v13 }
 0x898   : > { %v15337_v40 = vpop.eup %7837  ;;  %7849 = vtanh.f32 %v17227_v25  ;;  %v17233_v25 = vrot.slane %v15152_v38, 2  ;;  %v5673_v21 = vadd.f32 %v15200_v32, %v5672_v0  ;;  %v15390_v8 = vmul.f32 %v15331_v62, %v15252_v22 }
 0x899   : > { %v15353_v18 = vpop.eup %7839  ;;  %7851 = vtanh.f32 %v17230_v9  ;;  %v5678_v9 = vand.u32 2147483647, %v15173_v16  ;;  %v15399_v0 = vmul.f32 %v15337_v40, %v15257_v7  ;;  %vm5720_vm6 = vweird.f32 %v15217_v28 }
 0x89a   : > { %v15366_v43 = vpop.eup %7841  ;;  %7853 = vtanh.f32 %v17233_v25  ;;  %v15403_v46 = vmul.f32 %v15353_v18, %v15270_v55  ;;  %vm15533_vm4 = vmor %vm5719_vm15, %vm5720_vm6  ;;  %vm5820_vm2 = vweird.f32 %v15228_v39 }
 0x89b   : > { %v15375_v2 = vpop.eup %7843  ;;  %7855 = vtanh.f32 %v17234_v63  ;;  %v15408_v63 = vsel %vm15362_vm0, %v5666_v10, %v5662_v34  ;;  %v15415_v38 = vmul.f32 %v15366_v43, %v15279_v44  ;;  %v5687_v34 = vmul.f32 %v15205_v48, %v5686_v58 }
 0x89c   : > { %v15385_v17 = vpop.eup %7845  ;;  %7857 = vtanh.f32 %v17235_v52  ;;  %v5680_v52 = vand.u32 2147483648, %v15173_v16  ;;  %vm15439_vm14 = vcmp.eq.f32.partialorder %v5678_v9, 8.507059e+37  ;;  %v17243_v10 = vsub.f32 1.0, %v15268_v11 }
 0x89d   : > { %v15395_v25 = vpop.eup %7847  ;;  %7859 = vpow2.f32 %v15233_v56  ;;  %v5688_v11 = vadd.f32 %v15205_v48, %v5687_v34  ;;  %v5693_v16 = vand.u32 2147483647, %v15176_v61 }
 0x89e   : > { %v15410_v42 = vpop.eup %7849  ;;  %7861 = vpow2.f32 %v15235_v27  ;;  %v5677_v27 = vsel %vm15422_vm3, %v15200_v32, %v5673_v21  ;;  %v15452_v21 = vmul.f32 %v15375_v2, %v15284_v26  ;;  %v5695_v32 = vand.u32 2147483648, %v15176_v61  ;;  %vm15564_vm3 = vmor %vm5734_vm1, %vm5735_vm7 }
 0x89f   : > { %17236 = vst [vmem:[#allocation29_spill] sm:$0xff] %v15410_v42  ;;  %v15427_v49 = vpop.eup %7851  ;;  %7863 = vpow2.f32 %v15240_v50  ;;  %v5702_v50 = vmul.f32 %v15210_v6, %v17243_v10  ;;  %v5681_v10 = vor.u32 1.1754944e-38, %v5680_v52  ;;  %v5710_v52 = vand.u32 2147483648, %v15179_v1 }
 0x8a0   : > { %17239 = vst [vmem:[#allocation30_spill] sm:$0xff] %v15427_v49  ;;  %v15435_v45 = vpop.eup %7853  ;;  %7865 = vpow2.f32 %v15242_v5  ;;  %vm15492_vm13 = vcmp.eq.f32.partialorder %v5693_v16, 8.507059e+37  ;;  %vm5850_vm1 = vweird.f32 %v15246_v13 }
 0x8a1   : > { %17240 = vst [vmem:[#allocation31_spill] sm:$0xff] %v15435_v45  ;;  %v15446_v49 = vpop.eup %7855  ;;  %7867 = vpow2.f32 %v15248_v37  ;;  %v5703_v37 = vadd.f32 %v15210_v6, %v5702_v50  ;;  %v5711_v61 = vor.u32 1.1754944e-38, %v5710_v52  ;;  %v17253_v45 = vsub.f32 1.0, %v15304_v35 }
 0x8a2   : > { %17244 = vst [vmem:[#allocation32_spill] sm:$0xff] %v15446_v49  ;;  %v15455_v5 = vpop.eup %7857  ;;  %7869 = vpow2.f32 %v15250_v51  ;;  %v17246_v51 = vsub.f32 1.0, %v15277_v59  ;;  %v5723_v49 = vand.u32 2147483647, %v15183_v3 }
 0x8a3   : > { %17245 = vst [vmem:[#allocation33_spill] sm:$0xff] %v15455_v5  ;;  %v7860_v56 = vpop.eup %7859  ;;  %7871 = vpow2.f32 %v15255_v33  ;;  %v15474_v33 = vsel %vm15439_vm14, %v5681_v10, %v5677_v27  ;;  %v5696_v5 = vor.u32 1.1754944e-38, %v5695_v32  ;;  %v5732_v42 = vmul.f32 %v15273_v4, %v17253_v45 }
 0x8a4   : > { %v7862_v36 = vpop.eup %7861  ;;  %v5717_v34 = vmul.f32 %v15217_v28, %v17246_v51  ;;  %7873 = vpow2.f32 %v15259_v19  ;;  %v15483_v50 = vadd.f32 1.0, %v7860_v56  ;;  %v5692_v51 = vsel %vm15478_vm11, %v15205_v48, %v5688_v11 }
 0x8a5   : > { %v7864_v9 = vpop.eup %7863  ;;  %v5708_v19 = vand.u32 2147483647, %v15179_v1  ;;  %v15490_v58 = vadd.f32 1.0, %v7862_v36  ;;  %v5707_v1 = vsel %vm15498_vm10, %v15210_v6, %v5703_v37  ;;  %v5725_v6 = vand.u32 2147483648, %v15183_v3 }
 0x8a6   : > { %v7866_v59 = vpop.eup %7865  ;;  %v15503_v11 = vadd.f32 1.0, %v7864_v9  ;;  %v5718_v36 = vadd.f32 %v15217_v28, %v5717_v34  ;;  %7875 = vrcp.f32 %v15483_v50  ;;  %v15525_v52 = vsel %vm15492_vm13, %v5696_v5, %v5692_v51 }
 0x8a7   : > { %v7868_v27 = vpop.eup %7867  ;;  %v15510_v16 = vadd.f32 1.0, %v7866_v59  ;;  %vm5709_vm5 = vcmp.eq.f32.partialorder %v5708_v19, 8.507059e+37  ;;  %7877 = vrcp.f32 %v15490_v58  ;;  %v17256_v5 = vsub.f32 1.0, %v15308_v12 }
 0x8a8   : > { %v7870_v48 = vpop.eup %7869  ;;  %v15516_v9 = vadd.f32 1.0, %v7868_v27  ;;  %v15527_v59 = vsel %vm5709_vm5, %v5711_v61, %v5707_v1  ;;  %7879 = vrcp.f32 %v15503_v11  ;;  %v5722_v19 = vsel %vm15533_vm4, %v15217_v28, %v5718_v36 }
 0x8a9   : > { %v7872_v32 = vpop.eup %7871  ;;  %v15520_v34 = vadd.f32 1.0, %v7870_v48  ;;  %v5747_v51 = vmul.f32 %v15282_v23, %v17256_v5  ;;  %7881 = vrcp.f32 %v15510_v16  ;;  %vm5724_vm0 = vcmp.eq.f32.partialorder %v5723_v49, 8.507059e+37 }
 0x8aa   : > { %v7874_v37 = vpop.eup %7873  ;;  %v15537_v45 = vadd.f32 1.0, %v7872_v32  ;;  %v5733_v3 = vadd.f32 %v15273_v4, %v5732_v42  ;;  %7883 = vrcp.f32 %v15516_v9  ;;  %v5726_v10 = vor.u32 1.1754944e-38, %v5725_v6 }
 0x8ab   : > { %v15549_v27 = vadd.f32 1.0, %v7874_v37  ;;  %v5740_v56 = vand.u32 2147483648, %v15212_v60  ;;  %7885 = vrcp.f32 %v15520_v34  ;;  %v5738_v12 = vand.u32 2147483647, %v15212_v60 }
 0x8ac   : > { %v17257_v28 = vsub.f32 1.0, %v15343_v30  ;;  %v15559_v42 = vpop.eup %7875  ;;  %7887 = vrcp.f32 %v15537_v45  ;;  %v15562_v48 = vsel %vm5724_vm0, %v5726_v10, %v5722_v19  ;;  %v5748_v36 = vadd.f32 %v15282_v23, %v5747_v51 }
 0x8ad   : > { %vm5750_vm14 = vweird.f32 %v15282_v23  ;;  %v15570_v32 = vpop.eup %7877  ;;  %v5737_v60 = vsel %vm15564_vm3, %v15273_v4, %v5733_v3  ;;  %v5755_v30 = vand.u32 2147483648, %v15219_v54  ;;  %v17260_v61 = vsub.f32 1.0, %v15370_v29 }
 0x8ae   : > { %v5818_v49 = vmul.f32 %v15293_v57, %v17257_v28  ;;  %v15580_v37 = vpop.eup %7879  ;;  %7889 = vrcp.f32 %v15549_v27  ;;  %v5741_v35 = vor.u32 1.1754944e-38, %v5740_v56  ;;  %v5753_v19 = vand.u32 2147483647, %v15219_v54  ;;  %vm15587_vm9 = vmor %vm5749_vm12, %vm5750_vm14 }
 0x8af   : > { %v5833_v6 = vmul.f32 %v15311_v53, %v17260_v61  ;;  %v5824_v5 = vand.u32 2147483647, %v15228_v39  ;;  %v15585_v51 = vpop.eup %7881  ;;  %vm5739_vm8 = vcmp.eq.f32.partialorder %v5738_v12, 8.507059e+37  ;;  %vm5821_vm11 = vweird.f32 %v15293_v57 }
 0x8b0   : > { %v5819_v29 = vadd.f32 %v15293_v57, %v5818_v49  ;;  %v5826_v3 = vand.u32 2147483648, %v15228_v39  ;;  %v15594_v10 = vpop.eup %7883  ;;  %v15596_v56 = vsel %vm5739_vm8, %v5741_v35, %v5737_v60  ;;  %v5752_v54 = vsel %vm15587_vm9, %v15282_v23, %v5748_v36  ;;  %vm15612_vm15 = vmor %vm5820_vm2, %vm5821_vm11 }
 0x8b1   : > { %17263 = vst [vmem:[#allocation34_spill] sm:$0xff] %v15596_v56  ;;  %v17264_v12 = vsub.f32 1.0, %v15379_v15  ;;  %v15605_v1 = vpop.eup %7885  ;;  %v5756_v49 = vor.u32 1.1754944e-38, %v5755_v30  ;;  %v5834_v61 = vadd.f32 %v15311_v53, %v5833_v6  ;;  %vm5836_vm13 = vweird.f32 %v15311_v53 }
 0x8b2   : > { %v5839_v60 = vand.u32 2147483647, %v15238_v41  ;;  %v15610_v35 = vpop.eup %7887  ;;  %vm5754_vm10 = vcmp.eq.f32.partialorder %v5753_v19, 8.507059e+37  ;;  %vm15616_vm6 = vcmp.eq.f32.partialorder %v5824_v5, 8.507059e+37  ;;  %v5841_v15 = vand.u32 2147483648, %v15238_v41 }
 0x8b3   : > { %v5848_v28 = vmul.f32 %v15323_v24, %v17264_v12  ;;  %v17269_v36 = vsub.f32 1.0, %v15390_v8  ;;  %v15624_v6 = vsel %vm5754_vm10, %v5756_v49, %v5752_v54  ;;  %v5823_v19 = vsel %vm15612_vm15, %v15293_v57, %v5819_v29 }
 0x8b4   : > { %v5827_v4 = vor.u32 1.1754944e-38, %v5826_v3  ;;  %vm5835_vm5 = vweird.f32 %v15238_v41  ;;  %v15630_v12 = vpop.eup %7889  ;;  %vm5851_vm0 = vweird.f32 %v15323_v24  ;;  %v5854_v8 = vand.u32 2147483647, %v15246_v13 }
 0x8b5   : > { %v5863_v30 = vmul.f32 %v15331_v62, %v17269_v36  ;;  %vm15632_vm4 = vmor %vm5835_vm5, %vm5836_vm13  ;;  %v5849_v56 = vadd.f32 %v15323_v24, %v5848_v28  ;;  %v5856_v54 = vand.u32 2147483648, %v15246_v13  ;;  %vm5840_vm7 = vcmp.eq.f32.partialorder %v5839_v60, 8.507059e+37 }
 0x8b6   : > { %v5838_v57 = vsel %vm15632_vm4, %v15311_v53, %v5834_v61  ;;  %v5869_v41 = vand.u32 2147483647, %v15252_v22  ;;  %v5842_v29 = vor.u32 1.1754944e-38, %v5841_v15  ;;  %vm5866_vm3 = vweird.f32 %v15331_v62  ;;  %vm15654_vm14 = vmor %vm5850_vm1, %vm5851_vm0 }
 0x8b7   : > { %v5864_v3 = vadd.f32 %v15331_v62, %v5863_v30  ;;  %v17272_v28 = vsub.f32 1.0, %v15399_v0  ;;  %v15652_v23 = vsel %vm15616_vm6, %v5827_v4, %v5823_v19  ;;  %vm5865_vm12 = vweird.f32 %v15252_v22 }
 0x8b8   : > { %v5871_v13 = vand.u32 2147483648, %v15252_v22  ;;  %v17275_v61 = vsub.f32 1.0, %v15403_v46  ;;  %v15663_v15 = vsel %vm5840_vm7, %v5842_v29, %v5838_v57  ;;  %v5853_v0 = vsel %vm15654_vm14, %v15323_v24, %v5849_v56  ;;  %vm15668_vm9 = vmor %vm5865_vm12, %vm5866_vm3 }
 0x8b9   : > { %v5878_v49 = vmul.f32 %v15337_v40, %v17272_v28  ;;  %vm5855_vm8 = vcmp.eq.f32.partialorder %v5854_v8, 8.507059e+37  ;;  %v5857_v39 = vor.u32 1.1754944e-38, %v5856_v54  ;;  %vm15672_vm11 = vcmp.eq.f32.partialorder %v5869_v41, 8.507059e+37 }
 0x8ba   : > { %v5893_v60 = vmul.f32 %v15353_v18, %v17275_v61  ;;  %vm5880_vm2 = vweird.f32 %v15257_v7  ;;  %vm5881_vm13 = vweird.f32 %v15337_v40  ;;  %v5884_v22 = vand.u32 2147483647, %v15257_v7 }
 0x8bb   : > { %v5868_v24 = vsel %vm15668_vm9, %v15331_v62, %v5864_v3  ;;  %v5879_v46 = vadd.f32 %v15337_v40, %v5878_v49  ;;  %v5886_v56 = vand.u32 2147483648, %v15257_v7  ;;  %v5899_v19 = vand.u32 2147483647, %v15270_v55  ;;  %vm15705_vm6 = vmor %vm5880_vm2, %vm5881_vm13 }
 0x8bc   : > { %v5872_v4 = vor.u32 1.1754944e-38, %v5871_v13  ;;  %v5894_v5 = vadd.f32 %v15353_v18, %v5893_v60  ;;  %vm5896_vm10 = vweird.f32 %v15353_v18  ;;  %v17280_v8 = vsub.f32 1.0, %v15415_v38 }
 0x8bd   : > { %v15690_v57 = vsel %vm5855_vm8, %v5857_v39, %v5853_v0  ;;  %vm5895_vm15 = vweird.f32 %v15270_v55  ;;  %v6008_v62 = vmul.f32 %v15559_v42, %v15483_v50  ;;  %v6023_v41 = vmul.f32 %v15570_v32, %v15490_v58 }
 0x8be   : > { %v5908_v54 = vmul.f32 %v15366_v43, %v17280_v8  ;;  %v15699_v29 = vsel %vm15672_vm11, %v5872_v4, %v5868_v24  ;;  %vm15709_vm5 = vcmp.eq.f32.partialorder %v5884_v22, 8.507059e+37  ;;  %v5901_v28 = vand.u32 2147483648, %v15270_v55  ;;  %vm15719_vm4 = vmor %vm5895_vm15, %vm5896_vm10 }
 0x8bf   : > { %v6038_v49 = vmul.f32 %v15580_v37, %v15503_v11  ;;  %v5883_v53 = vsel %vm15705_vm6, %v15337_v40, %v5879_v46  ;;  %v5887_v13 = vor.u32 1.1754944e-38, %v5886_v56  ;;  %vm15723_vm0 = vcmp.eq.f32.partialorder %v5899_v19, 8.507059e+37 }
 0x8c0   : > { %v17289_v60 = vsub.f32 1.0, %v15452_v21  ;;  %v5898_v0 = vsel %vm15719_vm4, %v15353_v18, %v5894_v5  ;;  %v5909_v39 = vadd.f32 %v15366_v43, %v5908_v54  ;;  %vm5911_vm7 = vweird.f32 %v15366_v43 }
 0x8c1   : > { %v5914_v40 = vand.u32 2147483647, %v15279_v44  ;;  %v5916_v36 = vand.u32 2147483648, %v15279_v44  ;;  %v5929_v30 = vand.u32 2147483647, %v15284_v26  ;;  %v6009_v22 = vsub.f32 1.0, %v6008_v62 }
 0x8c2   : > { %v5923_v55 = vmul.f32 %v15375_v2, %v17289_v60  ;;  %v6024_v24 = vsub.f32 1.0, %v6023_v41  ;;  %v5902_v46 = vor.u32 1.1754944e-38, %v5901_v28  ;;  %vm5910_vm1 = vweird.f32 %v15279_v44 }
 0x8c3   : > { %v6039_v21 = vsub.f32 1.0, %v6038_v49  ;;  %v6053_v56 = vmul.f32 %v15585_v51, %v15510_v16  ;;  %v15743_v18 = vsel %vm15709_vm5, %v5887_v13, %v5883_v53  ;;  %vm15745_vm3 = vmor %vm5910_vm1, %vm5911_vm7  ;;  %vm5925_vm14 = vweird.f32 %v15284_v26 }
 0x8c4   : > { %v5924_v4 = vadd.f32 %v15375_v2, %v5923_v55  ;;  %vm5926_vm12 = vweird.f32 %v15375_v2  ;;  %v15754_v44 = vsel %vm15723_vm0, %v5902_v46, %v5898_v0  ;;  %v5913_v5 = vsel %vm15745_vm3, %v15366_v43, %v5909_v39 }
 0x8c5   : > { %vm5915_vm8 = vcmp.eq.f32.partialorder %v5914_v40, 8.507059e+37  ;;  %v5931_v8 = vand.u32 2147483648, %v15284_v26  ;;  %v5917_v54 = vor.u32 1.1754944e-38, %v5916_v36  ;;  %vm15760_vm9 = vcmp.eq.f32.partialorder %v5929_v30, 8.507059e+37  ;;  %vm15766_vm11 = vmor %vm5925_vm14, %vm5926_vm12 }
 0x8c6   : > { %v6010_v41 = vmul.f32 %v15559_v42, %v6009_v22  ;;  %v6025_v38 = vmul.f32 %v15570_v32, %v6024_v24  ;;  %vm6012_vm2 = vweird.f32 %v15483_v50  ;;  %vm6013_vm13 = vweird.f32 %v15559_v42 }
 0x8c7   : > { %v6040_v43 = vmul.f32 %v15580_v37, %v6039_v21  ;;  %v6054_v26 = vsub.f32 1.0, %v6053_v56  ;;  %v5928_v28 = vsel %vm15766_vm11, %v15375_v2, %v5924_v4  ;;  %v6016_v49 = vand.u32 2147483647, %v15483_v50  ;;  %vm15795_vm5 = vmor %vm6012_vm2, %vm6013_vm13  ;;  %v17314_v56 = vld [vmem:[#allocation26_spill] sm:$0xff] }
 0x8c8   : > { %v6018_v53 = vand.u32 2147483648, %v15483_v50  ;;  %v6031_v13 = vand.u32 2147483647, %v15490_v58  ;;  %v5918_v7 = vsel %vm5915_vm8, %v5917_v54, %v5913_v5  ;;  %v5932_v61 = vor.u32 1.1754944e-38, %v5931_v8 }
 0x8c9   : > { %vm6027_vm10 = vweird.f32 %v15490_v58  ;;  %v6033_v60 = vand.u32 2147483648, %v15490_v58  ;;  %v6011_v55 = vadd.f32 %v15559_v42, %v6010_v41  ;;  %v6026_v0 = vadd.f32 %v15570_v32, %v6025_v38  ;;  %v17319_v58 = vld [vmem:[#allocation34_spill] sm:$0xff] }
 0x8ca   : > { %vm6028_vm15 = vweird.f32 %v15570_v32  ;;  %v6068_v2 = vmul.f32 %v15594_v10, %v15516_v9  ;;  %v5933_v39 = vsel %vm15760_vm9, %v5932_v61, %v5928_v28  ;;  %v6041_v40 = vadd.f32 %v15580_v37, %v6040_v43 }
 0x8cb   : > { %vm6043_vm6 = vweird.f32 %v15580_v37  ;;  %v6055_v36 = vmul.f32 %v15585_v51, %v6054_v26  ;;  %vm15799_vm4 = vcmp.eq.f32.partialorder %v6016_v49, 8.507059e+37  ;;  %v6019_v24 = vor.u32 1.1754944e-38, %v6018_v53  ;;  %vm15810_vm7 = vmor %vm6027_vm10, %vm6028_vm15 }
 0x8cc   : > { %vm15803_vm0 = vcmp.eq.f32.partialorder %v6031_v13, 8.507059e+37  ;;  %v6048_v21 = vand.u32 2147483648, %v15503_v11  ;;  %v6034_v50 = vor.u32 1.1754944e-38, %v6033_v60  ;;  %vm6042_vm1 = vweird.f32 %v15503_v11 }
 0x8cd   : > { %v6046_v19 = vand.u32 2147483647, %v15503_v11  ;;  %v6063_v4 = vand.u32 2147483648, %v15510_v16  ;;  %v6015_v5 = vsel %vm15795_vm5, %v15559_v42, %v6011_v55  ;;  %v6030_v8 = vsel %vm15810_vm7, %v15570_v32, %v6026_v0  ;;  %vm15823_vm3 = vmor %vm6042_vm1, %vm6043_vm6 }
 0x8ce   : > { %vm6057_vm14 = vweird.f32 %v15510_v16  ;;  %v6069_v54 = vsub.f32 1.0, %v6068_v2  ;;  %v6045_v11 = vsel %vm15823_vm3, %v15580_v37, %v6041_v40  ;;  %v6056_v62 = vadd.f32 %v15585_v51, %v6055_v36 }
 0x8cf   : > { %vm6058_vm12 = vweird.f32 %v15585_v51  ;;  %v6061_v42 = vand.u32 2147483647, %v15510_v16  ;;  %v6049_v41 = vor.u32 1.1754944e-38, %v6048_v21  ;;  %v6078_v32 = vand.u32 2147483648, %v15516_v9 }
 0x8d0   : > { %v6083_v38 = vmul.f32 %v15605_v1, %v15520_v34  ;;  %v6098_v3 = vmul.f32 %v15610_v35, %v15537_v45  ;;  %v15841_v43 = vsel %vm15799_vm4, %v6019_v24, %v6015_v5  ;;  %v15845_v37 = vsel %vm15803_vm0, %v6034_v50, %v6030_v8  ;;  %vm15851_vm9 = vmor %vm6057_vm14, %vm6058_vm12  ;;  %v17311_v24 = vld [vmem:[#allocation24_spill] sm:$0xff] }
 0x8d1   : > { %vm6047_vm8 = vcmp.eq.f32.partialorder %v6046_v19, 8.507059e+37  ;;  %v6064_v26 = vor.u32 1.1754944e-38, %v6063_v4  ;;  %v6070_v53 = vmul.f32 %v15594_v10, %v6069_v54  ;;  %vm6073_vm11 = vweird.f32 %v15594_v10  ;;  %v17320_v54 = vld [vmem:[#allocation32_spill] sm:$0xff] }
 0x8d2   : > { %v15847_v28 = vsel %vm6047_vm8, %v6049_v41, %v6045_v11  ;;  %v6076_v13 = vand.u32 2147483647, %v15516_v9  ;;  %v6113_v61 = vmul.f32 %v15630_v12, %v15549_v27  ;;  %v6060_v60 = vsel %vm15851_vm9, %v15585_v51, %v6056_v62  ;;  %v17310_v51 = vld [vmem:[#allocation23_spill] sm:$0xff] }
 0x8d3   : > { %vm15863_vm2 = vcmp.eq.f32.partialorder %v6061_v42, 8.507059e+37  ;;  %v6127_v16 = vmul.f32 %v15652_v23, %v14979_v14  ;;  %v6128_v0 = vmul.f32 %v15663_v15, %v14981_v47  ;;  %v6129_v2 = vmul.f32 %v15690_v57, %v14983_v20  ;;  %v17312_v14 = vld [vmem:[#allocation28_spill] sm:$0xff]  ;;  %v17313_v57 = vld [vmem:[#allocation25_spill] sm:$0xff] }
 0x8d4   : > { %vm6072_vm13 = vweird.f32 %v15516_v9  ;;  %v15874_v40 = vor.u32 1.1754944e-38, %v6078_v32  ;;  %v6084_v36 = vsub.f32 1.0, %v6083_v38  ;;  %v6099_v30 = vsub.f32 1.0, %v6098_v3  ;;  %v17323_v42 = vld [vmem:[#allocation33_spill] sm:$0xff] }
 0x8d5   : > { %v6130_v22 = vmul.f32 %v15699_v29, %v17310_v51  ;;  %v6131_v46 = vmul.f32 %v15743_v18, %v17311_v24  ;;  %v6135_v23 = vmul.f32 %v17312_v14, %v15357_v31  ;;  %v6136_v47 = vmul.f32 %v15385_v17, %v15408_v63  ;;  %v17315_v29 = vld [vmem:[#allocation29_spill] sm:$0xff]  ;;  %v17316_v18 = vld [vmem:[#allocation30_spill] sm:$0xff]  ;;  %vm15937_vm5 = vmor %vm6072_vm13, %vm6073_vm11 }
 0x8d6   : > { %v6137_v20 = vmul.f32 %v15395_v25, %v15474_v33  ;;  %v6114_v15 = vsub.f32 1.0, %v6113_v61  ;;  %v6132_v21 = vmul.f32 %v15754_v44, %v17313_v57  ;;  %v6133_v50 = vmul.f32 %v5918_v7, %v17314_v56  ;;  %v17317_v33 = vld [vmem:[#allocation27_spill] sm:$0xff] }
 0x8d7   : > { %v6138_v19 = vmul.f32 %v17315_v29, %v15525_v52  ;;  %vm6087_vm10 = vweird.f32 %v15520_v34  ;;  %v6139_v31 = vmul.f32 %v17316_v18, %v15527_v59  ;;  %v15894_v4 = vadd.f32 %v6135_v23, %v6127_v16  ;;  %v17318_v7 = vld [vmem:[#allocation31_spill] sm:$0xff] }
 0x8d8   : > { %v15896_v17 = vadd.f32 %v6136_v47, %v6128_v0  ;;  %v15898_v63 = vadd.f32 %v6137_v20, %v6129_v2  ;;  %v6071_v25 = vadd.f32 %v15594_v10, %v6070_v53  ;;  %v6134_v44 = vmul.f32 %v5933_v39, %v17317_v33 }
 0x8d9   : > { %v6140_v5 = vmul.f32 %v17318_v7, %v15562_v48  ;;  %v15904_v8 = vadd.f32 %v6138_v19, %v6130_v22  ;;  %v6085_v52 = vmul.f32 %v15605_v1, %v6084_v36  ;;  %v6141_v59 = vmul.f32 %v17320_v54, %v17319_v58 }
 0x8da   : > { %v15909_v11 = vadd.f32 %v6139_v31, %v6131_v46  ;;  %7891 = vtanh.f32 %v15894_v4  ;;  %vm15912_vm15 = vcmp.eq.f32.partialorder %v6076_v13, 8.507059e+37  ;;  %v6100_v39 = vmul.f32 %v15610_v35, %v6099_v30 }
 0x8db   : > { %v6142_v48 = vmul.f32 %v17323_v42, %v15624_v6  ;;  %v15919_v41 = vadd.f32 %v6140_v5, %v6132_v21  ;;  %7893 = vtanh.f32 %v15896_v17  ;;  %vm6088_vm6 = vweird.f32 %v15605_v1 }
 0x8dc   : > { %v6115_v32 = vmul.f32 %v15630_v12, %v6114_v15  ;;  %v15924_v38 = vadd.f32 %v6141_v59, %v6133_v50  ;;  %7895 = vtanh.f32 %v15898_v63  ;;  %v6065_v3 = vsel %vm15863_vm2, %v6064_v26, %v6060_v60  ;;  %vm15959_vm1 = vmor %vm6087_vm10, %vm6088_vm6 }
 0x8dd   : > { %v6091_v49 = vand.u32 2147483647, %v15520_v34  ;;  %v15930_v53 = vadd.f32 %v6142_v48, %v6134_v44  ;;  %7897 = vtanh.f32 %v15904_v8  ;;  %v6086_v13 = vadd.f32 %v15605_v1, %v6085_v52 }
 0x8de   : > { %v6093_v61 = vand.u32 2147483648, %v15520_v34  ;;  %vm6102_vm4 = vweird.f32 %v15537_v45  ;;  %7899 = vtanh.f32 %v15909_v11  ;;  %v6075_v26 = vsel %vm15937_vm5, %v15594_v10, %v6071_v25 }
 0x8df   : > { %v6101_v60 = vadd.f32 %v15610_v35, %v6100_v39  ;;  %vm6103_vm0 = vweird.f32 %v15610_v35  ;;  %7901 = vtanh.f32 %v15919_v41  ;;  %v6108_v55 = vand.u32 2147483648, %v15537_v45 }
 0x8e0   : > { %v7892_v9 = vpop.eup %7891  ;;  %v6116_v16 = vadd.f32 %v15630_v12, %v6115_v32  ;;  %vm6118_vm7 = vweird.f32 %v15630_v12  ;;  %7903 = vtanh.f32 %v15924_v38  ;;  %v6106_v2 = vand.u32 2147483647, %v15537_v45  ;;  %vm15974_vm3 = vmor %vm6102_vm4, %vm6103_vm0 }
 0x8e1   : > { %v7894_v0 = vpop.eup %7893  ;;  %v6123_v36 = vand.u32 2147483648, %v15549_v27  ;;  %7905 = vtanh.f32 %v15930_v53  ;;  %v6159_v30 = vmul.f32 %v7892_v9, %v15841_v43  ;;  %v6090_v22 = vsel %vm15959_vm1, %v15605_v1, %v6086_v13 }
 0x8e2   : > { %v7896_v51 = vpop.eup %7895  ;;  %vm6117_vm14 = vweird.f32 %v15549_v27  ;;  %v6121_v24 = vand.u32 2147483647, %v15549_v27  ;;  %v6160_v46 = vmul.f32 %v7894_v0, %v15845_v37  ;;  %vm6092_vm12 = vcmp.eq.f32.partialorder %v6091_v49, 8.507059e+37 }
 0x8e3   : > { %v7898_v43 = vpop.eup %7897  ;;  %v6094_v14 = vor.u32 1.1754944e-38, %v6093_v61  ;;  %v6105_v1 = vsel %vm15974_vm3, %v15610_v35, %v6101_v60  ;;  %vm15986_vm8 = vmor %vm6117_vm14, %vm6118_vm7  ;;  %v6161_v23 = vmul.f32 %v7896_v51, %v15847_v28  ;;  %6175 = vst [vmem:[#allocation1] ss:$9 sm:$0xff] %v6159_v30  ;;  %v6080_v27 = vsel %vm15912_vm15, %v15874_v40, %v6075_v26 }
 0x8e4   : > { %v7900_v47 = vpop.eup %7899  ;;  %v6109_v37 = vor.u32 1.1754944e-38, %v6108_v55  ;;  %v6120_v20 = vsel %vm15986_vm8, %v15630_v12, %v6116_v16  ;;  %v6162_v35 = vmul.f32 %v7898_v43, %v6065_v3  ;;  %6177 = vst [vmem:[#allocation1 + $0x1] ss:$9 sm:$0xff] %v6160_v46  ;;  %vm6107_vm9 = vcmp.eq.f32.partialorder %v6106_v2, 8.507059e+37 }
 0x8e5   : > { %v7902_v15 = vpop.eup %7901  ;;  %v6095_v57 = vsel %vm6092_vm12, %v6094_v14, %v6090_v22  ;;  %v6124_v21 = vor.u32 1.1754944e-38, %v6123_v36  ;;  %v6163_v56 = vmul.f32 %v7900_v47, %v6080_v27  ;;  %6179 = vst [vmem:[#allocation1 + $0x2] ss:$9 sm:$0xff] %v6161_v23  ;;  %vm6122_vm11 = vcmp.eq.f32.partialorder %v6121_v24, 8.507059e+37 }
 0x8e6   : > { %v7904_v28 = vpop.eup %7903  ;;  %v6110_v50 = vsel %vm6107_vm9, %v6109_v37, %v6105_v1  ;;  %v6164_v29 = vmul.f32 %v7902_v15, %v6095_v57  ;;  %6181 = vst [vmem:[#allocation1 + $0x3] ss:$9 sm:$0xff] %v6162_v35 }
 0x8e7   : > { %v7906_v40 = vpop.eup %7905  ;;  %v6125_v19 = vsel %vm6122_vm11, %v6124_v21, %v6120_v20  ;;  %v6165_v12 = vmul.f32 %v7904_v28, %v6110_v50  ;;  %6183 = vst [vmem:[#allocation1 + $0x4] ss:$9 sm:$0xff] %v6163_v56 }
 0x8e8   : > { %v6166_v18 = vmul.f32 %v7906_v40, %v6125_v19  ;;  %6185 = vst [vmem:[#allocation1 + $0x5] ss:$9 sm:$0xff] %v6164_v29 }
 0x8e9   : > { %6187 = vst [vmem:[#allocation1 + $0x6] ss:$9 sm:$0xff] %v6165_v12 }
 0x8ea   : > { %6189 = vst [vmem:[#allocation1 + $0x7] ss:$9 sm:$0xff] %v6166_v18 }
 0x8f1   : > { %v6190_v31 = vld [vmem:[#allocation1] sm:$0xff] }
 0x8f2   : > { %6192 = vst [vmem:[%s8263_s25] sm:$0xff] %v6190_v31 }
 0x8f3   : > { %6201 = vst [vmem:[#allocation1] ss:$9 sm:$0xff] %v15894_v4 }
 0x8f4   : > { %7994 = shalt.err (!%p7991_p6)
}
 0x8f5   : > { %6770 = dma.vmem_to_hbm [thread:$0]  (%p8188_p7), %s6233_s27, 128, %s6235_s28, %s6220_s4   ;;  %6203 = vst [vmem:[#allocation1 + $0x1] ss:$9 sm:$0xff] %v15896_v17 }
 0x8f6   : > { %6205 = vst [vmem:[#allocation1 + $0x2] ss:$9 sm:$0xff] %v15898_v63 }
 0x8f7   : > { %6207 = vst [vmem:[#allocation1 + $0x3] ss:$9 sm:$0xff] %v15904_v8 }
 0x8f8   : > { %6209 = vst [vmem:[#allocation1 + $0x4] ss:$9 sm:$0xff] %v15909_v11 }
 0x8f9   : > { %6211 = vst [vmem:[#allocation1 + $0x5] ss:$9 sm:$0xff] %v15919_v41 }
 0x8fa   : > { %6213 = vst [vmem:[#allocation1 + $0x6] ss:$9 sm:$0xff] %v15924_v38 }
 0x8fb   : > { %6215 = vst [vmem:[#allocation1 + $0x7] ss:$9 sm:$0xff] %v15930_v53 }
 0x902   : > { %v6216_v4 = vld [vmem:[#allocation1] sm:$0xff] }
 0x903   : > { %6218 = vst [vmem:[#allocation2] sm:$0xff] %v6216_v4 }
 0x904 PF: > { %s17334_s9 = sld [smem:[#allocation12_spill]]  ;;  %p6787_p7 = scmp.ge.s32.totalorder %s8093_s19, 2 }
 0x906   : > { %p6781_p8 = pnand %p6787_p7, %p8193_p9 }
 0x908   : > { %p6782_p10 = pneg %p6781_p8 }
 0x90a   : > { %s6246_s21 = sand.u32 1, %s17334_s9  }
 0x90b   : > { %s6247_s2 = scalar_lea.sflag [#allocation5], %s6246_s21 }
 0x90c   : > { %8048 = dma.done.wait (%p6782_p10), %s6247_s2, 128  }
 0x90d   : > { %8050 = vsyncadd (%p6782_p10), %s6247_s2, 4294967168  ;;  %s19_s19 = sadd.s32 1, %s8093_s19   ;;  %s17336_s15 = sld [smem:[#allocation13_spill]] }
 0x90e   : > { %p16_p12 = scmp.ge.s32.totalorder %s19_s19, 6   ;;  %s17337_s17 = sld [smem:[#allocation16_spill]] }
 0x90f   : > { %s17338_s25 = sld [smem:[#allocation17_spill]]  ;;  %s17339_s9 = smov %s8057_s10 }
 0x910   : > { %s17340_s10 = smov %s8061_s11  ;;  %s17341_s11 = smov %s8234_s5 }
 0x911   : > { %s17342_s12 = smov %s8069_s13  ;;  %s17343_s13 = smov %s8073_s14 }
 0x912   : > { %s17344_s14 = smov %s8237_s6  ;;  %s17345_s16 = smov %s8089_s18 }
 0x913   :  { %18 = sbr.rel (!%p16_p12) target bundleno = 13 (0xd), region = 158 }
 0x915   : > { %s17346_s18 = smov %s17338_s25 }
 0x918   :  { %6253 = vsyncpa [#allocation4], 1 }
 0x919   :  { %6255 = vsyncpa [#allocation4 + $0x1], 1 }
 0x91a   :  { %6256 = vsyncpa [#allocation7], 1 }
 0x91b   :  { %6257 = vsyncpa [#allocation5], 1 }
 0x91c   :  { %6259 = vsyncpa [#allocation5 + $0x1], 1 }

</bundles_post_ra>
